<compile_context>
chip_gen: v7x
topology: tpu7x:2x2x1
jax: 0.10.0
libtpu: 0.0.40
codegen_flags: <defaults>
</compile_context>

<pallas_src>
import functools
import itertools

import numpy as np
import jax
import jax.numpy as jnp
from jax.experimental import pallas as pl
from jax.experimental.pallas import tpu as pltpu

# ---- model hyper-parameters (consistent with GraphNet.__init__) ----
N_CONST   = 8                        # n_constituents
P_FEAT    = 4                        # len(params)
HIDDEN    = 32
DE        = 6
DO        = 8
N_TARGETS = 5
NR        = N_CONST * (N_CONST - 1)  # 56
DR, DX    = 0, 0
BATCH     = 2

_PARAM_ORDER = ('a1', 'b1', 'a2', 'b2', 'a3', 'b3',
                'wx1', 'we1', 'bo1', 'ao2', 'bo2', 'ao3', 'bo3',
                'wc1', 'bc1', 'wc2', 'bc2', 'wc3', 'bc3')


# -------------------------------------------------------------------------
# The fused kernel: (TB, P*N) -> (TB, n_targets), 2-D matmuls only.
# -------------------------------------------------------------------------
def _graphnet_kernel(xf_ref,
                     a1_ref, b1_ref, a2_ref, b2_ref, a3_ref, b3_ref,
                     wx1_ref, we1_ref, bo1_ref, ao2_ref, bo2_ref, ao3_ref, bo3_ref,
                     wc1_ref, bc1_ref, wc2_ref, bc2_ref, wc3_ref, bc3_ref,
                     out_ref):
    def dense(h, w_ref, b_ref, relu=True):
        y = jnp.dot(h, w_ref[...], preferred_element_type=jnp.float32) + b_ref[...]
        return jnp.maximum(y, 0.0) if relu else y

    xf = xf_ref[...]                                   # (TB, P*N) = x.reshape(B, 32)
    h  = dense(xf, a1_ref, b1_ref)                     # (TB, Nr*H)     fr layer 1 (+ Rr/Rs fold)
    h  = dense(h,  a2_ref, b2_ref)                     # (TB, Nr*H/2)   fr layer 2
    e  = dense(h,  a3_ref, b3_ref)                     # (TB, Nr*De)    fr layer 3  (== E, edge-major flat)

    # fo layer 1: x term + (Ebar scatter + quirky C.view) folded into we1.
    g = jnp.dot(xf, wx1_ref[...], preferred_element_type=jnp.float32)
    g = g + jnp.dot(e, we1_ref[...], preferred_element_type=jnp.float32)
    g  = jnp.maximum(g + bo1_ref[...], 0.0)            # (TB, N*H)
    g  = dense(g, ao2_ref, bo2_ref)                    # (TB, N*H/2)    fo layer 2
    o  = dense(g, ao3_ref, bo3_ref)                    # (TB, N*Do)     fo layer 3 == O.view(B, Do*N)

    c  = dense(o, wc1_ref, bc1_ref)                    # (TB, H)        fc layer 1
    c  = dense(c, wc2_ref, bc2_ref)                    # (TB, H/2)      fc layer 2
    out_ref[...] = dense(c, wc3_ref, bc3_ref, relu=False)   # (TB, n_targets)


def _round_up(v, m):
    return (v + m - 1) // m * m


def graphnet_pallas(xf, params, tile_b):
    """xf: (Bp, P*N) with Bp a multiple of tile_b -> (Bp, n_targets)."""
    Bp, F = xf.shape
    weights = [params[k] for k in _PARAM_ORDER]

    mat_keys = [k for k in _PARAM_ORDER if not k.startswith('b')]
    flops = 2 * Bp * int(sum(int(np.prod(params[k].shape)) for k in mat_keys))
    bytes_accessed = int(xf.size * 4                       # activations in
                         + sum(int(w.size) * 4 for w in weights)  # weights, loaded once
                         + Bp * N_TARGETS * 4)             # output

    in_specs = ([pl.BlockSpec((tile_b, F), lambda t: (t, 0))]
                + [pl.BlockSpec(w.shape, lambda t: (0, 0)) for w in weights])

    return pl.pallas_call(
        _graphnet_kernel,
        out_shape=jax.ShapeDtypeStruct((Bp, N_TARGETS), jnp.float32),
        grid=(Bp // tile_b,),
        in_specs=in_specs,
        out_specs=pl.BlockSpec((tile_b, N_TARGETS), lambda t: (t, 0)),
        compiler_params=pltpu.CompilerParams(
            dimension_semantics=("parallel",),
            # weights ~8.4 MB (x2 buffers) + ~6 MB activations at tile_b=256;
            # 48 MB fits v5e/v6e (128 MiB) and v7x (64 MiB) with headroom.
            vmem_limit_bytes=48 * 1024 * 1024),
        cost_estimate=pl.CostEstimate(flops=flops, transcendentals=0,
                                      bytes_accessed=bytes_accessed),
    )(xf, *weights)


def graphnet_forward(x, params, tile_b=256):
    """x: (B, P, N) -> (B, n_targets).  Semantics of GraphNet.forward (sum_O=False).

    tile_b guidance: 256 is safe on all generations; v6e (128 MiB VMEM) can use
    512-1024, v7x/v5e should stay <= 256-512 with the 48 MB vmem limit above.
    """
    B = x.shape[0]
    xf = x.reshape(B, P_FEAT * N_CONST)              # zero-copy row-major flatten of x
    tb = min(_round_up(tile_b, 8), _round_up(B, 8))  # batch tile, multiple of 8 sublanes
    Bp = _round_up(B, tb)
    if Bp != B:
        xf = jnp.pad(xf, ((0, Bp - B), (0, 0)))      # pad batch; padded rows sliced off below
    out = graphnet_pallas(xf, params, tb)
    return out[:B]


# -------------------------------------------------------------------------
# Parameter / constant construction (deterministic, torch-style layouts)
# -------------------------------------------------------------------------
def assign_matrices(n):
    nr = n * (n - 1)
    Rr = np.zeros((n, nr), dtype=np.float32)
    Rs = np.zeros((n, nr), dtype=np.float32)
    pairs = [p for p in itertools.product(range(n), range(n)) if p[0] != p[1]]
    for i, (r, s) in enumerate(pairs):
        Rr[r, i] = 1.0
        Rs[s, i] = 1.0
    return jnp.asarray(Rr), jnp.asarray(Rs)


def _linear(key, fan_in, fan_out):
    kw, kb = jax.random.split(key)
    bound = 1.0 / np.sqrt(fan_in)
    W = jax.random.uniform(kw, (fan_out, fan_in), jnp.float32, -bound, bound)  # torch (out, in)
    b = jax.random.uniform(kb, (fan_out,), jnp.float32, -bound, bound)
    return W, b


def init_params(key):
    ks = jax.random.split(key, 9)
    fr_w = (_linear(ks[0], 2 * P_FEAT + DR, HIDDEN),
            _linear(ks[1], HIDDEN, HIDDEN // 2),
            _linear(ks[2], HIDDEN // 2, DE))
    fo_w = (_linear(ks[3], P_FEAT + DX + DE, HIDDEN),
            _linear(ks[4], HIDDEN, HIDDEN // 2),
            _linear(ks[5], HIDDEN // 2, DO))
    fc_w = (_linear(ks[6], DO * N_CONST, HIDDEN),
            _linear(ks[7], HIDDEN, HIDDEN // 2),
            _linear(ks[8], HIDDEN // 2, N_TARGETS))
    return fr_w, fo_w, fc_w


def build_kernel_params(Rr, Rs, fr_w, fo_w, fc_w):
    """Fold Rr/Rs selection, the Ebar scatter and the quirky torch views into
    dense per-layer weights acting on per-sample flat (lane-major) vectors.
    Packing is independent of the batch tile (review fix)."""
    Rr_np, Rs_np = np.asarray(Rr), np.asarray(Rs)
    (W1r, b1r), (W2r, b2r), (W3r, b3r) = (tuple(map(np.asarray, wb)) for wb in fr_w)
    (W1o, b1o), (W2o, b2o), (W3o, b3o) = (tuple(map(np.asarray, wb)) for wb in fo_w)
    (W1c, b1c), (W2c, b2c), (W3c, b3c) = (tuple(map(np.asarray, wb)) for wb in fc_w)

    # fr layer 1 with the receiver/sender gather folded in:
    #   h1[b, r*H+h] = sum_{p,n} xflat[b, p*N+n] * A1[p*N+n, r*H+h]
    #   A1[p*N+n, r*H+h] = Rr[n,r]*W1r[h,p] + Rs[n,r]*W1r[h,P+p]
    W1a = W1r[:, :P_FEAT].T                        # (P, H) receiver half
    W1b = W1r[:, P_FEAT:].T                        # (P, H) sender half
    A1 = (np.einsum('nr,ph->pnrh', Rr_np, W1a)
          + np.einsum('nr,ph->pnrh', Rs_np, W1b)).reshape(P_FEAT * N_CONST, NR * HIDDEN)
    A2 = np.kron(np.eye(NR, dtype=np.float32), W2r.T)          # (Nr*H, Nr*H/2)
    A3 = np.kron(np.eye(NR, dtype=np.float32), W3r.T)          # (Nr*H/2, Nr*De)

    # fo acts block-diagonally on the raw 80-vector C[b].flatten() (torch's
    # C.view(-1, P+De) rows stacked).  Ebar[b,e,n] lands at flat index
    # P*N + N*e + n and equals the sum over edges r with receiver n of E[b,r,e],
    # so the scatter + quirky view are just a row gather of W1big.
    W1big = np.kron(np.eye(N_CONST, dtype=np.float32), W1o.T)  # (80, N*H=256)
    Wx1 = np.ascontiguousarray(W1big[:P_FEAT * N_CONST])       # rows for x.flatten()
    recv = Rr_np.argmax(axis=0)                                # receiver node of each edge
    e_rows = (P_FEAT * N_CONST
              + N_CONST * np.tile(np.arange(DE), NR)
              + np.repeat(recv, DE)).astype(np.int64)          # row for E flat index r*De+e
    We1 = np.ascontiguousarray(W1big[e_rows])                  # (Nr*De, 256)
    Ao2 = np.kron(np.eye(N_CONST, dtype=np.float32), W2o.T)    # (256, 128)
    Ao3 = np.kron(np.eye(N_CONST, dtype=np.float32), W3o.T)    # (128, 64) == O.view(B, Do*N)

    def row(v):
        return jnp.asarray(np.asarray(v, np.float32).reshape(1, -1))

    return dict(
        a1=jnp.asarray(A1), b1=row(np.tile(b1r, NR)),
        a2=jnp.asarray(A2), b2=row(np.tile(b2r, NR)),
        a3=jnp.asarray(A3), b3=row(np.tile(b3r, NR)),
        wx1=jnp.asarray(Wx1), we1=jnp.asarray(We1), bo1=row(np.tile(b1o, N_CONST)),
        ao2=jnp.asarray(Ao2), bo2=row(np.tile(b2o, N_CONST)),
        ao3=jnp.asarray(Ao3), bo3=row(np.tile(b3o, N_CONST)),
        wc1=jnp.asarray(W1c.T), bc1=row(b1c),
        wc2=jnp.asarray(W2c.T), bc2=row(b2c),
        wc3=jnp.asarray(W3c.T), bc3=row(b3c),
    )


# -------------------------------------------------------------------------
# Pure-JAX reference (mirrors the PyTorch forward line-by-line, incl. the quirky views)
# -------------------------------------------------------------------------
def reference_forward(x, Rr, Rs, fr_w, fo_w, fc_w):
    relu = lambda v: jnp.maximum(v, 0.0)
    B = x.shape[0]
    (W1r, b1r), (W2r, b2r), (W3r, b3r) = fr_w
    Orr = jnp.einsum('bpn,ne->bpe', x, Rr)
    Ors = jnp.einsum('bpn,ne->bpe', x, Rs)
    Bm = jnp.concatenate([Orr, Ors], axis=1)                     # (B, 2P, Nr)
    Bt = jnp.transpose(Bm, (0, 2, 1)).reshape(-1, 2 * P_FEAT)
    h = relu(Bt @ W1r.T + b1r)
    h = relu(h @ W2r.T + b2r)
    E = relu(h @ W3r.T + b3r)                                    # (B*Nr, De)
    E = jnp.transpose(E.reshape(B, NR, DE), (0, 2, 1))           # (B, De, Nr)
    Ebar = jnp.einsum('ben,nm->bem', E, Rr.T)                    # (B, De, N)
    C = jnp.concatenate([x, Ebar], axis=1)                       # (B, P+De, N)
    Cv = C.reshape(-1, P_FEAT + DX + DE)                         # quirky raw view (no transpose)
    (W1o, b1o), (W2o, b2o), (W3o, b3o) = fo_w
    h = relu(Cv @ W1o.T + b1o)
    h = relu(h @ W2o.T + b2o)
    O = relu(h @ W3o.T + b3o)                                    # (B*N, Do)
    Of = O.reshape(B, DO * N_CONST)                              # == view(-1, N, Do).view(-1, Do*N)
    (W1c, b1c), (W2c, b2c), (W3c, b3c) = fc_w
    h = relu(Of @ W1c.T + b1c)
    h = relu(h @ W2c.T + b2c)
    return h @ W3c.T + b3c


# -------------------------------------------------------------------------
if __name__ == "__main__":
    key = jax.random.PRNGKey(0)
    kx, kp = jax.random.split(key)

    x = jax.random.normal(kx, (BATCH, P_FEAT, N_CONST), jnp.float32)
    Rr, Rs = assign_matrices(N_CONST)
    fr_w, fo_w, fc_w = init_params(kp)

    params = build_kernel_params(Rr, Rs, fr_w, fo_w, fc_w)

    fwd = jax.jit(functools.partial(graphnet_forward, tile_b=256))
    out = jax.block_until_ready(fwd(x, params))

    ref = reference_forward(x, Rr, Rs, fr_w, fo_w, fc_w)
    np.testing.assert_allclose(np.asarray(out), np.asarray(ref), rtol=5e-3, atol=5e-3)

    print("KERNEL_OK")
</pallas_src>

<mosaic_0001>
module attributes {stable_mosaic.version = 11 : i64} {
  func.func @_graphnet_kernel(%arg0: i32, %arg1: memref<8x32xf32, #tpu.memory_space<vmem>>, %arg2: memref<32x1792xf32, #tpu.memory_space<vmem>>, %arg3: memref<1x1792xf32, #tpu.memory_space<vmem>>, %arg4: memref<1792x896xf32, #tpu.memory_space<vmem>>, %arg5: memref<1x896xf32, #tpu.memory_space<vmem>>, %arg6: memref<896x336xf32, #tpu.memory_space<vmem>>, %arg7: memref<1x336xf32, #tpu.memory_space<vmem>>, %arg8: memref<32x256xf32, #tpu.memory_space<vmem>>, %arg9: memref<336x256xf32, #tpu.memory_space<vmem>>, %arg10: memref<1x256xf32, #tpu.memory_space<vmem>>, %arg11: memref<256x128xf32, #tpu.memory_space<vmem>>, %arg12: memref<1x128xf32, #tpu.memory_space<vmem>>, %arg13: memref<128x64xf32, #tpu.memory_space<vmem>>, %arg14: memref<1x64xf32, #tpu.memory_space<vmem>>, %arg15: memref<64x32xf32, #tpu.memory_space<vmem>>, %arg16: memref<1x32xf32, #tpu.memory_space<vmem>>, %arg17: memref<32x16xf32, #tpu.memory_space<vmem>>, %arg18: memref<1x16xf32, #tpu.memory_space<vmem>>, %arg19: memref<16x5xf32, #tpu.memory_space<vmem>>, %arg20: memref<1x5xf32, #tpu.memory_space<vmem>>, %arg21: memref<8x5xf32, #tpu.memory_space<vmem>>) attributes {dimension_semantics = [#tpu.dimension_semantics<parallel>], iteration_bounds = array<i64: 1>, scalar_prefetch = 0 : i64, scratch_operands = 0 : i64, tpu.core_type = #tpu.core_type<tc>, window_params = [{transform_indices = @transform_0, window_bounds = array<i64: 8, 32>}, {pipeline_mode = #tpu.pipeline_mode<synchronous>, transform_indices = @transform_1, window_bounds = array<i64: 32, 1792>}, {pipeline_mode = #tpu.pipeline_mode<synchronous>, transform_indices = @transform_2, window_bounds = array<i64: 1, 1792>}, {pipeline_mode = #tpu.pipeline_mode<synchronous>, transform_indices = @transform_3, window_bounds = array<i64: 1792, 896>}, {pipeline_mode = #tpu.pipeline_mode<synchronous>, transform_indices = @transform_4, window_bounds = array<i64: 1, 896>}, {pipeline_mode = #tpu.pipeline_mode<synchronous>, transform_indices = @transform_5, window_bounds = array<i64: 896, 336>}, {pipeline_mode = #tpu.pipeline_mode<synchronous>, transform_indices = @transform_6, window_bounds = array<i64: 1, 336>}, {pipeline_mode = #tpu.pipeline_mode<synchronous>, transform_indices = @transform_7, window_bounds = array<i64: 32, 256>}, {pipeline_mode = #tpu.pipeline_mode<synchronous>, transform_indices = @transform_8, window_bounds = array<i64: 336, 256>}, {pipeline_mode = #tpu.pipeline_mode<synchronous>, transform_indices = @transform_9, window_bounds = array<i64: 1, 256>}, {pipeline_mode = #tpu.pipeline_mode<synchronous>, transform_indices = @transform_10, window_bounds = array<i64: 256, 128>}, {pipeline_mode = #tpu.pipeline_mode<synchronous>, transform_indices = @transform_11, window_bounds = array<i64: 1, 128>}, {pipeline_mode = #tpu.pipeline_mode<synchronous>, transform_indices = @transform_12, window_bounds = array<i64: 128, 64>}, {pipeline_mode = #tpu.pipeline_mode<synchronous>, transform_indices = @transform_13, window_bounds = array<i64: 1, 64>}, {pipeline_mode = #tpu.pipeline_mode<synchronous>, transform_indices = @transform_14, window_bounds = array<i64: 64, 32>}, {pipeline_mode = #tpu.pipeline_mode<synchronous>, transform_indices = @transform_15, window_bounds = array<i64: 1, 32>}, {pipeline_mode = #tpu.pipeline_mode<synchronous>, transform_indices = @transform_16, window_bounds = array<i64: 32, 16>}, {pipeline_mode = #tpu.pipeline_mode<synchronous>, transform_indices = @transform_17, window_bounds = array<i64: 1, 16>}, {pipeline_mode = #tpu.pipeline_mode<synchronous>, transform_indices = @transform_18, window_bounds = array<i64: 16, 5>}, {pipeline_mode = #tpu.pipeline_mode<synchronous>, transform_indices = @transform_19, window_bounds = array<i64: 1, 5>}, {transform_indices = @transform_20, window_bounds = array<i64: 8, 5>}]} {
    %c0 = arith.constant 0 : index
    %c0_0 = arith.constant 0 : index
    %0 = vector.load %arg1[%c0, %c0_0] : memref<8x32xf32, #tpu.memory_space<vmem>>, vector<8x32xf32>
    %c0_1 = arith.constant 0 : index
    %c0_2 = arith.constant 0 : index
    %1 = vector.load %arg2[%c0_1, %c0_2] : memref<32x1792xf32, #tpu.memory_space<vmem>>, vector<32x1792xf32>
    %cst = arith.constant dense<0.000000e+00> : vector<8x1792xf32>
    %2 = tpu.matmul %0, %1, %cst {dimension_numbers = #tpu.dot_dimension_numbers<[1], [0], [0], [1], [0, 0, 1, 1], [], []>} : vector<8x32xf32>, vector<32x1792xf32>, vector<8x1792xf32> -> vector<8x1792xf32>
    %c0_3 = arith.constant 0 : index
    %c0_4 = arith.constant 0 : index
    %3 = vector.load %arg3[%c0_3, %c0_4] : memref<1x1792xf32, #tpu.memory_space<vmem>>, vector<1x1792xf32>
    %4 = vector.broadcast %3 : vector<1x1792xf32> to vector<8x1792xf32>
    %5 = arith.addf %2, %4 : vector<8x1792xf32>
    %cst_5 = arith.constant 0.000000e+00 : f32
    %6 = vector.broadcast %cst_5 : f32 to vector<8x1792xf32>
    %7 = arith.maximumf %5, %6 : vector<8x1792xf32>
    %c0_6 = arith.constant 0 : index
    %c0_7 = arith.constant 0 : index
    %8 = vector.load %arg4[%c0_6, %c0_7] : memref<1792x896xf32, #tpu.memory_space<vmem>>, vector<1792x896xf32>
    %cst_8 = arith.constant dense<0.000000e+00> : vector<8x896xf32>
    %9 = tpu.matmul %7, %8, %cst_8 {dimension_numbers = #tpu.dot_dimension_numbers<[1], [0], [0], [1], [0, 0, 1, 1], [], []>} : vector<8x1792xf32>, vector<1792x896xf32>, vector<8x896xf32> -> vector<8x896xf32>
    %c0_9 = arith.constant 0 : index
    %c0_10 = arith.constant 0 : index
    %10 = vector.load %arg5[%c0_9, %c0_10] : memref<1x896xf32, #tpu.memory_space<vmem>>, vector<1x896xf32>
    %11 = vector.broadcast %10 : vector<1x896xf32> to vector<8x896xf32>
    %12 = arith.addf %9, %11 : vector<8x896xf32>
    %cst_11 = arith.constant 0.000000e+00 : f32
    %13 = vector.broadcast %cst_11 : f32 to vector<8x896xf32>
    %14 = arith.maximumf %12, %13 : vector<8x896xf32>
    %c0_12 = arith.constant 0 : index
    %c0_13 = arith.constant 0 : index
    %15 = vector.load %arg6[%c0_12, %c0_13] : memref<896x336xf32, #tpu.memory_space<vmem>>, vector<896x336xf32>
    %cst_14 = arith.constant dense<0.000000e+00> : vector<8x336xf32>
    %16 = tpu.matmul %14, %15, %cst_14 {dimension_numbers = #tpu.dot_dimension_numbers<[1], [0], [0], [1], [0, 0, 1, 1], [], []>} : vector<8x896xf32>, vector<896x336xf32>, vector<8x336xf32> -> vector<8x336xf32>
    %c0_15 = arith.constant 0 : index
    %c0_16 = arith.constant 0 : index
    %17 = vector.load %arg7[%c0_15, %c0_16] : memref<1x336xf32, #tpu.memory_space<vmem>>, vector<1x336xf32>
    %18 = vector.broadcast %17 : vector<1x336xf32> to vector<8x336xf32>
    %19 = arith.addf %16, %18 : vector<8x336xf32>
    %cst_17 = arith.constant 0.000000e+00 : f32
    %20 = vector.broadcast %cst_17 : f32 to vector<8x336xf32>
    %21 = arith.maximumf %19, %20 : vector<8x336xf32>
    %c0_18 = arith.constant 0 : index
    %c0_19 = arith.constant 0 : index
    %22 = vector.load %arg8[%c0_18, %c0_19] : memref<32x256xf32, #tpu.memory_space<vmem>>, vector<32x256xf32>
    %cst_20 = arith.constant dense<0.000000e+00> : vector<8x256xf32>
    %23 = tpu.matmul %0, %22, %cst_20 {dimension_numbers = #tpu.dot_dimension_numbers<[1], [0], [0], [1], [0, 0, 1, 1], [], []>} : vector<8x32xf32>, vector<32x256xf32>, vector<8x256xf32> -> vector<8x256xf32>
    %c0_21 = arith.constant 0 : index
    %c0_22 = arith.constant 0 : index
    %24 = vector.load %arg9[%c0_21, %c0_22] : memref<336x256xf32, #tpu.memory_space<vmem>>, vector<336x256xf32>
    %cst_23 = arith.constant dense<0.000000e+00> : vector<8x256xf32>
    %25 = tpu.matmul %21, %24, %cst_23 {dimension_numbers = #tpu.dot_dimension_numbers<[1], [0], [0], [1], [0, 0, 1, 1], [], []>} : vector<8x336xf32>, vector<336x256xf32>, vector<8x256xf32> -> vector<8x256xf32>
    %26 = arith.addf %23, %25 : vector<8x256xf32>
    %c0_24 = arith.constant 0 : index
    %c0_25 = arith.constant 0 : index
    %27 = vector.load %arg10[%c0_24, %c0_25] : memref<1x256xf32, #tpu.memory_space<vmem>>, vector<1x256xf32>
    %28 = vector.broadcast %27 : vector<1x256xf32> to vector<8x256xf32>
    %29 = arith.addf %26, %28 : vector<8x256xf32>
    %cst_26 = arith.constant 0.000000e+00 : f32
    %30 = vector.broadcast %cst_26 : f32 to vector<8x256xf32>
    %31 = arith.maximumf %29, %30 : vector<8x256xf32>
    %c0_27 = arith.constant 0 : index
    %c0_28 = arith.constant 0 : index
    %32 = vector.load %arg11[%c0_27, %c0_28] : memref<256x128xf32, #tpu.memory_space<vmem>>, vector<256x128xf32>
    %cst_29 = arith.constant dense<0.000000e+00> : vector<8x128xf32>
    %33 = tpu.matmul %31, %32, %cst_29 {dimension_numbers = #tpu.dot_dimension_numbers<[1], [0], [0], [1], [0, 0, 1, 1], [], []>} : vector<8x256xf32>, vector<256x128xf32>, vector<8x128xf32> -> vector<8x128xf32>
    %c0_30 = arith.constant 0 : index
    %c0_31 = arith.constant 0 : index
    %34 = vector.load %arg12[%c0_30, %c0_31] : memref<1x128xf32, #tpu.memory_space<vmem>>, vector<1x128xf32>
    %35 = vector.broadcast %34 : vector<1x128xf32> to vector<8x128xf32>
    %36 = arith.addf %33, %35 : vector<8x128xf32>
    %cst_32 = arith.constant 0.000000e+00 : f32
    %37 = vector.broadcast %cst_32 : f32 to vector<8x128xf32>
    %38 = arith.maximumf %36, %37 : vector<8x128xf32>
    %c0_33 = arith.constant 0 : index
    %c0_34 = arith.constant 0 : index
    %39 = vector.load %arg13[%c0_33, %c0_34] : memref<128x64xf32, #tpu.memory_space<vmem>>, vector<128x64xf32>
    %cst_35 = arith.constant dense<0.000000e+00> : vector<8x64xf32>
    %40 = tpu.matmul %38, %39, %cst_35 {dimension_numbers = #tpu.dot_dimension_numbers<[1], [0], [0], [1], [0, 0, 1, 1], [], []>} : vector<8x128xf32>, vector<128x64xf32>, vector<8x64xf32> -> vector<8x64xf32>
    %c0_36 = arith.constant 0 : index
    %c0_37 = arith.constant 0 : index
    %41 = vector.load %arg14[%c0_36, %c0_37] : memref<1x64xf32, #tpu.memory_space<vmem>>, vector<1x64xf32>
    %42 = vector.broadcast %41 : vector<1x64xf32> to vector<8x64xf32>
    %43 = arith.addf %40, %42 : vector<8x64xf32>
    %cst_38 = arith.constant 0.000000e+00 : f32
    %44 = vector.broadcast %cst_38 : f32 to vector<8x64xf32>
    %45 = arith.maximumf %43, %44 : vector<8x64xf32>
    %c0_39 = arith.constant 0 : index
    %c0_40 = arith.constant 0 : index
    %46 = vector.load %arg15[%c0_39, %c0_40] : memref<64x32xf32, #tpu.memory_space<vmem>>, vector<64x32xf32>
    %cst_41 = arith.constant dense<0.000000e+00> : vector<8x32xf32>
    %47 = tpu.matmul %45, %46, %cst_41 {dimension_numbers = #tpu.dot_dimension_numbers<[1], [0], [0], [1], [0, 0, 1, 1], [], []>} : vector<8x64xf32>, vector<64x32xf32>, vector<8x32xf32> -> vector<8x32xf32>
    %c0_42 = arith.constant 0 : index
    %c0_43 = arith.constant 0 : index
    %48 = vector.load %arg16[%c0_42, %c0_43] : memref<1x32xf32, #tpu.memory_space<vmem>>, vector<1x32xf32>
    %49 = vector.broadcast %48 : vector<1x32xf32> to vector<8x32xf32>
    %50 = arith.addf %47, %49 : vector<8x32xf32>
    %cst_44 = arith.constant 0.000000e+00 : f32
    %51 = vector.broadcast %cst_44 : f32 to vector<8x32xf32>
    %52 = arith.maximumf %50, %51 : vector<8x32xf32>
    %c0_45 = arith.constant 0 : index
    %c0_46 = arith.constant 0 : index
    %53 = vector.load %arg17[%c0_45, %c0_46] : memref<32x16xf32, #tpu.memory_space<vmem>>, vector<32x16xf32>
    %cst_47 = arith.constant dense<0.000000e+00> : vector<8x16xf32>
    %54 = tpu.matmul %52, %53, %cst_47 {dimension_numbers = #tpu.dot_dimension_numbers<[1], [0], [0], [1], [0, 0, 1, 1], [], []>} : vector<8x32xf32>, vector<32x16xf32>, vector<8x16xf32> -> vector<8x16xf32>
    %c0_48 = arith.constant 0 : index
    %c0_49 = arith.constant 0 : index
    %55 = vector.load %arg18[%c0_48, %c0_49] : memref<1x16xf32, #tpu.memory_space<vmem>>, vector<1x16xf32>
    %56 = vector.broadcast %55 : vector<1x16xf32> to vector<8x16xf32>
    %57 = arith.addf %54, %56 : vector<8x16xf32>
    %cst_50 = arith.constant 0.000000e+00 : f32
    %58 = vector.broadcast %cst_50 : f32 to vector<8x16xf32>
    %59 = arith.maximumf %57, %58 : vector<8x16xf32>
    %c0_51 = arith.constant 0 : index
    %c0_52 = arith.constant 0 : index
    %60 = vector.load %arg19[%c0_51, %c0_52] : memref<16x5xf32, #tpu.memory_space<vmem>>, vector<16x5xf32>
    %cst_53 = arith.constant dense<0.000000e+00> : vector<8x5xf32>
    %61 = tpu.matmul %59, %60, %cst_53 {dimension_numbers = #tpu.dot_dimension_numbers<[1], [0], [0], [1], [0, 0, 1, 1], [], []>} : vector<8x16xf32>, vector<16x5xf32>, vector<8x5xf32> -> vector<8x5xf32>
    %c0_54 = arith.constant 0 : index
    %c0_55 = arith.constant 0 : index
    %62 = vector.load %arg20[%c0_54, %c0_55] : memref<1x5xf32, #tpu.memory_space<vmem>>, vector<1x5xf32>
    %63 = vector.broadcast %62 : vector<1x5xf32> to vector<8x5xf32>
    %64 = arith.addf %61, %63 : vector<8x5xf32>
    %c0_56 = arith.constant 0 : index
    %c0_57 = arith.constant 0 : index
    %65 = vector.load %arg21[%c0_56, %c0_57] : memref<8x5xf32, #tpu.memory_space<vmem>>, vector<8x5xf32>
    tpu.vector_store %arg21[%c0_56, %c0_57], %64 {strides = array<i32>} : memref<8x5xf32, #tpu.memory_space<vmem>>, vector<8x5xf32>,
    return
  }
  func.func @transform_0(%arg0: i32) -> (i32, i32) {
    %c0_i32 = arith.constant 0 : i32
    %c0_i32_0 = arith.constant 0 : i32
    return %arg0, %c0_i32 : i32, i32
  }
  func.func @transform_1(%arg0: i32) -> (i32, i32) {
    %c0_i32 = arith.constant 0 : i32
    %c0_i32_0 = arith.constant 0 : i32
    %c0_i32_1 = arith.constant 0 : i32
    return %c0_i32, %c0_i32_0 : i32, i32
  }
  func.func @transform_2(%arg0: i32) -> (i32, i32) {
    %c0_i32 = arith.constant 0 : i32
    %c0_i32_0 = arith.constant 0 : i32
    %c0_i32_1 = arith.constant 0 : i32
    return %c0_i32, %c0_i32_0 : i32, i32
  }
  func.func @transform_3(%arg0: i32) -> (i32, i32) {
    %c0_i32 = arith.constant 0 : i32
    %c0_i32_0 = arith.constant 0 : i32
    %c0_i32_1 = arith.constant 0 : i32
    return %c0_i32, %c0_i32_0 : i32, i32
  }
  func.func @transform_4(%arg0: i32) -> (i32, i32) {
    %c0_i32 = arith.constant 0 : i32
    %c0_i32_0 = arith.constant 0 : i32
    %c0_i32_1 = arith.constant 0 : i32
    return %c0_i32, %c0_i32_0 : i32, i32
  }
  func.func @transform_5(%arg0: i32) -> (i32, i32) {
    %c0_i32 = arith.constant 0 : i32
    %c0_i32_0 = arith.constant 0 : i32
    %c0_i32_1 = arith.constant 0 : i32
    return %c0_i32, %c0_i32_0 : i32, i32
  }
  func.func @transform_6(%arg0: i32) -> (i32, i32) {
    %c0_i32 = arith.constant 0 : i32
    %c0_i32_0 = arith.constant 0 : i32
    %c0_i32_1 = arith.constant 0 : i32
    return %c0_i32, %c0_i32_0 : i32, i32
  }
  func.func @transform_7(%arg0: i32) -> (i32, i32) {
    %c0_i32 = arith.constant 0 : i32
    %c0_i32_0 = arith.constant 0 : i32
    %c0_i32_1 = arith.constant 0 : i32
    return %c0_i32, %c0_i32_0 : i32, i32
  }
  func.func @transform_8(%arg0: i32) -> (i32, i32) {
    %c0_i32 = arith.constant 0 : i32
    %c0_i32_0 = arith.constant 0 : i32
    %c0_i32_1 = arith.constant 0 : i32
    return %c0_i32, %c0_i32_0 : i32, i32
  }
  func.func @transform_9(%arg0: i32) -> (i32, i32) {
    %c0_i32 = arith.constant 0 : i32
    %c0_i32_0 = arith.constant 0 : i32
    %c0_i32_1 = arith.constant 0 : i32
    return %c0_i32, %c0_i32_0 : i32, i32
  }
  func.func @transform_10(%arg0: i32) -> (i32, i32) {
    %c0_i32 = arith.constant 0 : i32
    %c0_i32_0 = arith.constant 0 : i32
    %c0_i32_1 = arith.constant 0 : i32
    return %c0_i32, %c0_i32_0 : i32, i32
  }
  func.func @transform_11(%arg0: i32) -> (i32, i32) {
    %c0_i32 = arith.constant 0 : i32
    %c0_i32_0 = arith.constant 0 : i32
    %c0_i32_1 = arith.constant 0 : i32
    return %c0_i32, %c0_i32_0 : i32, i32
  }
  func.func @transform_12(%arg0: i32) -> (i32, i32) {
    %c0_i32 = arith.constant 0 : i32
    %c0_i32_0 = arith.constant 0 : i32
    %c0_i32_1 = arith.constant 0 : i32
    return %c0_i32, %c0_i32_0 : i32, i32
  }
  func.func @transform_13(%arg0: i32) -> (i32, i32) {
    %c0_i32 = arith.constant 0 : i32
    %c0_i32_0 = arith.constant 0 : i32
    %c0_i32_1 = arith.constant 0 : i32
    return %c0_i32, %c0_i32_0 : i32, i32
  }
  func.func @transform_14(%arg0: i32) -> (i32, i32) {
    %c0_i32 = arith.constant 0 : i32
    %c0_i32_0 = arith.constant 0 : i32
    %c0_i32_1 = arith.constant 0 : i32
    return %c0_i32, %c0_i32_0 : i32, i32
  }
  func.func @transform_15(%arg0: i32) -> (i32, i32) {
    %c0_i32 = arith.constant 0 : i32
    %c0_i32_0 = arith.constant 0 : i32
    %c0_i32_1 = arith.constant 0 : i32
    return %c0_i32, %c0_i32_0 : i32, i32
  }
  func.func @transform_16(%arg0: i32) -> (i32, i32) {
    %c0_i32 = arith.constant 0 : i32
    %c0_i32_0 = arith.constant 0 : i32
    %c0_i32_1 = arith.constant 0 : i32
    return %c0_i32, %c0_i32_0 : i32, i32
  }
  func.func @transform_17(%arg0: i32) -> (i32, i32) {
    %c0_i32 = arith.constant 0 : i32
    %c0_i32_0 = arith.constant 0 : i32
    %c0_i32_1 = arith.constant 0 : i32
    return %c0_i32, %c0_i32_0 : i32, i32
  }
  func.func @transform_18(%arg0: i32) -> (i32, i32) {
    %c0_i32 = arith.constant 0 : i32
    %c0_i32_0 = arith.constant 0 : i32
    %c0_i32_1 = arith.constant 0 : i32
    return %c0_i32, %c0_i32_0 : i32, i32
  }
  func.func @transform_19(%arg0: i32) -> (i32, i32) {
    %c0_i32 = arith.constant 0 : i32
    %c0_i32_0 = arith.constant 0 : i32
    %c0_i32_1 = arith.constant 0 : i32
    return %c0_i32, %c0_i32_0 : i32, i32
  }
  func.func @transform_20(%arg0: i32) -> (i32, i32) {
    %c0_i32 = arith.constant 0 : i32
    %c0_i32_0 = arith.constant 0 : i32
    return %arg0, %c0_i32 : i32, i32
  }
}

</mosaic_0001>

<bundles_post_ra>
// kernel: graphnet_forward.1
= control target key start
LH: loop header
LB: loop body
LE: loop exit
PB: predicated region body
PF: predicated region fallthrough
CT: control target
= control target key end

     0   :  { %s10954_s0 = inlined_call_operand.vmem [shape: f32[8,32], index: 0, kind: input, shape index: {}]   ;;  %s10955_s1 = inlined_call_operand.vmem [shape: f32[32,1792], index: 1, kind: input, shape index: {}]   ;;  %s10956_s2 = inlined_call_operand.vmem [shape: f32[1,1792], index: 2, kind: input, shape index: {}]   ;;  %s10957_s3 = inlined_call_operand.hbm [shape: f32[1792,896], index: 3, kind: input, shape index: {}]   ;;  %s10958_s4 = inlined_call_operand.vmem [shape: f32[1,896], index: 4, kind: input, shape index: {}]   ;;  %s10959_s5 = inlined_call_operand.vmem [shape: f32[896,336], index: 5, kind: input, shape index: {}]   ;;  %s10960_s6 = inlined_call_operand.vmem [shape: f32[1,336], index: 6, kind: input, shape index: {}]   ;;  %s10961_s7 = inlined_call_operand.vmem [shape: f32[32,256], index: 7, kind: input, shape index: {}]   ;;  %s10962_s8 = inlined_call_operand.vmem [shape: f32[336,256], index: 8, kind: input, shape index: {}]   ;;  %s10963_s9 = inlined_call_operand.vmem [shape: f32[1,256], index: 9, kind: input, shape index: {}]   ;;  %s10964_s10 = inlined_call_operand.vmem [shape: f32[256,128], index: 10, kind: input, shape index: {}]   ;;  %s10965_s11 = inlined_call_operand.vmem [shape: f32[1,128], index: 11, kind: input, shape index: {}]   ;;  %s10966_s12 = inlined_call_operand.vmem [shape: f32[128,64], index: 12, kind: input, shape index: {}]   ;;  %s10967_s13 = inlined_call_operand.vmem [shape: f32[1,64], index: 13, kind: input, shape index: {}]   ;;  %s10968_s14 = inlined_call_operand.vmem [shape: f32[64,32], index: 14, kind: input, shape index: {}]   ;;  %s10969_s15 = inlined_call_operand.vmem [shape: f32[1,32], index: 15, kind: input, shape index: {}]   ;;  %s10970_s16 = inlined_call_operand.vmem [shape: f32[32,16], index: 16, kind: input, shape index: {}]   ;;  %s10971_s17 = inlined_call_operand.vmem [shape: f32[1,16], index: 17, kind: input, shape index: {}]   ;;  %s10972_s18 = inlined_call_operand.vmem [shape: f32[16,5], index: 18, kind: input, shape index: {}]   ;;  %s10973_s19 = inlined_call_operand.vmem [shape: f32[1,5], index: 19, kind: input, shape index: {}]   ;;  %s10974_s20 = inlined_call_operand.vmem [shape: f32[8,5], index: 20, kind: output, shape index: {}]  }
   0x1   :  { %10980 = sst [smem:[#allocation5_spill]] %s10954_s0 }
   0x2   :  { %10981 = sst [smem:[#allocation6_spill]] %s10955_s1 }
   0x3   :  { %10982 = sst [smem:[#allocation7_spill]] %s10956_s2 }
   0x4   :  { %10983 = sst [smem:[#allocation8_spill]] %s10957_s3 }
   0x5   :  { %10984 = sst [smem:[#allocation9_spill]] %s10958_s4 }
   0x6   :  { %10985 = sst [smem:[#allocation10_spill]] %s10969_s15 }
   0x7   :  { %25 = vsyncpa [#allocation3], 0  ;;  %s8817_s1 = smov [#allocation2]   ;;  %s10986_s2 = sld [smem:[#allocation8_spill]] }
   0x8   :  { %s37_s22 = sshll.u32 %s8817_s1, 4  ;;  %s38_s22 = int_to_ptr.vmem [resolvable:$true] %s37_s22 }
   0xd   :  { %s8793_s25 = scalar_lea.hbm %s10986_s2, 200704 }
   0xe   :  { %p8794_p0 = scmp.ne.s32.totalorder %s10986_s2, %s8793_s25  ;;  %p8797_p1 = scmp.lt.u32.totalorder %s8793_s25, %s10986_s2 }
  0x10   :  { %p8799_p2 = pnand %p8797_p1, %p8794_p0 }
  0x12   :  { %8802 = shalt.err (!%p8799_p2)
}
  0x13   :  { %s8803_s28 = scalar_lea.vmem %s38_s22, 200704  ;;  %p8808_p4 = scmp.lt.s32.totalorder %s38_s22, %s38_s22 }
  0x14   :  { %p8804_p3 = scmp.ne.s32.totalorder %s38_s22, %s8803_s28  ;;  %p8809_p5 = scmp.lt.s32.totalorder %s8803_s28, %s8803_s28 }
  0x16   :  { %p8810_p6 = por %p8809_p5, %p8808_p4 }
  0x18   :  { %p8811_p7 = pnand %p8810_p6, %p8804_p3 }
  0x1a   :  { %8814 = shalt.err (!%p8811_p7)
}
  0x1b   :  { %s8818_s4 = smov 896   ;;  %s8819_s29 = smov 56  }
  0x1c   :  { %43 = dma.hbm_to_vmem [thread:$0]  %s10986_s2, 200704, %s38_s22, [#allocation3], %s8818_s4, %s8818_s4, %s8819_s29  }
  0x1d   :  { %8815 = dma.done.wait [#allocation3], 200704  }
  0x1e   :  { %8816 = vsyncadd [#allocation3], 4294766592  ;;  %v8820_v0 = vmov 0.0   ;;  %s10987_s1 = sld [smem:[#allocation6_spill]]  ;;  %s10988_s21 = sld [smem:[#allocation5_spill]]  ;;  %vm210_vm0 = vcmask 261120  }
  0x1f   :  { %278 = vmatprep.mubr.f32.mxu0 %v8820_v0  ;;  %349 = vmatprep.mubr.f32.mxu1 %v8820_v0  ;;  %s10989_s15 = sld [smem:[#allocation7_spill]]  ;;  %s10990_s28 = sld [smem:[#allocation9_spill]]  ;;  %vm8822_vm1 = vmmov 0   ;;  %vm5330_vm2 = vcmask 654336   ;;  %vm5782_vm3 = vcmask 523264   ;;  %vm5951_vm4 = vcmask 130048  }
  0x20   :  { %vm6025_vm5 = vcmask 39936  }
  0x24   :  { %v81_v1 = vld [vmem:[%s10987_s1 + $0x8] sm:$0xff]  ;;  %v95_v2 = vld [vmem:[%s10987_s1 + $0x78] sm:$0xff]  ;;  %v80_v3 = vld [vmem:[%s10987_s1] sm:$0xff] }
  0x25   :  { %v6592_v4 = vpack.c.bf16 %v95_v2, %v81_v1  ;;  %v94_v5 = vld [vmem:[%s10987_s1 + $0x70] sm:$0xff]  ;;  %v109_v6 = vld [vmem:[%s10987_s1 + $0xe8] sm:$0xff]  ;;  %v123_v7 = vld [vmem:[%s10987_s1 + $0x158] sm:$0xff] }
  0x26   :  { %v6594_v8 = vpack.c.bf16 %v94_v5, %v80_v3  ;;  %v6596_v9 = vpack.c.bf16 %v123_v7, %v109_v6  ;;  %v108_v10 = vld [vmem:[%s10987_s1 + $0xe0] sm:$0xff]  ;;  %v122_v11 = vld [vmem:[%s10987_s1 + $0x150] sm:$0xff]  ;;  %v83_v12 = vld [vmem:[%s10987_s1 + $0x18] sm:$0xff] }
  0x27   :  { %6593 = vmatprep.subr.bf16.mxu0 %v6592_v4  ;;  %v97_v13 = vld [vmem:[%s10987_s1 + $0x88] sm:$0xff]  ;;  %v82_v14 = vld [vmem:[%s10987_s1 + $0x10] sm:$0xff]  ;;  %v6598_v15 = vpack.c.bf16 %v122_v11, %v108_v10  ;;  %v96_v17 = vld [vmem:[%s10987_s1 + $0x80] sm:$0xff] }
  0x28   :  { %6595 = vmatpush1.bf16.msra.mxu0 %v6594_v8  ;;  %v6600_v16 = vpack.c.bf16 %v97_v13, %v83_v12  ;;  %v111_v18 = vld [vmem:[%s10987_s1 + $0xf8] sm:$0xff]  ;;  %v125_v19 = vld [vmem:[%s10987_s1 + $0x168] sm:$0xff]  ;;  %v6602_v20 = vpack.c.bf16 %v96_v17, %v82_v14  ;;  %v110_v22 = vld [vmem:[%s10987_s1 + $0xf0] sm:$0xff] }
  0x29   :  { %6597 = vmatprep.subr.bf16.mxu0 %v6596_v9  ;;  %v6604_v21 = vpack.c.bf16 %v125_v19, %v111_v18  ;;  %v124_v23 = vld [vmem:[%s10987_s1 + $0x160] sm:$0xff]  ;;  %v85_v24 = vld [vmem:[%s10987_s1 + $0x28] sm:$0xff]  ;;  %v99_v25 = vld [vmem:[%s10987_s1 + $0x98] sm:$0xff] }
  0x2a   :  { %6601 = vmatprep.subr.bf16.mxu1 %v6600_v16  ;;  %v84_v26 = vld [vmem:[%s10987_s1 + $0x20] sm:$0xff]  ;;  %v98_v27 = vld [vmem:[%s10987_s1 + $0x90] sm:$0xff]  ;;  %v6606_v28 = vpack.c.bf16 %v124_v23, %v110_v22  ;;  %v6608_v29 = vpack.c.bf16 %v99_v25, %v85_v24  ;;  %v113_v30 = vld [vmem:[%s10987_s1 + $0x108] sm:$0xff] }
  0x2b   :  { %6603 = vmatpush1.bf16.msra.mxu1 %v6602_v20  ;;  %v127_v31 = vld [vmem:[%s10987_s1 + $0x178] sm:$0xff]  ;;  %v9011_v32 = vld [vmem:[%s10988_s21] sm:$0xff]  ;;  %v6610_v33 = vpack.c.bf16 %v98_v27, %v84_v26  ;;  %v101_v35 = vld [vmem:[%s10987_s1 + $0xa8] sm:$0xff] }
  0x2c   :  { %6599 = vmatpush1.bf16.msra.mxu0 %v6598_v15  ;;  %6605 = vmatprep.subr.bf16.mxu1 %v6604_v21  ;;  %v87_v34 = vld [vmem:[%s10987_s1 + $0x38] sm:$0xff]  ;;  %v6612_v36 = vpack.c.bf16 %v127_v31, %v113_v30  ;;  %v112_v37 = vld [vmem:[%s10987_s1 + $0x100] sm:$0xff]  ;;  %v126_v38 = vld [vmem:[%s10987_s1 + $0x170] sm:$0xff] }
  0x2d   :  { %6609 = vmatprep.subr.bf16.mxu0 %v6608_v29  ;;  %v6616_v39 = vpack.c.bf16 %v101_v35, %v87_v34  ;;  %v86_v40 = vld [vmem:[%s10987_s1 + $0x30] sm:$0xff]  ;;  %v89_v41 = vld [vmem:[%s10987_s1 + $0x48] sm:$0xff]  ;;  %v103_v42 = vld [vmem:[%s10987_s1 + $0xb8] sm:$0xff]  ;;  %v6614_v47 = vpack.c.bf16 %v126_v38, %v112_v37 }
  0x2e   :  { %v100_v43 = vld [vmem:[%s10987_s1 + $0xa0] sm:$0xff]  ;;  %v115_v45 = vld [vmem:[%s10987_s1 + $0x118] sm:$0xff]  ;;  %v129_v46 = vld [vmem:[%s10987_s1 + $0x188] sm:$0xff]  ;;  %v6624_v51 = vpack.c.bf16 %v103_v42, %v89_v41 }
  0x2f   :  { %6032 = vmatmul.mubr.msk.f32.vlgmr.msra.gmra.mrb[0].mxu0 %vm210_vm0, %v9011_v32  ;;  %6607 = vmatpush1.bf16.msra.mxu1 %v6606_v28  ;;  %v6618_v44 = vpack.c.bf16 %v100_v43, %v86_v40  ;;  %v6620_v48 = vpack.c.bf16 %v129_v46, %v115_v45  ;;  %v114_v49 = vld [vmem:[%s10987_s1 + $0x110] sm:$0xff]  ;;  %v128_v50 = vld [vmem:[%s10987_s1 + $0x180] sm:$0xff]  ;;  %v117_v54 = vld [vmem:[%s10987_s1 + $0x128] sm:$0xff] }
  0x30   :  { %6611 = vmatpush1.bf16.msra.mxu0 %v6610_v33  ;;  %420 = vmatprep.mubr.f32.mxu0 %v8820_v0  ;;  %v88_v52 = vld [vmem:[%s10987_s1 + $0x40] sm:$0xff]  ;;  %v102_v53 = vld [vmem:[%s10987_s1 + $0xb0] sm:$0xff]  ;;  %v131_v55 = vld [vmem:[%s10987_s1 + $0x198] sm:$0xff]  ;;  %v6622_v58 = vpack.c.bf16 %v128_v50, %v114_v49 }
  0x31   :  { %6613 = vmatprep.subr.bf16.mxu0 %v6612_v36  ;;  %6617 = vmatprep.subr.bf16.mxu1 %v6616_v39  ;;  %v91_v56 = vld [vmem:[%s10987_s1 + $0x58] sm:$0xff]  ;;  %v105_v57 = vld [vmem:[%s10987_s1 + $0xc8] sm:$0xff]  ;;  %v6626_v59 = vpack.c.bf16 %v102_v53, %v88_v52  ;;  %v116_v60 = vld [vmem:[%s10987_s1 + $0x120] sm:$0xff]  ;;  %v6628_v63 = vpack.c.bf16 %v131_v55, %v117_v54 }
  0x32   :  { %6033 = vmatmul.mubr.msk.f32.vlgmr.msra.gmra.mrb[0].mxu1 %vm210_vm0, %v9011_v32  ;;  %v90_v61 = vld [vmem:[%s10987_s1 + $0x50] sm:$0xff]  ;;  %v104_v62 = vld [vmem:[%s10987_s1 + $0xc0] sm:$0xff]  ;;  %v6632_v2 = vpack.c.bf16 %v105_v57, %v91_v56  ;;  %v119_v3 = vld [vmem:[%s10987_s1 + $0x138] sm:$0xff] }
  0x33   :  { %6619 = vmatpush1.bf16.msra.mxu1 %v6618_v44  ;;  %491 = vmatprep.mubr.f32.mxu1 %v8820_v0  ;;  %v130_v1 = vld [vmem:[%s10987_s1 + $0x190] sm:$0xff]  ;;  %v133_v4 = vld [vmem:[%s10987_s1 + $0x1a8] sm:$0xff]  ;;  %v107_v6 = vld [vmem:[%s10987_s1 + $0xd8] sm:$0xff]  ;;  %v6634_v7 = vpack.c.bf16 %v104_v62, %v90_v61 }
  0x34   :  { %6615 = vmatpush1.bf16.msra.mxu0 %v6614_v47  ;;  %6621 = vmatprep.subr.bf16.mxu1 %v6620_v48  ;;  %v93_v5 = vld [vmem:[%s10987_s1 + $0x68] sm:$0xff]  ;;  %v6630_v8 = vpack.c.bf16 %v130_v1, %v116_v60  ;;  %v6636_v9 = vpack.c.bf16 %v133_v4, %v119_v3  ;;  %v118_v10 = vld [vmem:[%s10987_s1 + $0x130] sm:$0xff]  ;;  %v132_v11 = vld [vmem:[%s10987_s1 + $0x1a0] sm:$0xff] }
  0x35   :  { %6625 = vmatprep.subr.bf16.mxu0 %v6624_v51  ;;  %v6640_v12 = vpack.c.bf16 %v107_v6, %v93_v5  ;;  %v92_v13 = vld [vmem:[%s10987_s1 + $0x60] sm:$0xff]  ;;  %v106_v14 = vld [vmem:[%s10987_s1 + $0xd0] sm:$0xff]  ;;  %v121_v15 = vld [vmem:[%s10987_s1 + $0x148] sm:$0xff]  ;;  %v6638_v19 = vpack.c.bf16 %v132_v11, %v118_v10 }
  0x36   :  { %v135_v16 = vld [vmem:[%s10987_s1 + $0x1b8] sm:$0xff]  ;;  %v726_v17 = vld [vmem:[#allocation2 + $0x8] sm:$0xff]  ;;  %v733_v18 = vld [vmem:[#allocation2 + $0x40] sm:$0xff]  ;;  %v6642_v20 = vpack.c.bf16 %v106_v14, %v92_v13 }
  0x37   :  { %6034 = vmatmul.mubr.msk.f32.vlgmr.msra.gmra.mrb[2].mxu0 %vm210_vm0, %v9011_v32  ;;  %6623 = vmatpush1.bf16.msra.mxu1 %v6622_v58  ;;  %v120_v21 = vld [vmem:[%s10987_s1 + $0x140] sm:$0xff]  ;;  %v732_v23 = vld [vmem:[#allocation2 + $0x38] sm:$0xff]  ;;  %v6644_v24 = vpack.c.bf16 %v135_v16, %v121_v15  ;;  %v134_v25 = vld [vmem:[%s10987_s1 + $0x1b0] sm:$0xff]  ;;  %v6648_v26 = vpack.c.bf16 %v733_v18, %v726_v17 }
  0x38   :  { %6627 = vmatpush1.bf16.msra.mxu0 %v6626_v59  ;;  %562 = vmatprep.mubr.f32.mxu0 %v8820_v0  ;;  %v725_v22 = vld [vmem:[#allocation2] sm:$0xff]  ;;  %v740_v27 = vld [vmem:[#allocation2 + $0x78] sm:$0xff]  ;;  %v747_v28 = vld [vmem:[#allocation2 + $0xb0] sm:$0xff]  ;;  %v6646_v33 = vpack.c.bf16 %v134_v25, %v120_v21 }
  0x39   :  { %6629 = vmatprep.subr.bf16.mxu0 %v6628_v63  ;;  %6633 = vmatprep.subr.bf16.mxu1 %v6632_v2  ;;  %v728_v29 = vld [vmem:[#allocation2 + $0x18] sm:$0xff]  ;;  %v735_v30 = vld [vmem:[#allocation2 + $0x50] sm:$0xff]  ;;  %v6650_v31 = vpack.c.bf16 %v732_v23, %v725_v22  ;;  %v6652_v35 = vpack.c.bf16 %v747_v28, %v740_v27  ;;  %v746_v37 = vld [vmem:[#allocation2 + $0xa8] sm:$0xff] }
  0x3a   :  { %6035 = vmatmul.mubr.msk.f32.vlgmr.msra.gmra.mrb[2].mxu1 %vm210_vm0, %v9011_v32  ;;  %v727_v34 = vld [vmem:[#allocation2 + $0x10] sm:$0xff]  ;;  %v7096_v38 = vpack.c.bf16 %v735_v30, %v728_v29  ;;  %v734_v39 = vld [vmem:[#allocation2 + $0x48] sm:$0xff]  ;;  %v761_v41 = vld [vmem:[#allocation2 + $0x120] sm:$0xff] }
  0x3b   :  { %6635 = vmatpush1.bf16.msra.mxu1 %v6634_v7  ;;  %633 = vmatprep.mubr.f32.mxu1 %v8820_v0  ;;  %v739_v36 = vld [vmem:[#allocation2 + $0x70] sm:$0xff]  ;;  %v754_v40 = vld [vmem:[#allocation2 + $0xe8] sm:$0xff]  ;;  %v749_v43 = vld [vmem:[#allocation2 + $0xc0] sm:$0xff]  ;;  %v7098_v45 = vpack.c.bf16 %v734_v39, %v727_v34 }
  0x3c   :  { %6631 = vmatpush1.bf16.msra.mxu0 %v6630_v8  ;;  %6637 = vmatprep.subr.bf16.mxu1 %v6636_v9  ;;  %v742_v42 = vld [vmem:[#allocation2 + $0x88] sm:$0xff]  ;;  %v6654_v44 = vpack.c.bf16 %v746_v37, %v739_v36  ;;  %v741_v46 = vld [vmem:[#allocation2 + $0x80] sm:$0xff]  ;;  %v6656_v47 = vpack.c.bf16 %v761_v41, %v754_v40  ;;  %v760_v49 = vld [vmem:[#allocation2 + $0x118] sm:$0xff] }
  0x3d   :  { %6641 = vmatprep.subr.bf16.mxu0 %v6640_v12  ;;  %v753_v48 = vld [vmem:[#allocation2 + $0xe0] sm:$0xff]  ;;  %v7100_v50 = vpack.c.bf16 %v749_v43, %v742_v42  ;;  %v748_v51 = vld [vmem:[#allocation2 + $0xb8] sm:$0xff]  ;;  %v775_v53 = vld [vmem:[#allocation2 + $0x190] sm:$0xff] }
  0x3e   :  { %v768_v52 = vld [vmem:[#allocation2 + $0x158] sm:$0xff]  ;;  %v763_v55 = vld [vmem:[#allocation2 + $0x130] sm:$0xff]  ;;  %v6658_v56 = vpack.c.bf16 %v760_v49, %v753_v48  ;;  %v7102_v57 = vpack.c.bf16 %v748_v51, %v741_v46  ;;  %v774_v61 = vld [vmem:[#allocation2 + $0x188] sm:$0xff] }
  0x3f   :  { %6036 = vmatmul.mubr.msk.f32.vlgmr.msra.gmra.mrb[4].mxu0 %vm210_vm0, %v9011_v32  ;;  %6639 = vmatpush1.bf16.msra.mxu1 %v6638_v19  ;;  %v756_v54 = vld [vmem:[#allocation2 + $0xf8] sm:$0xff]  ;;  %v755_v58 = vld [vmem:[#allocation2 + $0xf0] sm:$0xff]  ;;  %v6660_v59 = vpack.c.bf16 %v775_v53, %v768_v52  ;;  %v762_v63 = vld [vmem:[#allocation2 + $0x128] sm:$0xff] }
  0x40   :  { %6643 = vmatpush1.bf16.msra.mxu0 %v6642_v20  ;;  %704 = vmatprep.mubr.f32.mxu0 %v8820_v0  ;;  %v767_v60 = vld [vmem:[#allocation2 + $0x150] sm:$0xff]  ;;  %v7104_v62 = vpack.c.bf16 %v763_v55, %v756_v54  ;;  %v782_v1 = vld [vmem:[#allocation2 + $0x1c8] sm:$0xff]  ;;  %v789_v2 = vld [vmem:[#allocation2 + $0x200] sm:$0xff] }
  0x41   :  { %6645 = vmatprep.subr.bf16.mxu0 %v6644_v24  ;;  %6649 = vmatprep.subr.bf16.mxu1 %v6648_v26  ;;  %v770_v3 = vld [vmem:[#allocation2 + $0x168] sm:$0xff]  ;;  %v777_v4 = vld [vmem:[#allocation2 + $0x1a0] sm:$0xff]  ;;  %v6662_v5 = vpack.c.bf16 %v774_v61, %v767_v60  ;;  %v6664_v7 = vpack.c.bf16 %v789_v2, %v782_v1  ;;  %v788_v9 = vld [vmem:[#allocation2 + $0x1f8] sm:$0xff] }
  0x42   :  { %6037 = vmatmul.mubr.msk.f32.vlgmr.msra.gmra.mrb[4].mxu1 %vm210_vm0, %v9011_v32  ;;  %v769_v6 = vld [vmem:[#allocation2 + $0x160] sm:$0xff]  ;;  %v7108_v10 = vpack.c.bf16 %v777_v4, %v770_v3  ;;  %v776_v11 = vld [vmem:[#allocation2 + $0x198] sm:$0xff]  ;;  %v803_v13 = vld [vmem:[#allocation2 + $0x270] sm:$0xff] }
  0x43   :  { %6651 = vmatpush1.bf16.msra.mxu1 %v6650_v31  ;;  %v781_v8 = vld [vmem:[#allocation2 + $0x1c0] sm:$0xff]  ;;  %v796_v12 = vld [vmem:[#allocation2 + $0x238] sm:$0xff]  ;;  %v791_v15 = vld [vmem:[#allocation2 + $0x210] sm:$0xff]  ;;  %v7110_v17 = vpack.c.bf16 %v776_v11, %v769_v6 }
  0x44   :  { %6647 = vmatpush1.bf16.msra.mxu0 %v6646_v33  ;;  %6653 = vmatprep.subr.bf16.mxu1 %v6652_v35  ;;  %v784_v14 = vld [vmem:[#allocation2 + $0x1d8] sm:$0xff]  ;;  %v6666_v16 = vpack.c.bf16 %v788_v9, %v781_v8  ;;  %v783_v18 = vld [vmem:[#allocation2 + $0x1d0] sm:$0xff]  ;;  %v6668_v19 = vpack.c.bf16 %v803_v13, %v796_v12  ;;  %v802_v21 = vld [vmem:[#allocation2 + $0x268] sm:$0xff] }
  0x45   :  { %7097 = vmatprep.subr.bf16.mxu0 %v7096_v38  ;;  %v795_v20 = vld [vmem:[#allocation2 + $0x230] sm:$0xff]  ;;  %v7112_v22 = vpack.c.bf16 %v791_v15, %v784_v14  ;;  %v790_v23 = vld [vmem:[#allocation2 + $0x208] sm:$0xff]  ;;  %v817_v25 = vld [vmem:[#allocation2 + $0x2e0] sm:$0xff] }
  0x46   :  { %v810_v24 = vld [vmem:[#allocation2 + $0x2a8] sm:$0xff]  ;;  %v805_v27 = vld [vmem:[#allocation2 + $0x280] sm:$0xff]  ;;  %v6670_v28 = vpack.c.bf16 %v802_v21, %v795_v20  ;;  %v7114_v29 = vpack.c.bf16 %v790_v23, %v783_v18  ;;  %v816_v34 = vld [vmem:[#allocation2 + $0x2d8] sm:$0xff] }
  0x47   :  { %6038 = vmatmul.mubr.msk.f32.vlgmr.msra.gmra.mrb[6].mxu0 %vm210_vm0, %v9011_v32  ;;  %6655 = vmatpush1.bf16.msra.mxu1 %v6654_v44  ;;  %v7106_v32 = vpack.c.bf16 %v762_v63, %v755_v58  ;;  %v798_v26 = vld [vmem:[#allocation2 + $0x248] sm:$0xff]  ;;  %v797_v30 = vld [vmem:[#allocation2 + $0x240] sm:$0xff]  ;;  %v6672_v31 = vpack.c.bf16 %v817_v25, %v810_v24  ;;  %v804_v36 = vld [vmem:[#allocation2 + $0x278] sm:$0xff] }
  0x48   :  { %7099 = vmatpush1.bf16.msra.mxu0 %v7098_v45  ;;  %6657 = vmatprep.subr.bf16.mxu1 %v6656_v47  ;;  %v809_v33 = vld [vmem:[#allocation2 + $0x2a0] sm:$0xff]  ;;  %v7116_v35 = vpack.c.bf16 %v805_v27, %v798_v26  ;;  %v824_v37 = vld [vmem:[#allocation2 + $0x318] sm:$0xff]  ;;  %v831_v38 = vld [vmem:[#allocation2 + $0x350] sm:$0xff]  ;;  %v7118_v42 = vpack.c.bf16 %v804_v36, %v797_v30 }
  0x49   :  { %7101 = vmatprep.subr.bf16.mxu0 %v7100_v50  ;;  %v812_v39 = vld [vmem:[#allocation2 + $0x2b8] sm:$0xff]  ;;  %v819_v40 = vld [vmem:[#allocation2 + $0x2f0] sm:$0xff]  ;;  %v6674_v41 = vpack.c.bf16 %v816_v34, %v809_v33  ;;  %v6676_v44 = vpack.c.bf16 %v831_v38, %v824_v37  ;;  %v830_v46 = vld [vmem:[#allocation2 + $0x348] sm:$0xff] }
  0x4a   :  { %v811_v43 = vld [vmem:[#allocation2 + $0x2b0] sm:$0xff]  ;;  %v7120_v47 = vpack.c.bf16 %v819_v40, %v812_v39  ;;  %v818_v48 = vld [vmem:[#allocation2 + $0x2e8] sm:$0xff]  ;;  %v845_v50 = vld [vmem:[#allocation2 + $0x3c0] sm:$0xff] }
  0x4b   :  { %6659 = vmatpush1.bf16.msra.mxu1 %v6658_v56  ;;  %v823_v45 = vld [vmem:[#allocation2 + $0x310] sm:$0xff]  ;;  %v838_v49 = vld [vmem:[#allocation2 + $0x388] sm:$0xff]  ;;  %v833_v52 = vld [vmem:[#allocation2 + $0x360] sm:$0xff]  ;;  %v7122_v54 = vpack.c.bf16 %v818_v48, %v811_v43 }
  0x4c   :  { %7103 = vmatpush1.bf16.msra.mxu0 %v7102_v57  ;;  %6661 = vmatprep.subr.bf16.mxu1 %v6660_v59  ;;  %v826_v51 = vld [vmem:[#allocation2 + $0x328] sm:$0xff]  ;;  %v6678_v53 = vpack.c.bf16 %v830_v46, %v823_v45  ;;  %v825_v55 = vld [vmem:[#allocation2 + $0x320] sm:$0xff]  ;;  %v6680_v56 = vpack.c.bf16 %v845_v50, %v838_v49  ;;  %v844_v58 = vld [vmem:[#allocation2 + $0x3b8] sm:$0xff] }
  0x4d   :  { %7105 = vmatprep.subr.bf16.mxu0 %v7104_v62  ;;  %v837_v57 = vld [vmem:[#allocation2 + $0x380] sm:$0xff]  ;;  %v7124_v59 = vpack.c.bf16 %v833_v52, %v826_v51  ;;  %v832_v60 = vld [vmem:[#allocation2 + $0x358] sm:$0xff]  ;;  %v859_v62 = vld [vmem:[#allocation2 + $0x430] sm:$0xff] }
  0x4e   :  { %v852_v61 = vld [vmem:[#allocation2 + $0x3f8] sm:$0xff]  ;;  %v847_v1 = vld [vmem:[#allocation2 + $0x3d0] sm:$0xff]  ;;  %v6682_v2 = vpack.c.bf16 %v844_v58, %v837_v57  ;;  %v7126_v3 = vpack.c.bf16 %v832_v60, %v825_v55  ;;  %v858_v6 = vld [vmem:[#allocation2 + $0x428] sm:$0xff] }
  0x4f   :  { %6663 = vmatpush1.bf16.msra.mxu1 %v6662_v5  ;;  %v840_v63 = vld [vmem:[#allocation2 + $0x398] sm:$0xff]  ;;  %v839_v4 = vld [vmem:[#allocation2 + $0x390] sm:$0xff]  ;;  %v6684_v5 = vpack.c.bf16 %v859_v62, %v852_v61  ;;  %v846_v8 = vld [vmem:[#allocation2 + $0x3c8] sm:$0xff] }
  0x50   :  { %7107 = vmatpush1.bf16.msra.mxu0 %v7106_v32  ;;  %6665 = vmatprep.subr.bf16.mxu1 %v6664_v7  ;;  %v851_v32 = vld [vmem:[#allocation2 + $0x3f0] sm:$0xff]  ;;  %v7128_v7 = vpack.c.bf16 %v847_v1, %v840_v63  ;;  %v866_v9 = vld [vmem:[#allocation2 + $0x468] sm:$0xff]  ;;  %v861_v12 = vld [vmem:[#allocation2 + $0x440] sm:$0xff]  ;;  %v7130_v14 = vpack.c.bf16 %v846_v8, %v839_v4 }
  0x51   :  { %7109 = vmatprep.subr.bf16.mxu0 %v7108_v10  ;;  %v873_v10 = vld [vmem:[#allocation2 + $0x4a0] sm:$0xff]  ;;  %v854_v11 = vld [vmem:[#allocation2 + $0x408] sm:$0xff]  ;;  %v6686_v13 = vpack.c.bf16 %v858_v6, %v851_v32  ;;  %v872_v18 = vld [vmem:[#allocation2 + $0x498] sm:$0xff] }
  0x52   :  { %v853_v15 = vld [vmem:[#allocation2 + $0x400] sm:$0xff]  ;;  %v860_v20 = vld [vmem:[#allocation2 + $0x438] sm:$0xff]  ;;  %v875_v24 = vld [vmem:[#allocation2 + $0x4b0] sm:$0xff] }
  0x53   :  { %6667 = vmatpush1.bf16.msra.mxu1 %v6666_v16  ;;  %v6688_v16 = vpack.c.bf16 %v873_v10, %v866_v9  ;;  %v880_v21 = vld [vmem:[#allocation2 + $0x4d8] sm:$0xff]  ;;  %v7134_v26 = vpack.c.bf16 %v860_v20, %v853_v15  ;;  %v867_v27 = vld [vmem:[#allocation2 + $0x470] sm:$0xff]  ;;  %v886_v30 = vld [vmem:[#allocation2 + $0x508] sm:$0xff] }
  0x54   :  { %7111 = vmatpush1.bf16.msra.mxu0 %v7110_v17  ;;  %6669 = vmatprep.subr.bf16.mxu1 %v6668_v19  ;;  %v865_v17 = vld [vmem:[#allocation2 + $0x460] sm:$0xff]  ;;  %v7132_v19 = vpack.c.bf16 %v861_v12, %v854_v11  ;;  %v868_v23 = vld [vmem:[#allocation2 + $0x478] sm:$0xff]  ;;  %v874_v33 = vld [vmem:[#allocation2 + $0x4a8] sm:$0xff] }
  0x55   :  { %7113 = vmatprep.subr.bf16.mxu0 %v7112_v22  ;;  %v887_v22 = vld [vmem:[#allocation2 + $0x510] sm:$0xff]  ;;  %v6690_v25 = vpack.c.bf16 %v872_v18, %v865_v17  ;;  %v894_v34 = vld [vmem:[#allocation2 + $0x548] sm:$0xff]  ;;  %v889_v37 = vld [vmem:[#allocation2 + $0x520] sm:$0xff]  ;;  %v7138_v39 = vpack.c.bf16 %v874_v33, %v867_v27  ;;  %v140_v33 = vlaneseq }
  0x56   :  { %v882_v36 = vld [vmem:[#allocation2 + $0x4e8] sm:$0xff]  ;;  %v881_v40 = vld [vmem:[#allocation2 + $0x4e0] sm:$0xff]  ;;  %v900_v43 = vld [vmem:[#allocation2 + $0x578] sm:$0xff] }
  0x57   :  { %6671 = vmatpush1.bf16.msra.mxu1 %v6670_v28  ;;  %v6692_v28 = vpack.c.bf16 %v887_v22, %v880_v21  ;;  %v888_v45 = vld [vmem:[#allocation2 + $0x518] sm:$0xff]  ;;  %v903_v49 = vld [vmem:[#allocation2 + $0x590] sm:$0xff]  ;;  %v914_v55 = vld [vmem:[#allocation2 + $0x5e8] sm:$0xff] }
  0x58   :  { %7115 = vmatpush1.bf16.msra.mxu0 %v7114_v29  ;;  %6673 = vmatprep.subr.bf16.mxu1 %v6672_v31  ;;  %v879_v29 = vld [vmem:[#allocation2 + $0x4d0] sm:$0xff]  ;;  %v7136_v31 = vpack.c.bf16 %v875_v24, %v868_v23  ;;  %v908_v46 = vld [vmem:[#allocation2 + $0x5b8] sm:$0xff]  ;;  %v7142_v51 = vpack.c.bf16 %v888_v45, %v881_v40  ;;  %v902_v57 = vld [vmem:[#allocation2 + $0x588] sm:$0xff] }
  0x59   :  { %7117 = vmatprep.subr.bf16.mxu0 %v7116_v35  ;;  %v901_v35 = vld [vmem:[#allocation2 + $0x580] sm:$0xff]  ;;  %v6694_v38 = vpack.c.bf16 %v886_v30, %v879_v29  ;;  %v896_v48 = vld [vmem:[#allocation2 + $0x558] sm:$0xff]  ;;  %v895_v52 = vld [vmem:[#allocation2 + $0x550] sm:$0xff] }
  0x5a   :  { %v922_v58 = vld [vmem:[#allocation2 + $0x628] sm:$0xff]  ;;  %v917_v61 = vld [vmem:[#allocation2 + $0x600] sm:$0xff]  ;;  %v7146_v63 = vpack.c.bf16 %v902_v57, %v895_v52  ;;  %v916_v32 = vld [vmem:[#allocation2 + $0x5f8] sm:$0xff] }
  0x5b   :  { %6675 = vmatpush1.bf16.msra.mxu1 %v6674_v41  ;;  %v6696_v41 = vpack.c.bf16 %v901_v35, %v894_v34  ;;  %v910_v60 = vld [vmem:[#allocation2 + $0x5c8] sm:$0xff]  ;;  %v924_v6 = vld [vmem:[#allocation2 + $0x638] sm:$0xff]  ;;  %v923_v11 = vld [vmem:[#allocation2 + $0x630] sm:$0xff]  ;;  %v9134_v34 = vshrl.u32 %v140_v33, 7 }
  0x5c   :  { %7119 = vmatpush1.bf16.msra.mxu0 %v7118_v42  ;;  %6677 = vmatprep.subr.bf16.mxu1 %v6676_v44  ;;  %v893_v42 = vld [vmem:[#allocation2 + $0x540] sm:$0xff]  ;;  %v7140_v44 = vpack.c.bf16 %v889_v37, %v882_v36  ;;  %v7148_v4 = vpack.c.bf16 %v917_v61, %v910_v60  ;;  %v930_v12 = vld [vmem:[#allocation2 + $0x668] sm:$0xff]  ;;  %v943_v15 = vld [vmem:[#allocation2 + $0x6d0] sm:$0xff] }
  0x5d   :  { %7121 = vmatprep.subr.bf16.mxu0 %v7120_v47  ;;  %v915_v47 = vld [vmem:[#allocation2 + $0x5f0] sm:$0xff]  ;;  %v6698_v50 = vpack.c.bf16 %v900_v43, %v893_v42  ;;  %v945_v18 = vld [vmem:[#allocation2 + $0x6e0] sm:$0xff]  ;;  %v942_v20 = vld [vmem:[#allocation2 + $0x6c8] sm:$0xff]  ;;  %v9137_v35 = vsub.s32 0, %v9134_v34  ;;  %v9145_v37 = vsub.s32 1, %v9134_v34 }
  0x5e   :  { %v937_v23 = vld [vmem:[#allocation2 + $0x6a0] sm:$0xff]  ;;  %v944_v24 = vld [vmem:[#allocation2 + $0x6d8] sm:$0xff]  ;;  %v959_v30 = vld [vmem:[#allocation2 + $0x750] sm:$0xff] }
  0x5f   :  { %6679 = vmatpush1.bf16.msra.mxu1 %v6678_v53  ;;  %v6700_v53 = vpack.c.bf16 %v915_v47, %v908_v46  ;;  %v957_v27 = vld [vmem:[#allocation2 + $0x740] sm:$0xff]  ;;  %v956_v43 = vld [vmem:[#allocation2 + $0x738] sm:$0xff]  ;;  %v951_v46 = vld [vmem:[#allocation2 + $0x710] sm:$0xff] }
  0x60   :  { %7123 = vmatpush1.bf16.msra.mxu0 %v7122_v54  ;;  %6681 = vmatprep.subr.bf16.mxu1 %v6680_v56  ;;  %v907_v54 = vld [vmem:[#allocation2 + $0x5b0] sm:$0xff]  ;;  %v7144_v56 = vpack.c.bf16 %v903_v49, %v896_v48  ;;  %v9142_v36 = vld [vmem:[%s10989_s15] sm:$0xff]  ;;  %v958_v47 = vld [vmem:[#allocation2 + $0x748] sm:$0xff] }
  0x61   :  { %7125 = vmatprep.subr.bf16.mxu0 %v7124_v59  ;;  %v929_v59 = vld [vmem:[#allocation2 + $0x660] sm:$0xff]  ;;  %v6702_v62 = vpack.c.bf16 %v914_v55, %v907_v54  ;;  %v147_v40 = vrot.slane %v9142_v36, %v9145_v37  ;;  %v964_v48 = vld [vmem:[#allocation2 + $0x778] sm:$0xff]  ;;  %v966_v52 = vld [vmem:[#allocation2 + $0x788] sm:$0xff]  ;;  %v7162_v57 = vpack.c.bf16 %v958_v47, %v951_v46 }
  0x62   :  { %v6704_v1 = vpack.c.bf16 %v929_v59, %v922_v58  ;;  %v949_v42 = vld [vmem:[#allocation2 + $0x700] sm:$0xff]  ;;  %v963_v58 = vld [vmem:[#allocation2 + $0x770] sm:$0xff]  ;;  %v970_v59 = vld [vmem:[#allocation2 + $0x7a8] sm:$0xff] }
  0x63   :  { %6683 = vmatpush1.bf16.msra.mxu1 %v6682_v2  ;;  %v921_v2 = vld [vmem:[#allocation2 + $0x620] sm:$0xff]  ;;  %v1008_v33 = vld [vmem:[#allocation2 + $0x8d8] sm:$0xff]  ;;  %v1007_v47 = vld [vmem:[#allocation2 + $0x8d0] sm:$0xff] }
  0x64   :  { %7127 = vmatpush1.bf16.msra.mxu0 %v7126_v3  ;;  %6685 = vmatprep.subr.bf16.mxu1 %v6684_v5  ;;  %v928_v3 = vld [vmem:[#allocation2 + $0x658] sm:$0xff]  ;;  %v909_v5 = vld [vmem:[#allocation2 + $0x5c0] sm:$0xff] }
  0x65   :  { %7129 = vmatprep.subr.bf16.mxu0 %v7128_v7  ;;  %v931_v7 = vld [vmem:[#allocation2 + $0x670] sm:$0xff]  ;;  %v6706_v8 = vpack.c.bf16 %v928_v3, %v921_v2  ;;  %v7150_v9 = vpack.c.bf16 %v916_v32, %v909_v5  ;;  %v972_v2 = vld [vmem:[#allocation2 + $0x7b8] sm:$0xff]  ;;  %v978_v3 = vld [vmem:[#allocation2 + $0x7e8] sm:$0xff] }
  0x66   :  { %v7152_v10 = vpack.c.bf16 %v931_v7, %v924_v6  ;;  %v985_v5 = vld [vmem:[#allocation2 + $0x820] sm:$0xff]  ;;  %v980_v32 = vld [vmem:[#allocation2 + $0x7f8] sm:$0xff]  ;;  %v987_v6 = vld [vmem:[#allocation2 + $0x830] sm:$0xff] }
  0x67   :  { %6687 = vmatpush1.bf16.msra.mxu1 %v6686_v13  ;;  %v7154_v13 = vpack.c.bf16 %v930_v12, %v923_v11  ;;  %v984_v11 = vld [vmem:[#allocation2 + $0x818] sm:$0xff] }
  0x68   :  { %7131 = vmatpush1.bf16.msra.mxu0 %v7130_v14  ;;  %6689 = vmatprep.subr.bf16.mxu1 %v6688_v16  ;;  %v936_v14 = vld [vmem:[#allocation2 + $0x698] sm:$0xff]  ;;  %v938_v16 = vld [vmem:[#allocation2 + $0x6a8] sm:$0xff] }
  0x69   :  { %7133 = vmatprep.subr.bf16.mxu0 %v7132_v19  ;;  %v6708_v17 = vpack.c.bf16 %v943_v15, %v936_v14  ;;  %v935_v19 = vld [vmem:[#allocation2 + $0x690] sm:$0xff]  ;;  %v7156_v21 = vpack.c.bf16 %v945_v18, %v938_v16  ;;  %v7168_v14 = vpack.c.bf16 %v987_v6, %v980_v32  ;;  %v986_v16 = vld [vmem:[#allocation2 + $0x828] sm:$0xff] }
  0x6a   :  { %v6710_v22 = vpack.c.bf16 %v942_v20, %v935_v19  ;;  %v979_v15 = vld [vmem:[#allocation2 + $0x7f0] sm:$0xff]  ;;  %v994_v20 = vld [vmem:[#allocation2 + $0x868] sm:$0xff] }
  0x6b   :  { %6691 = vmatpush1.bf16.msra.mxu1 %v6690_v25  ;;  %v7158_v25 = vpack.c.bf16 %v944_v24, %v937_v23  ;;  %v999_v19 = vld [vmem:[#allocation2 + $0x890] sm:$0xff]  ;;  %v7170_v23 = vpack.c.bf16 %v986_v16, %v979_v15  ;;  %v1042_v15 = vld [vmem:[#allocation2 + $0x9e8] sm:$0xff]  ;;  %v1048_v16 = vld [vmem:[#allocation2 + $0xa18] sm:$0xff] }
  0x6c   :  { %7135 = vmatpush1.bf16.msra.mxu0 %v7134_v26  ;;  %6693 = vmatprep.subr.bf16.mxu1 %v6692_v28  ;;  %v950_v26 = vld [vmem:[#allocation2 + $0x708] sm:$0xff]  ;;  %v952_v28 = vld [vmem:[#allocation2 + $0x718] sm:$0xff]  ;;  %v991_v24 = vld [vmem:[#allocation2 + $0x850] sm:$0xff] }
  0x6d   :  { %7137 = vmatprep.subr.bf16.mxu0 %v7136_v31  ;;  %v6712_v29 = vpack.c.bf16 %v957_v27, %v950_v26  ;;  %v7160_v31 = vpack.c.bf16 %v959_v30, %v952_v28  ;;  %v993_v28 = vld [vmem:[#allocation2 + $0x860] sm:$0xff]  ;;  %v1006_v30 = vld [vmem:[#allocation2 + $0x8c8] sm:$0xff] }
  0x6f   :  { %6695 = vmatpush1.bf16.msra.mxu1 %v6694_v38  ;;  %v143_v38 = vrot.slane %v9142_v36, %v9137_v35 }
  0x70   :  { %7139 = vmatpush1.bf16.msra.mxu0 %v7138_v39  ;;  %6697 = vmatprep.subr.bf16.mxu1 %v6696_v41  ;;  %v9150_v39 = vsub.s32 3, %v9134_v34 }
  0x71   :  { %7141 = vmatprep.subr.bf16.mxu0 %v7140_v44 }
  0x72   :  { %v155_v49 = vrot.slane %v9142_v36, %v9150_v39 }
  0x73   :  { %6699 = vmatpush1.bf16.msra.mxu1 %v6698_v50 }
  0x74   :  { %7143 = vmatpush1.bf16.msra.mxu0 %v7142_v51  ;;  %6701 = vmatprep.subr.bf16.mxu1 %v6700_v53  ;;  %v971_v51 = vld [vmem:[#allocation2 + $0x7b0] sm:$0xff]  ;;  %v973_v53 = vld [vmem:[#allocation2 + $0x7c0] sm:$0xff] }
  0x75   :  { %7145 = vmatprep.subr.bf16.mxu0 %v7144_v56  ;;  %v6714_v56 = vpack.c.bf16 %v956_v43, %v949_v42  ;;  %v1005_v42 = vld [vmem:[#allocation2 + $0x8c0] sm:$0xff]  ;;  %v1012_v43 = vld [vmem:[#allocation2 + $0x8f8] sm:$0xff] }
  0x77   :  { %6703 = vmatpush1.bf16.msra.mxu1 %v6702_v62  ;;  %v6716_v62 = vpack.c.bf16 %v971_v51, %v964_v48  ;;  %v1014_v48 = vld [vmem:[#allocation2 + $0x908] sm:$0xff]  ;;  %v1027_v51 = vld [vmem:[#allocation2 + $0x970] sm:$0xff] }
  0x78   :  { %7147 = vmatpush1.bf16.msra.mxu0 %v7146_v63  ;;  %6705 = vmatprep.subr.bf16.mxu1 %v6704_v1  ;;  %v7164_v63 = vpack.c.bf16 %v973_v53, %v966_v52  ;;  %v965_v1 = vld [vmem:[#allocation2 + $0x780] sm:$0xff]  ;;  %v1022_v52 = vld [vmem:[#allocation2 + $0x948] sm:$0xff] }
  0x79   :  { %7149 = vmatprep.subr.bf16.mxu0 %v7148_v4  ;;  %v1029_v53 = vld [vmem:[#allocation2 + $0x980] sm:$0xff] }
  0x7b   :  { %6707 = vmatpush1.bf16.msra.mxu1 %v6706_v8  ;;  %v6718_v8 = vpack.c.bf16 %v970_v59, %v963_v58  ;;  %v1019_v58 = vld [vmem:[#allocation2 + $0x930] sm:$0xff]  ;;  %v1026_v59 = vld [vmem:[#allocation2 + $0x968] sm:$0xff] }
  0x7c   :  { %7151 = vmatpush1.bf16.msra.mxu0 %v7150_v9  ;;  %6709 = vmatprep.subr.bf16.mxu1 %v6708_v17  ;;  %v7166_v9 = vpack.c.bf16 %v972_v2, %v965_v1  ;;  %v992_v17 = vld [vmem:[#allocation2 + $0x858] sm:$0xff]  ;;  %v1034_v2 = vld [vmem:[#allocation2 + $0x9a8] sm:$0xff]  ;;  %v6734_v32 = vpack.c.bf16 %v1026_v59, %v1019_v58  ;;  %v1075_v58 = vld [vmem:[#allocation2 + $0xaf0] sm:$0xff] }
  0x7d   :  { %7153 = vmatprep.subr.bf16.mxu0 %v7152_v10  ;;  %v977_v10 = vld [vmem:[#allocation2 + $0x7e0] sm:$0xff]  ;;  %v6724_v26 = vpack.c.bf16 %v999_v19, %v992_v17  ;;  %v1028_v1 = vld [vmem:[#allocation2 + $0x978] sm:$0xff]  ;;  %v1055_v19 = vld [vmem:[#allocation2 + $0xa50] sm:$0xff] }
  0x7e   :  { %v1082_v59 = vld [vmem:[#allocation2 + $0xb28] sm:$0xff] }
  0x7f   :  { %6711 = vmatpush1.bf16.msra.mxu1 %v6710_v22  ;;  %v6722_v22 = vpack.c.bf16 %v984_v11, %v977_v10 }
  0x80   :  { %7155 = vmatpush1.bf16.msra.mxu0 %v7154_v13  ;;  %6713 = vmatprep.subr.bf16.mxu1 %v6712_v29  ;;  %v6720_v13 = vpack.c.bf16 %v985_v5, %v978_v3  ;;  %v1000_v29 = vld [vmem:[#allocation2 + $0x898] sm:$0xff]  ;;  %v1041_v3 = vld [vmem:[#allocation2 + $0x9e0] sm:$0xff]  ;;  %v1043_v5 = vld [vmem:[#allocation2 + $0x9f0] sm:$0xff] }
  0x81   :  { %7157 = vmatprep.subr.bf16.mxu0 %v7156_v21  ;;  %v1001_v21 = vld [vmem:[#allocation2 + $0x8a0] sm:$0xff]  ;;  %v6736_v11 = vpack.c.bf16 %v1041_v3, %v1034_v2  ;;  %v1090_v2 = vld [vmem:[#allocation2 + $0xb68] sm:$0xff] }
  0x82   :  { %v7172_v27 = vpack.c.bf16 %v1001_v21, %v994_v20  ;;  %v1050_v20 = vld [vmem:[#allocation2 + $0xa28] sm:$0xff]  ;;  %v1057_v21 = vld [vmem:[#allocation2 + $0xa60] sm:$0xff] }
  0x83   :  { %v1097_v3 = vld [vmem:[#allocation2 + $0xba0] sm:$0xff] }
  0x84   :  { %7159 = vmatpush1.bf16.msra.mxu0 %v7158_v25  ;;  %v998_v25 = vld [vmem:[#allocation2 + $0x888] sm:$0xff] }
  0x85   :  { %7161 = vmatprep.subr.bf16.mxu0 %v7160_v31  ;;  %v1013_v31 = vld [vmem:[#allocation2 + $0x900] sm:$0xff] }
 0x102   :  { %v280_v41 = vpop.f32.mrb[0].mxu0 }
 0x103   :  { %v281_v44 = vadd.f32 %v280_v41, %v143_v38  ;;  %v282_v45 = vpop.f32.mrb[1].mxu0  ;;  %v1015_v38 = vld [vmem:[#allocation2 + $0x910] sm:$0xff]  ;;  %v7174_v41 = vpack.c.bf16 %v1000_v29, %v993_v28  ;;  %v1049_v28 = vld [vmem:[#allocation2 + $0xa20] sm:$0xff]  ;;  %v1056_v29 = vld [vmem:[#allocation2 + $0xa58] sm:$0xff] }
 0x104   :  { %v283_v50 = vadd.f32 %v282_v45, %v147_v40  ;;  %v6726_v40 = vpack.c.bf16 %v998_v25, %v991_v24  ;;  %v6728_v45 = vpack.c.bf16 %v1013_v31, %v1006_v30  ;;  %v7176_v46 = vpack.c.bf16 %v1015_v38, %v1008_v33  ;;  %v1047_v24 = vld [vmem:[#allocation2 + $0xa10] sm:$0xff]  ;;  %v1054_v25 = vld [vmem:[#allocation2 + $0xa48] sm:$0xff]  ;;  %v1069_v31 = vld [vmem:[#allocation2 + $0xac0] sm:$0xff] }
 0x105   :  { %v9156_v54 = vpop.f32.mrb[0].mxu1  ;;  %v9160_v61 = vmax.f32 %v281_v44, 0.0  ;;  %v1062_v30 = vld [vmem:[#allocation2 + $0xa88] sm:$0xff]  ;;  %v1064_v33 = vld [vmem:[#allocation2 + $0xa98] sm:$0xff]  ;;  %v1071_v38 = vld [vmem:[#allocation2 + $0xad0] sm:$0xff] }
 0x106   :  { %v9158_v55 = vmax.f32 %v283_v50, 0.0  ;;  %v353_v60 = vpop.f32.mrb[1].mxu1 }
 0x107   :  { %v354_v4 = vadd.f32 %v353_v60, %v155_v49  ;;  %v1020_v49 = vld [vmem:[#allocation2 + $0x938] sm:$0xff] }
 0x108   :  { %2394 = vmatprep.mubr.f32.mxu1 %v9158_v55  ;;  %2891 = vmatprep.mubr.f32.mxu0 %v9158_v55  ;;  %v6732_v60 = vpack.c.bf16 %v1027_v51, %v1020_v49  ;;  %v1076_v49 = vld [vmem:[#allocation2 + $0xaf8] sm:$0xff]  ;;  %v1083_v51 = vld [vmem:[#allocation2 + $0xb30] sm:$0xff] }
 0x109   :  { %2395 = vmatmul.mubr.f32.vlgmr.msra.gmra.mrb[6].mxu1 %v9160_v61  ;;  %2892 = vmatmul.mubr.f32.vlgmr.msra.gmra.mrb[8].mxu0 %v9160_v61  ;;  %v9166_v7 = vmax.f32 %v354_v4, 0.0  ;;  %v1036_v4 = vld [vmem:[#allocation2 + $0x9b8] sm:$0xff] }
 0x10a   :  { %6715 = vmatpush1.bf16.msra.mxu1 %v6714_v56  ;;  %7163 = vmatpush1.bf16.msra.mxu0 %v7162_v57  ;;  %v9168_v12 = vpop.f32.mrb[2].mxu0  ;;  %v6730_v56 = vpack.c.bf16 %v1012_v43, %v1005_v42  ;;  %v7178_v57 = vpack.c.bf16 %v1014_v48, %v1007_v47  ;;  %v1061_v42 = vld [vmem:[#allocation2 + $0xa80] sm:$0xff]  ;;  %v1068_v43 = vld [vmem:[#allocation2 + $0xab8] sm:$0xff]  ;;  %v1063_v47 = vld [vmem:[#allocation2 + $0xa90] sm:$0xff] }
 0x10b   :  { %6717 = vmatprep.subr.bf16.mxu1 %v6716_v62  ;;  %7165 = vmatprep.subr.bf16.mxu0 %v7164_v63  ;;  %v9170_v18 = vpop.f32.mrb[3].mxu0  ;;  %v7180_v62 = vpack.c.bf16 %v1029_v53, %v1022_v52  ;;  %v1021_v63 = vld [vmem:[#allocation2 + $0x940] sm:$0xff]  ;;  %v1070_v48 = vld [vmem:[#allocation2 + $0xac8] sm:$0xff] }
 0x10c   :  { %2465 = vmatprep.mubr.f32.mxu1 %v9166_v7  ;;  %2962 = vmatprep.mubr.f32.mxu0 %v9166_v7  ;;  %v7182_v6 = vpack.c.bf16 %v1028_v1, %v1021_v63  ;;  %v1078_v52 = vld [vmem:[#allocation2 + $0xb08] sm:$0xff]  ;;  %v1085_v53 = vld [vmem:[#allocation2 + $0xb40] sm:$0xff]  ;;  %v1084_v1 = vld [vmem:[#allocation2 + $0xb38] sm:$0xff] }
 0x10d   :  { %v9174_v44 = vpop.f32.mrb[2].mxu1  ;;  %v1077_v63 = vld [vmem:[#allocation2 + $0xb00] sm:$0xff] }
 0x10e   :  { %6719 = vmatpush1.bf16.msra.mxu1 %v6718_v8  ;;  %7167 = vmatpush1.bf16.msra.mxu0 %v7166_v9  ;;  %v9176_v50 = vpop.f32.mrb[3].mxu1  ;;  %v1033_v8 = vld [vmem:[#allocation2 + $0x9a0] sm:$0xff]  ;;  %v1040_v9 = vld [vmem:[#allocation2 + $0x9d8] sm:$0xff] }
 0x10f   :  { %6721 = vmatprep.subr.bf16.mxu1 %v6720_v13  ;;  %7169 = vmatprep.subr.bf16.mxu0 %v7168_v14  ;;  %v7184_v13 = vpack.c.bf16 %v1043_v5, %v1036_v4  ;;  %v1035_v14 = vld [vmem:[#allocation2 + $0x9b0] sm:$0xff]  ;;  %v1092_v4 = vld [vmem:[#allocation2 + $0xb78] sm:$0xff] }
 0x110   :  { %v1099_v5 = vld [vmem:[#allocation2 + $0xbb0] sm:$0xff] }
 0x112   :  { %6723 = vmatpush1.bf16.msra.mxu1 %v6722_v22  ;;  %7171 = vmatpush1.bf16.msra.mxu0 %v7170_v23  ;;  %v6738_v22 = vpack.c.bf16 %v1040_v9, %v1033_v8  ;;  %v7186_v23 = vpack.c.bf16 %v1042_v15, %v1035_v14  ;;  %v1089_v8 = vld [vmem:[#allocation2 + $0xb60] sm:$0xff]  ;;  %v1096_v9 = vld [vmem:[#allocation2 + $0xb98] sm:$0xff]  ;;  %v1091_v14 = vld [vmem:[#allocation2 + $0xb70] sm:$0xff] }
 0x113   :  { %6725 = vmatprep.subr.bf16.mxu1 %v6724_v26  ;;  %7173 = vmatprep.subr.bf16.mxu0 %v7172_v27  ;;  %v6740_v26 = vpack.c.bf16 %v1055_v19, %v1048_v16  ;;  %v7188_v27 = vpack.c.bf16 %v1057_v21, %v1050_v20  ;;  %v1098_v15 = vld [vmem:[#allocation2 + $0xba8] sm:$0xff]  ;;  %v1104_v16 = vld [vmem:[#allocation2 + $0xbd8] sm:$0xff]  ;;  %v1111_v19 = vld [vmem:[#allocation2 + $0xc10] sm:$0xff] }
 0x114   :  { %v1106_v20 = vld [vmem:[#allocation2 + $0xbe8] sm:$0xff]  ;;  %v1113_v21 = vld [vmem:[#allocation2 + $0xc20] sm:$0xff] }
 0x115   :  { %v9178_v10 = vpop.f32.mrb[4].mxu1 }
 0x116   :  { %6727 = vmatpush1.bf16.msra.mxu1 %v6726_v40  ;;  %7175 = vmatpush1.bf16.msra.mxu0 %v7174_v41  ;;  %v9180_v17 = vpop.f32.mrb[5].mxu1  ;;  %v6742_v40 = vpack.c.bf16 %v1054_v25, %v1047_v24  ;;  %v7190_v41 = vpack.c.bf16 %v1056_v29, %v1049_v28  ;;  %v1103_v24 = vld [vmem:[#allocation2 + $0xbd0] sm:$0xff]  ;;  %v1110_v25 = vld [vmem:[#allocation2 + $0xc08] sm:$0xff]  ;;  %v1105_v28 = vld [vmem:[#allocation2 + $0xbe0] sm:$0xff] }
 0x117   :  { %6729 = vmatprep.subr.bf16.mxu1 %v6728_v45  ;;  %7177 = vmatprep.subr.bf16.mxu0 %v7176_v46  ;;  %v6744_v45 = vpack.c.bf16 %v1069_v31, %v1062_v30  ;;  %v7192_v46 = vpack.c.bf16 %v1071_v38, %v1064_v33  ;;  %v1112_v29 = vld [vmem:[#allocation2 + $0xc18] sm:$0xff]  ;;  %v1118_v30 = vld [vmem:[#allocation2 + $0xc48] sm:$0xff]  ;;  %v1125_v31 = vld [vmem:[#allocation2 + $0xc80] sm:$0xff] }
 0x118   :  { %v1120_v33 = vld [vmem:[#allocation2 + $0xc58] sm:$0xff]  ;;  %v1127_v38 = vld [vmem:[#allocation2 + $0xc90] sm:$0xff] }
 0x11a   :  { %6731 = vmatpush1.bf16.msra.mxu1 %v6730_v56  ;;  %7179 = vmatpush1.bf16.msra.mxu0 %v7178_v57  ;;  %v6746_v56 = vpack.c.bf16 %v1068_v43, %v1061_v42  ;;  %v7194_v57 = vpack.c.bf16 %v1070_v48, %v1063_v47  ;;  %v1117_v42 = vld [vmem:[#allocation2 + $0xc40] sm:$0xff]  ;;  %v1124_v43 = vld [vmem:[#allocation2 + $0xc78] sm:$0xff]  ;;  %v1119_v47 = vld [vmem:[#allocation2 + $0xc50] sm:$0xff] }
 0x11b   :  { %6733 = vmatprep.subr.bf16.mxu1 %v6732_v60  ;;  %7181 = vmatprep.subr.bf16.mxu0 %v7180_v62  ;;  %v6748_v60 = vpack.c.bf16 %v1083_v51, %v1076_v49  ;;  %v7196_v62 = vpack.c.bf16 %v1085_v53, %v1078_v52  ;;  %v1126_v48 = vld [vmem:[#allocation2 + $0xc88] sm:$0xff]  ;;  %v1132_v49 = vld [vmem:[#allocation2 + $0xcb8] sm:$0xff]  ;;  %v1139_v51 = vld [vmem:[#allocation2 + $0xcf0] sm:$0xff] }
 0x11c   :  { %v1134_v52 = vld [vmem:[#allocation2 + $0xcc8] sm:$0xff]  ;;  %v1141_v53 = vld [vmem:[#allocation2 + $0xd00] sm:$0xff] }
 0x11e   :  { %6735 = vmatpush1.bf16.msra.mxu1 %v6734_v32  ;;  %7183 = vmatpush1.bf16.msra.mxu0 %v7182_v6  ;;  %v6750_v32 = vpack.c.bf16 %v1082_v59, %v1075_v58  ;;  %v7198_v6 = vpack.c.bf16 %v1084_v1, %v1077_v63  ;;  %v1131_v58 = vld [vmem:[#allocation2 + $0xcb0] sm:$0xff]  ;;  %v1138_v59 = vld [vmem:[#allocation2 + $0xce8] sm:$0xff]  ;;  %v1133_v63 = vld [vmem:[#allocation2 + $0xcc0] sm:$0xff] }
 0x11f   :  { %6737 = vmatprep.subr.bf16.mxu1 %v6736_v11  ;;  %7185 = vmatprep.subr.bf16.mxu0 %v7184_v13  ;;  %v6752_v11 = vpack.c.bf16 %v1097_v3, %v1090_v2  ;;  %v7200_v13 = vpack.c.bf16 %v1099_v5, %v1092_v4  ;;  %v1140_v1 = vld [vmem:[#allocation2 + $0xcf8] sm:$0xff]  ;;  %v1146_v2 = vld [vmem:[#allocation2 + $0xd28] sm:$0xff]  ;;  %v1153_v3 = vld [vmem:[#allocation2 + $0xd60] sm:$0xff] }
 0x120   :  { %v1148_v4 = vld [vmem:[#allocation2 + $0xd38] sm:$0xff]  ;;  %v1155_v5 = vld [vmem:[#allocation2 + $0xd70] sm:$0xff] }
 0x122   :  { %6739 = vmatpush1.bf16.msra.mxu1 %v6738_v22  ;;  %7187 = vmatpush1.bf16.msra.mxu0 %v7186_v23  ;;  %v6754_v22 = vpack.c.bf16 %v1096_v9, %v1089_v8  ;;  %v7202_v23 = vpack.c.bf16 %v1098_v15, %v1091_v14  ;;  %v7214_v8 = vpack.c.bf16 %v1140_v1, %v1133_v63  ;;  %v1145_v9 = vld [vmem:[#allocation2 + $0xd20] sm:$0xff]  ;;  %v1147_v15 = vld [vmem:[#allocation2 + $0xd30] sm:$0xff] }
 0x123   :  { %6741 = vmatprep.subr.bf16.mxu1 %v6740_v26  ;;  %7189 = vmatprep.subr.bf16.mxu0 %v7188_v27  ;;  %v6756_v26 = vpack.c.bf16 %v1111_v19, %v1104_v16  ;;  %v7204_v27 = vpack.c.bf16 %v1113_v21, %v1106_v20  ;;  %v7216_v14 = vpack.c.bf16 %v1155_v5, %v1148_v4  ;;  %v1154_v16 = vld [vmem:[#allocation2 + $0xd68] sm:$0xff]  ;;  %v1160_v19 = vld [vmem:[#allocation2 + $0xd98] sm:$0xff]  ;;  %v1167_v20 = vld [vmem:[#allocation2 + $0xdd0] sm:$0xff] }
 0x124   :  { %v1162_v21 = vld [vmem:[#allocation2 + $0xda8] sm:$0xff]  ;;  %v1187_v1 = vld [vmem:[#allocation2 + $0xe70] sm:$0xff]  ;;  %v1189_v5 = vld [vmem:[#allocation2 + $0xe80] sm:$0xff] }
 0x126   :  { %6743 = vmatpush1.bf16.msra.mxu1 %v6742_v40  ;;  %7191 = vmatpush1.bf16.msra.mxu0 %v7190_v41  ;;  %v6758_v40 = vpack.c.bf16 %v1110_v25, %v1103_v24  ;;  %v7206_v41 = vpack.c.bf16 %v1112_v29, %v1105_v28  ;;  %v1166_v28 = vld [vmem:[#allocation2 + $0xdc8] sm:$0xff]  ;;  %v6772_v29 = vpack.c.bf16 %v1167_v20, %v1160_v19  ;;  %v1208_v19 = vld [vmem:[#allocation2 + $0xf18] sm:$0xff] }
 0x127   :  { %6745 = vmatprep.subr.bf16.mxu1 %v6744_v45  ;;  %7193 = vmatprep.subr.bf16.mxu0 %v7192_v46  ;;  %v6760_v45 = vpack.c.bf16 %v1125_v31, %v1118_v30  ;;  %v7208_v46 = vpack.c.bf16 %v1127_v38, %v1120_v33  ;;  %v1161_v31 = vld [vmem:[#allocation2 + $0xda0] sm:$0xff]  ;;  %v1168_v33 = vld [vmem:[#allocation2 + $0xdd8] sm:$0xff]  ;;  %v1174_v38 = vld [vmem:[#allocation2 + $0xe08] sm:$0xff] }
 0x12a   :  { %6747 = vmatpush1.bf16.msra.mxu1 %v6746_v56  ;;  %7195 = vmatpush1.bf16.msra.mxu0 %v7194_v57  ;;  %v6762_v56 = vpack.c.bf16 %v1124_v43, %v1117_v42  ;;  %v7210_v57 = vpack.c.bf16 %v1126_v48, %v1119_v47  ;;  %v1183_v42 = vld [vmem:[#allocation2 + $0xe50] sm:$0xff]  ;;  %v7222_v47 = vpack.c.bf16 %v1168_v33, %v1161_v31  ;;  %v1173_v48 = vld [vmem:[#allocation2 + $0xe00] sm:$0xff]  ;;  %v1222_v33 = vld [vmem:[#allocation2 + $0xf88] sm:$0xff] }
 0x12b   :  { %6749 = vmatprep.subr.bf16.mxu1 %v6748_v60  ;;  %7197 = vmatprep.subr.bf16.mxu0 %v7196_v62  ;;  %v6764_v60 = vpack.c.bf16 %v1139_v51, %v1132_v49  ;;  %v7212_v62 = vpack.c.bf16 %v1141_v53, %v1134_v52  ;;  %v1180_v49 = vld [vmem:[#allocation2 + $0xe38] sm:$0xff]  ;;  %v1175_v53 = vld [vmem:[#allocation2 + $0xe10] sm:$0xff] }
 0x12c   :  { %v1215_v31 = vld [vmem:[#allocation2 + $0xf50] sm:$0xff] }
 0x12e   :  { %6751 = vmatpush1.bf16.msra.mxu1 %v6750_v32  ;;  %7199 = vmatpush1.bf16.msra.mxu0 %v7198_v6  ;;  %v9183_v32 = vsub.s32 2, %v9134_v34  ;;  %v6766_v6 = vpack.c.bf16 %v1138_v59, %v1131_v58  ;;  %v1195_v58 = vld [vmem:[#allocation2 + $0xeb0] sm:$0xff]  ;;  %v1190_v59 = vld [vmem:[#allocation2 + $0xe88] sm:$0xff] }
 0x12f   :  { %6753 = vmatprep.subr.bf16.mxu1 %v6752_v11  ;;  %7201 = vmatprep.subr.bf16.mxu0 %v7200_v13  ;;  %v1152_v11 = vld [vmem:[#allocation2 + $0xd58] sm:$0xff]  ;;  %v6768_v13 = vpack.c.bf16 %v1153_v3, %v1146_v2  ;;  %v1194_v2 = vld [vmem:[#allocation2 + $0xea8] sm:$0xff] }
 0x130   :  { %v151_v24 = vrot.slane %v9142_v36, %v9183_v32  ;;  %v6770_v25 = vpack.c.bf16 %v1152_v11, %v1145_v9  ;;  %v1209_v9 = vld [vmem:[#allocation2 + $0xf20] sm:$0xff]  ;;  %v1204_v11 = vld [vmem:[#allocation2 + $0xef8] sm:$0xff] }
 0x132   :  { %6755 = vmatpush1.bf16.msra.mxu1 %v6754_v22  ;;  %7203 = vmatpush1.bf16.msra.mxu0 %v7202_v23  ;;  %v1169_v22 = vld [vmem:[#allocation2 + $0xde0] sm:$0xff]  ;;  %v9186_v23 = vsub.s32 5, %v9134_v34 }
 0x133   :  { %6757 = vmatprep.subr.bf16.mxu1 %v6756_v26  ;;  %7205 = vmatprep.subr.bf16.mxu0 %v7204_v27  ;;  %v7218_v26 = vpack.c.bf16 %v1154_v16, %v1147_v15  ;;  %v1159_v27 = vld [vmem:[#allocation2 + $0xd90] sm:$0xff]  ;;  %v7220_v30 = vpack.c.bf16 %v1169_v22, %v1162_v21  ;;  %v1201_v16 = vld [vmem:[#allocation2 + $0xee0] sm:$0xff] }
 0x134   :  { %v163_v43 = vrot.slane %v9142_v36, %v9186_v23  ;;  %v1203_v22 = vld [vmem:[#allocation2 + $0xef0] sm:$0xff] }
 0x136   :  { %6759 = vmatpush1.bf16.msra.mxu1 %v6758_v40  ;;  %7207 = vmatpush1.bf16.msra.mxu0 %v7206_v41  ;;  %v1181_v40 = vld [vmem:[#allocation2 + $0xe40] sm:$0xff]  ;;  %v1176_v41 = vld [vmem:[#allocation2 + $0xe18] sm:$0xff]  ;;  %v425_v36 = vadd.f32 %v9170_v18, %v163_v43  ;;  %v6782_v18 = vpack.c.bf16 %v1194_v2, %v1187_v1  ;;  %v1230_v43 = vld [vmem:[#allocation2 + $0xfc8] sm:$0xff] }
 0x137   :  { %6761 = vmatprep.subr.bf16.mxu1 %v6760_v45  ;;  %7209 = vmatprep.subr.bf16.mxu0 %v7208_v46  ;;  %v352_v45 = vadd.f32 %v9156_v54, %v151_v24  ;;  %v6774_v46 = vpack.c.bf16 %v1166_v28, %v1159_v27  ;;  %v6776_v51 = vpack.c.bf16 %v1181_v40, %v1174_v38  ;;  %v1210_v24 = vld [vmem:[#allocation2 + $0xf28] sm:$0xff]  ;;  %v1225_v28 = vld [vmem:[#allocation2 + $0xfa0] sm:$0xff]  ;;  %v1243_v2 = vld [vmem:[#allocation2 + $0x1030] sm:$0xff] }
 0x138   :  { %v7224_v52 = vpack.c.bf16 %v1183_v42, %v1176_v41  ;;  %v6778_v54 = vpack.c.bf16 %v1180_v49, %v1173_v48  ;;  %v1218_v27 = vld [vmem:[#allocation2 + $0xf68] sm:$0xff]  ;;  %v1217_v41 = vld [vmem:[#allocation2 + $0xf60] sm:$0xff]  ;;  %v1224_v42 = vld [vmem:[#allocation2 + $0xf98] sm:$0xff]  ;;  %v6790_v48 = vpack.c.bf16 %v1222_v33, %v1215_v31 }
 0x139   :  { %v7236_v40 = vpack.c.bf16 %v1225_v28, %v1218_v27  ;;  %v7238_v49 = vpack.c.bf16 %v1224_v42, %v1217_v41  ;;  %v1279_v27 = vld [vmem:[#allocation2 + $0x1150] sm:$0xff]  ;;  %v1274_v28 = vld [vmem:[#allocation2 + $0x1128] sm:$0xff]  ;;  %v1273_v42 = vld [vmem:[#allocation2 + $0x1120] sm:$0xff] }
 0x13a   :  { %6763 = vmatpush1.bf16.msra.mxu1 %v6762_v56  ;;  %7211 = vmatpush1.bf16.msra.mxu0 %v7210_v57  ;;  %v1182_v56 = vld [vmem:[#allocation2 + $0xe48] sm:$0xff]  ;;  %v1188_v57 = vld [vmem:[#allocation2 + $0xe78] sm:$0xff]  ;;  %v1271_v33 = vld [vmem:[#allocation2 + $0x1110] sm:$0xff] }
 0x13b   :  { %6765 = vmatprep.subr.bf16.mxu1 %v6764_v60  ;;  %7213 = vmatprep.subr.bf16.mxu0 %v7212_v62  ;;  %v1197_v60 = vld [vmem:[#allocation2 + $0xec0] sm:$0xff]  ;;  %v9194_v62 = vmax.f32 %v352_v45, 0.0  ;;  %v7226_v63 = vpack.c.bf16 %v1182_v56, %v1175_v53  ;;  %v6780_v3 = vpack.c.bf16 %v1195_v58, %v1188_v57  ;;  %v1231_v57 = vld [vmem:[#allocation2 + $0xfd0] sm:$0xff]  ;;  %v1238_v58 = vld [vmem:[#allocation2 + $0x1008] sm:$0xff] }
 0x13c   :  { %v7228_v4 = vpack.c.bf16 %v1197_v60, %v1190_v59  ;;  %v1237_v45 = vld [vmem:[#allocation2 + $0x1000] sm:$0xff]  ;;  %v1244_v59 = vld [vmem:[#allocation2 + $0x1038] sm:$0xff]  ;;  %v1251_v60 = vld [vmem:[#allocation2 + $0x1070] sm:$0xff]  ;;  %v7242_v1 = vpack.c.bf16 %v1238_v58, %v1231_v57 }
 0x13d   :  { %v6792_v53 = vpack.c.bf16 %v1237_v45, %v1230_v43  ;;  %v1280_v43 = vld [vmem:[#allocation2 + $0x1158] sm:$0xff]  ;;  %v1286_v45 = vld [vmem:[#allocation2 + $0x1188] sm:$0xff]  ;;  %v1287_v58 = vld [vmem:[#allocation2 + $0x1190] sm:$0xff] }
 0x13e   :  { %6767 = vmatpush1.bf16.msra.mxu1 %v6766_v6  ;;  %7215 = vmatpush1.bf16.msra.mxu0 %v7214_v8  ;;  %v1196_v6 = vld [vmem:[#allocation2 + $0xeb8] sm:$0xff]  ;;  %v1202_v8 = vld [vmem:[#allocation2 + $0xee8] sm:$0xff] }
 0x13f   :  { %6769 = vmatprep.subr.bf16.mxu1 %v6768_v13  ;;  %7217 = vmatprep.subr.bf16.mxu0 %v7216_v14  ;;  %v1211_v13 = vld [vmem:[#allocation2 + $0xf30] sm:$0xff]  ;;  %v9196_v14 = vmax.f32 %v425_v36, 0.0  ;;  %v7230_v15 = vpack.c.bf16 %v1196_v6, %v1189_v5  ;;  %v6784_v20 = vpack.c.bf16 %v1209_v9, %v1202_v8  ;;  %v1246_v36 = vld [vmem:[#allocation2 + $0x1048] sm:$0xff]  ;;  %v1245_v6 = vld [vmem:[#allocation2 + $0x1040] sm:$0xff] }
 0x140   :  { %v7232_v21 = vpack.c.bf16 %v1211_v13, %v1204_v11  ;;  %v1252_v8 = vld [vmem:[#allocation2 + $0x1078] sm:$0xff]  ;;  %v1258_v9 = vld [vmem:[#allocation2 + $0x10a8] sm:$0xff]  ;;  %v1265_v11 = vld [vmem:[#allocation2 + $0x10e0] sm:$0xff] }
 0x141   :  { %v1260_v13 = vld [vmem:[#allocation2 + $0x10b8] sm:$0xff] }
 0x142   :  { %6771 = vmatpush1.bf16.msra.mxu1 %v6770_v25  ;;  %7219 = vmatpush1.bf16.msra.mxu0 %v7218_v26  ;;  %v1216_v25 = vld [vmem:[#allocation2 + $0xf58] sm:$0xff]  ;;  %v1223_v26 = vld [vmem:[#allocation2 + $0xf90] sm:$0xff] }
 0x143   :  { %6773 = vmatprep.subr.bf16.mxu1 %v6772_v29  ;;  %7221 = vmatprep.subr.bf16.mxu0 %v7220_v30  ;;  %v6786_v29 = vpack.c.bf16 %v1208_v19, %v1201_v16  ;;  %v7234_v30 = vpack.c.bf16 %v1210_v24, %v1203_v22  ;;  %v6788_v38 = vpack.c.bf16 %v1223_v26, %v1216_v25  ;;  %v1257_v19 = vld [vmem:[#allocation2 + $0x10a0] sm:$0xff]  ;;  %v1259_v24 = vld [vmem:[#allocation2 + $0x10b0] sm:$0xff]  ;;  %v1266_v25 = vld [vmem:[#allocation2 + $0x10e8] sm:$0xff] }
 0x144   :  { %v7246_v16 = vpack.c.bf16 %v1252_v8, %v1245_v6  ;;  %v1272_v26 = vld [vmem:[#allocation2 + $0x1118] sm:$0xff]  ;;  %v7250_v31 = vpack.c.bf16 %v1266_v25, %v1259_v24  ;;  %v1301_v8 = vld [vmem:[#allocation2 + $0x1200] sm:$0xff]  ;;  %v1315_v25 = vld [vmem:[#allocation2 + $0x1270] sm:$0xff] }
 0x146   :  { %6775 = vmatpush1.bf16.msra.mxu1 %v6774_v46  ;;  %7223 = vmatpush1.bf16.msra.mxu0 %v7222_v47  ;;  %v1232_v46 = vld [vmem:[#allocation2 + $0xfd8] sm:$0xff]  ;;  %v1239_v47 = vld [vmem:[#allocation2 + $0x1010] sm:$0xff] }
 0x147   :  { %6777 = vmatprep.subr.bf16.mxu1 %v6776_v51  ;;  %7225 = vmatprep.subr.bf16.mxu0 %v7224_v52  ;;  %v1229_v51 = vld [vmem:[#allocation2 + $0xfc0] sm:$0xff]  ;;  %v1236_v52 = vld [vmem:[#allocation2 + $0xff8] sm:$0xff]  ;;  %v7240_v56 = vpack.c.bf16 %v1239_v47, %v1232_v46 }
 0x148   :  { %v1293_v46 = vld [vmem:[#allocation2 + $0x11c0] sm:$0xff]  ;;  %v1288_v47 = vld [vmem:[#allocation2 + $0x1198] sm:$0xff] }
 0x149   :  { %2466 = vmatmul.mubr.f32.vlgmr.msra.gmra.mrb[6].mxu1 %v9194_v62  ;;  %2963 = vmatmul.mubr.f32.vlgmr.msra.gmra.mrb[8].mxu0 %v9194_v62 }
 0x14a   :  { %6779 = vmatpush1.bf16.msra.mxu1 %v6778_v54  ;;  %7227 = vmatpush1.bf16.msra.mxu0 %v7226_v63  ;;  %v1253_v54 = vld [vmem:[#allocation2 + $0x1080] sm:$0xff]  ;;  %v6794_v63 = vpack.c.bf16 %v1236_v52, %v1229_v51  ;;  %v7254_v51 = vpack.c.bf16 %v1280_v43, %v1273_v42 }
 0x14b   :  { %6781 = vmatprep.subr.bf16.mxu1 %v6780_v3  ;;  %7229 = vmatprep.subr.bf16.mxu0 %v7228_v4  ;;  %v1250_v3 = vld [vmem:[#allocation2 + $0x1068] sm:$0xff]  ;;  %v6796_v4 = vpack.c.bf16 %v1251_v60, %v1244_v59  ;;  %v7244_v5 = vpack.c.bf16 %v1253_v54, %v1246_v36  ;;  %v1285_v52 = vld [vmem:[#allocation2 + $0x1180] sm:$0xff]  ;;  %v1300_v60 = vld [vmem:[#allocation2 + $0x11f8] sm:$0xff] }
 0x14c   :  { %2536 = vmatprep.mubr.f32.mxu1 %v9196_v14  ;;  %3033 = vmatprep.mubr.f32.mxu0 %v9196_v14  ;;  %v1294_v59 = vld [vmem:[#allocation2 + $0x11c8] sm:$0xff]  ;;  %v1307_v36 = vld [vmem:[#allocation2 + $0x1230] sm:$0xff]  ;;  %v1329_v43 = vld [vmem:[#allocation2 + $0x12e0] sm:$0xff] }
 0x14d   :  { %v1302_v54 = vld [vmem:[#allocation2 + $0x1208] sm:$0xff] }
 0x14e   :  { %6783 = vmatpush1.bf16.msra.mxu1 %v6782_v18  ;;  %7231 = vmatpush1.bf16.msra.mxu0 %v7230_v15  ;;  %v1267_v18 = vld [vmem:[#allocation2 + $0x10f0] sm:$0xff]  ;;  %v6798_v15 = vpack.c.bf16 %v1250_v3, %v1243_v2  ;;  %v7258_v2 = vpack.c.bf16 %v1294_v59, %v1287_v58 }
 0x14f   :  { %6785 = vmatprep.subr.bf16.mxu1 %v6784_v20  ;;  %7233 = vmatprep.subr.bf16.mxu0 %v7232_v21  ;;  %v1264_v20 = vld [vmem:[#allocation2 + $0x10d8] sm:$0xff]  ;;  %v6800_v21 = vpack.c.bf16 %v1265_v11, %v1258_v9  ;;  %v7248_v22 = vpack.c.bf16 %v1267_v18, %v1260_v13  ;;  %v1299_v3 = vld [vmem:[#allocation2 + $0x11f0] sm:$0xff]  ;;  %v1314_v11 = vld [vmem:[#allocation2 + $0x1268] sm:$0xff] }
 0x150   :  { %v1308_v9 = vld [vmem:[#allocation2 + $0x1238] sm:$0xff]  ;;  %v1321_v13 = vld [vmem:[#allocation2 + $0x12a0] sm:$0xff]  ;;  %v1343_v59 = vld [vmem:[#allocation2 + $0x1350] sm:$0xff] }
 0x151   :  { %v1316_v18 = vld [vmem:[#allocation2 + $0x1278] sm:$0xff] }
 0x152   :  { %6787 = vmatpush1.bf16.msra.mxu1 %v6786_v29  ;;  %7235 = vmatpush1.bf16.msra.mxu0 %v7234_v30  ;;  %v1281_v29 = vld [vmem:[#allocation2 + $0x1160] sm:$0xff]  ;;  %v6802_v30 = vpack.c.bf16 %v1264_v20, %v1257_v19  ;;  %v7262_v19 = vpack.c.bf16 %v1308_v9, %v1301_v8 }
 0x153   :  { %6789 = vmatprep.subr.bf16.mxu1 %v6788_v38  ;;  %7237 = vmatprep.subr.bf16.mxu0 %v7236_v40  ;;  %v1278_v38 = vld [vmem:[#allocation2 + $0x1148] sm:$0xff]  ;;  %v6804_v40 = vpack.c.bf16 %v1279_v27, %v1272_v26  ;;  %v7252_v41 = vpack.c.bf16 %v1281_v29, %v1274_v28  ;;  %v1313_v20 = vld [vmem:[#allocation2 + $0x1260] sm:$0xff]  ;;  %v1328_v27 = vld [vmem:[#allocation2 + $0x12d8] sm:$0xff] }
 0x154   :  { %v1322_v26 = vld [vmem:[#allocation2 + $0x12a8] sm:$0xff]  ;;  %v1335_v28 = vld [vmem:[#allocation2 + $0x1310] sm:$0xff]  ;;  %v1357_v9 = vld [vmem:[#allocation2 + $0x13c0] sm:$0xff] }
 0x155   :  { %v1330_v29 = vld [vmem:[#allocation2 + $0x12e8] sm:$0xff] }
 0x156   :  { %6791 = vmatpush1.bf16.msra.mxu1 %v6790_v48  ;;  %7239 = vmatpush1.bf16.msra.mxu0 %v7238_v49  ;;  %v1295_v48 = vld [vmem:[#allocation2 + $0x11d0] sm:$0xff]  ;;  %v6806_v49 = vpack.c.bf16 %v1278_v38, %v1271_v33  ;;  %v7266_v33 = vpack.c.bf16 %v1322_v26, %v1315_v25 }
 0x157   :  { %6793 = vmatprep.subr.bf16.mxu1 %v6792_v53  ;;  %7241 = vmatprep.subr.bf16.mxu0 %v7240_v56  ;;  %v1292_v53 = vld [vmem:[#allocation2 + $0x11b8] sm:$0xff]  ;;  %v6808_v56 = vpack.c.bf16 %v1293_v46, %v1286_v45  ;;  %v7256_v57 = vpack.c.bf16 %v1295_v48, %v1288_v47  ;;  %v1327_v38 = vld [vmem:[#allocation2 + $0x12d0] sm:$0xff]  ;;  %v1342_v46 = vld [vmem:[#allocation2 + $0x1348] sm:$0xff] }
 0x158   :  { %v1336_v45 = vld [vmem:[#allocation2 + $0x1318] sm:$0xff]  ;;  %v1349_v47 = vld [vmem:[#allocation2 + $0x1380] sm:$0xff] }
 0x159   :  { %v1344_v48 = vld [vmem:[#allocation2 + $0x1358] sm:$0xff] }
 0x15a   :  { %6795 = vmatpush1.bf16.msra.mxu1 %v6794_v63  ;;  %7243 = vmatpush1.bf16.msra.mxu0 %v7242_v1  ;;  %v1309_v63 = vld [vmem:[#allocation2 + $0x1240] sm:$0xff]  ;;  %v6810_v1 = vpack.c.bf16 %v1292_v53, %v1285_v52  ;;  %v7270_v52 = vpack.c.bf16 %v1336_v45, %v1329_v43  ;;  %v1383_v45 = vld [vmem:[#allocation2 + $0x1490] sm:$0xff] }
 0x15b   :  { %6797 = vmatprep.subr.bf16.mxu1 %v6796_v4  ;;  %7245 = vmatprep.subr.bf16.mxu0 %v7244_v5  ;;  %v1306_v4 = vld [vmem:[#allocation2 + $0x1228] sm:$0xff]  ;;  %v6812_v5 = vpack.c.bf16 %v1307_v36, %v1300_v60  ;;  %v7260_v6 = vpack.c.bf16 %v1309_v63, %v1302_v54  ;;  %v1341_v53 = vld [vmem:[#allocation2 + $0x1340] sm:$0xff]  ;;  %v1356_v36 = vld [vmem:[#allocation2 + $0x13b8] sm:$0xff] }
 0x15c   :  { %v1350_v60 = vld [vmem:[#allocation2 + $0x1388] sm:$0xff]  ;;  %v1363_v54 = vld [vmem:[#allocation2 + $0x13f0] sm:$0xff] }
 0x15d   :  { %v1358_v63 = vld [vmem:[#allocation2 + $0x13c8] sm:$0xff] }
 0x15e   :  { %6799 = vmatpush1.bf16.msra.mxu1 %v6798_v15  ;;  %7247 = vmatpush1.bf16.msra.mxu0 %v7246_v16  ;;  %v1323_v15 = vld [vmem:[#allocation2 + $0x12b0] sm:$0xff]  ;;  %v6814_v16 = vpack.c.bf16 %v1306_v4, %v1299_v3  ;;  %v7274_v3 = vpack.c.bf16 %v1350_v60, %v1343_v59 }
 0x15f   :  { %6801 = vmatprep.subr.bf16.mxu1 %v6800_v21  ;;  %7249 = vmatprep.subr.bf16.mxu0 %v7248_v22  ;;  %v1320_v21 = vld [vmem:[#allocation2 + $0x1298] sm:$0xff]  ;;  %v6816_v22 = vpack.c.bf16 %v1321_v13, %v1314_v11  ;;  %v7264_v24 = vpack.c.bf16 %v1323_v15, %v1316_v18  ;;  %v1355_v4 = vld [vmem:[#allocation2 + $0x13b0] sm:$0xff]  ;;  %v1370_v13 = vld [vmem:[#allocation2 + $0x1428] sm:$0xff] }
 0x160   :  { %v1364_v11 = vld [vmem:[#allocation2 + $0x13f8] sm:$0xff]  ;;  %v1377_v18 = vld [vmem:[#allocation2 + $0x1460] sm:$0xff] }
 0x161   :  { %v1372_v15 = vld [vmem:[#allocation2 + $0x1438] sm:$0xff]  ;;  %v6832_v25 = vpack.c.bf16 %v1377_v18, %v1370_v13  ;;  %v1421_v13 = vld [vmem:[#allocation2 + $0x15c0] sm:$0xff] }
 0x162   :  { %6803 = vmatpush1.bf16.msra.mxu1 %v6802_v30  ;;  %7251 = vmatpush1.bf16.msra.mxu0 %v7250_v31  ;;  %v1337_v30 = vld [vmem:[#allocation2 + $0x1320] sm:$0xff]  ;;  %v6818_v31 = vpack.c.bf16 %v1320_v21, %v1313_v20  ;;  %v7278_v21 = vpack.c.bf16 %v1364_v11, %v1357_v9  ;;  %v1419_v9 = vld [vmem:[#allocation2 + $0x15b0] sm:$0xff]  ;;  %v1414_v11 = vld [vmem:[#allocation2 + $0x1588] sm:$0xff] }
 0x163   :  { %6805 = vmatprep.subr.bf16.mxu1 %v6804_v40  ;;  %7253 = vmatprep.subr.bf16.mxu0 %v7252_v41  ;;  %v1334_v40 = vld [vmem:[#allocation2 + $0x1308] sm:$0xff]  ;;  %v6820_v41 = vpack.c.bf16 %v1335_v28, %v1328_v27  ;;  %v7268_v42 = vpack.c.bf16 %v1337_v30, %v1330_v29  ;;  %v1371_v27 = vld [vmem:[#allocation2 + $0x1430] sm:$0xff]  ;;  %v1384_v29 = vld [vmem:[#allocation2 + $0x1498] sm:$0xff] }
 0x164   :  { %v1378_v28 = vld [vmem:[#allocation2 + $0x1468] sm:$0xff]  ;;  %v1391_v30 = vld [vmem:[#allocation2 + $0x14d0] sm:$0xff] }
 0x165   :  { %v7282_v43 = vpack.c.bf16 %v1378_v28, %v1371_v27  ;;  %v1426_v27 = vld [vmem:[#allocation2 + $0x15e8] sm:$0xff]  ;;  %v1433_v28 = vld [vmem:[#allocation2 + $0x1620] sm:$0xff] }
 0x166   :  { %6807 = vmatpush1.bf16.msra.mxu1 %v6806_v49  ;;  %7255 = vmatpush1.bf16.msra.mxu0 %v7254_v51  ;;  %v1351_v49 = vld [vmem:[#allocation2 + $0x1390] sm:$0xff]  ;;  %v6822_v51 = vpack.c.bf16 %v1334_v40, %v1327_v38  ;;  %v170_v38 = vsub.s32 7, %v9134_v34  ;;  %v9209_v40 = vld [vmem:[%s10989_s15] sm:$0xff] }
 0x167   :  { %6809 = vmatprep.subr.bf16.mxu1 %v6808_v56  ;;  %7257 = vmatprep.subr.bf16.mxu0 %v7256_v57  ;;  %v1348_v56 = vld [vmem:[#allocation2 + $0x1378] sm:$0xff]  ;;  %v6824_v57 = vpack.c.bf16 %v1349_v47, %v1342_v46  ;;  %v7272_v58 = vpack.c.bf16 %v1351_v49, %v1344_v48  ;;  %v1390_v46 = vld [vmem:[#allocation2 + $0x14c8] sm:$0xff]  ;;  %v6836_v47 = vpack.c.bf16 %v1391_v30, %v1384_v29  ;;  %v1385_v49 = vld [vmem:[#allocation2 + $0x14a0] sm:$0xff] }
 0x168   :  { %v171_v59 = vrot.slane %v9209_v40, %v170_v38  ;;  %v1428_v29 = vld [vmem:[#allocation2 + $0x15f8] sm:$0xff]  ;;  %v1435_v30 = vld [vmem:[#allocation2 + $0x1630] sm:$0xff]  ;;  %v1425_v38 = vld [vmem:[#allocation2 + $0x15e0] sm:$0xff] }
 0x16a   :  { %6811 = vmatpush1.bf16.msra.mxu1 %v6810_v1  ;;  %7259 = vmatpush1.bf16.msra.mxu0 %v7258_v2  ;;  %v1365_v1 = vld [vmem:[#allocation2 + $0x1400] sm:$0xff]  ;;  %v6826_v2 = vpack.c.bf16 %v1348_v56, %v1341_v53  ;;  %v9213_v53 = vpop.f32.mrb[4].mxu0 }
 0x16b   :  { %6813 = vmatprep.subr.bf16.mxu1 %v6812_v5  ;;  %7261 = vmatprep.subr.bf16.mxu0 %v7260_v6  ;;  %v1362_v5 = vld [vmem:[#allocation2 + $0x13e8] sm:$0xff]  ;;  %v6828_v6 = vpack.c.bf16 %v1363_v54, %v1356_v36  ;;  %v7276_v8 = vpack.c.bf16 %v1365_v1, %v1358_v63  ;;  %v1405_v56 = vld [vmem:[#allocation2 + $0x1540] sm:$0xff]  ;;  %v6838_v36 = vpack.c.bf16 %v1390_v46, %v1383_v45  ;;  %v1404_v1 = vld [vmem:[#allocation2 + $0x1538] sm:$0xff] }
 0x16c   :  { %v6830_v20 = vpack.c.bf16 %v1362_v5, %v1355_v4  ;;  %v1397_v63 = vld [vmem:[#allocation2 + $0x1500] sm:$0xff]  ;;  %v1399_v5 = vld [vmem:[#allocation2 + $0x1510] sm:$0xff]  ;;  %v1434_v46 = vld [vmem:[#allocation2 + $0x1628] sm:$0xff] }
 0x16d   :  { %v1427_v45 = vld [vmem:[#allocation2 + $0x15f0] sm:$0xff] }
 0x16e   :  { %6815 = vmatpush1.bf16.msra.mxu1 %v6814_v16  ;;  %7263 = vmatpush1.bf16.msra.mxu0 %v7262_v19  ;;  %v1379_v16 = vld [vmem:[#allocation2 + $0x1470] sm:$0xff]  ;;  %v9203_v19 = vsub.s32 4, %v9134_v34 }
 0x16f   :  { %6817 = vmatprep.subr.bf16.mxu1 %v6816_v22  ;;  %7265 = vmatprep.subr.bf16.mxu0 %v7264_v24  ;;  %v1369_v22 = vld [vmem:[#allocation2 + $0x1420] sm:$0xff]  ;;  %v1376_v24 = vld [vmem:[#allocation2 + $0x1458] sm:$0xff]  ;;  %v7280_v26 = vpack.c.bf16 %v1379_v16, %v1372_v15  ;;  %v6842_v15 = vpack.c.bf16 %v1404_v1, %v1397_v63  ;;  %v1454_v63 = vld [vmem:[#allocation2 + $0x16c8] sm:$0xff] }
 0x170   :  { %v1461_v1 = vld [vmem:[#allocation2 + $0x1700] sm:$0xff] }
 0x172   :  { %6819 = vmatpush1.bf16.msra.mxu1 %v6818_v31  ;;  %7267 = vmatpush1.bf16.msra.mxu0 %v7266_v33  ;;  %v1386_v31 = vld [vmem:[#allocation2 + $0x14a8] sm:$0xff]  ;;  %v1393_v33 = vld [vmem:[#allocation2 + $0x14e0] sm:$0xff] }
 0x173   :  { %6821 = vmatprep.subr.bf16.mxu1 %v6820_v41  ;;  %7269 = vmatprep.subr.bf16.mxu0 %v7268_v42  ;;  %v159_v41 = vrot.slane %v9209_v40, %v9203_v19  ;;  %v6834_v42 = vpack.c.bf16 %v1376_v24, %v1369_v22  ;;  %v7284_v48 = vpack.c.bf16 %v1393_v33, %v1386_v31 }
 0x174   :  { %v7292_v24 = vpack.c.bf16 %v1421_v13, %v1414_v11  ;;  %v6856_v11 = vpack.c.bf16 %v1461_v1, %v1454_v63  ;;  %v1502_v63 = vld [vmem:[#allocation2 + $0x1848] sm:$0xff] }
 0x175   :  { %v423_v60 = vadd.f32 %v9168_v12, %v159_v41  ;;  %v496_v12 = vadd.f32 %v9176_v50, %v171_v59  ;;  %v1432_v41 = vld [vmem:[#allocation2 + $0x1618] sm:$0xff] }
 0x176   :  { %6823 = vmatpush1.bf16.msra.mxu1 %v6822_v51  ;;  %7271 = vmatpush1.bf16.msra.mxu0 %v7270_v52  ;;  %v1392_v51 = vld [vmem:[#allocation2 + $0x14d8] sm:$0xff]  ;;  %v1398_v52 = vld [vmem:[#allocation2 + $0x1508] sm:$0xff] }
 0x177   :  { %6825 = vmatprep.subr.bf16.mxu1 %v6824_v57  ;;  %7273 = vmatprep.subr.bf16.mxu0 %v7272_v58  ;;  %v1400_v57 = vld [vmem:[#allocation2 + $0x1518] sm:$0xff]  ;;  %v1407_v58 = vld [vmem:[#allocation2 + $0x1550] sm:$0xff]  ;;  %v7286_v54 = vpack.c.bf16 %v1392_v51, %v1385_v49  ;;  %v9220_v18 = vmax.f32 %v423_v60, 0.0  ;;  %v9222_v31 = vmax.f32 %v496_v12, 0.0  ;;  %v1442_v49 = vld [vmem:[#allocation2 + $0x1668] sm:$0xff] }
 0x178   :  { %v7288_v4 = vpack.c.bf16 %v1407_v58, %v1400_v57  ;;  %v1449_v51 = vld [vmem:[#allocation2 + $0x16a0] sm:$0xff]  ;;  %v1439_v57 = vld [vmem:[#allocation2 + $0x1650] sm:$0xff]  ;;  %v1446_v58 = vld [vmem:[#allocation2 + $0x1688] sm:$0xff] }
 0x179   :  { %v7300_v60 = vpack.c.bf16 %v1449_v51, %v1442_v49  ;;  %v1455_v12 = vld [vmem:[#allocation2 + $0x16d0] sm:$0xff] }
 0x17a   :  { %6827 = vmatpush1.bf16.msra.mxu1 %v6826_v2  ;;  %7275 = vmatpush1.bf16.msra.mxu0 %v7274_v3  ;;  %v9217_v2 = vpop.f32.mrb[5].mxu0  ;;  %v6840_v3 = vpack.c.bf16 %v1405_v56, %v1398_v52  ;;  %v6850_v52 = vpack.c.bf16 %v1432_v41, %v1425_v38  ;;  %v7298_v56 = vpack.c.bf16 %v1434_v46, %v1427_v45  ;;  %v1489_v38 = vld [vmem:[#allocation2 + $0x17e0] sm:$0xff]  ;;  %v1484_v41 = vld [vmem:[#allocation2 + $0x17b8] sm:$0xff]  ;;  %v1483_v51 = vld [vmem:[#allocation2 + $0x17b0] sm:$0xff] }
 0x17b   :  { %6829 = vmatprep.subr.bf16.mxu1 %v6828_v6  ;;  %7277 = vmatprep.subr.bf16.mxu0 %v7276_v8  ;;  %v1406_v6 = vld [vmem:[#allocation2 + $0x1548] sm:$0xff]  ;;  %v1412_v8 = vld [vmem:[#allocation2 + $0x1578] sm:$0xff]  ;;  %v1481_v46 = vld [vmem:[#allocation2 + $0x17a0] sm:$0xff] }
 0x17c   :  { %v7290_v16 = vpack.c.bf16 %v1406_v6, %v1399_v5  ;;  %v6844_v22 = vpack.c.bf16 %v1419_v9, %v1412_v8  ;;  %v6854_v5 = vpack.c.bf16 %v1446_v58, %v1439_v57  ;;  %v1453_v8 = vld [vmem:[#allocation2 + $0x16c0] sm:$0xff]  ;;  %v1460_v9 = vld [vmem:[#allocation2 + $0x16f8] sm:$0xff]  ;;  %v1503_v57 = vld [vmem:[#allocation2 + $0x1850] sm:$0xff] }
 0x17d   :  { %v1498_v58 = vld [vmem:[#allocation2 + $0x1828] sm:$0xff] }
 0x17e   :  { %6831 = vmatpush1.bf16.msra.mxu1 %v6830_v20  ;;  %7279 = vmatpush1.bf16.msra.mxu0 %v7278_v21  ;;  %v1411_v20 = vld [vmem:[#allocation2 + $0x1570] sm:$0xff]  ;;  %v1418_v21 = vld [vmem:[#allocation2 + $0x15a8] sm:$0xff] }
 0x17f   :  { %6833 = vmatprep.subr.bf16.mxu1 %v6832_v25  ;;  %7281 = vmatprep.subr.bf16.mxu0 %v7280_v26  ;;  %v1413_v25 = vld [vmem:[#allocation2 + $0x1580] sm:$0xff]  ;;  %v1420_v26 = vld [vmem:[#allocation2 + $0x15b8] sm:$0xff]  ;;  %v6846_v50 = vpack.c.bf16 %v1418_v21, %v1411_v20  ;;  %v1475_v20 = vld [vmem:[#allocation2 + $0x1770] sm:$0xff] }
 0x180   :  { %v7294_v33 = vpack.c.bf16 %v1420_v26, %v1413_v25  ;;  %v1470_v21 = vld [vmem:[#allocation2 + $0x1748] sm:$0xff]  ;;  %v1467_v26 = vld [vmem:[#allocation2 + $0x1730] sm:$0xff] }
 0x182   :  { %6835 = vmatpush1.bf16.msra.mxu1 %v6834_v42  ;;  %7283 = vmatpush1.bf16.msra.mxu0 %v7282_v43  ;;  %v6848_v42 = vpack.c.bf16 %v1433_v28, %v1426_v27  ;;  %v7296_v43 = vpack.c.bf16 %v1435_v30, %v1428_v29  ;;  %v1474_v27 = vld [vmem:[#allocation2 + $0x1768] sm:$0xff]  ;;  %v1469_v30 = vld [vmem:[#allocation2 + $0x1740] sm:$0xff] }
 0x183   :  { %6837 = vmatprep.subr.bf16.mxu1 %v6836_v47  ;;  %7285 = vmatprep.subr.bf16.mxu0 %v7284_v48  ;;  %v1440_v47 = vld [vmem:[#allocation2 + $0x1658] sm:$0xff]  ;;  %v1447_v48 = vld [vmem:[#allocation2 + $0x1690] sm:$0xff] }
 0x184   :  { %v6852_v59 = vpack.c.bf16 %v1447_v48, %v1440_v47  ;;  %v1488_v47 = vld [vmem:[#allocation2 + $0x17d8] sm:$0xff] }
 0x186   :  { %6839 = vmatpush1.bf16.msra.mxu1 %v6838_v36  ;;  %7287 = vmatpush1.bf16.msra.mxu0 %v7286_v54  ;;  %v1441_v36 = vld [vmem:[#allocation2 + $0x1660] sm:$0xff]  ;;  %v1448_v54 = vld [vmem:[#allocation2 + $0x1698] sm:$0xff] }
 0x187   :  { %6841 = vmatprep.subr.bf16.mxu1 %v6840_v3  ;;  %7289 = vmatprep.subr.bf16.mxu0 %v7288_v4  ;;  %v1456_v3 = vld [vmem:[#allocation2 + $0x16d8] sm:$0xff]  ;;  %v1463_v4 = vld [vmem:[#allocation2 + $0x1710] sm:$0xff]  ;;  %v7302_v6 = vpack.c.bf16 %v1448_v54, %v1441_v36 }
 0x188   :  { %v7304_v13 = vpack.c.bf16 %v1463_v4, %v1456_v3  ;;  %v1495_v54 = vld [vmem:[#allocation2 + $0x1810] sm:$0xff]  ;;  %v1497_v4 = vld [vmem:[#allocation2 + $0x1820] sm:$0xff] }
 0x189   :  { %2537 = vmatmul.mubr.f32.vlgmr.msra.gmra.mrb[6].mxu1 %v9220_v18  ;;  %3034 = vmatmul.mubr.f32.vlgmr.msra.gmra.mrb[8].mxu0 %v9220_v18 }
 0x18a   :  { %6843 = vmatpush1.bf16.msra.mxu1 %v6842_v15  ;;  %7291 = vmatpush1.bf16.msra.mxu0 %v7290_v16  ;;  %v1462_v15 = vld [vmem:[#allocation2 + $0x1708] sm:$0xff]  ;;  %v1468_v16 = vld [vmem:[#allocation2 + $0x1738] sm:$0xff] }
 0x18b   :  { %6845 = vmatprep.subr.bf16.mxu1 %v6844_v22  ;;  %7293 = vmatprep.subr.bf16.mxu0 %v7292_v24  ;;  %v1477_v22 = vld [vmem:[#allocation2 + $0x1780] sm:$0xff]  ;;  %v6858_v24 = vpack.c.bf16 %v1460_v9, %v1453_v8  ;;  %v7306_v25 = vpack.c.bf16 %v1462_v15, %v1455_v12  ;;  %v6860_v28 = vpack.c.bf16 %v1475_v20, %v1468_v16  ;;  %v1512_v9 = vld [vmem:[#allocation2 + $0x1898] sm:$0xff] }
 0x18c   :  { %2607 = vmatprep.mubr.f32.mxu1 %v9222_v31  ;;  %3104 = vmatprep.mubr.f32.mxu0 %v9222_v31  ;;  %v7308_v29 = vpack.c.bf16 %v1477_v22, %v1470_v21  ;;  %v1517_v8 = vld [vmem:[#allocation2 + $0x18c0] sm:$0xff]  ;;  %v1516_v16 = vld [vmem:[#allocation2 + $0x18b8] sm:$0xff]  ;;  %v1511_v22 = vld [vmem:[#allocation2 + $0x1890] sm:$0xff] }
 0x18d   :  { %v1509_v15 = vld [vmem:[#allocation2 + $0x1880] sm:$0xff] }
 0x18e   :  { %6847 = vmatpush1.bf16.msra.mxu1 %v6846_v50  ;;  %7295 = vmatpush1.bf16.msra.mxu0 %v7294_v33  ;;  %v1476_v50 = vld [vmem:[#allocation2 + $0x1778] sm:$0xff]  ;;  %v1482_v33 = vld [vmem:[#allocation2 + $0x17a8] sm:$0xff] }
 0x18f   :  { %6849 = vmatprep.subr.bf16.mxu1 %v6848_v42  ;;  %7297 = vmatprep.subr.bf16.mxu0 %v7296_v43  ;;  %v1491_v42 = vld [vmem:[#allocation2 + $0x17f0] sm:$0xff]  ;;  %v6862_v43 = vpack.c.bf16 %v1474_v27, %v1467_v26  ;;  %v7310_v45 = vpack.c.bf16 %v1476_v50, %v1469_v30  ;;  %v6864_v48 = vpack.c.bf16 %v1489_v38, %v1482_v33  ;;  %v1526_v27 = vld [vmem:[#allocation2 + $0x1908] sm:$0xff] }
 0x190   :  { %v7312_v49 = vpack.c.bf16 %v1491_v42, %v1484_v41  ;;  %v1531_v26 = vld [vmem:[#allocation2 + $0x1930] sm:$0xff]  ;;  %v1530_v33 = vld [vmem:[#allocation2 + $0x1928] sm:$0xff]  ;;  %v1525_v42 = vld [vmem:[#allocation2 + $0x1900] sm:$0xff] }
 0x191   :  { %v1523_v50 = vld [vmem:[#allocation2 + $0x18f0] sm:$0xff] }
 0x192   :  { %6851 = vmatpush1.bf16.msra.mxu1 %v6850_v52  ;;  %7299 = vmatpush1.bf16.msra.mxu0 %v7298_v56  ;;  %v1490_v52 = vld [vmem:[#allocation2 + $0x17e8] sm:$0xff]  ;;  %v1496_v56 = vld [vmem:[#allocation2 + $0x1818] sm:$0xff] }
 0x193   :  { %6853 = vmatprep.subr.bf16.mxu1 %v6852_v59  ;;  %7301 = vmatprep.subr.bf16.mxu0 %v7300_v60  ;;  %v1505_v59 = vld [vmem:[#allocation2 + $0x1860] sm:$0xff]  ;;  %v6866_v60 = vpack.c.bf16 %v1488_v47, %v1481_v46  ;;  %v7314_v36 = vpack.c.bf16 %v1490_v52, %v1483_v51  ;;  %v6868_v1 = vpack.c.bf16 %v1503_v57, %v1496_v56  ;;  %v1540_v47 = vld [vmem:[#allocation2 + $0x1978] sm:$0xff] }
 0x194   :  { %v7316_v3 = vpack.c.bf16 %v1505_v59, %v1498_v58  ;;  %v1545_v46 = vld [vmem:[#allocation2 + $0x19a0] sm:$0xff]  ;;  %v1544_v56 = vld [vmem:[#allocation2 + $0x1998] sm:$0xff]  ;;  %v1539_v59 = vld [vmem:[#allocation2 + $0x1970] sm:$0xff] }
 0x195   :  { %v1537_v52 = vld [vmem:[#allocation2 + $0x1960] sm:$0xff] }
 0x196   :  { %6855 = vmatpush1.bf16.msra.mxu1 %v6854_v5  ;;  %7303 = vmatpush1.bf16.msra.mxu0 %v7302_v6  ;;  %v1504_v5 = vld [vmem:[#allocation2 + $0x1858] sm:$0xff]  ;;  %v1510_v6 = vld [vmem:[#allocation2 + $0x1888] sm:$0xff] }
 0x197   :  { %6857 = vmatprep.subr.bf16.mxu1 %v6856_v11  ;;  %7305 = vmatprep.subr.bf16.mxu0 %v7304_v13  ;;  %v1519_v11 = vld [vmem:[#allocation2 + $0x18d0] sm:$0xff]  ;;  %v6870_v13 = vpack.c.bf16 %v1502_v63, %v1495_v54  ;;  %v7318_v12 = vpack.c.bf16 %v1504_v5, %v1497_v4  ;;  %v6872_v20 = vpack.c.bf16 %v1517_v8, %v1510_v6  ;;  %v1554_v63 = vld [vmem:[#allocation2 + $0x19e8] sm:$0xff] }
 0x198   :  { %v7320_v21 = vpack.c.bf16 %v1519_v11, %v1512_v9  ;;  %v1559_v54 = vld [vmem:[#allocation2 + $0x1a10] sm:$0xff]  ;;  %v1558_v6 = vld [vmem:[#allocation2 + $0x1a08] sm:$0xff]  ;;  %v1553_v11 = vld [vmem:[#allocation2 + $0x19e0] sm:$0xff] }
 0x199   :  { %v1551_v5 = vld [vmem:[#allocation2 + $0x19d0] sm:$0xff] }
 0x19a   :  { %6859 = vmatpush1.bf16.msra.mxu1 %v6858_v24  ;;  %7307 = vmatpush1.bf16.msra.mxu0 %v7306_v25  ;;  %v1518_v24 = vld [vmem:[#allocation2 + $0x18c8] sm:$0xff]  ;;  %v1524_v25 = vld [vmem:[#allocation2 + $0x18f8] sm:$0xff] }
 0x19b   :  { %6861 = vmatprep.subr.bf16.mxu1 %v6860_v28  ;;  %7309 = vmatprep.subr.bf16.mxu0 %v7308_v29  ;;  %v1533_v28 = vld [vmem:[#allocation2 + $0x1940] sm:$0xff]  ;;  %v6874_v29 = vpack.c.bf16 %v1516_v16, %v1509_v15  ;;  %v7322_v30 = vpack.c.bf16 %v1518_v24, %v1511_v22  ;;  %v6876_v38 = vpack.c.bf16 %v1531_v26, %v1524_v25  ;;  %v1568_v16 = vld [vmem:[#allocation2 + $0x1a58] sm:$0xff] }
 0x19c   :  { %v7324_v41 = vpack.c.bf16 %v1533_v28, %v1526_v27  ;;  %v1573_v15 = vld [vmem:[#allocation2 + $0x1a80] sm:$0xff]  ;;  %v1572_v25 = vld [vmem:[#allocation2 + $0x1a78] sm:$0xff]  ;;  %v1567_v28 = vld [vmem:[#allocation2 + $0x1a50] sm:$0xff] }
 0x19d   :  { %v1565_v24 = vld [vmem:[#allocation2 + $0x1a40] sm:$0xff] }
 0x19e   :  { %6863 = vmatpush1.bf16.msra.mxu1 %v6862_v43  ;;  %7311 = vmatpush1.bf16.msra.mxu0 %v7310_v45  ;;  %v1532_v43 = vld [vmem:[#allocation2 + $0x1938] sm:$0xff]  ;;  %v1538_v45 = vld [vmem:[#allocation2 + $0x1968] sm:$0xff] }
 0x19f   :  { %6865 = vmatprep.subr.bf16.mxu1 %v6864_v48  ;;  %7313 = vmatprep.subr.bf16.mxu0 %v7312_v49  ;;  %v1547_v48 = vld [vmem:[#allocation2 + $0x19b0] sm:$0xff]  ;;  %v6878_v49 = vpack.c.bf16 %v1530_v33, %v1523_v50  ;;  %v7326_v51 = vpack.c.bf16 %v1532_v43, %v1525_v42  ;;  %v6880_v57 = vpack.c.bf16 %v1545_v46, %v1538_v45  ;;  %v1582_v33 = vld [vmem:[#allocation2 + $0x1ac8] sm:$0xff] }
 0x1a0   :  { %v7328_v58 = vpack.c.bf16 %v1547_v48, %v1540_v47  ;;  %v1587_v50 = vld [vmem:[#allocation2 + $0x1af0] sm:$0xff]  ;;  %v1586_v45 = vld [vmem:[#allocation2 + $0x1ae8] sm:$0xff]  ;;  %v1581_v48 = vld [vmem:[#allocation2 + $0x1ac0] sm:$0xff] }
 0x1a1   :  { %v1579_v43 = vld [vmem:[#allocation2 + $0x1ab0] sm:$0xff] }
 0x1a2   :  { %6867 = vmatpush1.bf16.msra.mxu1 %v6866_v60  ;;  %7315 = vmatpush1.bf16.msra.mxu0 %v7314_v36  ;;  %v1546_v60 = vld [vmem:[#allocation2 + $0x19a8] sm:$0xff]  ;;  %v1552_v36 = vld [vmem:[#allocation2 + $0x19d8] sm:$0xff] }
 0x1a3   :  { %6869 = vmatprep.subr.bf16.mxu1 %v6868_v1  ;;  %7317 = vmatprep.subr.bf16.mxu0 %v7316_v3  ;;  %v1561_v1 = vld [vmem:[#allocation2 + $0x1a20] sm:$0xff]  ;;  %v6882_v3 = vpack.c.bf16 %v1544_v56, %v1537_v52  ;;  %v7330_v4 = vpack.c.bf16 %v1546_v60, %v1539_v59  ;;  %v6884_v8 = vpack.c.bf16 %v1559_v54, %v1552_v36  ;;  %v1596_v56 = vld [vmem:[#allocation2 + $0x1b38] sm:$0xff]  ;;  %v166_v54 = vsub.s32 6, %v9134_v34 }
 0x1a4   :  { %v7332_v9 = vpack.c.bf16 %v1561_v1, %v1554_v63  ;;  %v1601_v52 = vld [vmem:[#allocation2 + $0x1b60] sm:$0xff]  ;;  %v1600_v36 = vld [vmem:[#allocation2 + $0x1b58] sm:$0xff] }
 0x1a5   :  { %v1593_v60 = vld [vmem:[#allocation2 + $0x1b20] sm:$0xff] }
 0x1a6   :  { %6871 = vmatpush1.bf16.msra.mxu1 %v6870_v13  ;;  %7319 = vmatpush1.bf16.msra.mxu0 %v7318_v12  ;;  %v1560_v13 = vld [vmem:[#allocation2 + $0x1a18] sm:$0xff]  ;;  %v1566_v12 = vld [vmem:[#allocation2 + $0x1a48] sm:$0xff] }
 0x1a7   :  { %6873 = vmatprep.subr.bf16.mxu1 %v6872_v20  ;;  %7321 = vmatprep.subr.bf16.mxu0 %v7320_v21  ;;  %v1575_v20 = vld [vmem:[#allocation2 + $0x1a90] sm:$0xff]  ;;  %v6886_v21 = vpack.c.bf16 %v1558_v6, %v1551_v5  ;;  %v7334_v22 = vpack.c.bf16 %v1560_v13, %v1553_v11  ;;  %v6888_v26 = vpack.c.bf16 %v1573_v15, %v1566_v12  ;;  %v1608_v5 = vld [vmem:[#allocation2 + $0x1b98] sm:$0xff]  ;;  %v9232_v11 = vld [vmem:[%s10989_s15 + $0x8] sm:$0x3f] }
 0x1a8   :  { %v7336_v27 = vpack.c.bf16 %v1575_v20, %v1568_v16  ;;  %v1615_v6 = vld [vmem:[#allocation2 + $0x1bd0] sm:$0xff]  ;;  %v6898_v13 = vpack.c.bf16 %v1600_v36, %v1593_v60  ;;  %v1614_v16 = vld [vmem:[#allocation2 + $0x1bc8] sm:$0xff]  ;;  %v167_v20 = vrot.slane %v9209_v40, %v166_v54 }
 0x1a9   :  { %v1607_v15 = vld [vmem:[#allocation2 + $0x1b90] sm:$0xff] }
 0x1aa   :  { %6875 = vmatpush1.bf16.msra.mxu1 %v6874_v29  ;;  %7323 = vmatpush1.bf16.msra.mxu0 %v7322_v30  ;;  %v1574_v29 = vld [vmem:[#allocation2 + $0x1a88] sm:$0xff]  ;;  %v1580_v30 = vld [vmem:[#allocation2 + $0x1ab8] sm:$0xff]  ;;  %v494_v40 = vadd.f32 %v9174_v44, %v167_v20  ;;  %v1651_v20 = vld [vmem:[#allocation2 + $0x1cf0] sm:$0xff] }
 0x1ab   :  { %6877 = vmatprep.subr.bf16.mxu1 %v6876_v38  ;;  %7325 = vmatprep.subr.bf16.mxu0 %v7324_v41  ;;  %v1589_v38 = vld [vmem:[#allocation2 + $0x1b00] sm:$0xff]  ;;  %v6890_v41 = vpack.c.bf16 %v1572_v25, %v1565_v24  ;;  %v7338_v42 = vpack.c.bf16 %v1574_v29, %v1567_v28  ;;  %v6892_v46 = vpack.c.bf16 %v1587_v50, %v1580_v30  ;;  %v1616_v25 = vld [vmem:[#allocation2 + $0x1bd8] sm:$0xff]  ;;  %v1631_v29 = vld [vmem:[#allocation2 + $0x1c50] sm:$0xff] }
 0x1ac   :  { %v7340_v47 = vpack.c.bf16 %v1589_v38, %v1582_v33  ;;  %v1609_v24 = vld [vmem:[#allocation2 + $0x1ba0] sm:$0xff]  ;;  %v1624_v28 = vld [vmem:[#allocation2 + $0x1c18] sm:$0xff]  ;;  %v179_v30 = vrot.slane %v9232_v11, %v9145_v37  ;;  %v6902_v50 = vpack.c.bf16 %v1614_v16, %v1607_v15  ;;  %v9241_v60 = vmax.f32 %v494_v40, 0.0  ;;  %v1678_v40 = vld [vmem:[#allocation2 + $0x1dc8] sm:$0xff] }
 0x1ad   :  { %v7350_v33 = vpack.c.bf16 %v1616_v25, %v1609_v24  ;;  %v1621_v38 = vld [vmem:[#allocation2 + $0x1c00] sm:$0xff]  ;;  %v1671_v24 = vld [vmem:[#allocation2 + $0x1d90] sm:$0xff]  ;;  %v1666_v25 = vld [vmem:[#allocation2 + $0x1d68] sm:$0xff] }
 0x1ae   :  { %6879 = vmatpush1.bf16.msra.mxu1 %v6878_v49  ;;  %7327 = vmatpush1.bf16.msra.mxu0 %v7326_v51  ;;  %v1588_v49 = vld [vmem:[#allocation2 + $0x1af8] sm:$0xff]  ;;  %v1594_v51 = vld [vmem:[#allocation2 + $0x1b28] sm:$0xff] }
 0x1af   :  { %6881 = vmatprep.subr.bf16.mxu1 %v6880_v57  ;;  %7329 = vmatprep.subr.bf16.mxu0 %v7328_v58  ;;  %v1603_v57 = vld [vmem:[#allocation2 + $0x1b70] sm:$0xff]  ;;  %v6894_v58 = vpack.c.bf16 %v1586_v45, %v1579_v43  ;;  %v7342_v59 = vpack.c.bf16 %v1588_v49, %v1581_v48  ;;  %v6896_v63 = vpack.c.bf16 %v1601_v52, %v1594_v51  ;;  %v1638_v49 = vld [vmem:[#allocation2 + $0x1c88] sm:$0xff]  ;;  %v1645_v51 = vld [vmem:[#allocation2 + $0x1cc0] sm:$0xff] }
 0x1b0   :  { %v7344_v1 = vpack.c.bf16 %v1603_v57, %v1596_v56  ;;  %v7352_v43 = vpack.c.bf16 %v1631_v29, %v1624_v28  ;;  %v1623_v45 = vld [vmem:[#allocation2 + $0x1c10] sm:$0xff]  ;;  %v567_v52 = vadd.f32 %v9217_v2, %v179_v30  ;;  %v7356_v36 = vpack.c.bf16 %v1645_v51, %v1638_v49  ;;  %v1670_v30 = vld [vmem:[#allocation2 + $0x1d88] sm:$0xff]  ;;  %v1684_v49 = vld [vmem:[#allocation2 + $0x1df8] sm:$0xff] }
 0x1b1   :  { %v1643_v48 = vld [vmem:[#allocation2 + $0x1cb0] sm:$0xff] }
 0x1b2   :  { %6883 = vmatpush1.bf16.msra.mxu1 %v6882_v3  ;;  %7331 = vmatpush1.bf16.msra.mxu0 %v7330_v4  ;;  %v1595_v3 = vld [vmem:[#allocation2 + $0x1b30] sm:$0xff]  ;;  %v1602_v4 = vld [vmem:[#allocation2 + $0x1b68] sm:$0xff] }
 0x1b3   :  { %6885 = vmatprep.subr.bf16.mxu1 %v6884_v8  ;;  %7333 = vmatprep.subr.bf16.mxu0 %v7332_v9  ;;  %v1610_v8 = vld [vmem:[#allocation2 + $0x1ba8] sm:$0xff]  ;;  %v1617_v9 = vld [vmem:[#allocation2 + $0x1be0] sm:$0xff]  ;;  %v7346_v12 = vpack.c.bf16 %v1602_v4, %v1595_v3  ;;  %v1663_v29 = vld [vmem:[#allocation2 + $0x1d50] sm:$0xff] }
 0x1b4   :  { %v1650_v3 = vld [vmem:[#allocation2 + $0x1ce8] sm:$0xff]  ;;  %v1657_v4 = vld [vmem:[#allocation2 + $0x1d20] sm:$0xff] }
 0x1b5   :  { %v6912_v15 = vpack.c.bf16 %v1657_v4, %v1650_v3  ;;  %v1691_v3 = vld [vmem:[#allocation2 + $0x1e30] sm:$0xff]  ;;  %v1698_v4 = vld [vmem:[#allocation2 + $0x1e68] sm:$0xff] }
 0x1b6   :  { %6887 = vmatpush1.bf16.msra.mxu1 %v6886_v21  ;;  %7335 = vmatpush1.bf16.msra.mxu0 %v7334_v22  ;;  %v6900_v21 = vpack.c.bf16 %v1615_v6, %v1608_v5  ;;  %v7348_v22 = vpack.c.bf16 %v1617_v9, %v1610_v8  ;;  %v1652_v5 = vld [vmem:[#allocation2 + $0x1cf8] sm:$0xff]  ;;  %v1659_v6 = vld [vmem:[#allocation2 + $0x1d30] sm:$0xff]  ;;  %v9243_v8 = vmax.f32 %v567_v52, 0.0 }
 0x1b7   :  { %6889 = vmatprep.subr.bf16.mxu1 %v6888_v26  ;;  %7337 = vmatprep.subr.bf16.mxu0 %v7336_v27  ;;  %v1622_v26 = vld [vmem:[#allocation2 + $0x1c08] sm:$0xff]  ;;  %v1629_v27 = vld [vmem:[#allocation2 + $0x1c40] sm:$0xff]  ;;  %v7360_v16 = vpack.c.bf16 %v1659_v6, %v1652_v5 }
 0x1ba   :  { %6891 = vmatpush1.bf16.msra.mxu1 %v6890_v41  ;;  %7339 = vmatpush1.bf16.msra.mxu0 %v7338_v42  ;;  %v1628_v41 = vld [vmem:[#allocation2 + $0x1c38] sm:$0xff]  ;;  %v6904_v42 = vpack.c.bf16 %v1629_v27, %v1622_v26  ;;  %v1673_v26 = vld [vmem:[#allocation2 + $0x1da0] sm:$0xff] }
 0x1bb   :  { %6893 = vmatprep.subr.bf16.mxu1 %v6892_v46  ;;  %7341 = vmatprep.subr.bf16.mxu0 %v7340_v47  ;;  %v1630_v46 = vld [vmem:[#allocation2 + $0x1c48] sm:$0xff]  ;;  %v1636_v47 = vld [vmem:[#allocation2 + $0x1c78] sm:$0xff]  ;;  %v6906_v56 = vpack.c.bf16 %v1628_v41, %v1621_v38  ;;  %v1665_v38 = vld [vmem:[#allocation2 + $0x1d60] sm:$0xff] }
 0x1bc   :  { %v7354_v57 = vpack.c.bf16 %v1630_v46, %v1623_v45  ;;  %v6908_v44 = vpack.c.bf16 %v1643_v48, %v1636_v47  ;;  %v1672_v41 = vld [vmem:[#allocation2 + $0x1d98] sm:$0xff]  ;;  %v1687_v45 = vld [vmem:[#allocation2 + $0x1e10] sm:$0xff]  ;;  %v6918_v46 = vpack.c.bf16 %v1670_v30, %v1663_v29  ;;  %v1677_v48 = vld [vmem:[#allocation2 + $0x1dc0] sm:$0xff] }
 0x1bd   :  { %v7366_v47 = vpack.c.bf16 %v1672_v41, %v1665_v38  ;;  %v1720_v29 = vld [vmem:[#allocation2 + $0x1f18] sm:$0xff]  ;;  %v1727_v30 = vld [vmem:[#allocation2 + $0x1f50] sm:$0xff] }
 0x1be   :  { %6895 = vmatpush1.bf16.msra.mxu1 %v6894_v58  ;;  %7343 = vmatpush1.bf16.msra.mxu0 %v7342_v59  ;;  %v1635_v58 = vld [vmem:[#allocation2 + $0x1c70] sm:$0xff]  ;;  %v1642_v59 = vld [vmem:[#allocation2 + $0x1ca8] sm:$0xff] }
 0x1bf   :  { %6897 = vmatprep.subr.bf16.mxu1 %v6896_v63  ;;  %7345 = vmatprep.subr.bf16.mxu0 %v7344_v1  ;;  %v1637_v63 = vld [vmem:[#allocation2 + $0x1c80] sm:$0xff]  ;;  %v1644_v1 = vld [vmem:[#allocation2 + $0x1cb8] sm:$0xff]  ;;  %v6910_v2 = vpack.c.bf16 %v1642_v59, %v1635_v58  ;;  %v1699_v59 = vld [vmem:[#allocation2 + $0x1e70] sm:$0xff] }
 0x1c0   :  { %v7358_v9 = vpack.c.bf16 %v1644_v1, %v1637_v63  ;;  %v1692_v58 = vld [vmem:[#allocation2 + $0x1e38] sm:$0xff]  ;;  %v6922_v63 = vpack.c.bf16 %v1684_v49, %v1677_v48  ;;  %v1734_v48 = vld [vmem:[#allocation2 + $0x1f88] sm:$0xff]  ;;  %v1741_v49 = vld [vmem:[#allocation2 + $0x1fc0] sm:$0xff] }
 0x1c1   :  { %v6924_v5 = vpack.c.bf16 %v1699_v59, %v1692_v58  ;;  %v1733_v58 = vld [vmem:[#allocation2 + $0x1f80] sm:$0xff]  ;;  %v1740_v59 = vld [vmem:[#allocation2 + $0x1fb8] sm:$0xff] }
 0x1c2   :  { %6899 = vmatpush1.bf16.msra.mxu1 %v6898_v13  ;;  %7347 = vmatpush1.bf16.msra.mxu0 %v7346_v12  ;;  %v1649_v13 = vld [vmem:[#allocation2 + $0x1ce0] sm:$0xff]  ;;  %v1656_v12 = vld [vmem:[#allocation2 + $0x1d18] sm:$0xff] }
 0x1c3   :  { %6901 = vmatprep.subr.bf16.mxu1 %v6900_v21  ;;  %7349 = vmatprep.subr.bf16.mxu0 %v7348_v22  ;;  %v1658_v21 = vld [vmem:[#allocation2 + $0x1d28] sm:$0xff]  ;;  %v1664_v22 = vld [vmem:[#allocation2 + $0x1d58] sm:$0xff]  ;;  %v6914_v27 = vpack.c.bf16 %v1656_v12, %v1649_v13  ;;  %v1713_v12 = vld [vmem:[#allocation2 + $0x1ee0] sm:$0xff] }
 0x1c4   :  { %v7362_v28 = vpack.c.bf16 %v1658_v21, %v1651_v20  ;;  %v1706_v13 = vld [vmem:[#allocation2 + $0x1ea8] sm:$0xff]  ;;  %v6926_v20 = vpack.c.bf16 %v1698_v4, %v1691_v3  ;;  %v1748_v3 = vld [vmem:[#allocation2 + $0x1ff8] sm:$0xff]  ;;  %v1755_v4 = vld [vmem:[#allocation2 + $0x2030] sm:$0xff] }
 0x1c6   :  { %6903 = vmatpush1.bf16.msra.mxu1 %v6902_v50  ;;  %7351 = vmatpush1.bf16.msra.mxu0 %v7350_v33  ;;  %v6916_v50 = vpack.c.bf16 %v1671_v24, %v1664_v22  ;;  %v7364_v33 = vpack.c.bf16 %v1673_v26, %v1666_v25  ;;  %v1705_v22 = vld [vmem:[#allocation2 + $0x1ea0] sm:$0xff]  ;;  %v1712_v24 = vld [vmem:[#allocation2 + $0x1ed8] sm:$0xff]  ;;  %v6928_v25 = vpack.c.bf16 %v1713_v12, %v1706_v13  ;;  %v1747_v13 = vld [vmem:[#allocation2 + $0x1ff0] sm:$0xff] }
 0x1c7   :  { %6905 = vmatprep.subr.bf16.mxu1 %v6904_v42  ;;  %7353 = vmatprep.subr.bf16.mxu0 %v7352_v43  ;;  %v1685_v42 = vld [vmem:[#allocation2 + $0x1e00] sm:$0xff]  ;;  %v1680_v43 = vld [vmem:[#allocation2 + $0x1dd8] sm:$0xff]  ;;  %v6930_v38 = vpack.c.bf16 %v1712_v24, %v1705_v22  ;;  %v1754_v12 = vld [vmem:[#allocation2 + $0x2028] sm:$0xff] }
 0x1c8   :  { %v6920_v51 = vpack.c.bf16 %v1685_v42, %v1678_v40  ;;  %v7368_v52 = vpack.c.bf16 %v1687_v45, %v1680_v43  ;;  %v1719_v40 = vld [vmem:[#allocation2 + $0x1f10] sm:$0xff]  ;;  %v1726_v42 = vld [vmem:[#allocation2 + $0x1f48] sm:$0xff]  ;;  %v6932_v43 = vpack.c.bf16 %v1727_v30, %v1720_v29  ;;  %v1769_v24 = vld [vmem:[#allocation2 + $0x20a0] sm:$0xff] }
 0x1c9   :  { %2608 = vmatmul.mubr.f32.vlgmr.msra.gmra.mrb[6].mxu1 %v9241_v60  ;;  %3105 = vmatmul.mubr.f32.vlgmr.msra.gmra.mrb[8].mxu0 %v9241_v60  ;;  %v1762_v22 = vld [vmem:[#allocation2 + $0x2068] sm:$0xff]  ;;  %v1761_v29 = vld [vmem:[#allocation2 + $0x2060] sm:$0xff]  ;;  %v1768_v30 = vld [vmem:[#allocation2 + $0x2098] sm:$0xff] }
 0x1ca   :  { %6907 = vmatpush1.bf16.msra.mxu1 %v6906_v56  ;;  %7355 = vmatpush1.bf16.msra.mxu0 %v7354_v57  ;;  %v1679_v56 = vld [vmem:[#allocation2 + $0x1dd0] sm:$0xff]  ;;  %v1686_v57 = vld [vmem:[#allocation2 + $0x1e08] sm:$0xff] }
 0x1cb   :  { %6909 = vmatprep.subr.bf16.mxu1 %v6908_v44  ;;  %7357 = vmatprep.subr.bf16.mxu0 %v7356_v36  ;;  %v1694_v44 = vld [vmem:[#allocation2 + $0x1e48] sm:$0xff]  ;;  %v1701_v36 = vld [vmem:[#allocation2 + $0x1e80] sm:$0xff]  ;;  %v7370_v1 = vpack.c.bf16 %v1686_v57, %v1679_v56  ;;  %v6934_v56 = vpack.c.bf16 %v1726_v42, %v1719_v40  ;;  %v1776_v40 = vld [vmem:[#allocation2 + $0x20d8] sm:$0xff] }
 0x1cc   :  { %2678 = vmatprep.mubr.f32.mxu1 %v9243_v8  ;;  %3175 = vmatprep.mubr.f32.mxu0 %v9243_v8  ;;  %v7372_v6 = vpack.c.bf16 %v1701_v36, %v1694_v44  ;;  %v6936_v44 = vpack.c.bf16 %v1741_v49, %v1734_v48  ;;  %v1783_v42 = vld [vmem:[#allocation2 + $0x2110] sm:$0xff]  ;;  %v1782_v49 = vld [vmem:[#allocation2 + $0x2108] sm:$0xff] }
 0x1cd   :  { %v1775_v48 = vld [vmem:[#allocation2 + $0x20d0] sm:$0xff] }
 0x1ce   :  { %6911 = vmatpush1.bf16.msra.mxu1 %v6910_v2  ;;  %7359 = vmatpush1.bf16.msra.mxu0 %v7358_v9  ;;  %v1693_v2 = vld [vmem:[#allocation2 + $0x1e40] sm:$0xff]  ;;  %v1700_v9 = vld [vmem:[#allocation2 + $0x1e78] sm:$0xff] }
 0x1cf   :  { %6913 = vmatprep.subr.bf16.mxu1 %v6912_v15  ;;  %7361 = vmatprep.subr.bf16.mxu0 %v7360_v16  ;;  %v1708_v15 = vld [vmem:[#allocation2 + $0x1eb8] sm:$0xff]  ;;  %v1715_v16 = vld [vmem:[#allocation2 + $0x1ef0] sm:$0xff]  ;;  %v7374_v21 = vpack.c.bf16 %v1700_v9, %v1693_v2  ;;  %v6938_v2 = vpack.c.bf16 %v1740_v59, %v1733_v58  ;;  %v1790_v58 = vld [vmem:[#allocation2 + $0x2148] sm:$0xff] }
 0x1d0   :  { %v7376_v26 = vpack.c.bf16 %v1715_v16, %v1708_v15  ;;  %v6940_v15 = vpack.c.bf16 %v1755_v4, %v1748_v3  ;;  %v1797_v59 = vld [vmem:[#allocation2 + $0x2180] sm:$0xff]  ;;  %v1796_v4 = vld [vmem:[#allocation2 + $0x2178] sm:$0xff] }
 0x1d1   :  { %v1789_v3 = vld [vmem:[#allocation2 + $0x2140] sm:$0xff] }
 0x1d2   :  { %6915 = vmatpush1.bf16.msra.mxu1 %v6914_v27  ;;  %7363 = vmatpush1.bf16.msra.mxu0 %v7362_v28  ;;  %v1707_v27 = vld [vmem:[#allocation2 + $0x1eb0] sm:$0xff]  ;;  %v1714_v28 = vld [vmem:[#allocation2 + $0x1ee8] sm:$0xff] }
 0x1d3   :  { %6917 = vmatprep.subr.bf16.mxu1 %v6916_v50  ;;  %7365 = vmatprep.subr.bf16.mxu0 %v7364_v33  ;;  %v1722_v50 = vld [vmem:[#allocation2 + $0x1f28] sm:$0xff]  ;;  %v1729_v33 = vld [vmem:[#allocation2 + $0x1f60] sm:$0xff]  ;;  %v7378_v41 = vpack.c.bf16 %v1714_v28, %v1707_v27  ;;  %v6942_v27 = vpack.c.bf16 %v1754_v12, %v1747_v13  ;;  %v1804_v13 = vld [vmem:[#allocation2 + $0x21b8] sm:$0xff] }
 0x1d4   :  { %v7380_v45 = vpack.c.bf16 %v1729_v33, %v1722_v50  ;;  %v6944_v50 = vpack.c.bf16 %v1769_v24, %v1762_v22  ;;  %v1811_v12 = vld [vmem:[#allocation2 + $0x21f0] sm:$0xff]  ;;  %v1810_v24 = vld [vmem:[#allocation2 + $0x21e8] sm:$0xff] }
 0x1d5   :  { %v1803_v22 = vld [vmem:[#allocation2 + $0x21b0] sm:$0xff] }
 0x1d6   :  { %6919 = vmatpush1.bf16.msra.mxu1 %v6918_v46  ;;  %7367 = vmatpush1.bf16.msra.mxu0 %v7366_v47  ;;  %v1721_v46 = vld [vmem:[#allocation2 + $0x1f20] sm:$0xff]  ;;  %v1728_v47 = vld [vmem:[#allocation2 + $0x1f58] sm:$0xff] }
 0x1d7   :  { %6921 = vmatprep.subr.bf16.mxu1 %v6920_v51  ;;  %7369 = vmatprep.subr.bf16.mxu0 %v7368_v52  ;;  %v1736_v51 = vld [vmem:[#allocation2 + $0x1f98] sm:$0xff]  ;;  %v1743_v52 = vld [vmem:[#allocation2 + $0x1fd0] sm:$0xff]  ;;  %v7382_v57 = vpack.c.bf16 %v1728_v47, %v1721_v46  ;;  %v6946_v46 = vpack.c.bf16 %v1768_v30, %v1761_v29  ;;  %v1818_v29 = vld [vmem:[#allocation2 + $0x2228] sm:$0xff] }
 0x1d8   :  { %v7384_v36 = vpack.c.bf16 %v1743_v52, %v1736_v51  ;;  %v6948_v51 = vpack.c.bf16 %v1783_v42, %v1776_v40  ;;  %v1825_v30 = vld [vmem:[#allocation2 + $0x2260] sm:$0xff]  ;;  %v1824_v42 = vld [vmem:[#allocation2 + $0x2258] sm:$0xff] }
 0x1d9   :  { %v1817_v40 = vld [vmem:[#allocation2 + $0x2220] sm:$0xff] }
 0x1da   :  { %6923 = vmatpush1.bf16.msra.mxu1 %v6922_v63  ;;  %7371 = vmatpush1.bf16.msra.mxu0 %v7370_v1  ;;  %v1735_v63 = vld [vmem:[#allocation2 + $0x1f90] sm:$0xff]  ;;  %v1742_v1 = vld [vmem:[#allocation2 + $0x1fc8] sm:$0xff] }
 0x1db   :  { %6925 = vmatprep.subr.bf16.mxu1 %v6924_v5  ;;  %7373 = vmatprep.subr.bf16.mxu0 %v7372_v6  ;;  %v1750_v5 = vld [vmem:[#allocation2 + $0x2008] sm:$0xff]  ;;  %v1757_v6 = vld [vmem:[#allocation2 + $0x2040] sm:$0xff]  ;;  %v7386_v9 = vpack.c.bf16 %v1742_v1, %v1735_v63  ;;  %v6950_v63 = vpack.c.bf16 %v1782_v49, %v1775_v48  ;;  %v1832_v48 = vld [vmem:[#allocation2 + $0x2298] sm:$0xff] }
 0x1dc   :  { %v7388_v16 = vpack.c.bf16 %v1757_v6, %v1750_v5  ;;  %v6952_v5 = vpack.c.bf16 %v1797_v59, %v1790_v58  ;;  %v1839_v49 = vld [vmem:[#allocation2 + $0x22d0] sm:$0xff] }
 0x1dd   :  { %v1831_v59 = vld [vmem:[#allocation2 + $0x2290] sm:$0xff] }
 0x1de   :  { %6927 = vmatpush1.bf16.msra.mxu1 %v6926_v20  ;;  %7375 = vmatpush1.bf16.msra.mxu0 %v7374_v21  ;;  %v1749_v20 = vld [vmem:[#allocation2 + $0x2000] sm:$0xff]  ;;  %v1756_v21 = vld [vmem:[#allocation2 + $0x2038] sm:$0xff] }
 0x1df   :  { %6929 = vmatprep.subr.bf16.mxu1 %v6928_v25  ;;  %7377 = vmatprep.subr.bf16.mxu0 %v7376_v26  ;;  %v1764_v25 = vld [vmem:[#allocation2 + $0x2078] sm:$0xff]  ;;  %v1771_v26 = vld [vmem:[#allocation2 + $0x20b0] sm:$0xff]  ;;  %v7390_v28 = vpack.c.bf16 %v1756_v21, %v1749_v20  ;;  %v6954_v20 = vpack.c.bf16 %v1796_v4, %v1789_v3  ;;  %v1846_v4 = vld [vmem:[#allocation2 + $0x2308] sm:$0xff] }
 0x1e0   :  { %v7392_v33 = vpack.c.bf16 %v1771_v26, %v1764_v25  ;;  %v6956_v25 = vpack.c.bf16 %v1811_v12, %v1804_v13  ;;  %v1840_v3 = vld [vmem:[#allocation2 + $0x22d8] sm:$0xff]  ;;  %v9253_v13 = vpop.f32.mrb[6].mxu0 }
 0x1e2   :  { %6931 = vmatpush1.bf16.msra.mxu1 %v6930_v38  ;;  %7379 = vmatpush1.bf16.msra.mxu0 %v7378_v41  ;;  %v1763_v38 = vld [vmem:[#allocation2 + $0x2070] sm:$0xff]  ;;  %v1770_v41 = vld [vmem:[#allocation2 + $0x20a8] sm:$0xff] }
 0x1e3   :  { %6933 = vmatprep.subr.bf16.mxu1 %v6932_v43  ;;  %7381 = vmatprep.subr.bf16.mxu0 %v7380_v45  ;;  %v1778_v43 = vld [vmem:[#allocation2 + $0x20e8] sm:$0xff]  ;;  %v1785_v45 = vld [vmem:[#allocation2 + $0x2120] sm:$0xff]  ;;  %v7394_v47 = vpack.c.bf16 %v1770_v41, %v1763_v38  ;;  %v6958_v38 = vpack.c.bf16 %v1810_v24, %v1803_v22  ;;  %v1852_v24 = vld [vmem:[#allocation2 + $0x2338] sm:$0xff] }
 0x1e4   :  { %v7396_v52 = vpack.c.bf16 %v1785_v45, %v1778_v43  ;;  %v6960_v43 = vpack.c.bf16 %v1825_v30, %v1818_v29  ;;  %v1845_v22 = vld [vmem:[#allocation2 + $0x2300] sm:$0xff]  ;;  %v1862_v30 = vld [vmem:[#allocation2 + $0x2388] sm:$0xff] }
 0x1e6   :  { %6935 = vmatpush1.bf16.msra.mxu1 %v6934_v56  ;;  %7383 = vmatpush1.bf16.msra.mxu0 %v7382_v57  ;;  %v1777_v56 = vld [vmem:[#allocation2 + $0x20e0] sm:$0xff]  ;;  %v1784_v57 = vld [vmem:[#allocation2 + $0x2118] sm:$0xff] }
 0x1e7   :  { %6937 = vmatprep.subr.bf16.mxu1 %v6936_v44  ;;  %7385 = vmatprep.subr.bf16.mxu0 %v7384_v36  ;;  %v1792_v44 = vld [vmem:[#allocation2 + $0x2158] sm:$0xff]  ;;  %v1799_v36 = vld [vmem:[#allocation2 + $0x2190] sm:$0xff]  ;;  %v7398_v1 = vpack.c.bf16 %v1784_v57, %v1777_v56  ;;  %v175_v56 = vrot.slane %v9232_v11, %v9137_v35  ;;  %v6962_v57 = vpack.c.bf16 %v1824_v42, %v1817_v40  ;;  %v1866_v40 = vld [vmem:[#allocation2 + $0x23a8] sm:$0xff] }
 0x1e8   :  { %v7400_v6 = vpack.c.bf16 %v1799_v36, %v1792_v44  ;;  %v1838_v44 = vld [vmem:[#allocation2 + $0x22c8] sm:$0xff]  ;;  %v6964_v36 = vpack.c.bf16 %v1839_v49, %v1832_v48  ;;  %v1861_v42 = vld [vmem:[#allocation2 + $0x2380] sm:$0xff]  ;;  %v1876_v49 = vld [vmem:[#allocation2 + $0x23f8] sm:$0xff] }
 0x1e9   :  { %v565_v12 = vadd.f32 %v9213_v53, %v175_v56  ;;  %v1867_v53 = vld [vmem:[#allocation2 + $0x23b0] sm:$0xff]  ;;  %v1881_v48 = vld [vmem:[#allocation2 + $0x2420] sm:$0xff] }
 0x1ea   :  { %6939 = vmatpush1.bf16.msra.mxu1 %v6938_v2  ;;  %7387 = vmatpush1.bf16.msra.mxu0 %v7386_v9  ;;  %v1791_v2 = vld [vmem:[#allocation2 + $0x2150] sm:$0xff]  ;;  %v1798_v9 = vld [vmem:[#allocation2 + $0x2188] sm:$0xff] }
 0x1eb   :  { %6941 = vmatprep.subr.bf16.mxu1 %v6940_v15  ;;  %7389 = vmatprep.subr.bf16.mxu0 %v7388_v16  ;;  %v1806_v15 = vld [vmem:[#allocation2 + $0x21c8] sm:$0xff]  ;;  %v1813_v16 = vld [vmem:[#allocation2 + $0x2200] sm:$0xff]  ;;  %v7402_v21 = vpack.c.bf16 %v1798_v9, %v1791_v2  ;;  %v1848_v2 = vld [vmem:[#allocation2 + $0x2318] sm:$0xff]  ;;  %v9259_v29 = vmax.f32 %v565_v12, 0.0 }
 0x1ec   :  { %v7404_v26 = vpack.c.bf16 %v1813_v16, %v1806_v15  ;;  %v1855_v9 = vld [vmem:[#allocation2 + $0x2350] sm:$0xff]  ;;  %v6966_v15 = vpack.c.bf16 %v1838_v44, %v1831_v59  ;;  %v1880_v59 = vld [vmem:[#allocation2 + $0x2418] sm:$0xff] }
 0x1ed   :  { %v1875_v44 = vld [vmem:[#allocation2 + $0x23f0] sm:$0xff] }
 0x1ee   :  { %6943 = vmatpush1.bf16.msra.mxu1 %v6942_v27  ;;  %7391 = vmatpush1.bf16.msra.mxu0 %v7390_v28  ;;  %v1805_v27 = vld [vmem:[#allocation2 + $0x21c0] sm:$0xff]  ;;  %v1812_v28 = vld [vmem:[#allocation2 + $0x21f8] sm:$0xff]  ;;  %v1887_v12 = vld [vmem:[#allocation2 + $0x2450] sm:$0xff] }
 0x1ef   :  { %6945 = vmatprep.subr.bf16.mxu1 %v6944_v50  ;;  %7393 = vmatprep.subr.bf16.mxu0 %v7392_v33  ;;  %v1820_v50 = vld [vmem:[#allocation2 + $0x2238] sm:$0xff]  ;;  %v1827_v33 = vld [vmem:[#allocation2 + $0x2270] sm:$0xff]  ;;  %v7406_v41 = vpack.c.bf16 %v1812_v28, %v1805_v27  ;;  %v1854_v27 = vld [vmem:[#allocation2 + $0x2348] sm:$0xff] }
 0x1f0   :  { %v7408_v45 = vpack.c.bf16 %v1827_v33, %v1820_v50  ;;  %v1860_v28 = vld [vmem:[#allocation2 + $0x2378] sm:$0xff]  ;;  %v1869_v50 = vld [vmem:[#allocation2 + $0x23c0] sm:$0xff]  ;;  %v6970_v33 = vpack.c.bf16 %v1852_v24, %v1845_v22  ;;  %v1902_v22 = vld [vmem:[#allocation2 + $0x24c8] sm:$0xff] }
 0x1f1   :  { %v1909_v24 = vld [vmem:[#allocation2 + $0x2500] sm:$0xff] }
 0x1f2   :  { %6947 = vmatpush1.bf16.msra.mxu1 %v6946_v46  ;;  %7395 = vmatpush1.bf16.msra.mxu0 %v7394_v47  ;;  %v1819_v46 = vld [vmem:[#allocation2 + $0x2230] sm:$0xff]  ;;  %v1826_v47 = vld [vmem:[#allocation2 + $0x2268] sm:$0xff] }
 0x1f3   :  { %6949 = vmatprep.subr.bf16.mxu1 %v6948_v51  ;;  %7397 = vmatprep.subr.bf16.mxu0 %v7396_v52  ;;  %v1834_v51 = vld [vmem:[#allocation2 + $0x22a8] sm:$0xff]  ;;  %v1841_v52 = vld [vmem:[#allocation2 + $0x22e0] sm:$0xff]  ;;  %v7410_v58 = vpack.c.bf16 %v1826_v47, %v1819_v46  ;;  %v1868_v46 = vld [vmem:[#allocation2 + $0x23b8] sm:$0xff] }
 0x1f4   :  { %v1874_v47 = vld [vmem:[#allocation2 + $0x23e8] sm:$0xff]  ;;  %v7422_v56 = vpack.c.bf16 %v1868_v46, %v1861_v42  ;;  %v1923_v42 = vld [vmem:[#allocation2 + $0x2570] sm:$0xff] }
 0x1f6   :  { %6951 = vmatpush1.bf16.msra.mxu1 %v6950_v63  ;;  %7399 = vmatpush1.bf16.msra.mxu0 %v7398_v1  ;;  %v7412_v63 = vpack.c.bf16 %v1841_v52, %v1834_v51  ;;  %v1833_v1 = vld [vmem:[#allocation2 + $0x22a0] sm:$0xff]  ;;  %v1883_v51 = vld [vmem:[#allocation2 + $0x2430] sm:$0xff] }
 0x1f7   :  { %6953 = vmatprep.subr.bf16.mxu1 %v6952_v5  ;;  %7401 = vmatprep.subr.bf16.mxu0 %v7400_v6  ;;  %v187_v5 = vrot.slane %v9232_v11, %v9150_v39  ;;  %v1853_v6 = vld [vmem:[#allocation2 + $0x2340] sm:$0xff]  ;;  %v7414_v16 = vpack.c.bf16 %v1840_v3, %v1833_v1  ;;  %v1888_v1 = vld [vmem:[#allocation2 + $0x2458] sm:$0xff]  ;;  %v1895_v3 = vld [vmem:[#allocation2 + $0x2490] sm:$0xff] }
 0x1f9   :  { %v638_v11 = vadd.f32 %v9180_v17, %v187_v5  ;;  %v6972_v17 = vpack.c.bf16 %v1867_v53, %v1860_v28  ;;  %v1897_v5 = vld [vmem:[#allocation2 + $0x24a0] sm:$0xff]  ;;  %v6984_v53 = vpack.c.bf16 %v1909_v24, %v1902_v22 }
 0x1fa   :  { %6955 = vmatpush1.bf16.msra.mxu1 %v6954_v20  ;;  %7403 = vmatpush1.bf16.msra.mxu0 %v7402_v21  ;;  %v6968_v20 = vpack.c.bf16 %v1853_v6, %v1846_v4  ;;  %v7416_v21 = vpack.c.bf16 %v1855_v9, %v1848_v2  ;;  %v1890_v4 = vld [vmem:[#allocation2 + $0x2468] sm:$0xff]  ;;  %v6980_v9 = vpack.c.bf16 %v1895_v3, %v1888_v1 }
 0x1fb   :  { %6957 = vmatprep.subr.bf16.mxu1 %v6956_v25  ;;  %7405 = vmatprep.subr.bf16.mxu0 %v7404_v26  ;;  %v9256_v25 = vpop.f32.mrb[7].mxu0  ;;  %v1847_v26 = vld [vmem:[#allocation2 + $0x2310] sm:$0xff] }
 0x1fe   :  { %6959 = vmatpush1.bf16.msra.mxu1 %v6958_v38  ;;  %7407 = vmatpush1.bf16.msra.mxu0 %v7406_v41  ;;  %v7418_v38 = vpack.c.bf16 %v1854_v27, %v1847_v26  ;;  %v1859_v41 = vld [vmem:[#allocation2 + $0x2370] sm:$0xff] }
 0x1ff   :  { %6961 = vmatprep.subr.bf16.mxu1 %v6960_v43  ;;  %7409 = vmatprep.subr.bf16.mxu0 %v7408_v45  ;;  %v9261_v43 = vmax.f32 %v638_v11, 0.0  ;;  %v7420_v45 = vpack.c.bf16 %v1869_v50, %v1862_v30  ;;  %v6974_v52 = vpack.c.bf16 %v1866_v40, %v1859_v41  ;;  %v1904_v11 = vld [vmem:[#allocation2 + $0x24d8] sm:$0xff]  ;;  %v1911_v26 = vld [vmem:[#allocation2 + $0x2510] sm:$0xff]  ;;  %v1901_v30 = vld [vmem:[#allocation2 + $0x24c0] sm:$0xff] }
 0x200   :  { %v1908_v50 = vld [vmem:[#allocation2 + $0x24f8] sm:$0xff]  ;;  %v1910_v41 = vld [vmem:[#allocation2 + $0x2508] sm:$0xff] }
 0x201   :  { %v1916_v40 = vld [vmem:[#allocation2 + $0x2538] sm:$0xff]  ;;  %v6986_v46 = vpack.c.bf16 %v1908_v50, %v1901_v30  ;;  %v1958_v30 = vld [vmem:[#allocation2 + $0x2688] sm:$0xff]  ;;  %v1965_v50 = vld [vmem:[#allocation2 + $0x26c0] sm:$0xff] }
 0x202   :  { %6963 = vmatpush1.bf16.msra.mxu1 %v6962_v57  ;;  %7411 = vmatpush1.bf16.msra.mxu0 %v7410_v58  ;;  %v6976_v57 = vpack.c.bf16 %v1881_v48, %v1874_v47  ;;  %v1873_v58 = vld [vmem:[#allocation2 + $0x23e0] sm:$0xff]  ;;  %v6988_v48 = vpack.c.bf16 %v1923_v42, %v1916_v40  ;;  %v7000_v42 = vpack.c.bf16 %v1965_v50, %v1958_v30 }
 0x203   :  { %6965 = vmatprep.subr.bf16.mxu1 %v6964_v36  ;;  %7413 = vmatprep.subr.bf16.mxu0 %v7412_v63  ;;  %v7424_v36 = vpack.c.bf16 %v1883_v51, %v1876_v49  ;;  %v1882_v63 = vld [vmem:[#allocation2 + $0x2428] sm:$0xff]  ;;  %v6978_v6 = vpack.c.bf16 %v1880_v59, %v1873_v58  ;;  %v1915_v49 = vld [vmem:[#allocation2 + $0x2530] sm:$0xff]  ;;  %v1937_v59 = vld [vmem:[#allocation2 + $0x25e0] sm:$0xff] }
 0x204   :  { %v7426_v2 = vpack.c.bf16 %v1882_v63, %v1875_v44  ;;  %v1922_v51 = vld [vmem:[#allocation2 + $0x2568] sm:$0xff]  ;;  %v1932_v44 = vld [vmem:[#allocation2 + $0x25b8] sm:$0xff] }
 0x205   :  { %v1930_v58 = vld [vmem:[#allocation2 + $0x25a8] sm:$0xff]  ;;  %v6990_v63 = vpack.c.bf16 %v1922_v51, %v1915_v49  ;;  %v1972_v49 = vld [vmem:[#allocation2 + $0x26f8] sm:$0xff]  ;;  %v1979_v51 = vld [vmem:[#allocation2 + $0x2730] sm:$0xff] }
 0x206   :  { %6967 = vmatpush1.bf16.msra.mxu1 %v6966_v15  ;;  %7415 = vmatpush1.bf16.msra.mxu0 %v7414_v16  ;;  %v1894_v15 = vld [vmem:[#allocation2 + $0x2488] sm:$0xff]  ;;  %v1889_v16 = vld [vmem:[#allocation2 + $0x2460] sm:$0xff]  ;;  %v6992_v3 = vpack.c.bf16 %v1937_v59, %v1930_v58  ;;  %v7004_v59 = vpack.c.bf16 %v1979_v51, %v1972_v49 }
 0x207   :  { %6969 = vmatprep.subr.bf16.mxu1 %v6968_v20  ;;  %7417 = vmatprep.subr.bf16.mxu0 %v7416_v21  ;;  %v7428_v20 = vpack.c.bf16 %v1897_v5, %v1890_v4  ;;  %v1896_v21 = vld [vmem:[#allocation2 + $0x2498] sm:$0xff]  ;;  %v6982_v27 = vpack.c.bf16 %v1894_v15, %v1887_v12  ;;  %v1929_v4 = vld [vmem:[#allocation2 + $0x25a0] sm:$0xff]  ;;  %v1951_v15 = vld [vmem:[#allocation2 + $0x2650] sm:$0xff] }
 0x208   :  { %v7430_v28 = vpack.c.bf16 %v1896_v21, %v1889_v16  ;;  %v1936_v5 = vld [vmem:[#allocation2 + $0x25d8] sm:$0xff]  ;;  %v1946_v16 = vld [vmem:[#allocation2 + $0x2628] sm:$0xff] }
 0x209   :  { %2679 = vmatmul.mubr.f32.vlgmr.msra.gmra.mrb[6].mxu1 %v9259_v29  ;;  %3176 = vmatmul.mubr.f32.vlgmr.msra.gmra.mrb[8].mxu0 %v9259_v29  ;;  %v1944_v12 = vld [vmem:[#allocation2 + $0x2618] sm:$0xff]  ;;  %v6994_v21 = vpack.c.bf16 %v1936_v5, %v1929_v4  ;;  %v1986_v4 = vld [vmem:[#allocation2 + $0x2768] sm:$0xff]  ;;  %v1993_v5 = vld [vmem:[#allocation2 + $0x27a0] sm:$0xff] }
 0x20a   :  { %6971 = vmatpush1.bf16.msra.mxu1 %v6970_v33  ;;  %2749 = vmatprep.mubr.f32.mxu1 %v9261_v43  ;;  %v1903_v33 = vld [vmem:[#allocation2 + $0x24d0] sm:$0xff]  ;;  %v6996_v24 = vpack.c.bf16 %v1951_v15, %v1944_v12  ;;  %v7008_v15 = vpack.c.bf16 %v1993_v5, %v1986_v4 }
 0x20b   :  { %7419 = vmatpush1.bf16.msra.mxu0 %v7418_v38  ;;  %3246 = vmatprep.mubr.f32.mxu0 %v9261_v43  ;;  %v7432_v38 = vpack.c.bf16 %v1911_v26, %v1904_v11  ;;  %v7434_v47 = vpack.c.bf16 %v1910_v41, %v1903_v33  ;;  %v1943_v11 = vld [vmem:[#allocation2 + $0x2610] sm:$0xff]  ;;  %v1950_v26 = vld [vmem:[#allocation2 + $0x2648] sm:$0xff]  ;;  %v1960_v33 = vld [vmem:[#allocation2 + $0x2698] sm:$0xff] }
 0x20c   :  { %6973 = vmatprep.subr.bf16.mxu1 %v6972_v17  ;;  %7421 = vmatprep.subr.bf16.mxu0 %v7420_v45  ;;  %v1918_v17 = vld [vmem:[#allocation2 + $0x2548] sm:$0xff]  ;;  %v1925_v45 = vld [vmem:[#allocation2 + $0x2580] sm:$0xff]  ;;  %v6998_v41 = vpack.c.bf16 %v1950_v26, %v1943_v11  ;;  %v2000_v11 = vld [vmem:[#allocation2 + $0x27d8] sm:$0xff] }
 0x20d   :  { %v2007_v26 = vld [vmem:[#allocation2 + $0x2810] sm:$0xff] }
 0x20e   :  { %6975 = vmatpush1.bf16.msra.mxu1 %v6974_v52  ;;  %v1917_v52 = vld [vmem:[#allocation2 + $0x2540] sm:$0xff]  ;;  %v7012_v50 = vpack.c.bf16 %v2007_v26, %v2000_v11 }
 0x20f   :  { %7423 = vmatpush1.bf16.msra.mxu0 %v7422_v56  ;;  %6977 = vmatprep.subr.bf16.mxu1 %v6976_v57  ;;  %v7436_v56 = vpack.c.bf16 %v1925_v45, %v1918_v17  ;;  %v1924_v57 = vld [vmem:[#allocation2 + $0x2578] sm:$0xff]  ;;  %v1957_v17 = vld [vmem:[#allocation2 + $0x2680] sm:$0xff] }
 0x210   :  { %7425 = vmatprep.subr.bf16.mxu0 %v7424_v36  ;;  %v1939_v36 = vld [vmem:[#allocation2 + $0x25f0] sm:$0xff]  ;;  %v7438_v1 = vpack.c.bf16 %v1924_v57, %v1917_v52  ;;  %v1964_v45 = vld [vmem:[#allocation2 + $0x26b8] sm:$0xff]  ;;  %v1974_v52 = vld [vmem:[#allocation2 + $0x2708] sm:$0xff] }
 0x211   :  { %v7002_v57 = vpack.c.bf16 %v1964_v45, %v1957_v17  ;;  %v2014_v17 = vld [vmem:[#allocation2 + $0x2848] sm:$0xff]  ;;  %v2021_v45 = vld [vmem:[#allocation2 + $0x2880] sm:$0xff] }
 0x212   :  { %6979 = vmatpush1.bf16.msra.mxu1 %v6978_v6  ;;  %v1931_v6 = vld [vmem:[#allocation2 + $0x25b0] sm:$0xff]  ;;  %v7016_v51 = vpack.c.bf16 %v2021_v45, %v2014_v17  ;;  %v9270_v17 = vld [vmem:[%s10989_s15 + $0x8] sm:$0x3f] }
 0x213   :  { %7427 = vmatpush1.bf16.msra.mxu0 %v7426_v2  ;;  %6981 = vmatprep.subr.bf16.mxu1 %v6980_v9  ;;  %v7440_v2 = vpack.c.bf16 %v1939_v36, %v1932_v44  ;;  %v1938_v9 = vld [vmem:[#allocation2 + $0x25e8] sm:$0xff]  ;;  %v1971_v44 = vld [vmem:[#allocation2 + $0x26f0] sm:$0xff]  ;;  %v183_v45 = vrot.slane %v9270_v17, %v9183_v32 }
 0x214   :  { %7429 = vmatprep.subr.bf16.mxu0 %v7428_v20  ;;  %v1953_v20 = vld [vmem:[#allocation2 + $0x2660] sm:$0xff]  ;;  %v7442_v22 = vpack.c.bf16 %v1938_v9, %v1931_v6  ;;  %v1978_v36 = vld [vmem:[#allocation2 + $0x2728] sm:$0xff]  ;;  %v1988_v6 = vld [vmem:[#allocation2 + $0x2778] sm:$0xff] }
 0x215   :  { %v7006_v9 = vpack.c.bf16 %v1978_v36, %v1971_v44  ;;  %v2028_v44 = vld [vmem:[#allocation2 + $0x28b8] sm:$0xff]  ;;  %v2035_v36 = vld [vmem:[#allocation2 + $0x28f0] sm:$0xff] }
 0x216   :  { %6983 = vmatpush1.bf16.msra.mxu1 %v6982_v27  ;;  %v1945_v27 = vld [vmem:[#allocation2 + $0x2620] sm:$0xff]  ;;  %v7020_v5 = vpack.c.bf16 %v2035_v36, %v2028_v44  ;;  %v2072_v44 = vld [vmem:[#allocation2 + $0x2a18] sm:$0xff]  ;;  %v2079_v36 = vld [vmem:[#allocation2 + $0x2a50] sm:$0xff] }
 0x217   :  { %7431 = vmatpush1.bf16.msra.mxu0 %v7430_v28  ;;  %6985 = vmatprep.subr.bf16.mxu1 %v6984_v53  ;;  %v7444_v28 = vpack.c.bf16 %v1953_v20, %v1946_v16  ;;  %v1952_v53 = vld [vmem:[#allocation2 + $0x2658] sm:$0xff]  ;;  %v1985_v16 = vld [vmem:[#allocation2 + $0x2760] sm:$0xff] }
 0x218   :  { %7433 = vmatprep.subr.bf16.mxu0 %v7432_v38  ;;  %v1967_v38 = vld [vmem:[#allocation2 + $0x26d0] sm:$0xff]  ;;  %v7446_v40 = vpack.c.bf16 %v1952_v53, %v1945_v27  ;;  %v1992_v20 = vld [vmem:[#allocation2 + $0x2798] sm:$0xff]  ;;  %v2002_v27 = vld [vmem:[#allocation2 + $0x27e8] sm:$0xff] }
 0x219   :  { %v7010_v53 = vpack.c.bf16 %v1992_v20, %v1985_v16  ;;  %v2042_v16 = vld [vmem:[#allocation2 + $0x2928] sm:$0xff]  ;;  %v2049_v20 = vld [vmem:[#allocation2 + $0x2960] sm:$0xff] }
 0x21a   :  { %6987 = vmatpush1.bf16.msra.mxu1 %v6986_v46  ;;  %v1959_v46 = vld [vmem:[#allocation2 + $0x2690] sm:$0xff]  ;;  %v7024_v26 = vpack.c.bf16 %v2049_v20, %v2042_v16 }
 0x21b   :  { %7435 = vmatpush1.bf16.msra.mxu0 %v7434_v47  ;;  %6989 = vmatprep.subr.bf16.mxu1 %v6988_v48  ;;  %v7448_v47 = vpack.c.bf16 %v1967_v38, %v1960_v33  ;;  %v1966_v48 = vld [vmem:[#allocation2 + $0x26c8] sm:$0xff]  ;;  %v1999_v33 = vld [vmem:[#allocation2 + $0x27d0] sm:$0xff] }
 0x21c   :  { %7437 = vmatprep.subr.bf16.mxu0 %v7436_v56  ;;  %v1981_v56 = vld [vmem:[#allocation2 + $0x2740] sm:$0xff]  ;;  %v7450_v58 = vpack.c.bf16 %v1966_v48, %v1959_v46  ;;  %v2006_v38 = vld [vmem:[#allocation2 + $0x2808] sm:$0xff]  ;;  %v2016_v46 = vld [vmem:[#allocation2 + $0x2858] sm:$0xff] }
 0x21d   :  { %v7014_v48 = vpack.c.bf16 %v2006_v38, %v1999_v33  ;;  %v2056_v33 = vld [vmem:[#allocation2 + $0x2998] sm:$0xff]  ;;  %v2063_v38 = vld [vmem:[#allocation2 + $0x29d0] sm:$0xff] }
 0x21e   :  { %6991 = vmatpush1.bf16.msra.mxu1 %v6990_v63  ;;  %v1973_v63 = vld [vmem:[#allocation2 + $0x2700] sm:$0xff]  ;;  %v2091_v16 = vld [vmem:[#allocation2 + $0x2ab0] sm:$0xff] }
 0x21f   :  { %7439 = vmatpush1.bf16.msra.mxu0 %v7438_v1  ;;  %6993 = vmatprep.subr.bf16.mxu1 %v6992_v3  ;;  %v7452_v1 = vpack.c.bf16 %v1981_v56, %v1974_v52  ;;  %v1980_v3 = vld [vmem:[#allocation2 + $0x2738] sm:$0xff]  ;;  %v2013_v52 = vld [vmem:[#allocation2 + $0x2840] sm:$0xff] }
 0x220   :  { %7441 = vmatprep.subr.bf16.mxu0 %v7440_v2  ;;  %v1995_v2 = vld [vmem:[#allocation2 + $0x27b0] sm:$0xff]  ;;  %v7454_v12 = vpack.c.bf16 %v1980_v3, %v1973_v63  ;;  %v2020_v56 = vld [vmem:[#allocation2 + $0x2878] sm:$0xff]  ;;  %v2030_v63 = vld [vmem:[#allocation2 + $0x28c8] sm:$0xff] }
 0x221   :  { %v7018_v3 = vpack.c.bf16 %v2020_v56, %v2013_v52  ;;  %v2064_v56 = vld [vmem:[#allocation2 + $0x29d8] sm:$0xff] }
 0x222   :  { %6995 = vmatpush1.bf16.msra.mxu1 %v6994_v21  ;;  %v1987_v21 = vld [vmem:[#allocation2 + $0x2770] sm:$0xff] }
 0x223   :  { %7443 = vmatpush1.bf16.msra.mxu0 %v7442_v22  ;;  %6997 = vmatprep.subr.bf16.mxu1 %v6996_v24  ;;  %v7456_v22 = vpack.c.bf16 %v1995_v2, %v1988_v6  ;;  %v1994_v24 = vld [vmem:[#allocation2 + $0x27a8] sm:$0xff]  ;;  %v2027_v6 = vld [vmem:[#allocation2 + $0x28b0] sm:$0xff] }
 0x224   :  { %7445 = vmatprep.subr.bf16.mxu0 %v7444_v28  ;;  %v2009_v28 = vld [vmem:[#allocation2 + $0x2820] sm:$0xff]  ;;  %v7458_v30 = vpack.c.bf16 %v1994_v24, %v1987_v21  ;;  %v2034_v2 = vld [vmem:[#allocation2 + $0x28e8] sm:$0xff]  ;;  %v2044_v21 = vld [vmem:[#allocation2 + $0x2938] sm:$0xff] }
 0x225   :  { %v7022_v24 = vpack.c.bf16 %v2034_v2, %v2027_v6  ;;  %v2076_v6 = vld [vmem:[#allocation2 + $0x2a38] sm:$0xff]  ;;  %v2071_v2 = vld [vmem:[#allocation2 + $0x2a10] sm:$0xff] }
 0x226   :  { %6999 = vmatpush1.bf16.msra.mxu1 %v6998_v41  ;;  %v2001_v41 = vld [vmem:[#allocation2 + $0x27e0] sm:$0xff] }
 0x227   :  { %7447 = vmatpush1.bf16.msra.mxu0 %v7446_v40  ;;  %7001 = vmatprep.subr.bf16.mxu1 %v7000_v42  ;;  %v7460_v40 = vpack.c.bf16 %v2009_v28, %v2002_v27  ;;  %v2008_v42 = vld [vmem:[#allocation2 + $0x2818] sm:$0xff]  ;;  %v2041_v27 = vld [vmem:[#allocation2 + $0x2920] sm:$0xff] }
 0x228   :  { %7449 = vmatprep.subr.bf16.mxu0 %v7448_v47  ;;  %v2023_v47 = vld [vmem:[#allocation2 + $0x2890] sm:$0xff]  ;;  %v7462_v49 = vpack.c.bf16 %v2008_v42, %v2001_v41  ;;  %v2048_v28 = vld [vmem:[#allocation2 + $0x2958] sm:$0xff]  ;;  %v2058_v41 = vld [vmem:[#allocation2 + $0x29a8] sm:$0xff] }
 0x229   :  { %v7026_v42 = vpack.c.bf16 %v2048_v28, %v2041_v27  ;;  %v2083_v27 = vld [vmem:[#allocation2 + $0x2a70] sm:$0xff]  ;;  %v2090_v28 = vld [vmem:[#allocation2 + $0x2aa8] sm:$0xff] }
 0x22a   :  { %7003 = vmatpush1.bf16.msra.mxu1 %v7002_v57  ;;  %v2015_v57 = vld [vmem:[#allocation2 + $0x2850] sm:$0xff] }
 0x22b   :  { %7451 = vmatpush1.bf16.msra.mxu0 %v7450_v58  ;;  %7005 = vmatprep.subr.bf16.mxu1 %v7004_v59  ;;  %v7464_v58 = vpack.c.bf16 %v2023_v47, %v2016_v46  ;;  %v2022_v59 = vld [vmem:[#allocation2 + $0x2888] sm:$0xff]  ;;  %v7028_v47 = vpack.c.bf16 %v2063_v38, %v2056_v33  ;;  %v2105_v38 = vld [vmem:[#allocation2 + $0x2b20] sm:$0xff] }
 0x22c   :  { %7453 = vmatprep.subr.bf16.mxu0 %v7452_v1  ;;  %v2037_v1 = vld [vmem:[#allocation2 + $0x2900] sm:$0xff]  ;;  %v7466_v4 = vpack.c.bf16 %v2022_v59, %v2015_v57  ;;  %v2070_v57 = vld [vmem:[#allocation2 + $0x2a08] sm:$0xff]  ;;  %v195_v59 = vrot.slane %v9270_v17, %v9186_v23 }
 0x22d   :  { %v2098_v33 = vld [vmem:[#allocation2 + $0x2ae8] sm:$0xff] }
 0x22e   :  { %7007 = vmatpush1.bf16.msra.mxu1 %v7006_v9  ;;  %v2029_v9 = vld [vmem:[#allocation2 + $0x28c0] sm:$0xff]  ;;  %v709_v20 = vadd.f32 %v9256_v25, %v195_v59  ;;  %v2100_v25 = vld [vmem:[#allocation2 + $0x2af8] sm:$0xff] }
 0x22f   :  { %7455 = vmatpush1.bf16.msra.mxu0 %v7454_v12  ;;  %7009 = vmatprep.subr.bf16.mxu1 %v7008_v15  ;;  %v7468_v12 = vpack.c.bf16 %v2037_v1, %v2030_v63  ;;  %v2036_v15 = vld [vmem:[#allocation2 + $0x28f8] sm:$0xff]  ;;  %v636_v1 = vadd.f32 %v9178_v10, %v183_v45  ;;  %v2121_v59 = vld [vmem:[#allocation2 + $0x2ba0] sm:$0xff] }
 0x230   :  { %7457 = vmatprep.subr.bf16.mxu0 %v7456_v22  ;;  %v2051_v22 = vld [vmem:[#allocation2 + $0x2970] sm:$0xff]  ;;  %v7470_v11 = vpack.c.bf16 %v2036_v15, %v2029_v9  ;;  %v7480_v9 = vpack.c.bf16 %v2079_v36, %v2072_v44  ;;  %v2084_v15 = vld [vmem:[#allocation2 + $0x2a78] sm:$0xff] }
 0x232   :  { %7011 = vmatpush1.bf16.msra.mxu1 %v7010_v53  ;;  %v2043_v53 = vld [vmem:[#allocation2 + $0x2930] sm:$0xff] }
 0x233   :  { %7459 = vmatpush1.bf16.msra.mxu0 %v7458_v30  ;;  %7013 = vmatprep.subr.bf16.mxu1 %v7012_v50  ;;  %v7472_v30 = vpack.c.bf16 %v2051_v22, %v2044_v21  ;;  %v2050_v50 = vld [vmem:[#allocation2 + $0x2968] sm:$0xff]  ;;  %v2093_v22 = vld [vmem:[#allocation2 + $0x2ac0] sm:$0xff] }
 0x234   :  { %7461 = vmatprep.subr.bf16.mxu0 %v7460_v40  ;;  %v2065_v40 = vld [vmem:[#allocation2 + $0x29e0] sm:$0xff]  ;;  %v7474_v46 = vpack.c.bf16 %v2050_v50, %v2043_v53  ;;  %v2086_v21 = vld [vmem:[#allocation2 + $0x2a88] sm:$0xff]  ;;  %v2092_v50 = vld [vmem:[#allocation2 + $0x2ab8] sm:$0xff] }
 0x235   :  { %v7476_v52 = vpack.c.bf16 %v2065_v40, %v2058_v41  ;;  %v2085_v53 = vld [vmem:[#allocation2 + $0x2a80] sm:$0xff]  ;;  %v9280_v41 = vmax.f32 %v709_v20, 0.0  ;;  %v2107_v40 = vld [vmem:[#allocation2 + $0x2b30] sm:$0xff] }
 0x236   :  { %7015 = vmatpush1.bf16.msra.mxu1 %v7014_v48  ;;  %v2055_v48 = vld [vmem:[#allocation2 + $0x2990] sm:$0xff]  ;;  %v7486_v45 = vpack.c.bf16 %v2092_v50, %v2085_v53  ;;  %v2149_v50 = vld [vmem:[#allocation2 + $0x2c80] sm:$0xff] }
 0x237   :  { %7463 = vmatpush1.bf16.msra.mxu0 %v7462_v49  ;;  %7017 = vmatprep.subr.bf16.mxu1 %v7016_v51  ;;  %v2062_v49 = vld [vmem:[#allocation2 + $0x29c8] sm:$0xff]  ;;  %v2057_v51 = vld [vmem:[#allocation2 + $0x29a0] sm:$0xff]  ;;  %v2147_v53 = vld [vmem:[#allocation2 + $0x2c70] sm:$0xff] }
 0x238   :  { %7465 = vmatprep.subr.bf16.mxu0 %v7464_v58  ;;  %v2077_v58 = vld [vmem:[#allocation2 + $0x2a40] sm:$0xff]  ;;  %v7030_v63 = vpack.c.bf16 %v2062_v49, %v2055_v48  ;;  %v2104_v48 = vld [vmem:[#allocation2 + $0x2b18] sm:$0xff]  ;;  %v2099_v49 = vld [vmem:[#allocation2 + $0x2af0] sm:$0xff] }
 0x23a   :  { %7019 = vmatpush1.bf16.msra.mxu1 %v7018_v3  ;;  %v7478_v3 = vpack.c.bf16 %v2064_v56, %v2057_v51  ;;  %v7488_v51 = vpack.c.bf16 %v2107_v40, %v2100_v25  ;;  %v2112_v56 = vld [vmem:[#allocation2 + $0x2b58] sm:$0xff]  ;;  %v2139_v40 = vld [vmem:[#allocation2 + $0x2c30] sm:$0xff] }
 0x23b   :  { %7467 = vmatpush1.bf16.msra.mxu0 %v7466_v4  ;;  %7021 = vmatprep.subr.bf16.mxu1 %v7020_v5  ;;  %v7032_v4 = vpack.c.bf16 %v2077_v58, %v2070_v57  ;;  %v2069_v5 = vld [vmem:[#allocation2 + $0x2a00] sm:$0xff]  ;;  %v2119_v57 = vld [vmem:[#allocation2 + $0x2b90] sm:$0xff]  ;;  %v2114_v58 = vld [vmem:[#allocation2 + $0x2b68] sm:$0xff] }
 0x23c   :  { %7469 = vmatprep.subr.bf16.mxu0 %v7468_v12  ;;  %v2078_v12 = vld [vmem:[#allocation2 + $0x2a48] sm:$0xff] }
 0x23d   :  { %v7482_v10 = vpack.c.bf16 %v2078_v12, %v2071_v2  ;;  %v2126_v2 = vld [vmem:[#allocation2 + $0x2bc8] sm:$0xff]  ;;  %v2128_v12 = vld [vmem:[#allocation2 + $0x2bd8] sm:$0xff] }
 0x23e   :  { %7023 = vmatpush1.bf16.msra.mxu1 %v7022_v24  ;;  %v7034_v24 = vpack.c.bf16 %v2076_v6, %v2069_v5  ;;  %v7492_v5 = vpack.c.bf16 %v2121_v59, %v2114_v58  ;;  %v2120_v6 = vld [vmem:[#allocation2 + $0x2b98] sm:$0xff]  ;;  %v2153_v59 = vld [vmem:[#allocation2 + $0x2ca0] sm:$0xff] }
 0x23f   :  { %7471 = vmatpush1.bf16.msra.mxu0 %v7470_v11  ;;  %7025 = vmatprep.subr.bf16.mxu1 %v7024_v26  ;;  %v9278_v11 = vmax.f32 %v636_v1, 0.0  ;;  %v7036_v26 = vpack.c.bf16 %v2091_v16, %v2084_v15  ;;  %v2111_v1 = vld [vmem:[#allocation2 + $0x2b50] sm:$0xff] }
 0x240   :  { %7473 = vmatprep.subr.bf16.mxu0 %v7472_v30  ;;  %v7484_v30 = vpack.c.bf16 %v2093_v22, %v2086_v21  ;;  %v2135_v15 = vld [vmem:[#allocation2 + $0x2c10] sm:$0xff]  ;;  %v2125_v22 = vld [vmem:[#allocation2 + $0x2bc0] sm:$0xff] }
 0x242   :  { %7027 = vmatpush1.bf16.msra.mxu1 %v7026_v42  ;;  %v7038_v42 = vpack.c.bf16 %v2090_v28, %v2083_v27  ;;  %v2134_v27 = vld [vmem:[#allocation2 + $0x2c08] sm:$0xff]  ;;  %v2140_v28 = vld [vmem:[#allocation2 + $0x2c38] sm:$0xff] }
 0x243   :  { %7475 = vmatpush1.bf16.msra.mxu0 %v7474_v46  ;;  %7029 = vmatprep.subr.bf16.mxu1 %v7028_v47  ;;  %v7040_v46 = vpack.c.bf16 %v2105_v38, %v2098_v33  ;;  %v2097_v47 = vld [vmem:[#allocation2 + $0x2ae0] sm:$0xff]  ;;  %v7052_v25 = vpack.c.bf16 %v2147_v53, %v2140_v28 }
 0x244   :  { %7477 = vmatprep.subr.bf16.mxu0 %v7476_v52  ;;  %v2106_v52 = vld [vmem:[#allocation2 + $0x2b28] sm:$0xff]  ;;  %v7042_v44 = vpack.c.bf16 %v2104_v48, %v2097_v47  ;;  %v2148_v47 = vld [vmem:[#allocation2 + $0x2c78] sm:$0xff] }
 0x245   :  { %v7490_v36 = vpack.c.bf16 %v2106_v52, %v2099_v49  ;;  %v2154_v48 = vld [vmem:[#allocation2 + $0x2ca8] sm:$0xff]  ;;  %v2161_v49 = vld [vmem:[#allocation2 + $0x2ce0] sm:$0xff]  ;;  %v2163_v52 = vld [vmem:[#allocation2 + $0x2cf0] sm:$0xff] }
 0x246   :  { %7031 = vmatpush1.bf16.msra.mxu1 %v7030_v63  ;;  %v7044_v63 = vpack.c.bf16 %v2119_v57, %v2112_v56  ;;  %v7056_v58 = vpack.c.bf16 %v2161_v49, %v2154_v48 }
 0x247   :  { %7479 = vmatpush1.bf16.msra.mxu0 %v7478_v3  ;;  %7033 = vmatprep.subr.bf16.mxu1 %v7032_v4  ;;  %v2118_v3 = vld [vmem:[#allocation2 + $0x2b88] sm:$0xff]  ;;  %v2113_v4 = vld [vmem:[#allocation2 + $0x2b60] sm:$0xff] }
 0x248   :  { %7481 = vmatprep.subr.bf16.mxu0 %v7480_v9  ;;  %v2133_v9 = vld [vmem:[#allocation2 + $0x2c00] sm:$0xff]  ;;  %v7046_v16 = vpack.c.bf16 %v2118_v3, %v2111_v1  ;;  %v7494_v20 = vpack.c.bf16 %v2120_v6, %v2113_v4  ;;  %v2162_v1 = vld [vmem:[#allocation2 + $0x2ce8] sm:$0xff]  ;;  %v2168_v3 = vld [vmem:[#allocation2 + $0x2d18] sm:$0xff] }
 0x249   :  { %2750 = vmatmul.mubr.f32.vlgmr.msra.gmra.mrb[6].mxu1 %v9278_v11  ;;  %v7048_v21 = vpack.c.bf16 %v2133_v9, %v2126_v2  ;;  %v2175_v4 = vld [vmem:[#allocation2 + $0x2d50] sm:$0xff]  ;;  %v2177_v6 = vld [vmem:[#allocation2 + $0x2d60] sm:$0xff] }
 0x24a   :  { %3247 = vmatmul.mubr.f32.vlgmr.msra.gmra.mrb[8].mxu0 %v9278_v11  ;;  %7035 = vmatpush1.bf16.msra.mxu1 %v7034_v24  ;;  %v2132_v24 = vld [vmem:[#allocation2 + $0x2bf8] sm:$0xff] }
 0x24b   :  { %7483 = vmatpush1.bf16.msra.mxu0 %v7482_v10  ;;  %7037 = vmatprep.subr.bf16.mxu1 %v7036_v26  ;;  %v2127_v10 = vld [vmem:[#allocation2 + $0x2bd0] sm:$0xff]  ;;  %v7496_v26 = vpack.c.bf16 %v2135_v15, %v2128_v12  ;;  %v7050_v33 = vpack.c.bf16 %v2132_v24, %v2125_v22  ;;  %v7060_v12 = vpack.c.bf16 %v2175_v4, %v2168_v3  ;;  %v2176_v22 = vld [vmem:[#allocation2 + $0x2d58] sm:$0xff]  ;;  %v2182_v24 = vld [vmem:[#allocation2 + $0x2d88] sm:$0xff] }
 0x24c   :  { %7485 = vmatprep.subr.bf16.mxu0 %v7484_v30  ;;  %2820 = vmatprep.mubr.f32.mxu1 %v9280_v41  ;;  %v2142_v30 = vld [vmem:[#allocation2 + $0x2c48] sm:$0xff]  ;;  %v7498_v38 = vpack.c.bf16 %v2134_v27, %v2127_v10  ;;  %v2167_v15 = vld [vmem:[#allocation2 + $0x2d10] sm:$0xff]  ;;  %v2189_v10 = vld [vmem:[#allocation2 + $0x2dc0] sm:$0xff] }
 0x24d   :  { %3317 = vmatprep.mubr.f32.mxu0 %v9280_v41  ;;  %v2191_v27 = vld [vmem:[#allocation2 + $0x2dd0] sm:$0xff] }
 0x24e   :  { %7039 = vmatpush1.bf16.msra.mxu1 %v7038_v42  ;;  %v2146_v42 = vld [vmem:[#allocation2 + $0x2c68] sm:$0xff] }
 0x24f   :  { %7487 = vmatpush1.bf16.msra.mxu0 %v7486_v45  ;;  %7041 = vmatprep.subr.bf16.mxu1 %v7040_v46  ;;  %v2141_v45 = vld [vmem:[#allocation2 + $0x2c40] sm:$0xff]  ;;  %v7500_v46 = vpack.c.bf16 %v2149_v50, %v2142_v30  ;;  %v7054_v56 = vpack.c.bf16 %v2146_v42, %v2139_v40  ;;  %v7064_v30 = vpack.c.bf16 %v2189_v10, %v2182_v24  ;;  %v2190_v40 = vld [vmem:[#allocation2 + $0x2dc8] sm:$0xff]  ;;  %v2196_v42 = vld [vmem:[#allocation2 + $0x2df8] sm:$0xff] }
 0x250   :  { %7489 = vmatprep.subr.bf16.mxu0 %v7488_v51  ;;  %v2156_v51 = vld [vmem:[#allocation2 + $0x2cb8] sm:$0xff]  ;;  %v7502_v57 = vpack.c.bf16 %v2148_v47, %v2141_v45  ;;  %v2181_v50 = vld [vmem:[#allocation2 + $0x2d80] sm:$0xff]  ;;  %v2203_v45 = vld [vmem:[#allocation2 + $0x2e30] sm:$0xff] }
 0x251   :  { %v2205_v47 = vld [vmem:[#allocation2 + $0x2e40] sm:$0xff] }
 0x252   :  { %7043 = vmatpush1.bf16.msra.mxu1 %v7042_v44  ;;  %v2160_v44 = vld [vmem:[#allocation2 + $0x2cd8] sm:$0xff] }
 0x253   :  { %7491 = vmatpush1.bf16.msra.mxu0 %v7490_v36  ;;  %7045 = vmatprep.subr.bf16.mxu1 %v7044_v63  ;;  %v2155_v36 = vld [vmem:[#allocation2 + $0x2cb0] sm:$0xff]  ;;  %v7504_v63 = vpack.c.bf16 %v2163_v52, %v2156_v51  ;;  %v7058_v2 = vpack.c.bf16 %v2160_v44, %v2153_v59  ;;  %v7068_v51 = vpack.c.bf16 %v2203_v45, %v2196_v42  ;;  %v2204_v59 = vld [vmem:[#allocation2 + $0x2e38] sm:$0xff]  ;;  %v2210_v44 = vld [vmem:[#allocation2 + $0x2e68] sm:$0xff] }
 0x254   :  { %7493 = vmatprep.subr.bf16.mxu0 %v7492_v5  ;;  %v2170_v5 = vld [vmem:[#allocation2 + $0x2d28] sm:$0xff]  ;;  %v7506_v9 = vpack.c.bf16 %v2162_v1, %v2155_v36  ;;  %v2195_v52 = vld [vmem:[#allocation2 + $0x2df0] sm:$0xff]  ;;  %v2217_v36 = vld [vmem:[#allocation2 + $0x2ea0] sm:$0xff] }
 0x255   :  { %v2219_v1 = vld [vmem:[#allocation2 + $0x2eb0] sm:$0xff] }
 0x256   :  { %7047 = vmatpush1.bf16.msra.mxu1 %v7046_v16  ;;  %v2174_v16 = vld [vmem:[#allocation2 + $0x2d48] sm:$0xff] }
 0x257   :  { %7495 = vmatpush1.bf16.msra.mxu0 %v7494_v20  ;;  %7049 = vmatprep.subr.bf16.mxu1 %v7048_v21  ;;  %v2169_v20 = vld [vmem:[#allocation2 + $0x2d20] sm:$0xff]  ;;  %v7508_v21 = vpack.c.bf16 %v2177_v6, %v2170_v5  ;;  %v7062_v28 = vpack.c.bf16 %v2174_v16, %v2167_v15  ;;  %v7072_v5 = vpack.c.bf16 %v2217_v36, %v2210_v44  ;;  %v2218_v15 = vld [vmem:[#allocation2 + $0x2ea8] sm:$0xff]  ;;  %v2224_v16 = vld [vmem:[#allocation2 + $0x2ed8] sm:$0xff] }
 0x258   :  { %7497 = vmatprep.subr.bf16.mxu0 %v7496_v26  ;;  %v2184_v26 = vld [vmem:[#allocation2 + $0x2d98] sm:$0xff]  ;;  %v7510_v53 = vpack.c.bf16 %v2176_v22, %v2169_v20  ;;  %v2209_v6 = vld [vmem:[#allocation2 + $0x2e60] sm:$0xff]  ;;  %v2231_v20 = vld [vmem:[#allocation2 + $0x2f10] sm:$0xff] }
 0x259   :  { %v2233_v22 = vld [vmem:[#allocation2 + $0x2f20] sm:$0xff] }
 0x25a   :  { %7051 = vmatpush1.bf16.msra.mxu1 %v7050_v33  ;;  %v2188_v33 = vld [vmem:[#allocation2 + $0x2db8] sm:$0xff] }
 0x25b   :  { %7499 = vmatpush1.bf16.msra.mxu0 %v7498_v38  ;;  %7053 = vmatprep.subr.bf16.mxu1 %v7052_v25  ;;  %v2183_v38 = vld [vmem:[#allocation2 + $0x2d90] sm:$0xff]  ;;  %v7512_v25 = vpack.c.bf16 %v2191_v27, %v2184_v26  ;;  %v7066_v48 = vpack.c.bf16 %v2188_v33, %v2181_v50  ;;  %v7076_v26 = vpack.c.bf16 %v2231_v20, %v2224_v16  ;;  %v2232_v50 = vld [vmem:[#allocation2 + $0x2f18] sm:$0xff]  ;;  %v2238_v33 = vld [vmem:[#allocation2 + $0x2f48] sm:$0xff] }
 0x25c   :  { %7501 = vmatprep.subr.bf16.mxu0 %v7500_v46  ;;  %v2198_v46 = vld [vmem:[#allocation2 + $0x2e08] sm:$0xff]  ;;  %v7514_v49 = vpack.c.bf16 %v2190_v40, %v2183_v38  ;;  %v2223_v27 = vld [vmem:[#allocation2 + $0x2ed0] sm:$0xff]  ;;  %v2245_v38 = vld [vmem:[#allocation2 + $0x2f80] sm:$0xff] }
 0x25d   :  { %v2247_v40 = vld [vmem:[#allocation2 + $0x2f90] sm:$0xff] }
 0x25e   :  { %7055 = vmatpush1.bf16.msra.mxu1 %v7054_v56  ;;  %v2202_v56 = vld [vmem:[#allocation2 + $0x2e28] sm:$0xff] }
 0x25f   :  { %7503 = vmatpush1.bf16.msra.mxu0 %v7502_v57  ;;  %7057 = vmatprep.subr.bf16.mxu1 %v7056_v58  ;;  %v2197_v57 = vld [vmem:[#allocation2 + $0x2e00] sm:$0xff]  ;;  %v7516_v58 = vpack.c.bf16 %v2205_v47, %v2198_v46  ;;  %v7070_v3 = vpack.c.bf16 %v2202_v56, %v2195_v52  ;;  %v7080_v46 = vpack.c.bf16 %v2245_v38, %v2238_v33  ;;  %v2246_v52 = vld [vmem:[#allocation2 + $0x2f88] sm:$0xff]  ;;  %v2252_v56 = vld [vmem:[#allocation2 + $0x2fb8] sm:$0xff] }
 0x260   :  { %7505 = vmatprep.subr.bf16.mxu0 %v7504_v63  ;;  %v2212_v63 = vld [vmem:[#allocation2 + $0x2e78] sm:$0xff]  ;;  %v7518_v4 = vpack.c.bf16 %v2204_v59, %v2197_v57  ;;  %v2237_v47 = vld [vmem:[#allocation2 + $0x2f40] sm:$0xff]  ;;  %v2259_v57 = vld [vmem:[#allocation2 + $0x2ff0] sm:$0xff] }
 0x261   :  { %v2261_v59 = vld [vmem:[#allocation2 + $0x3000] sm:$0xff] }
 0x262   :  { %7059 = vmatpush1.bf16.msra.mxu1 %v7058_v2  ;;  %v2216_v2 = vld [vmem:[#allocation2 + $0x2e98] sm:$0xff]  ;;  %v2289_v33 = vld [vmem:[#allocation2 + $0x30e0] sm:$0xff] }
 0x263   :  { %7507 = vmatpush1.bf16.msra.mxu0 %v7506_v9  ;;  %7061 = vmatprep.subr.bf16.mxu1 %v7060_v12  ;;  %v2211_v9 = vld [vmem:[#allocation2 + $0x2e70] sm:$0xff]  ;;  %v7520_v12 = vpack.c.bf16 %v2219_v1, %v2212_v63  ;;  %v7074_v24 = vpack.c.bf16 %v2216_v2, %v2209_v6  ;;  %v7084_v63 = vpack.c.bf16 %v2259_v57, %v2252_v56  ;;  %v2260_v6 = vld [vmem:[#allocation2 + $0x2ff8] sm:$0xff]  ;;  %v2266_v2 = vld [vmem:[#allocation2 + $0x3028] sm:$0xff] }
 0x264   :  { %7509 = vmatprep.subr.bf16.mxu0 %v7508_v21  ;;  %v2226_v21 = vld [vmem:[#allocation2 + $0x2ee8] sm:$0xff]  ;;  %v7522_v10 = vpack.c.bf16 %v2218_v15, %v2211_v9  ;;  %v2251_v1 = vld [vmem:[#allocation2 + $0x2fb0] sm:$0xff]  ;;  %v2273_v9 = vld [vmem:[#allocation2 + $0x3060] sm:$0xff] }
 0x265   :  { %v2275_v15 = vld [vmem:[#allocation2 + $0x3070] sm:$0xff] }
 0x266   :  { %7063 = vmatpush1.bf16.msra.mxu1 %v7062_v28  ;;  %v2230_v28 = vld [vmem:[#allocation2 + $0x2f08] sm:$0xff]  ;;  %v843_v56 = vld [vmem:[#allocation2 + $0x3b0] sm:$0xff] }
 0x267   :  { %7511 = vmatpush1.bf16.msra.mxu0 %v7510_v53  ;;  %7065 = vmatprep.subr.bf16.mxu1 %v7064_v30  ;;  %v2225_v53 = vld [vmem:[#allocation2 + $0x2ee0] sm:$0xff]  ;;  %v7524_v30 = vpack.c.bf16 %v2233_v22, %v2226_v21  ;;  %v7078_v42 = vpack.c.bf16 %v2230_v28, %v2223_v27  ;;  %v7088_v21 = vpack.c.bf16 %v2273_v9, %v2266_v2  ;;  %v2274_v27 = vld [vmem:[#allocation2 + $0x3068] sm:$0xff]  ;;  %v2280_v28 = vld [vmem:[#allocation2 + $0x3098] sm:$0xff] }
 0x268   :  { %7513 = vmatprep.subr.bf16.mxu0 %v7512_v25  ;;  %v2240_v25 = vld [vmem:[#allocation2 + $0x2f58] sm:$0xff]  ;;  %v7526_v45 = vpack.c.bf16 %v2232_v50, %v2225_v53  ;;  %v2265_v22 = vld [vmem:[#allocation2 + $0x3020] sm:$0xff]  ;;  %v2287_v53 = vld [vmem:[#allocation2 + $0x30d0] sm:$0xff] }
 0x269   :  { %v2282_v50 = vld [vmem:[#allocation2 + $0x30a8] sm:$0xff]  ;;  %v857_v2 = vld [vmem:[#allocation2 + $0x420] sm:$0xff]  ;;  %v864_v9 = vld [vmem:[#allocation2 + $0x458] sm:$0xff] }
 0x26a   :  { %7067 = vmatpush1.bf16.msra.mxu1 %v7066_v48  ;;  %v2244_v48 = vld [vmem:[#allocation2 + $0x2f78] sm:$0xff] }
 0x26b   :  { %7515 = vmatpush1.bf16.msra.mxu0 %v7514_v49  ;;  %7069 = vmatprep.subr.bf16.mxu1 %v7068_v51  ;;  %v2239_v49 = vld [vmem:[#allocation2 + $0x2f50] sm:$0xff]  ;;  %v7528_v51 = vpack.c.bf16 %v2247_v40, %v2240_v25  ;;  %v7082_v44 = vpack.c.bf16 %v2244_v48, %v2237_v47  ;;  %v7092_v40 = vpack.c.bf16 %v2287_v53, %v2280_v28  ;;  %v2288_v48 = vld [vmem:[#allocation2 + $0x30d8] sm:$0xff]  ;;  %v878_v28 = vld [vmem:[#allocation2 + $0x4c8] sm:$0xff] }
 0x26c   :  { %7517 = vmatprep.subr.bf16.mxu0 %v7516_v58  ;;  %v2254_v58 = vld [vmem:[#allocation2 + $0x2fc8] sm:$0xff]  ;;  %v7530_v36 = vpack.c.bf16 %v2246_v52, %v2239_v49  ;;  %v7540_v47 = vpack.c.bf16 %v2289_v33, %v2282_v50  ;;  %v757_v33 = vld [vmem:[#allocation2 + $0x100] sm:$0xff] }
 0x26d   :  { %v730_v49 = vld [vmem:[#allocation2 + $0x28] sm:$0xff] }
 0x26e   :  { %7071 = vmatpush1.bf16.msra.mxu1 %v7070_v3  ;;  %v2258_v3 = vld [vmem:[#allocation2 + $0x2fe8] sm:$0xff] }
 0x26f   :  { %7519 = vmatpush1.bf16.msra.mxu0 %v7518_v4  ;;  %7073 = vmatprep.subr.bf16.mxu1 %v7072_v5  ;;  %v2253_v4 = vld [vmem:[#allocation2 + $0x2fc0] sm:$0xff]  ;;  %v7532_v5 = vpack.c.bf16 %v2261_v59, %v2254_v58  ;;  %v7086_v16 = vpack.c.bf16 %v2258_v3, %v2251_v1  ;;  %v731_v1 = vld [vmem:[#allocation2 + $0x30] sm:$0xff]  ;;  %v738_v3 = vld [vmem:[#allocation2 + $0x68] sm:$0xff] }
 0x270   :  { %7521 = vmatprep.subr.bf16.mxu0 %v7520_v12  ;;  %v2268_v12 = vld [vmem:[#allocation2 + $0x3038] sm:$0xff]  ;;  %v7534_v20 = vpack.c.bf16 %v2260_v6, %v2253_v4  ;;  %v751_v6 = vld [vmem:[#allocation2 + $0xd0] sm:$0xff] }
 0x272   :  { %7075 = vmatpush1.bf16.msra.mxu1 %v7074_v24  ;;  %v2272_v24 = vld [vmem:[#allocation2 + $0x3058] sm:$0xff] }
 0x273   :  { %7523 = vmatpush1.bf16.msra.mxu0 %v7522_v10  ;;  %7077 = vmatprep.subr.bf16.mxu1 %v7076_v26  ;;  %v2267_v10 = vld [vmem:[#allocation2 + $0x3030] sm:$0xff]  ;;  %v7536_v26 = vpack.c.bf16 %v2275_v15, %v2268_v12  ;;  %v7090_v38 = vpack.c.bf16 %v2272_v24, %v2265_v22  ;;  %v7994_v12 = vpack.c.bf16 %v738_v3, %v731_v1  ;;  %v752_v22 = vld [vmem:[#allocation2 + $0xd8] sm:$0xff]  ;;  %v758_v24 = vld [vmem:[#allocation2 + $0x108] sm:$0xff] }
 0x274   :  { %7525 = vmatprep.subr.bf16.mxu0 %v7524_v30  ;;  %v191_v30 = vrot.slane %v9270_v17, %v9203_v19  ;;  %v7538_v25 = vpack.c.bf16 %v2274_v27, %v2267_v10  ;;  %v850_v17 = vld [vmem:[#allocation2 + $0x3e8] sm:$0xff]  ;;  %v743_v15 = vld [vmem:[#allocation2 + $0x90] sm:$0xff]  ;;  %v765_v10 = vld [vmem:[#allocation2 + $0x140] sm:$0xff] }
 0x275   :  { %v871_v27 = vld [vmem:[#allocation2 + $0x490] sm:$0xff]  ;;  %v7552_v50 = vpack.c.bf16 %v765_v10, %v758_v24 }
 0x276   :  { %7079 = vmatpush1.bf16.msra.mxu1 %v7078_v42  ;;  %v2279_v42 = vld [vmem:[#allocation2 + $0x3090] sm:$0xff]  ;;  %v707_v52 = vadd.f32 %v9253_v13, %v191_v30 }
 0x277   :  { %7527 = vmatpush1.bf16.msra.mxu0 %v7526_v45  ;;  %7081 = vmatprep.subr.bf16.mxu1 %v7080_v46  ;;  %v2286_v45 = vld [vmem:[#allocation2 + $0x30c8] sm:$0xff]  ;;  %v2281_v46 = vld [vmem:[#allocation2 + $0x30a0] sm:$0xff] }
 0x278   :  { %7529 = vmatprep.subr.bf16.mxu0 %v7528_v51  ;;  %v737_v51 = vld [vmem:[#allocation2 + $0x60] sm:$0xff]  ;;  %v7094_v57 = vpack.c.bf16 %v2286_v45, %v2279_v42  ;;  %v7542_v58 = vpack.c.bf16 %v2288_v48, %v2281_v46  ;;  %v9289_v4 = vmax.f32 %v707_v52, 0.0  ;;  %v766_v42 = vld [vmem:[#allocation2 + $0x148] sm:$0xff]  ;;  %v772_v45 = vld [vmem:[#allocation2 + $0x178] sm:$0xff] }
 0x279   :  { %v7544_v59 = vpack.c.bf16 %v737_v51, %v730_v49  ;;  %v779_v46 = vld [vmem:[#allocation2 + $0x1b0] sm:$0xff]  ;;  %v892_v48 = vld [vmem:[#allocation2 + $0x538] sm:$0xff] }
 0x27a   :  { %7083 = vmatpush1.bf16.msra.mxu1 %v7082_v44  ;;  %v729_v44 = vld [vmem:[#allocation2 + $0x20] sm:$0xff]  ;;  %v7556_v52 = vpack.c.bf16 %v779_v46, %v772_v45 }
 0x27b   :  { %7531 = vmatpush1.bf16.msra.mxu0 %v7530_v36  ;;  %7085 = vmatprep.subr.bf16.mxu1 %v7084_v63  ;;  %v736_v36 = vld [vmem:[#allocation2 + $0x58] sm:$0xff]  ;;  %v7992_v63 = vpack.c.bf16 %v850_v17, %v843_v56  ;;  %v771_v56 = vld [vmem:[#allocation2 + $0x170] sm:$0xff]  ;;  %v778_v17 = vld [vmem:[#allocation2 + $0x1a8] sm:$0xff] }
 0x27c   :  { %7533 = vmatprep.subr.bf16.mxu0 %v7532_v5  ;;  %v744_v5 = vld [vmem:[#allocation2 + $0x98] sm:$0xff]  ;;  %v7546_v13 = vpack.c.bf16 %v736_v36, %v729_v44  ;;  %v793_v44 = vld [vmem:[#allocation2 + $0x220] sm:$0xff]  ;;  %v899_v36 = vld [vmem:[#allocation2 + $0x570] sm:$0xff]  ;;  %v7558_v1 = vpack.c.bf16 %v778_v17, %v771_v56 }
 0x27d   :  { %v813_v46 = vld [vmem:[#allocation2 + $0x2c0] sm:$0xff]  ;;  %v835_v56 = vld [vmem:[#allocation2 + $0x370] sm:$0xff] }
 0x27e   :  { %7087 = vmatpush1.bf16.msra.mxu1 %v7086_v16  ;;  %v750_v16 = vld [vmem:[#allocation2 + $0xc8] sm:$0xff]  ;;  %v941_v17 = vld [vmem:[#allocation2 + $0x6c0] sm:$0xff] }
 0x27f   :  { %7535 = vmatpush1.bf16.msra.mxu0 %v7534_v20  ;;  %7089 = vmatprep.subr.bf16.mxu1 %v7088_v21  ;;  %v745_v20 = vld [vmem:[#allocation2 + $0xa0] sm:$0xff]  ;;  %v7548_v21 = vpack.c.bf16 %v751_v6, %v744_v5  ;;  %v7550_v53 = vpack.c.bf16 %v750_v16, %v743_v15  ;;  %v800_v15 = vld [vmem:[#allocation2 + $0x258] sm:$0xff]  ;;  %v807_v16 = vld [vmem:[#allocation2 + $0x290] sm:$0xff] }
 0x280   :  { %7537 = vmatprep.subr.bf16.mxu0 %v7536_v26  ;;  %v7996_v26 = vpack.c.bf16 %v864_v9, %v857_v2  ;;  %v7998_v30 = vpack.c.bf16 %v752_v22, %v745_v20  ;;  %v785_v6 = vld [vmem:[#allocation2 + $0x1e0] sm:$0xff]  ;;  %v787_v2 = vld [vmem:[#allocation2 + $0x1f0] sm:$0xff]  ;;  %v7564_v10 = vpack.c.bf16 %v807_v16, %v800_v15 }
 0x281   :  { %v913_v20 = vld [vmem:[#allocation2 + $0x5e0] sm:$0xff] }
 0x282   :  { %7091 = vmatpush1.bf16.msra.mxu1 %v7090_v38  ;;  %v764_v38 = vld [vmem:[#allocation2 + $0x138] sm:$0xff]  ;;  %v841_v16 = vld [vmem:[#allocation2 + $0x3a0] sm:$0xff] }
 0x283   :  { %7539 = vmatpush1.bf16.msra.mxu0 %v7538_v25  ;;  %7093 = vmatprep.subr.bf16.mxu1 %v7092_v40  ;;  %v759_v25 = vld [vmem:[#allocation2 + $0x110] sm:$0xff]  ;;  %v8000_v40 = vpack.c.bf16 %v878_v28, %v871_v27  ;;  %v7554_v49 = vpack.c.bf16 %v764_v38, %v757_v33  ;;  %v806_v27 = vld [vmem:[#allocation2 + $0x288] sm:$0xff]  ;;  %v801_v28 = vld [vmem:[#allocation2 + $0x260] sm:$0xff] }
 0x284   :  { %7541 = vmatprep.subr.bf16.mxu0 %v7540_v47  ;;  %v885_v47 = vld [vmem:[#allocation2 + $0x500] sm:$0xff]  ;;  %v8002_v51 = vpack.c.bf16 %v766_v42, %v759_v25  ;;  %v927_v38 = vld [vmem:[#allocation2 + $0x650] sm:$0xff]  ;;  %v934_v25 = vld [vmem:[#allocation2 + $0x688] sm:$0xff] }
 0x285   :  { %v821_v33 = vld [vmem:[#allocation2 + $0x300] sm:$0xff] }
 0x286   :  { %7095 = vmatpush1.bf16.msra.mxu1 %v7094_v57  ;;  %v773_v57 = vld [vmem:[#allocation2 + $0x180] sm:$0xff] }
 0x287   :  { %7543 = vmatpush1.bf16.msra.mxu0 %v7542_v58  ;;  %7545 = vmatprep.subr.bf16.mxu1 %v7544_v59  ;;  %v8004_v58 = vpack.c.bf16 %v892_v48, %v885_v47  ;;  %v786_v59 = vld [vmem:[#allocation2 + $0x1e8] sm:$0xff]  ;;  %v820_v47 = vld [vmem:[#allocation2 + $0x2f8] sm:$0xff]  ;;  %v815_v48 = vld [vmem:[#allocation2 + $0x2d0] sm:$0xff] }
 0x288   :  { %7993 = vmatprep.subr.bf16.mxu0 %v7992_v63  ;;  %v906_v63 = vld [vmem:[#allocation2 + $0x5a8] sm:$0xff]  ;;  %v7560_v5 = vpack.c.bf16 %v793_v44, %v786_v59  ;;  %v827_v44 = vld [vmem:[#allocation2 + $0x330] sm:$0xff] }
 0x289   :  { %2821 = vmatmul.mubr.f32.vlgmr.msra.gmra.mrb[6].mxu1 %v9289_v4  ;;  %v8008_v9 = vpack.c.bf16 %v906_v63, %v899_v36  ;;  %v834_v36 = vld [vmem:[#allocation2 + $0x368] sm:$0xff]  ;;  %v829_v63 = vld [vmem:[#allocation2 + $0x340] sm:$0xff] }
 0x28a   :  { %3318 = vmatmul.mubr.f32.vlgmr.msra.gmra.mrb[8].mxu0 %v9289_v4  ;;  %7547 = vmatpush1.bf16.msra.mxu1 %v7546_v13  ;;  %v792_v13 = vld [vmem:[#allocation2 + $0x218] sm:$0xff] }
 0x28b   :  { %3388 = vmatprep.mubr.f32.mxu1 %v9158_v55  ;;  %7995 = vmatpush3.bf16.msra.mxu0 %v7994_v12  ;;  %v794_v12 = vld [vmem:[#allocation2 + $0x228] sm:$0xff]  ;;  %v7562_v22 = vpack.c.bf16 %v792_v13, %v785_v6  ;;  %v849_v6 = vld [vmem:[#allocation2 + $0x3e0] sm:$0xff]  ;;  %v1067_v13 = vld [vmem:[#allocation2 + $0xab0] sm:$0xff] }
 0x28c   :  { %3885 = vmatprep.mubr.f32.mxu0 %v9158_v55  ;;  %7549 = vmatprep.subr.bf16.mxu1 %v7548_v21  ;;  %v780_v55 = vld [vmem:[#allocation2 + $0x1b8] sm:$0xff]  ;;  %v8010_v24 = vpack.c.bf16 %v794_v12, %v787_v2  ;;  %v1074_v2 = vld [vmem:[#allocation2 + $0xae8] sm:$0xff] }
 0x28d   :  { %7997 = vmatprep.subr.bf16.mxu0 %v7996_v26  ;;  %v8006_v3 = vpack.c.bf16 %v780_v55, %v773_v57  ;;  %v920_v21 = vld [vmem:[#allocation2 + $0x618] sm:$0xff]  ;;  %v799_v26 = vld [vmem:[#allocation2 + $0x250] sm:$0xff] }
 0x28e   :  { %7551 = vmatpush1.bf16.msra.mxu1 %v7550_v53  ;;  %v8012_v53 = vpack.c.bf16 %v920_v21, %v913_v20  ;;  %v948_v57 = vld [vmem:[#allocation2 + $0x6f8] sm:$0xff]  ;;  %v8024_v21 = vpack.c.bf16 %v1074_v2, %v1067_v13  ;;  %v890_v13 = vld [vmem:[#allocation2 + $0x528] sm:$0xff]  ;;  %v997_v2 = vld [vmem:[#allocation2 + $0x880] sm:$0xff] }
 0x28f   :  { %7999 = vmatpush3.bf16.msra.mxu0 %v7998_v30  ;;  %7553 = vmatprep.subr.bf16.mxu1 %v7552_v50  ;;  %v808_v30 = vld [vmem:[#allocation2 + $0x298] sm:$0xff]  ;;  %v814_v50 = vld [vmem:[#allocation2 + $0x2c8] sm:$0xff] }
 0x290   :  { %8001 = vmatprep.subr.bf16.mxu0 %v8000_v40  ;;  %v7566_v40 = vpack.c.bf16 %v806_v27, %v799_v26  ;;  %v8014_v42 = vpack.c.bf16 %v808_v30, %v801_v28  ;;  %v7568_v45 = vpack.c.bf16 %v821_v33, %v814_v50  ;;  %v848_v20 = vld [vmem:[#allocation2 + $0x3d8] sm:$0xff]  ;;  %v863_v26 = vld [vmem:[#allocation2 + $0x450] sm:$0xff]  ;;  %v1081_v27 = vld [vmem:[#allocation2 + $0xb20] sm:$0xff] }
 0x291   :  { %v1088_v28 = vld [vmem:[#allocation2 + $0xb58] sm:$0xff]  ;;  %v855_v50 = vld [vmem:[#allocation2 + $0x410] sm:$0xff]  ;;  %v862_v33 = vld [vmem:[#allocation2 + $0x448] sm:$0xff] }
 0x292   :  { %7555 = vmatpush1.bf16.msra.mxu1 %v7554_v49  ;;  %v8016_v49 = vpack.c.bf16 %v934_v25, %v927_v38  ;;  %v969_v38 = vld [vmem:[#allocation2 + $0x7a0] sm:$0xff] }
 0x293   :  { %8003 = vmatpush3.bf16.msra.mxu0 %v8002_v51  ;;  %7557 = vmatprep.subr.bf16.mxu1 %v7556_v52  ;;  %v822_v51 = vld [vmem:[#allocation2 + $0x308] sm:$0xff]  ;;  %v828_v52 = vld [vmem:[#allocation2 + $0x338] sm:$0xff] }
 0x294   :  { %8005 = vmatprep.subr.bf16.mxu0 %v8004_v58  ;;  %v7570_v58 = vpack.c.bf16 %v820_v47, %v813_v46  ;;  %v8018_v55 = vpack.c.bf16 %v822_v51, %v815_v48  ;;  %v7572_v59 = vpack.c.bf16 %v835_v56, %v828_v52  ;;  %v877_v46 = vld [vmem:[#allocation2 + $0x4c0] sm:$0xff]  ;;  %v1095_v47 = vld [vmem:[#allocation2 + $0xb90] sm:$0xff]  ;;  %v1102_v48 = vld [vmem:[#allocation2 + $0xbc8] sm:$0xff] }
 0x295   :  { %v869_v56 = vld [vmem:[#allocation2 + $0x480] sm:$0xff] }
 0x296   :  { %7559 = vmatpush1.bf16.msra.mxu1 %v7558_v1  ;;  %v8020_v1 = vpack.c.bf16 %v948_v57, %v941_v17  ;;  %v876_v17 = vld [vmem:[#allocation2 + $0x4b8] sm:$0xff]  ;;  %v983_v57 = vld [vmem:[#allocation2 + $0x810] sm:$0xff] }
 0x297   :  { %8007 = vmatpush3.bf16.msra.mxu0 %v8006_v3  ;;  %7561 = vmatprep.subr.bf16.mxu1 %v7560_v5  ;;  %v836_v3 = vld [vmem:[#allocation2 + $0x378] sm:$0xff]  ;;  %v842_v5 = vld [vmem:[#allocation2 + $0x3a8] sm:$0xff] }
 0x298   :  { %8009 = vmatprep.subr.bf16.mxu0 %v8008_v9  ;;  %v7574_v9 = vpack.c.bf16 %v834_v36, %v827_v44  ;;  %v8022_v12 = vpack.c.bf16 %v836_v3, %v829_v63  ;;  %v7576_v15 = vpack.c.bf16 %v849_v6, %v842_v5  ;;  %v891_v44 = vld [vmem:[#allocation2 + $0x530] sm:$0xff]  ;;  %v1109_v36 = vld [vmem:[#allocation2 + $0xc00] sm:$0xff]  ;;  %v1116_v63 = vld [vmem:[#allocation2 + $0xc38] sm:$0xff] }
 0x299   :  { %v883_v6 = vld [vmem:[#allocation2 + $0x4f0] sm:$0xff] }
 0x29a   :  { %7563 = vmatpush1.bf16.msra.mxu1 %v7562_v22  ;;  %v955_v22 = vld [vmem:[#allocation2 + $0x730] sm:$0xff] }
 0x29b   :  { %8011 = vmatpush3.bf16.msra.mxu0 %v8010_v24  ;;  %7565 = vmatprep.subr.bf16.mxu1 %v7564_v10  ;;  %v962_v24 = vld [vmem:[#allocation2 + $0x768] sm:$0xff]  ;;  %v856_v10 = vld [vmem:[#allocation2 + $0x418] sm:$0xff] }
 0x29c   :  { %8013 = vmatprep.subr.bf16.mxu0 %v8012_v53  ;;  %v7578_v53 = vpack.c.bf16 %v848_v20, %v841_v16  ;;  %v8026_v30 = vpack.c.bf16 %v962_v24, %v955_v22  ;;  %v7580_v25 = vpack.c.bf16 %v863_v26, %v856_v10  ;;  %v905_v16 = vld [vmem:[#allocation2 + $0x5a0] sm:$0xff]  ;;  %v1123_v20 = vld [vmem:[#allocation2 + $0xc70] sm:$0xff]  ;;  %v7590_v22 = vpack.c.bf16 %v890_v13, %v883_v6 }
 0x29d   :  { %v897_v26 = vld [vmem:[#allocation2 + $0x560] sm:$0xff]  ;;  %v947_v6 = vld [vmem:[#allocation2 + $0x6f0] sm:$0xff] }
 0x29e   :  { %7567 = vmatpush1.bf16.msra.mxu1 %v7566_v40  ;;  %v8028_v40 = vpack.c.bf16 %v1088_v28, %v1081_v27  ;;  %v904_v27 = vld [vmem:[#allocation2 + $0x598] sm:$0xff]  ;;  %v1011_v28 = vld [vmem:[#allocation2 + $0x8f0] sm:$0xff]  ;;  %v1165_v13 = vld [vmem:[#allocation2 + $0xdc0] sm:$0xff] }
 0x29f   :  { %8015 = vmatpush3.bf16.msra.mxu0 %v8014_v42  ;;  %7569 = vmatprep.subr.bf16.mxu1 %v7568_v45  ;;  %v976_v42 = vld [vmem:[#allocation2 + $0x7d8] sm:$0xff]  ;;  %v870_v45 = vld [vmem:[#allocation2 + $0x488] sm:$0xff] }
 0x2a0   :  { %8017 = vmatprep.subr.bf16.mxu0 %v8016_v49  ;;  %v7582_v49 = vpack.c.bf16 %v862_v33, %v855_v50  ;;  %v8030_v51 = vpack.c.bf16 %v976_v42, %v969_v38  ;;  %v7584_v52 = vpack.c.bf16 %v877_v46, %v870_v45  ;;  %v912_v50 = vld [vmem:[#allocation2 + $0x5d8] sm:$0xff]  ;;  %v919_v33 = vld [vmem:[#allocation2 + $0x610] sm:$0xff]  ;;  %v1137_v38 = vld [vmem:[#allocation2 + $0xce0] sm:$0xff] }
 0x2a1   :  { %v7596_v45 = vpack.c.bf16 %v919_v33, %v912_v50  ;;  %v911_v46 = vld [vmem:[#allocation2 + $0x5d0] sm:$0xff]  ;;  %v953_v33 = vld [vmem:[#allocation2 + $0x720] sm:$0xff] }
 0x2a2   :  { %7571 = vmatpush1.bf16.msra.mxu1 %v7570_v58  ;;  %v8032_v58 = vpack.c.bf16 %v1102_v48, %v1095_v47  ;;  %v918_v47 = vld [vmem:[#allocation2 + $0x608] sm:$0xff]  ;;  %v1025_v48 = vld [vmem:[#allocation2 + $0x960] sm:$0xff] }
 0x2a3   :  { %8019 = vmatpush3.bf16.msra.mxu0 %v8018_v55  ;;  %7573 = vmatprep.subr.bf16.mxu1 %v7572_v59  ;;  %v990_v55 = vld [vmem:[#allocation2 + $0x848] sm:$0xff]  ;;  %v884_v59 = vld [vmem:[#allocation2 + $0x4f8] sm:$0xff] }
 0x2a4   :  { %8021 = vmatprep.subr.bf16.mxu0 %v8020_v1  ;;  %v7586_v1 = vpack.c.bf16 %v876_v17, %v869_v56  ;;  %v8034_v3 = vpack.c.bf16 %v990_v55, %v983_v57  ;;  %v7588_v5 = vpack.c.bf16 %v891_v44, %v884_v59  ;;  %v933_v56 = vld [vmem:[#allocation2 + $0x680] sm:$0xff]  ;;  %v1151_v17 = vld [vmem:[#allocation2 + $0xd50] sm:$0xff]  ;;  %v1158_v57 = vld [vmem:[#allocation2 + $0xd88] sm:$0xff] }
 0x2a5   :  { %v925_v44 = vld [vmem:[#allocation2 + $0x640] sm:$0xff] }
 0x2a6   :  { %7575 = vmatpush1.bf16.msra.mxu1 %v7574_v9  ;;  %v8036_v9 = vpack.c.bf16 %v1116_v63, %v1109_v36  ;;  %v932_v36 = vld [vmem:[#allocation2 + $0x678] sm:$0xff]  ;;  %v1039_v63 = vld [vmem:[#allocation2 + $0x9d0] sm:$0xff] }
 0x2a7   :  { %8023 = vmatpush3.bf16.msra.mxu0 %v8022_v12  ;;  %7577 = vmatprep.subr.bf16.mxu1 %v7576_v15  ;;  %v1004_v12 = vld [vmem:[#allocation2 + $0x8b8] sm:$0xff]  ;;  %v898_v15 = vld [vmem:[#allocation2 + $0x568] sm:$0xff] }
 0x2a8   :  { %8025 = vmatprep.subr.bf16.mxu0 %v8024_v21  ;;  %v1130_v21 = vld [vmem:[#allocation2 + $0xca8] sm:$0xff]  ;;  %v8038_v24 = vpack.c.bf16 %v1004_v12, %v997_v2  ;;  %v7592_v10 = vpack.c.bf16 %v905_v16, %v898_v15  ;;  %v1172_v2 = vld [vmem:[#allocation2 + $0xdf8] sm:$0xff]  ;;  %v939_v16 = vld [vmem:[#allocation2 + $0x6b0] sm:$0xff] }
 0x2aa   :  { %3886 = vmatmul.mubr.f32.vlgmr.msra.gmra.mrb[10].mxu0 %v9160_v61  ;;  %7579 = vmatpush1.bf16.msra.mxu1 %v7578_v53  ;;  %v8040_v53 = vpack.c.bf16 %v1130_v21, %v1123_v20  ;;  %v946_v20 = vld [vmem:[#allocation2 + $0x6e8] sm:$0xff]  ;;  %v1053_v21 = vld [vmem:[#allocation2 + $0xa40] sm:$0xff] }
 0x2ab   :  { %8027 = vmatpush3.bf16.msra.mxu0 %v8026_v30  ;;  %3955 = vmatprep.mubr.f32.mxu0 %v9166_v7  ;;  %v1018_v30 = vld [vmem:[#allocation2 + $0x928] sm:$0xff] }
 0x2ac   :  { %7581 = vmatprep.subr.bf16.mxu1 %v7580_v25  ;;  %8029 = vmatprep.subr.bf16.mxu0 %v8028_v40  ;;  %v1144_v25 = vld [vmem:[#allocation2 + $0xd18] sm:$0xff]  ;;  %v7594_v40 = vpack.c.bf16 %v904_v27, %v897_v26  ;;  %v8042_v42 = vpack.c.bf16 %v1018_v30, %v1011_v28  ;;  %v961_v26 = vld [vmem:[#allocation2 + $0x760] sm:$0xff]  ;;  %v1291_v27 = vld [vmem:[#allocation2 + $0x11b0] sm:$0xff] }
 0x2ad   :  { %v1298_v28 = vld [vmem:[#allocation2 + $0x11e8] sm:$0xff] }
 0x2ae   :  { %7583 = vmatpush1.bf16.msra.mxu1 %v7582_v49  ;;  %v8044_v49 = vpack.c.bf16 %v1144_v25, %v1137_v38  ;;  %v960_v38 = vld [vmem:[#allocation2 + $0x758] sm:$0xff]  ;;  %v8056_v25 = vpack.c.bf16 %v1298_v28, %v1291_v27 }
 0x2af   :  { %8031 = vmatpush3.bf16.msra.mxu0 %v8030_v51  ;;  %7585 = vmatprep.subr.bf16.mxu1 %v7584_v52  ;;  %v1032_v51 = vld [vmem:[#allocation2 + $0x998] sm:$0xff]  ;;  %v926_v52 = vld [vmem:[#allocation2 + $0x648] sm:$0xff] }
 0x2b0   :  { %8033 = vmatprep.subr.bf16.mxu0 %v8032_v58  ;;  %v7598_v58 = vpack.c.bf16 %v918_v47, %v911_v46  ;;  %v8046_v55 = vpack.c.bf16 %v1032_v51, %v1025_v48  ;;  %v7600_v59 = vpack.c.bf16 %v933_v56, %v926_v52  ;;  %v975_v46 = vld [vmem:[#allocation2 + $0x7d0] sm:$0xff]  ;;  %v7610_v47 = vpack.c.bf16 %v960_v38, %v953_v33  ;;  %v1305_v48 = vld [vmem:[#allocation2 + $0x1220] sm:$0xff]  ;;  %v974_v56 = vld [vmem:[#allocation2 + $0x7c8] sm:$0xff] }
 0x2b1   :  { %v967_v52 = vld [vmem:[#allocation2 + $0x790] sm:$0xff]  ;;  %v1228_v28 = vld [vmem:[#allocation2 + $0xfb8] sm:$0xff]  ;;  %v1354_v33 = vld [vmem:[#allocation2 + $0x13a8] sm:$0xff] }
 0x2b2   :  { %7587 = vmatpush1.bf16.msra.mxu1 %v7586_v1  ;;  %v8048_v1 = vpack.c.bf16 %v1158_v57, %v1151_v17  ;;  %v1193_v17 = vld [vmem:[#allocation2 + $0xea0] sm:$0xff] }
 0x2b3   :  { %8035 = vmatpush3.bf16.msra.mxu0 %v8034_v3  ;;  %7589 = vmatprep.subr.bf16.mxu1 %v7588_v5  ;;  %v1046_v3 = vld [vmem:[#allocation2 + $0xa08] sm:$0xff]  ;;  %v940_v5 = vld [vmem:[#allocation2 + $0x6b8] sm:$0xff] }
 0x2b4   :  { %8037 = vmatprep.subr.bf16.mxu0 %v8036_v9  ;;  %v7602_v9 = vpack.c.bf16 %v932_v36, %v925_v44  ;;  %v8050_v12 = vpack.c.bf16 %v1046_v3, %v1039_v63  ;;  %v7604_v15 = vpack.c.bf16 %v947_v6, %v940_v5  ;;  %v1319_v36 = vld [vmem:[#allocation2 + $0x1290] sm:$0xff]  ;;  %v1326_v63 = vld [vmem:[#allocation2 + $0x12c8] sm:$0xff]  ;;  %v981_v6 = vld [vmem:[#allocation2 + $0x800] sm:$0xff] }
 0x2b6   :  { %7591 = vmatpush1.bf16.msra.mxu1 %v7590_v22  ;;  %v8052_v22 = vpack.c.bf16 %v1172_v2, %v1165_v13  ;;  %v988_v13 = vld [vmem:[#allocation2 + $0x838] sm:$0xff]  ;;  %v1207_v2 = vld [vmem:[#allocation2 + $0xf10] sm:$0xff] }
 0x2b7   :  { %8039 = vmatpush3.bf16.msra.mxu0 %v8038_v24  ;;  %7593 = vmatprep.subr.bf16.mxu1 %v7592_v10  ;;  %v1060_v24 = vld [vmem:[#allocation2 + $0xa78] sm:$0xff]  ;;  %v954_v10 = vld [vmem:[#allocation2 + $0x728] sm:$0xff] }
 0x2b8   :  { %8041 = vmatprep.subr.bf16.mxu0 %v8040_v53  ;;  %v7606_v53 = vpack.c.bf16 %v946_v20, %v939_v16  ;;  %v8054_v30 = vpack.c.bf16 %v1060_v24, %v1053_v21  ;;  %v7608_v50 = vpack.c.bf16 %v961_v26, %v954_v10  ;;  %v1333_v16 = vld [vmem:[#allocation2 + $0x1300] sm:$0xff]  ;;  %v1340_v20 = vld [vmem:[#allocation2 + $0x1338] sm:$0xff]  ;;  %v7618_v21 = vpack.c.bf16 %v988_v13, %v981_v6  ;;  %v995_v24 = vld [vmem:[#allocation2 + $0x870] sm:$0xff] }
 0x2b9   :  { %v1002_v10 = vld [vmem:[#allocation2 + $0x8a8] sm:$0xff]  ;;  %v1221_v26 = vld [vmem:[#allocation2 + $0xf80] sm:$0xff]  ;;  %v8068_v27 = vpack.c.bf16 %v1340_v20, %v1333_v16 }
 0x2ba   :  { %7595 = vmatpush1.bf16.msra.mxu1 %v7594_v40  ;;  %v1179_v40 = vld [vmem:[#allocation2 + $0xe30] sm:$0xff]  ;;  %v7622_v38 = vpack.c.bf16 %v1002_v10, %v995_v24  ;;  %v1382_v6 = vld [vmem:[#allocation2 + $0x1488] sm:$0xff]  ;;  %v1396_v24 = vld [vmem:[#allocation2 + $0x14f8] sm:$0xff] }
 0x2bb   :  { %8043 = vmatpush3.bf16.msra.mxu0 %v8042_v42  ;;  %7597 = vmatprep.subr.bf16.mxu1 %v7596_v45  ;;  %v1186_v42 = vld [vmem:[#allocation2 + $0xe68] sm:$0xff]  ;;  %v968_v45 = vld [vmem:[#allocation2 + $0x798] sm:$0xff] }
 0x2bc   :  { %8045 = vmatprep.subr.bf16.mxu0 %v8044_v49  ;;  %v1312_v49 = vld [vmem:[#allocation2 + $0x1258] sm:$0xff]  ;;  %v8058_v51 = vpack.c.bf16 %v1186_v42, %v1179_v40  ;;  %v7612_v57 = vpack.c.bf16 %v975_v46, %v968_v45  ;;  %v1009_v42 = vld [vmem:[#allocation2 + $0x8e0] sm:$0xff]  ;;  %v1235_v46 = vld [vmem:[#allocation2 + $0xff0] sm:$0xff] }
 0x2bd   :  { %v8060_v44 = vpack.c.bf16 %v1312_v49, %v1305_v48  ;;  %v1016_v45 = vld [vmem:[#allocation2 + $0x918] sm:$0xff]  ;;  %v1242_v48 = vld [vmem:[#allocation2 + $0x1028] sm:$0xff] }
 0x2be   :  { %7599 = vmatpush1.bf16.msra.mxu1 %v7598_v58  ;;  %v1200_v58 = vld [vmem:[#allocation2 + $0xed8] sm:$0xff]  ;;  %v1270_v20 = vld [vmem:[#allocation2 + $0x1108] sm:$0xff] }
 0x2bf   :  { %8047 = vmatpush3.bf16.msra.mxu0 %v8046_v55  ;;  %7601 = vmatprep.subr.bf16.mxu1 %v7600_v59  ;;  %v982_v55 = vld [vmem:[#allocation2 + $0x808] sm:$0xff]  ;;  %v989_v59 = vld [vmem:[#allocation2 + $0x840] sm:$0xff]  ;;  %v8062_v3 = vpack.c.bf16 %v1200_v58, %v1193_v17  ;;  %v1024_v49 = vld [vmem:[#allocation2 + $0x958] sm:$0xff]  ;;  %v7626_v17 = vpack.c.bf16 %v1016_v45, %v1009_v42 }
 0x2c0   :  { %8049 = vmatprep.subr.bf16.mxu0 %v8048_v1  ;;  %v7614_v1 = vpack.c.bf16 %v974_v56, %v967_v52  ;;  %v7616_v5 = vpack.c.bf16 %v989_v59, %v982_v55  ;;  %v1361_v52 = vld [vmem:[#allocation2 + $0x13e0] sm:$0xff]  ;;  %v1368_v56 = vld [vmem:[#allocation2 + $0x1418] sm:$0xff]  ;;  %v1023_v55 = vld [vmem:[#allocation2 + $0x950] sm:$0xff] }
 0x2c1   :  { %v1030_v59 = vld [vmem:[#allocation2 + $0x988] sm:$0xff] }
 0x2c2   :  { %7603 = vmatpush1.bf16.msra.mxu1 %v7602_v9  ;;  %v8064_v9 = vpack.c.bf16 %v1326_v63, %v1319_v36  ;;  %v8076_v36 = vpack.c.bf16 %v1368_v56, %v1361_v52  ;;  %v1256_v63 = vld [vmem:[#allocation2 + $0x1098] sm:$0xff]  ;;  %v7630_v13 = vpack.c.bf16 %v1030_v59, %v1023_v55  ;;  %v1522_v42 = vld [vmem:[#allocation2 + $0x18e8] sm:$0xff]  ;;  %v1403_v52 = vld [vmem:[#allocation2 + $0x1530] sm:$0xff] }
 0x2c3   :  { %8051 = vmatpush3.bf16.msra.mxu0 %v8050_v12  ;;  %7605 = vmatprep.subr.bf16.mxu1 %v7604_v15  ;;  %v996_v12 = vld [vmem:[#allocation2 + $0x878] sm:$0xff]  ;;  %v1003_v15 = vld [vmem:[#allocation2 + $0x8b0] sm:$0xff]  ;;  %v1410_v56 = vld [vmem:[#allocation2 + $0x1568] sm:$0xff] }
 0x2c4   :  { %8053 = vmatprep.subr.bf16.mxu0 %v8052_v22  ;;  %v7620_v22 = vpack.c.bf16 %v1003_v15, %v996_v12  ;;  %v1044_v12 = vld [vmem:[#allocation2 + $0x9f8] sm:$0xff]  ;;  %v1263_v15 = vld [vmem:[#allocation2 + $0x10d0] sm:$0xff] }
 0x2c5   :  { %v1536_v55 = vld [vmem:[#allocation2 + $0x1958] sm:$0xff] }
 0x2c6   :  { %7607 = vmatpush1.bf16.msra.mxu1 %v7606_v53  ;;  %v1010_v53 = vld [vmem:[#allocation2 + $0x8e8] sm:$0xff] }
 0x2c7   :  { %8055 = vmatpush3.bf16.msra.mxu0 %v8054_v30  ;;  %7609 = vmatprep.subr.bf16.mxu1 %v7608_v50  ;;  %v1017_v30 = vld [vmem:[#allocation2 + $0x920] sm:$0xff]  ;;  %v1347_v50 = vld [vmem:[#allocation2 + $0x1370] sm:$0xff] }
 0x2c8   :  { %8057 = vmatprep.subr.bf16.mxu0 %v8056_v25  ;;  %v8070_v25 = vpack.c.bf16 %v1228_v28, %v1221_v26  ;;  %v7624_v40 = vpack.c.bf16 %v1017_v30, %v1010_v53  ;;  %v8082_v26 = vpack.c.bf16 %v1270_v20, %v1263_v15  ;;  %v1051_v28 = vld [vmem:[#allocation2 + $0xa30] sm:$0xff]  ;;  %v1058_v53 = vld [vmem:[#allocation2 + $0xa68] sm:$0xff]  ;;  %v1277_v30 = vld [vmem:[#allocation2 + $0x1140] sm:$0xff] }
 0x2c9   :  { %3389 = vmatmul.mubr.f32.vlgmr.msra.gmra.mrb[8].mxu1 %v9160_v61  ;;  %v1214_v61 = vld [vmem:[#allocation2 + $0xf48] sm:$0xff]  ;;  %v7638_v45 = vpack.c.bf16 %v1058_v53, %v1051_v28  ;;  %v1093_v20 = vld [vmem:[#allocation2 + $0xb80] sm:$0xff]  ;;  %v1564_v28 = vld [vmem:[#allocation2 + $0x1a38] sm:$0xff] }
 0x2ca   :  { %3956 = vmatmul.mubr.f32.vlgmr.msra.gmra.mrb[12].mxu0 %v9194_v62  ;;  %7611 = vmatpush1.bf16.msra.mxu1 %v7610_v47  ;;  %v8072_v47 = vpack.c.bf16 %v1354_v33, %v1347_v50  ;;  %v1284_v33 = vld [vmem:[#allocation2 + $0x1178] sm:$0xff] }
 0x2cb   :  { %3459 = vmatprep.mubr.f32.mxu1 %v9166_v7  ;;  %8059 = vmatpush3.bf16.msra.mxu0 %v8058_v51  ;;  %v8066_v7 = vpack.c.bf16 %v1214_v61, %v1207_v2  ;;  %v1031_v51 = vld [vmem:[#allocation2 + $0x990] sm:$0xff]  ;;  %v1037_v61 = vld [vmem:[#allocation2 + $0x9c0] sm:$0xff] }
 0x2cc   :  { %4025 = vmatprep.mubr.f32.mxu0 %v9196_v14  ;;  %7613 = vmatprep.subr.bf16.mxu1 %v7612_v57  ;;  %v8074_v57 = vpack.c.bf16 %v1242_v48, %v1235_v46  ;;  %v7628_v58 = vpack.c.bf16 %v1031_v51, %v1024_v49  ;;  %v7634_v10 = vpack.c.bf16 %v1044_v12, %v1037_v61  ;;  %v1065_v48 = vld [vmem:[#allocation2 + $0xaa0] sm:$0xff]  ;;  %v1072_v49 = vld [vmem:[#allocation2 + $0xad8] sm:$0xff]  ;;  %v1550_v61 = vld [vmem:[#allocation2 + $0x19c8] sm:$0xff] }
 0x2cd   :  { %8061 = vmatprep.subr.bf16.mxu0 %v8060_v44  ;;  %v1249_v44 = vld [vmem:[#allocation2 + $0x1060] sm:$0xff]  ;;  %v8086_v46 = vpack.c.bf16 %v1284_v33, %v1277_v30  ;;  %v7642_v59 = vpack.c.bf16 %v1072_v49, %v1065_v48  ;;  %v1107_v33 = vld [vmem:[#allocation2 + $0xbf0] sm:$0xff]  ;;  %v1578_v48 = vld [vmem:[#allocation2 + $0x1aa8] sm:$0xff] }
 0x2ce   :  { %7615 = vmatpush1.bf16.msra.mxu1 %v7614_v1  ;;  %v1038_v1 = vld [vmem:[#allocation2 + $0x9c8] sm:$0xff]  ;;  %v8078_v2 = vpack.c.bf16 %v1256_v63, %v1249_v44  ;;  %v8090_v44 = vpack.c.bf16 %v1410_v56, %v1403_v52  ;;  %v1121_v56 = vld [vmem:[#allocation2 + $0xc60] sm:$0xff] }
 0x2cf   :  { %8063 = vmatpush3.bf16.msra.mxu0 %v8062_v3  ;;  %7617 = vmatprep.subr.bf16.mxu1 %v7616_v5  ;;  %v1045_v3 = vld [vmem:[#allocation2 + $0xa00] sm:$0xff]  ;;  %v1375_v5 = vld [vmem:[#allocation2 + $0x1450] sm:$0xff]  ;;  %v1086_v63 = vld [vmem:[#allocation2 + $0xb48] sm:$0xff] }
 0x2d0   :  { %8065 = vmatprep.subr.bf16.mxu0 %v8064_v9  ;;  %v7632_v9 = vpack.c.bf16 %v1045_v3, %v1038_v1  ;;  %v8080_v16 = vpack.c.bf16 %v1382_v6, %v1375_v5  ;;  %v1417_v1 = vld [vmem:[#allocation2 + $0x15a0] sm:$0xff]  ;;  %v1424_v6 = vld [vmem:[#allocation2 + $0x15d8] sm:$0xff] }
 0x2d1   :  { %v8094_v15 = vpack.c.bf16 %v1424_v6, %v1417_v1  ;;  %v1135_v6 = vld [vmem:[#allocation2 + $0xcd0] sm:$0xff] }
 0x2d2   :  { %7619 = vmatpush1.bf16.msra.mxu1 %v7618_v21  ;;  %v1052_v21 = vld [vmem:[#allocation2 + $0xa38] sm:$0xff] }
 0x2d3   :  { %8067 = vmatpush3.bf16.msra.mxu0 %v8066_v7  ;;  %7621 = vmatprep.subr.bf16.mxu1 %v7620_v22  ;;  %v1059_v7 = vld [vmem:[#allocation2 + $0xa70] sm:$0xff]  ;;  %v1389_v22 = vld [vmem:[#allocation2 + $0x14c0] sm:$0xff] }
 0x2d4   :  { %8069 = vmatprep.subr.bf16.mxu0 %v8068_v27  ;;  %v7636_v27 = vpack.c.bf16 %v1059_v7, %v1052_v21  ;;  %v8084_v50 = vpack.c.bf16 %v1396_v24, %v1389_v22  ;;  %v1100_v21 = vld [vmem:[#allocation2 + $0xbb8] sm:$0xff]  ;;  %v1431_v7 = vld [vmem:[#allocation2 + $0x1610] sm:$0xff]  ;;  %v1438_v24 = vld [vmem:[#allocation2 + $0x1648] sm:$0xff] }
 0x2d5   :  { %v7650_v53 = vpack.c.bf16 %v1100_v21, %v1093_v20  ;;  %v8098_v30 = vpack.c.bf16 %v1438_v24, %v1431_v7  ;;  %v1606_v20 = vld [vmem:[#allocation2 + $0x1b88] sm:$0xff]  ;;  %v1149_v24 = vld [vmem:[#allocation2 + $0xd40] sm:$0xff] }
 0x2d6   :  { %7623 = vmatpush1.bf16.msra.mxu1 %v7622_v38  ;;  %v1066_v38 = vld [vmem:[#allocation2 + $0xaa8] sm:$0xff] }
 0x2d7   :  { %8071 = vmatpush3.bf16.msra.mxu0 %v8070_v25  ;;  %7625 = vmatprep.subr.bf16.mxu1 %v7624_v40  ;;  %v1073_v25 = vld [vmem:[#allocation2 + $0xae0] sm:$0xff]  ;;  %v1515_v40 = vld [vmem:[#allocation2 + $0x18b0] sm:$0xff] }
 0x2d8   :  { %8073 = vmatprep.subr.bf16.mxu0 %v8072_v47  ;;  %v7640_v47 = vpack.c.bf16 %v1073_v25, %v1066_v38  ;;  %v8088_v51 = vpack.c.bf16 %v1522_v42, %v1515_v40  ;;  %v1114_v38 = vld [vmem:[#allocation2 + $0xc28] sm:$0xff]  ;;  %v1445_v25 = vld [vmem:[#allocation2 + $0x1680] sm:$0xff]  ;;  %v1452_v42 = vld [vmem:[#allocation2 + $0x16b8] sm:$0xff] }
 0x2d9   :  { %v7654_v49 = vpack.c.bf16 %v1114_v38, %v1107_v33  ;;  %v1620_v33 = vld [vmem:[#allocation2 + $0x1bf8] sm:$0xff] }
 0x2da   :  { %7627 = vmatpush1.bf16.msra.mxu1 %v7626_v17  ;;  %v1080_v17 = vld [vmem:[#allocation2 + $0xb18] sm:$0xff] }
 0x2db   :  { %8075 = vmatpush3.bf16.msra.mxu0 %v8074_v57  ;;  %7629 = vmatprep.subr.bf16.mxu1 %v7628_v58  ;;  %v1087_v57 = vld [vmem:[#allocation2 + $0xb50] sm:$0xff]  ;;  %v1529_v58 = vld [vmem:[#allocation2 + $0x1920] sm:$0xff] }
 0x2dc   :  { %8077 = vmatprep.subr.bf16.mxu0 %v8076_v36  ;;  %v1079_v36 = vld [vmem:[#allocation2 + $0xb10] sm:$0xff]  ;;  %v7644_v3 = vpack.c.bf16 %v1087_v57, %v1080_v17  ;;  %v8092_v5 = vpack.c.bf16 %v1536_v55, %v1529_v58  ;;  %v1128_v17 = vld [vmem:[#allocation2 + $0xc98] sm:$0xff]  ;;  %v1466_v55 = vld [vmem:[#allocation2 + $0x1728] sm:$0xff] }
 0x2dd   :  { %v7646_v12 = vpack.c.bf16 %v1086_v63, %v1079_v36  ;;  %v1459_v57 = vld [vmem:[#allocation2 + $0x16f0] sm:$0xff]  ;;  %v1585_v36 = vld [vmem:[#allocation2 + $0x1ae0] sm:$0xff]  ;;  %v1592_v63 = vld [vmem:[#allocation2 + $0x1b18] sm:$0xff]  ;;  %v7658_v1 = vpack.c.bf16 %v1128_v17, %v1121_v56 }
 0x2de   :  { %7631 = vmatpush1.bf16.msra.mxu1 %v7630_v13  ;;  %v1094_v13 = vld [vmem:[#allocation2 + $0xb88] sm:$0xff] }
 0x2df   :  { %8079 = vmatpush3.bf16.msra.mxu0 %v8078_v2  ;;  %7633 = vmatprep.subr.bf16.mxu1 %v7632_v9  ;;  %v1101_v2 = vld [vmem:[#allocation2 + $0xbc0] sm:$0xff]  ;;  %v1543_v9 = vld [vmem:[#allocation2 + $0x1990] sm:$0xff]  ;;  %v1746_v56 = vld [vmem:[#allocation2 + $0x1fe8] sm:$0xff] }
 0x2e0   :  { %8081 = vmatprep.subr.bf16.mxu0 %v8080_v16  ;;  %v7648_v16 = vpack.c.bf16 %v1101_v2, %v1094_v13  ;;  %v8096_v22 = vpack.c.bf16 %v1550_v61, %v1543_v9  ;;  %v1142_v13 = vld [vmem:[#allocation2 + $0xd08] sm:$0xff]  ;;  %v1473_v2 = vld [vmem:[#allocation2 + $0x1760] sm:$0xff]  ;;  %v8108_v9 = vpack.c.bf16 %v1592_v63, %v1585_v36  ;;  %v1480_v61 = vld [vmem:[#allocation2 + $0x1798] sm:$0xff] }
 0x2e1   :  { %v7662_v21 = vpack.c.bf16 %v1142_v13, %v1135_v6  ;;  %v8110_v7 = vpack.c.bf16 %v1480_v61, %v1473_v2  ;;  %v1627_v36 = vld [vmem:[#allocation2 + $0x1c30] sm:$0xff]  ;;  %v1634_v63 = vld [vmem:[#allocation2 + $0x1c68] sm:$0xff]  ;;  %v1753_v6 = vld [vmem:[#allocation2 + $0x2020] sm:$0xff] }
 0x2e2   :  { %7635 = vmatpush1.bf16.msra.mxu1 %v7634_v10  ;;  %v1108_v10 = vld [vmem:[#allocation2 + $0xbf8] sm:$0xff]  ;;  %v8122_v2 = vpack.c.bf16 %v1634_v63, %v1627_v36  ;;  %v1198_v61 = vld [vmem:[#allocation2 + $0xec8] sm:$0xff]  ;;  %v1683_v63 = vld [vmem:[#allocation2 + $0x1df0] sm:$0xff] }
 0x2e3   :  { %8083 = vmatpush3.bf16.msra.mxu0 %v8082_v26  ;;  %7637 = vmatprep.subr.bf16.mxu1 %v7636_v27  ;;  %v1115_v26 = vld [vmem:[#allocation2 + $0xc30] sm:$0xff]  ;;  %v1557_v27 = vld [vmem:[#allocation2 + $0x1a00] sm:$0xff]  ;;  %v1760_v13 = vld [vmem:[#allocation2 + $0x2058] sm:$0xff] }
 0x2e4   :  { %8085 = vmatprep.subr.bf16.mxu0 %v8084_v50  ;;  %v7652_v50 = vpack.c.bf16 %v1115_v26, %v1108_v10  ;;  %v8100_v40 = vpack.c.bf16 %v1564_v28, %v1557_v27  ;;  %v1156_v10 = vld [vmem:[#allocation2 + $0xd78] sm:$0xff]  ;;  %v1487_v26 = vld [vmem:[#allocation2 + $0x17d0] sm:$0xff]  ;;  %v1494_v28 = vld [vmem:[#allocation2 + $0x1808] sm:$0xff] }
 0x2e5   :  { %v7666_v38 = vpack.c.bf16 %v1156_v10, %v1149_v24  ;;  %v1774_v24 = vld [vmem:[#allocation2 + $0x20c8] sm:$0xff]  ;;  %v1240_v36 = vld [vmem:[#allocation2 + $0x1018] sm:$0xff] }
 0x2e6   :  { %7639 = vmatpush1.bf16.msra.mxu1 %v7638_v45  ;;  %v1122_v45 = vld [vmem:[#allocation2 + $0xc68] sm:$0xff] }
 0x2e7   :  { %8087 = vmatpush3.bf16.msra.mxu0 %v8086_v46  ;;  %7641 = vmatprep.subr.bf16.mxu1 %v7640_v47  ;;  %v1129_v46 = vld [vmem:[#allocation2 + $0xca0] sm:$0xff]  ;;  %v1571_v47 = vld [vmem:[#allocation2 + $0x1a70] sm:$0xff] }
 0x2e8   :  { %8089 = vmatprep.subr.bf16.mxu0 %v8088_v51  ;;  %v8102_v51 = vpack.c.bf16 %v1452_v42, %v1445_v25  ;;  %v7656_v52 = vpack.c.bf16 %v1129_v46, %v1122_v45  ;;  %v8104_v58 = vpack.c.bf16 %v1578_v48, %v1571_v47  ;;  %v8114_v25 = vpack.c.bf16 %v1494_v28, %v1487_v26  ;;  %v1163_v42 = vld [vmem:[#allocation2 + $0xdb0] sm:$0xff]  ;;  %v1170_v45 = vld [vmem:[#allocation2 + $0xde8] sm:$0xff]  ;;  %v1501_v46 = vld [vmem:[#allocation2 + $0x1840] sm:$0xff] }
 0x2e9   :  { %v1508_v48 = vld [vmem:[#allocation2 + $0x1878] sm:$0xff]  ;;  %v7670_v17 = vpack.c.bf16 %v1170_v45, %v1163_v42  ;;  %v1205_v28 = vld [vmem:[#allocation2 + $0xf00] sm:$0xff] }
 0x2ea   :  { %4026 = vmatmul.mubr.f32.vlgmr.msra.gmra.mrb[14].mxu0 %v9220_v18  ;;  %7643 = vmatpush1.bf16.msra.mxu1 %v7642_v59  ;;  %v1136_v59 = vld [vmem:[#allocation2 + $0xcd8] sm:$0xff] }
 0x2eb   :  { %8091 = vmatpush3.bf16.msra.mxu0 %v8090_v44  ;;  %4095 = vmatprep.mubr.f32.mxu0 %v9222_v31  ;;  %v1143_v44 = vld [vmem:[#allocation2 + $0xd10] sm:$0xff] }
 0x2ec   :  { %7645 = vmatprep.subr.bf16.mxu1 %v7644_v3  ;;  %8093 = vmatprep.subr.bf16.mxu0 %v8092_v5  ;;  %v8106_v3 = vpack.c.bf16 %v1466_v55, %v1459_v57  ;;  %v7660_v5 = vpack.c.bf16 %v1143_v44, %v1136_v59  ;;  %v8118_v57 = vpack.c.bf16 %v1508_v48, %v1501_v46  ;;  %v1177_v55 = vld [vmem:[#allocation2 + $0xe20] sm:$0xff]  ;;  %v1184_v59 = vld [vmem:[#allocation2 + $0xe58] sm:$0xff]  ;;  %v1219_v46 = vld [vmem:[#allocation2 + $0xf70] sm:$0xff] }
 0x2ed   :  { %v1669_v48 = vld [vmem:[#allocation2 + $0x1d80] sm:$0xff] }
 0x2ee   :  { %7647 = vmatpush1.bf16.msra.mxu1 %v7646_v12  ;;  %v1150_v12 = vld [vmem:[#allocation2 + $0xd48] sm:$0xff] }
 0x2ef   :  { %8095 = vmatpush3.bf16.msra.mxu0 %v8094_v15  ;;  %7649 = vmatprep.subr.bf16.mxu1 %v7648_v16  ;;  %v1157_v15 = vld [vmem:[#allocation2 + $0xd80] sm:$0xff]  ;;  %v1599_v16 = vld [vmem:[#allocation2 + $0x1b50] sm:$0xff] }
 0x2f0   :  { %8097 = vmatprep.subr.bf16.mxu0 %v8096_v22  ;;  %v7664_v22 = vpack.c.bf16 %v1157_v15, %v1150_v12  ;;  %v8112_v27 = vpack.c.bf16 %v1606_v20, %v1599_v16  ;;  %v1641_v12 = vld [vmem:[#allocation2 + $0x1ca0] sm:$0xff]  ;;  %v1648_v16 = vld [vmem:[#allocation2 + $0x1cd8] sm:$0xff]  ;;  %v1206_v20 = vld [vmem:[#allocation2 + $0xf08] sm:$0xff] }
 0x2f1   :  { %v8126_v26 = vpack.c.bf16 %v1648_v16, %v1641_v12  ;;  %v1254_v16 = vld [vmem:[#allocation2 + $0x1088] sm:$0xff] }
 0x2f2   :  { %7651 = vmatpush1.bf16.msra.mxu1 %v7650_v53  ;;  %v1164_v53 = vld [vmem:[#allocation2 + $0xdb8] sm:$0xff] }
 0x2f3   :  { %8099 = vmatpush3.bf16.msra.mxu0 %v8098_v30  ;;  %7653 = vmatprep.subr.bf16.mxu1 %v7652_v50  ;;  %v1171_v30 = vld [vmem:[#allocation2 + $0xdf0] sm:$0xff]  ;;  %v1613_v50 = vld [vmem:[#allocation2 + $0x1bc0] sm:$0xff] }
 0x2f4   :  { %8101 = vmatprep.subr.bf16.mxu0 %v8100_v40  ;;  %v7668_v40 = vpack.c.bf16 %v1171_v30, %v1164_v53  ;;  %v8116_v47 = vpack.c.bf16 %v1620_v33, %v1613_v50  ;;  %v1212_v53 = vld [vmem:[#allocation2 + $0xf38] sm:$0xff]  ;;  %v1655_v30 = vld [vmem:[#allocation2 + $0x1d10] sm:$0xff] }
 0x2f5   :  { %v1220_v33 = vld [vmem:[#allocation2 + $0xf78] sm:$0xff]  ;;  %v7682_v42 = vpack.c.bf16 %v1212_v53, %v1205_v28 }
 0x2f6   :  { %7655 = vmatpush1.bf16.msra.mxu1 %v7654_v49  ;;  %v1178_v49 = vld [vmem:[#allocation2 + $0xe28] sm:$0xff] }
 0x2f7   :  { %8103 = vmatpush3.bf16.msra.mxu0 %v8102_v51  ;;  %7657 = vmatprep.subr.bf16.mxu1 %v7656_v52  ;;  %v1185_v51 = vld [vmem:[#allocation2 + $0xe60] sm:$0xff]  ;;  %v1739_v52 = vld [vmem:[#allocation2 + $0x1fb0] sm:$0xff] }
 0x2f8   :  { %8105 = vmatprep.subr.bf16.mxu0 %v8104_v58  ;;  %v7672_v58 = vpack.c.bf16 %v1185_v51, %v1178_v49  ;;  %v8120_v44 = vpack.c.bf16 %v1746_v56, %v1739_v52  ;;  %v1676_v51 = vld [vmem:[#allocation2 + $0x1db8] sm:$0xff]  ;;  %v1234_v52 = vld [vmem:[#allocation2 + $0xfe8] sm:$0xff]  ;;  %v1241_v56 = vld [vmem:[#allocation2 + $0x1020] sm:$0xff] }
 0x2fa   :  { %7659 = vmatpush1.bf16.msra.mxu1 %v7658_v1  ;;  %v1192_v1 = vld [vmem:[#allocation2 + $0xe98] sm:$0xff] }
 0x2fb   :  { %8107 = vmatpush3.bf16.msra.mxu0 %v8106_v3  ;;  %7661 = vmatprep.subr.bf16.mxu1 %v7660_v5  ;;  %v1199_v3 = vld [vmem:[#allocation2 + $0xed0] sm:$0xff]  ;;  %v7674_v5 = vpack.c.bf16 %v1184_v59, %v1177_v55  ;;  %v8134_v55 = vpack.c.bf16 %v1676_v51, %v1669_v48  ;;  %v7688_v59 = vpack.c.bf16 %v1241_v56, %v1234_v52  ;;  %v1725_v51 = vld [vmem:[#allocation2 + $0x1f40] sm:$0xff]  ;;  %v1732_v56 = vld [vmem:[#allocation2 + $0x1f78] sm:$0xff] }
 0x2fc   :  { %8109 = vmatprep.subr.bf16.mxu0 %v8108_v9  ;;  %v1191_v9 = vld [vmem:[#allocation2 + $0xe90] sm:$0xff]  ;;  %v7676_v15 = vpack.c.bf16 %v1199_v3, %v1192_v1  ;;  %v1690_v3 = vld [vmem:[#allocation2 + $0x1e28] sm:$0xff] }
 0x2fd   :  { %v7678_v10 = vpack.c.bf16 %v1198_v61, %v1191_v9  ;;  %v8138_v61 = vpack.c.bf16 %v1690_v3, %v1683_v63  ;;  %v1275_v48 = vld [vmem:[#allocation2 + $0x1130] sm:$0xff]  ;;  %v1289_v63 = vld [vmem:[#allocation2 + $0x11a0] sm:$0xff] }
 0x2fe   :  { %7663 = vmatpush1.bf16.msra.mxu1 %v7662_v21  ;;  %v1213_v21 = vld [vmem:[#allocation2 + $0xf40] sm:$0xff] }
 0x2ff   :  { %8111 = vmatpush3.bf16.msra.mxu0 %v8110_v7  ;;  %7665 = vmatprep.subr.bf16.mxu1 %v7664_v22  ;;  %v8124_v7 = vpack.c.bf16 %v1760_v13, %v1753_v6  ;;  %v1767_v22 = vld [vmem:[#allocation2 + $0x2090] sm:$0xff]  ;;  %v1809_v13 = vld [vmem:[#allocation2 + $0x21e0] sm:$0xff] }
 0x300   :  { %8113 = vmatprep.subr.bf16.mxu0 %v8112_v27  ;;  %v7680_v27 = vpack.c.bf16 %v1213_v21, %v1206_v20  ;;  %v8128_v50 = vpack.c.bf16 %v1774_v24, %v1767_v22  ;;  %v1255_v6 = vld [vmem:[#allocation2 + $0x1090] sm:$0xff]  ;;  %v1697_v20 = vld [vmem:[#allocation2 + $0x1e60] sm:$0xff]  ;;  %v1262_v22 = vld [vmem:[#allocation2 + $0x10c8] sm:$0xff] }
 0x301   :  { %v1269_v24 = vld [vmem:[#allocation2 + $0x1100] sm:$0xff] }
 0x302   :  { %7667 = vmatpush1.bf16.msra.mxu1 %v7666_v38  ;;  %v1227_v38 = vld [vmem:[#allocation2 + $0xfb0] sm:$0xff]  ;;  %v7696_v53 = vpack.c.bf16 %v1269_v24, %v1262_v22  ;;  %v1872_v24 = vld [vmem:[#allocation2 + $0x23d8] sm:$0xff] }
 0x303   :  { %8115 = vmatpush3.bf16.msra.mxu0 %v8114_v25  ;;  %7669 = vmatprep.subr.bf16.mxu1 %v7668_v40  ;;  %v1781_v25 = vld [vmem:[#allocation2 + $0x2100] sm:$0xff]  ;;  %v1788_v40 = vld [vmem:[#allocation2 + $0x2138] sm:$0xff]  ;;  %v7684_v45 = vpack.c.bf16 %v1227_v38, %v1220_v33  ;;  %v1718_v38 = vld [vmem:[#allocation2 + $0x1f08] sm:$0xff] }
 0x304   :  { %8117 = vmatprep.subr.bf16.mxu0 %v8116_v47  ;;  %v1226_v47 = vld [vmem:[#allocation2 + $0xfa8] sm:$0xff]  ;;  %v8132_v49 = vpack.c.bf16 %v1788_v40, %v1781_v25  ;;  %v1276_v25 = vld [vmem:[#allocation2 + $0x1138] sm:$0xff]  ;;  %v1283_v40 = vld [vmem:[#allocation2 + $0x1170] sm:$0xff] }
 0x306   :  { %7671 = vmatpush1.bf16.msra.mxu1 %v7670_v17  ;;  %v1795_v17 = vld [vmem:[#allocation2 + $0x2170] sm:$0xff] }
 0x307   :  { %8119 = vmatpush3.bf16.msra.mxu0 %v8118_v57  ;;  %7673 = vmatprep.subr.bf16.mxu1 %v7672_v58  ;;  %v1802_v57 = vld [vmem:[#allocation2 + $0x21a8] sm:$0xff]  ;;  %v7686_v58 = vpack.c.bf16 %v1226_v47, %v1219_v46  ;;  %v7700_v47 = vpack.c.bf16 %v1283_v40, %v1276_v25 }
 0x308   :  { %8121 = vmatprep.subr.bf16.mxu0 %v8120_v44  ;;  %v1233_v44 = vld [vmem:[#allocation2 + $0xfe0] sm:$0xff]  ;;  %v8136_v1 = vpack.c.bf16 %v1802_v57, %v1795_v17  ;;  %v1290_v17 = vld [vmem:[#allocation2 + $0x11a8] sm:$0xff] }
 0x309   :  { %3460 = vmatmul.mubr.f32.vlgmr.msra.gmra.mrb[8].mxu1 %v9194_v62  ;;  %v1662_v62 = vld [vmem:[#allocation2 + $0x1d48] sm:$0xff]  ;;  %v7690_v9 = vpack.c.bf16 %v1240_v36, %v1233_v44  ;;  %v1297_v57 = vld [vmem:[#allocation2 + $0x11e0] sm:$0xff]  ;;  %v8150_v44 = vpack.c.bf16 %v1732_v56, %v1725_v51  ;;  %v1331_v51 = vld [vmem:[#allocation2 + $0x12f0] sm:$0xff] }
 0x30a   :  { %4096 = vmatmul.mubr.f32.vlgmr.msra.gmra.mrb[16].mxu0 %v9241_v60  ;;  %7675 = vmatpush1.bf16.msra.mxu1 %v7674_v5  ;;  %v1248_v5 = vld [vmem:[#allocation2 + $0x1058] sm:$0xff]  ;;  %v7704_v36 = vpack.c.bf16 %v1297_v57, %v1290_v17  ;;  %v1886_v40 = vld [vmem:[#allocation2 + $0x2448] sm:$0xff]  ;;  %v1893_v56 = vld [vmem:[#allocation2 + $0x2480] sm:$0xff] }
 0x30b   :  { %3530 = vmatprep.mubr.f32.mxu1 %v9196_v14  ;;  %8123 = vmatpush3.bf16.msra.mxu0 %v8122_v2  ;;  %v8130_v14 = vpack.c.bf16 %v1662_v62, %v1655_v30  ;;  %v1816_v2 = vld [vmem:[#allocation2 + $0x2218] sm:$0xff]  ;;  %v7692_v12 = vpack.c.bf16 %v1255_v6, %v1248_v5  ;;  %v1261_v30 = vld [vmem:[#allocation2 + $0x10c0] sm:$0xff]  ;;  %v1711_v62 = vld [vmem:[#allocation2 + $0x1ed0] sm:$0xff] }
 0x30c   :  { %4165 = vmatprep.mubr.f32.mxu0 %v9243_v8  ;;  %7677 = vmatprep.subr.bf16.mxu1 %v7676_v15  ;;  %v1247_v15 = vld [vmem:[#allocation2 + $0x1050] sm:$0xff]  ;;  %v8140_v21 = vpack.c.bf16 %v1816_v2, %v1809_v13  ;;  %v8146_v46 = vpack.c.bf16 %v1718_v38, %v1711_v62  ;;  %v1858_v6 = vld [vmem:[#allocation2 + $0x2368] sm:$0xff]  ;;  %v1304_v13 = vld [vmem:[#allocation2 + $0x1218] sm:$0xff] }
 0x30d   :  { %8125 = vmatprep.subr.bf16.mxu0 %v8124_v7  ;;  %v1704_v7 = vld [vmem:[#allocation2 + $0x1e98] sm:$0xff]  ;;  %v1851_v5 = vld [vmem:[#allocation2 + $0x2330] sm:$0xff]  ;;  %v1317_v62 = vld [vmem:[#allocation2 + $0x1280] sm:$0xff] }
 0x30e   :  { %7679 = vmatpush1.bf16.msra.mxu1 %v7678_v10  ;;  %v1823_v10 = vld [vmem:[#allocation2 + $0x2250] sm:$0xff]  ;;  %v8142_v28 = vpack.c.bf16 %v1704_v7, %v1697_v20  ;;  %v1310_v20 = vld [vmem:[#allocation2 + $0x1248] sm:$0xff]  ;;  %v1900_v57 = vld [vmem:[#allocation2 + $0x24b8] sm:$0xff] }
 0x30f   :  { %8127 = vmatpush3.bf16.msra.mxu0 %v8126_v26  ;;  %7681 = vmatprep.subr.bf16.mxu1 %v7680_v27  ;;  %v1830_v26 = vld [vmem:[#allocation2 + $0x2288] sm:$0xff]  ;;  %v7694_v27 = vpack.c.bf16 %v1254_v16, %v1247_v15  ;;  %v1311_v2 = vld [vmem:[#allocation2 + $0x1250] sm:$0xff]  ;;  %v8154_v15 = vpack.c.bf16 %v1858_v6, %v1851_v5  ;;  %v1352_v5 = vld [vmem:[#allocation2 + $0x1398] sm:$0xff] }
 0x310   :  { %8129 = vmatprep.subr.bf16.mxu0 %v8128_v50  ;;  %v1268_v50 = vld [vmem:[#allocation2 + $0x10f8] sm:$0xff]  ;;  %v8144_v33 = vpack.c.bf16 %v1830_v26, %v1823_v10  ;;  %v1303_v16 = vld [vmem:[#allocation2 + $0x1210] sm:$0xff]  ;;  %v7708_v7 = vpack.c.bf16 %v1311_v2, %v1304_v13  ;;  %v1318_v10 = vld [vmem:[#allocation2 + $0x1288] sm:$0xff] }
 0x311   :  { %v1325_v26 = vld [vmem:[#allocation2 + $0x12c0] sm:$0xff]  ;;  %v1879_v38 = vld [vmem:[#allocation2 + $0x2410] sm:$0xff]  ;;  %v1914_v2 = vld [vmem:[#allocation2 + $0x2528] sm:$0xff] }
 0x312   :  { %7683 = vmatpush1.bf16.msra.mxu1 %v7682_v42  ;;  %v1837_v42 = vld [vmem:[#allocation2 + $0x22c0] sm:$0xff]  ;;  %v1907_v6 = vld [vmem:[#allocation2 + $0x24f0] sm:$0xff] }
 0x313   :  { %8131 = vmatpush3.bf16.msra.mxu0 %v8130_v14  ;;  %7685 = vmatprep.subr.bf16.mxu1 %v7684_v45  ;;  %v1844_v14 = vld [vmem:[#allocation2 + $0x22f8] sm:$0xff]  ;;  %v7698_v45 = vpack.c.bf16 %v1268_v50, %v1261_v30  ;;  %v7712_v50 = vpack.c.bf16 %v1325_v26, %v1318_v10 }
 0x314   :  { %8133 = vmatprep.subr.bf16.mxu0 %v8132_v49  ;;  %v1282_v49 = vld [vmem:[#allocation2 + $0x1168] sm:$0xff]  ;;  %v8148_v52 = vpack.c.bf16 %v1844_v14, %v1837_v42  ;;  %v1332_v42 = vld [vmem:[#allocation2 + $0x12f8] sm:$0xff]  ;;  %v1339_v14 = vld [vmem:[#allocation2 + $0x1330] sm:$0xff] }
 0x315   :  { %v1928_v26 = vld [vmem:[#allocation2 + $0x2598] sm:$0xff] }
 0x316   :  { %7687 = vmatpush1.bf16.msra.mxu1 %v7686_v58  ;;  %v1963_v58 = vld [vmem:[#allocation2 + $0x26b0] sm:$0xff] }
 0x317   :  { %8135 = vmatpush3.bf16.msra.mxu0 %v8134_v55  ;;  %7689 = vmatprep.subr.bf16.mxu1 %v7688_v59  ;;  %v1970_v55 = vld [vmem:[#allocation2 + $0x26e8] sm:$0xff]  ;;  %v7702_v59 = vpack.c.bf16 %v1282_v49, %v1275_v48  ;;  %v8162_v48 = vpack.c.bf16 %v1886_v40, %v1879_v38  ;;  %v7716_v49 = vpack.c.bf16 %v1339_v14, %v1332_v42  ;;  %v1373_v38 = vld [vmem:[#allocation2 + $0x1440] sm:$0xff]  ;;  %v1935_v40 = vld [vmem:[#allocation2 + $0x25d0] sm:$0xff] }
 0x318   :  { %8137 = vmatprep.subr.bf16.mxu0 %v8136_v1  ;;  %v1296_v1 = vld [vmem:[#allocation2 + $0x11d8] sm:$0xff]  ;;  %v8152_v3 = vpack.c.bf16 %v1970_v55, %v1963_v58  ;;  %v1346_v58 = vld [vmem:[#allocation2 + $0x1368] sm:$0xff]  ;;  %v1353_v55 = vld [vmem:[#allocation2 + $0x13a0] sm:$0xff] }
 0x319   :  { %v1942_v14 = vld [vmem:[#allocation2 + $0x2608] sm:$0xff] }
 0x31a   :  { %7691 = vmatpush1.bf16.msra.mxu1 %v7690_v9  ;;  %v1977_v9 = vld [vmem:[#allocation2 + $0x2720] sm:$0xff] }
 0x31b   :  { %8139 = vmatpush3.bf16.msra.mxu0 %v8138_v61  ;;  %7693 = vmatprep.subr.bf16.mxu1 %v7692_v12  ;;  %v1984_v61 = vld [vmem:[#allocation2 + $0x2758] sm:$0xff]  ;;  %v7706_v12 = vpack.c.bf16 %v1296_v1, %v1289_v63  ;;  %v8166_v63 = vpack.c.bf16 %v1900_v57, %v1893_v56  ;;  %v7720_v1 = vpack.c.bf16 %v1353_v55, %v1346_v58  ;;  %v1387_v56 = vld [vmem:[#allocation2 + $0x14b0] sm:$0xff]  ;;  %v1949_v57 = vld [vmem:[#allocation2 + $0x2640] sm:$0xff] }
 0x31c   :  { %8141 = vmatprep.subr.bf16.mxu0 %v8140_v21  ;;  %v1865_v21 = vld [vmem:[#allocation2 + $0x23a0] sm:$0xff]  ;;  %v8156_v22 = vpack.c.bf16 %v1984_v61, %v1977_v9  ;;  %v1360_v9 = vld [vmem:[#allocation2 + $0x13d8] sm:$0xff]  ;;  %v1367_v61 = vld [vmem:[#allocation2 + $0x1410] sm:$0xff] }
 0x31d   :  { %v8158_v30 = vpack.c.bf16 %v1872_v24, %v1865_v21  ;;  %v7724_v21 = vpack.c.bf16 %v1367_v61, %v1360_v9  ;;  %v1921_v24 = vld [vmem:[#allocation2 + $0x2560] sm:$0xff]  ;;  %v1956_v55 = vld [vmem:[#allocation2 + $0x2678] sm:$0xff]  ;;  %v2075_v9 = vld [vmem:[#allocation2 + $0x2a30] sm:$0xff] }
 0x31e   :  { %7695 = vmatpush1.bf16.msra.mxu1 %v7694_v27  ;;  %v1991_v27 = vld [vmem:[#allocation2 + $0x2790] sm:$0xff]  ;;  %v2082_v61 = vld [vmem:[#allocation2 + $0x2a68] sm:$0xff] }
 0x31f   :  { %8143 = vmatpush3.bf16.msra.mxu0 %v8142_v28  ;;  %7697 = vmatprep.subr.bf16.mxu1 %v7696_v53  ;;  %v1998_v28 = vld [vmem:[#allocation2 + $0x27c8] sm:$0xff]  ;;  %v7710_v53 = vpack.c.bf16 %v1310_v20, %v1303_v16  ;;  %v8170_v20 = vpack.c.bf16 %v1914_v2, %v1907_v6  ;;  %v1401_v6 = vld [vmem:[#allocation2 + $0x1520] sm:$0xff] }
 0x320   :  { %8145 = vmatprep.subr.bf16.mxu0 %v8144_v33  ;;  %v1324_v33 = vld [vmem:[#allocation2 + $0x12b8] sm:$0xff]  ;;  %v8160_v25 = vpack.c.bf16 %v1998_v28, %v1991_v27  ;;  %v1374_v27 = vld [vmem:[#allocation2 + $0x1448] sm:$0xff]  ;;  %v1381_v28 = vld [vmem:[#allocation2 + $0x1480] sm:$0xff] }
 0x322   :  { %7699 = vmatpush1.bf16.msra.mxu1 %v7698_v45  ;;  %v2005_v45 = vld [vmem:[#allocation2 + $0x2800] sm:$0xff] }
 0x323   :  { %8147 = vmatpush3.bf16.msra.mxu0 %v8146_v46  ;;  %7701 = vmatprep.subr.bf16.mxu1 %v7700_v47  ;;  %v2012_v46 = vld [vmem:[#allocation2 + $0x2838] sm:$0xff]  ;;  %v7714_v47 = vpack.c.bf16 %v1324_v33, %v1317_v62  ;;  %v8174_v62 = vpack.c.bf16 %v1928_v26, %v1921_v24  ;;  %v7728_v33 = vpack.c.bf16 %v1381_v28, %v1374_v27  ;;  %v1422_v24 = vld [vmem:[#allocation2 + $0x15c8] sm:$0xff] }
 0x324   :  { %8149 = vmatprep.subr.bf16.mxu0 %v8148_v52  ;;  %v1338_v52 = vld [vmem:[#allocation2 + $0x1328] sm:$0xff]  ;;  %v8164_v17 = vpack.c.bf16 %v2012_v46, %v2005_v45  ;;  %v1388_v45 = vld [vmem:[#allocation2 + $0x14b8] sm:$0xff]  ;;  %v1395_v46 = vld [vmem:[#allocation2 + $0x14f0] sm:$0xff] }
 0x325   :  { %v2096_v27 = vld [vmem:[#allocation2 + $0x2ad8] sm:$0xff]  ;;  %v1430_v28 = vld [vmem:[#allocation2 + $0x1608] sm:$0xff] }
 0x326   :  { %7703 = vmatpush1.bf16.msra.mxu1 %v7702_v59  ;;  %v2019_v59 = vld [vmem:[#allocation2 + $0x2870] sm:$0xff] }
 0x327   :  { %8151 = vmatpush3.bf16.msra.mxu0 %v8150_v44  ;;  %7705 = vmatprep.subr.bf16.mxu1 %v7704_v36  ;;  %v2026_v44 = vld [vmem:[#allocation2 + $0x28a8] sm:$0xff]  ;;  %v7718_v36 = vpack.c.bf16 %v1338_v52, %v1331_v51  ;;  %v8178_v51 = vpack.c.bf16 %v1942_v14, %v1935_v40  ;;  %v7732_v52 = vpack.c.bf16 %v1395_v46, %v1388_v45  ;;  %v1429_v40 = vld [vmem:[#allocation2 + $0x1600] sm:$0xff]  ;;  %v2103_v14 = vld [vmem:[#allocation2 + $0x2b10] sm:$0xff] }
 0x328   :  { %8153 = vmatprep.subr.bf16.mxu0 %v8152_v3  ;;  %v1345_v3 = vld [vmem:[#allocation2 + $0x1360] sm:$0xff]  ;;  %v8168_v13 = vpack.c.bf16 %v2026_v44, %v2019_v59  ;;  %v1402_v59 = vld [vmem:[#allocation2 + $0x1528] sm:$0xff]  ;;  %v1444_v46 = vld [vmem:[#allocation2 + $0x1678] sm:$0xff] }
 0x329   :  { %v7722_v16 = vpack.c.bf16 %v1352_v5, %v1345_v3  ;;  %v1409_v44 = vld [vmem:[#allocation2 + $0x1560] sm:$0xff]  ;;  %v8182_v3 = vpack.c.bf16 %v1956_v55, %v1949_v57  ;;  %v2124_v55 = vld [vmem:[#allocation2 + $0x2bb8] sm:$0xff] }
 0x32a   :  { %4166 = vmatmul.mubr.f32.vlgmr.msra.gmra.mrb[18].mxu0 %v9259_v29  ;;  %7707 = vmatpush1.bf16.msra.mxu1 %v7706_v12  ;;  %v2033_v12 = vld [vmem:[#allocation2 + $0x28e0] sm:$0xff]  ;;  %v7736_v5 = vpack.c.bf16 %v1409_v44, %v1402_v59  ;;  %v1458_v59 = vld [vmem:[#allocation2 + $0x16e8] sm:$0xff] }
 0x32b   :  { %8155 = vmatpush3.bf16.msra.mxu0 %v8154_v15  ;;  %4235 = vmatprep.mubr.f32.mxu0 %v9261_v43  ;;  %v2040_v15 = vld [vmem:[#allocation2 + $0x2918] sm:$0xff]  ;;  %v2117_v57 = vld [vmem:[#allocation2 + $0x2b80] sm:$0xff] }
 0x32c   :  { %7709 = vmatprep.subr.bf16.mxu1 %v7708_v7  ;;  %8157 = vmatprep.subr.bf16.mxu0 %v8156_v22  ;;  %v1359_v7 = vld [vmem:[#allocation2 + $0x13d0] sm:$0xff]  ;;  %v1366_v22 = vld [vmem:[#allocation2 + $0x1408] sm:$0xff]  ;;  %v8172_v10 = vpack.c.bf16 %v2040_v15, %v2033_v12  ;;  %v1416_v12 = vld [vmem:[#allocation2 + $0x1598] sm:$0xff] }
 0x32d   :  { %v1423_v15 = vld [vmem:[#allocation2 + $0x15d0] sm:$0xff]  ;;  %v1465_v44 = vld [vmem:[#allocation2 + $0x1720] sm:$0xff] }
 0x32e   :  { %7711 = vmatpush1.bf16.msra.mxu1 %v7710_v53  ;;  %v2047_v53 = vld [vmem:[#allocation2 + $0x2950] sm:$0xff]  ;;  %v7740_v26 = vpack.c.bf16 %v1423_v15, %v1416_v12  ;;  %v1472_v12 = vld [vmem:[#allocation2 + $0x1758] sm:$0xff] }
 0x32f   :  { %8159 = vmatpush3.bf16.msra.mxu0 %v8158_v30  ;;  %7713 = vmatprep.subr.bf16.mxu1 %v7712_v50  ;;  %v2054_v30 = vld [vmem:[#allocation2 + $0x2988] sm:$0xff]  ;;  %v7726_v50 = vpack.c.bf16 %v1366_v22, %v1359_v7  ;;  %v8186_v7 = vpack.c.bf16 %v2082_v61, %v2075_v9  ;;  %v1415_v22 = vld [vmem:[#allocation2 + $0x1590] sm:$0xff] }
 0x330   :  { %8161 = vmatprep.subr.bf16.mxu0 %v8160_v25  ;;  %v1380_v25 = vld [vmem:[#allocation2 + $0x1478] sm:$0xff]  ;;  %v8176_v42 = vpack.c.bf16 %v2054_v30, %v2047_v53  ;;  %v1437_v53 = vld [vmem:[#allocation2 + $0x1640] sm:$0xff]  ;;  %v2138_v61 = vld [vmem:[#allocation2 + $0x2c28] sm:$0xff] }
 0x331   :  { %v1479_v15 = vld [vmem:[#allocation2 + $0x1790] sm:$0xff] }
 0x332   :  { %7715 = vmatpush1.bf16.msra.mxu1 %v7714_v47  ;;  %v2061_v47 = vld [vmem:[#allocation2 + $0x29c0] sm:$0xff] }
 0x333   :  { %8163 = vmatpush3.bf16.msra.mxu0 %v8162_v48  ;;  %7717 = vmatprep.subr.bf16.mxu1 %v7716_v49  ;;  %v2068_v48 = vld [vmem:[#allocation2 + $0x29f8] sm:$0xff]  ;;  %v7730_v49 = vpack.c.bf16 %v1380_v25, %v1373_v38  ;;  %v7744_v25 = vpack.c.bf16 %v1437_v53, %v1430_v28  ;;  %v1486_v53 = vld [vmem:[#allocation2 + $0x17c8] sm:$0xff] }
 0x334   :  { %8165 = vmatprep.subr.bf16.mxu0 %v8164_v17  ;;  %v1394_v17 = vld [vmem:[#allocation2 + $0x14e8] sm:$0xff]  ;;  %v8180_v58 = vpack.c.bf16 %v2068_v48, %v2061_v47  ;;  %v1451_v47 = vld [vmem:[#allocation2 + $0x16b0] sm:$0xff]  ;;  %v2229_v48 = vld [vmem:[#allocation2 + $0x2f00] sm:$0xff] }
 0x335   :  { %v2152_v28 = vld [vmem:[#allocation2 + $0x2c98] sm:$0xff] }
 0x336   :  { %7719 = vmatpush1.bf16.msra.mxu1 %v7718_v36  ;;  %v2187_v36 = vld [vmem:[#allocation2 + $0x2db0] sm:$0xff] }
 0x337   :  { %8167 = vmatpush3.bf16.msra.mxu0 %v8166_v63  ;;  %7721 = vmatprep.subr.bf16.mxu1 %v7720_v1  ;;  %v2194_v63 = vld [vmem:[#allocation2 + $0x2de8] sm:$0xff]  ;;  %v7734_v1 = vpack.c.bf16 %v1394_v17, %v1387_v56  ;;  %v1443_v56 = vld [vmem:[#allocation2 + $0x1670] sm:$0xff] }
 0x338   :  { %8169 = vmatprep.subr.bf16.mxu0 %v8168_v13  ;;  %v1408_v13 = vld [vmem:[#allocation2 + $0x1558] sm:$0xff]  ;;  %v8184_v2 = vpack.c.bf16 %v2194_v63, %v2187_v36  ;;  %v1450_v17 = vld [vmem:[#allocation2 + $0x16a8] sm:$0xff]  ;;  %v2243_v36 = vld [vmem:[#allocation2 + $0x2f70] sm:$0xff] }
 0x339   :  { %v2250_v63 = vld [vmem:[#allocation2 + $0x2fa8] sm:$0xff] }
 0x33a   :  { %7723 = vmatpush1.bf16.msra.mxu1 %v7722_v16  ;;  %v7738_v16 = vpack.c.bf16 %v1408_v13, %v1401_v6  ;;  %v1457_v6 = vld [vmem:[#allocation2 + $0x16e0] sm:$0xff]  ;;  %v1464_v13 = vld [vmem:[#allocation2 + $0x1718] sm:$0xff]  ;;  %v8200_v9 = vpack.c.bf16 %v2250_v63, %v2243_v36 }
 0x33b   :  { %8171 = vmatpush3.bf16.msra.mxu0 %v8170_v20  ;;  %7725 = vmatprep.subr.bf16.mxu1 %v7724_v21  ;;  %v2201_v20 = vld [vmem:[#allocation2 + $0x2e20] sm:$0xff]  ;;  %v2208_v21 = vld [vmem:[#allocation2 + $0x2e58] sm:$0xff] }
 0x33c   :  { %8173 = vmatprep.subr.bf16.mxu0 %v8172_v10  ;;  %v2089_v10 = vld [vmem:[#allocation2 + $0x2aa0] sm:$0xff]  ;;  %v8188_v30 = vpack.c.bf16 %v2208_v21, %v2201_v20  ;;  %v2264_v20 = vld [vmem:[#allocation2 + $0x3018] sm:$0xff]  ;;  %v7754_v21 = vpack.c.bf16 %v1464_v13, %v1457_v6  ;;  %v4319_v13 = vld [vmem:[%s10959_s5 + $0x8] sm:$0xff] }
 0x33d   :  { %v8190_v38 = vpack.c.bf16 %v2096_v27, %v2089_v10  ;;  %v1478_v10 = vld [vmem:[#allocation2 + $0x1788] sm:$0xff]  ;;  %v2173_v36 = vld [vmem:[#allocation2 + $0x2d40] sm:$0xff] }
 0x33e   :  { %7727 = vmatpush1.bf16.msra.mxu1 %v7726_v50  ;;  %v2215_v50 = vld [vmem:[#allocation2 + $0x2e90] sm:$0xff] }
 0x33f   :  { %8175 = vmatpush3.bf16.msra.mxu0 %v8174_v62  ;;  %7729 = vmatprep.subr.bf16.mxu1 %v7728_v33  ;;  %v2222_v62 = vld [vmem:[#allocation2 + $0x2ec8] sm:$0xff]  ;;  %v7742_v33 = vpack.c.bf16 %v1422_v24, %v1415_v22  ;;  %v7756_v22 = vpack.c.bf16 %v1479_v15, %v1472_v12  ;;  %v1471_v24 = vld [vmem:[#allocation2 + $0x1750] sm:$0xff]  ;;  %v1513_v15 = vld [vmem:[#allocation2 + $0x18a0] sm:$0xff] }
 0x340   :  { %8177 = vmatprep.subr.bf16.mxu0 %v8176_v42  ;;  %v1436_v42 = vld [vmem:[#allocation2 + $0x1638] sm:$0xff]  ;;  %v8192_v45 = vpack.c.bf16 %v2222_v62, %v2215_v50  ;;  %v2271_v50 = vld [vmem:[#allocation2 + $0x3050] sm:$0xff]  ;;  %v2278_v62 = vld [vmem:[#allocation2 + $0x3088] sm:$0xff] }
 0x342   :  { %7731 = vmatpush1.bf16.msra.mxu1 %v7730_v49  ;;  %v2236_v49 = vld [vmem:[#allocation2 + $0x2f38] sm:$0xff] }
 0x343   :  { %8179 = vmatpush3.bf16.msra.mxu0 %v8178_v51  ;;  %7733 = vmatprep.subr.bf16.mxu1 %v7732_v52  ;;  %v7746_v51 = vpack.c.bf16 %v1436_v42, %v1429_v40  ;;  %v7748_v52 = vpack.c.bf16 %v1451_v47, %v1444_v46  ;;  %v1485_v40 = vld [vmem:[#allocation2 + $0x17c0] sm:$0xff]  ;;  %v1492_v42 = vld [vmem:[#allocation2 + $0x17f8] sm:$0xff]  ;;  %v2166_v46 = vld [vmem:[#allocation2 + $0x2d08] sm:$0xff] }
 0x344   :  { %8181 = vmatprep.subr.bf16.mxu0 %v8180_v58  ;;  %v8196_v58 = vpack.c.bf16 %v2236_v49, %v2229_v48  ;;  %v1500_v47 = vld [vmem:[#allocation2 + $0x1838] sm:$0xff]  ;;  %v1507_v48 = vld [vmem:[#allocation2 + $0x1870] sm:$0xff] }
 0x346   :  { %7735 = vmatpush1.bf16.msra.mxu1 %v7734_v1  ;;  %v7750_v1 = vpack.c.bf16 %v1450_v17, %v1443_v56  ;;  %v9320_v56 = vld [vmem:[%s10990_s28] sm:$0xff] }
 0x347   :  { %8183 = vmatpush3.bf16.msra.mxu0 %v8182_v3  ;;  %7737 = vmatprep.subr.bf16.mxu1 %v7736_v5  ;;  %v8198_v3 = vpack.c.bf16 %v2124_v55, %v2117_v57  ;;  %v7752_v5 = vpack.c.bf16 %v1465_v44, %v1458_v59  ;;  %v7762_v57 = vpack.c.bf16 %v1492_v42, %v1485_v40  ;;  %v1499_v59 = vld [vmem:[#allocation2 + $0x1830] sm:$0xff]  ;;  %v1506_v44 = vld [vmem:[#allocation2 + $0x1868] sm:$0xff]  ;;  %v1549_v42 = vld [vmem:[#allocation2 + $0x19c0] sm:$0xff] }
 0x348   :  { %8185 = vmatprep.subr.bf16.mxu0 %v8184_v2  ;;  %v2131_v2 = vld [vmem:[#allocation2 + $0x2bf0] sm:$0xff]  ;;  %v7764_v55 = vpack.c.bf16 %v1507_v48, %v1500_v47  ;;  %v2302_v6 = vrot.slane %v9320_v56, %v9145_v37  ;;  %v1542_v40 = vld [vmem:[#allocation2 + $0x1988] sm:$0xff] }
 0x349   :  { %3531 = vmatmul.mubr.f32.vlgmr.msra.gmra.mrb[8].mxu1 %v9220_v18  ;;  %v2110_v18 = vld [vmem:[#allocation2 + $0x2b48] sm:$0xff] }
 0x34a   :  { %4236 = vmatmul.mubr.f32.vlgmr.msra.gmra.mrb[20].mxu0 %v9278_v11  ;;  %7739 = vmatpush1.bf16.msra.mxu1 %v7738_v16  ;;  %v2257_v16 = vld [vmem:[#allocation2 + $0x2fe0] sm:$0xff] }
 0x34b   :  { %3601 = vmatprep.mubr.f32.mxu1 %v9222_v31  ;;  %8187 = vmatpush3.bf16.msra.mxu0 %v8186_v7  ;;  %v8194_v31 = vpack.c.bf16 %v2110_v18, %v2103_v14  ;;  %v8202_v7 = vpack.c.bf16 %v2138_v61, %v2131_v2  ;;  %v8204_v27 = vpack.c.bf16 %v2264_v20, %v2257_v16  ;;  %v2159_v14 = vld [vmem:[#allocation2 + $0x2cd0] sm:$0xff]  ;;  %v4322_v2 = vld [vmem:[%s10959_s5 + $0x20] sm:$0xff]  ;;  %v1520_v16 = vld [vmem:[#allocation2 + $0x18d8] sm:$0xff] }
 0x34c   :  { %4305 = vmatprep.mubr.f32.mxu0 %v9280_v41  ;;  %7741 = vmatprep.subr.bf16.mxu1 %v7740_v26  ;;  %v2145_v26 = vld [vmem:[#allocation2 + $0x2c60] sm:$0xff]  ;;  %v8208_v18 = vpack.c.bf16 %v2278_v62, %v2271_v50  ;;  %v8216_v20 = vpack.c.bf16 %v4322_v2, %v4319_v13  ;;  %v1534_v50 = vld [vmem:[#allocation2 + $0x1948] sm:$0xff]  ;;  %v4324_v62 = vld [vmem:[%s10959_s5 + $0x30] sm:$0xff] }
 0x34d   :  { %8189 = vmatprep.subr.bf16.mxu0 %v8188_v30  ;;  %v1493_v30 = vld [vmem:[#allocation2 + $0x1800] sm:$0xff]  ;;  %v1562_v13 = vld [vmem:[#allocation2 + $0x1a28] sm:$0xff]  ;;  %v4336_v2 = vld [vmem:[%s10959_s5 + $0x90] sm:$0xff] }
 0x34e   :  { %7743 = vmatpush1.bf16.msra.mxu1 %v7742_v33  ;;  %v7758_v33 = vpack.c.bf16 %v1478_v10, %v1471_v24  ;;  %v1535_v10 = vld [vmem:[#allocation2 + $0x1950] sm:$0xff] }
 0x34f   :  { %8191 = vmatpush3.bf16.msra.mxu0 %v8190_v38  ;;  %7745 = vmatprep.subr.bf16.mxu1 %v7744_v25  ;;  %v8206_v38 = vpack.c.bf16 %v2152_v28, %v2145_v26  ;;  %v7760_v25 = vpack.c.bf16 %v1493_v30, %v1486_v53  ;;  %v4325_v26 = vld [vmem:[%s10959_s5 + $0x38] sm:$0xff]  ;;  %v7770_v28 = vpack.c.bf16 %v1520_v16, %v1513_v15  ;;  %v1527_v30 = vld [vmem:[#allocation2 + $0x1910] sm:$0xff]  ;;  %v1577_v15 = vld [vmem:[#allocation2 + $0x1aa0] sm:$0xff] }
 0x350   :  { %8193 = vmatprep.subr.bf16.mxu0 %v8192_v45  ;;  %v7774_v47 = vpack.c.bf16 %v1534_v50, %v1527_v30  ;;  %v4343_v16 = vld [vmem:[%s10959_s5 + $0xc8] sm:$0xff]  ;;  %v1584_v30 = vld [vmem:[#allocation2 + $0x1ad8] sm:$0xff]  ;;  %v1591_v50 = vld [vmem:[#allocation2 + $0x1b10] sm:$0xff] }
 0x352   :  { %7747 = vmatpush1.bf16.msra.mxu1 %v7746_v51 }
 0x353   :  { %8195 = vmatpush3.bf16.msra.mxu0 %v8194_v31  ;;  %7749 = vmatprep.subr.bf16.mxu1 %v7748_v52  ;;  %v2285_v31 = vld [vmem:[#allocation2 + $0x30c0] sm:$0xff]  ;;  %v2292_v52 = vld [vmem:[#allocation2 + $0x30f8] sm:$0xff] }
 0x354   :  { %8197 = vmatprep.subr.bf16.mxu0 %v8196_v58  ;;  %v8210_v58 = vpack.c.bf16 %v2166_v46, %v2159_v14  ;;  %v8212_v63 = vpack.c.bf16 %v2292_v52, %v2285_v31  ;;  %v4334_v46 = vld [vmem:[%s10959_s5 + $0x80] sm:$0xff]  ;;  %v1548_v52 = vld [vmem:[#allocation2 + $0x19b8] sm:$0xff] }
 0x355   :  { %v1541_v31 = vld [vmem:[#allocation2 + $0x1980] sm:$0xff] }
 0x356   :  { %7751 = vmatpush1.bf16.msra.mxu1 %v7750_v1  ;;  %v2180_v1 = vld [vmem:[#allocation2 + $0x2d78] sm:$0xff] }
 0x357   :  { %8199 = vmatpush3.bf16.msra.mxu0 %v8198_v3  ;;  %7753 = vmatprep.subr.bf16.mxu1 %v7752_v5  ;;  %v1514_v3 = vld [vmem:[#allocation2 + $0x18a8] sm:$0xff]  ;;  %v1521_v5 = vld [vmem:[#allocation2 + $0x18e0] sm:$0xff]  ;;  %v8214_v61 = vpack.c.bf16 %v2180_v1, %v2173_v36  ;;  %v4337_v36 = vld [vmem:[%s10959_s5 + $0x98] sm:$0xff]  ;;  %v7778_v1 = vpack.c.bf16 %v1548_v52, %v1541_v31 }
 0x358   :  { %8201 = vmatprep.subr.bf16.mxu0 %v8200_v9  ;;  %v7766_v9 = vpack.c.bf16 %v1506_v44, %v1499_v59  ;;  %v7768_v12 = vpack.c.bf16 %v1521_v5, %v1514_v3  ;;  %v1556_v59 = vld [vmem:[#allocation2 + $0x19f8] sm:$0xff]  ;;  %v1563_v44 = vld [vmem:[#allocation2 + $0x1a30] sm:$0xff]  ;;  %v1605_v31 = vld [vmem:[#allocation2 + $0x1b80] sm:$0xff] }
 0x359   :  { %v7780_v5 = vpack.c.bf16 %v1563_v44, %v1556_v59  ;;  %v4355_v52 = vld [vmem:[%s10959_s5 + $0x128] sm:$0xff]  ;;  %v1597_v44 = vld [vmem:[#allocation2 + $0x1b40] sm:$0xff] }
 0x35a   :  { %7755 = vmatpush1.bf16.msra.mxu1 %v7754_v21  ;;  %v4318_v21 = vld [vmem:[%s10959_s5] sm:$0xff] }
 0x35b   :  { %8203 = vmatpush3.bf16.msra.mxu0 %v8202_v7  ;;  %7757 = vmatprep.subr.bf16.mxu1 %v7756_v22  ;;  %v4321_v7 = vld [vmem:[%s10959_s5 + $0x18] sm:$0xff] }
 0x35c   :  { %v9313_v45 = vpop.f32.mrb[6].mxu1  ;;  %8205 = vmatprep.subr.bf16.mxu0 %v8204_v27  ;;  %v1528_v22 = vld [vmem:[#allocation2 + $0x1918] sm:$0xff]  ;;  %v4328_v27 = vld [vmem:[%s10959_s5 + $0x50] sm:$0xff]  ;;  %v8218_v53 = vpack.c.bf16 %v4321_v7, %v4318_v21 }
 0x35d   :  { %v9315_v49 = vpop.f32.mrb[8].mxu0  ;;  %v2824_v51 = vpop.f32.mrb[7].mxu1 }
 0x35e   :  { %v9322_v17 = vpop.f32.mrb[9].mxu0  ;;  %7759 = vmatpush1.bf16.msra.mxu1 %v7758_v33  ;;  %v9338_v24 = vadd.f32 %v2824_v51, %v2302_v6  ;;  %v7772_v33 = vpack.c.bf16 %v1535_v10, %v1528_v22  ;;  %v7776_v51 = vpack.c.bf16 %v1549_v42, %v1542_v40  ;;  %v1555_v6 = vld [vmem:[#allocation2 + $0x19f0] sm:$0xff]  ;;  %v1569_v10 = vld [vmem:[#allocation2 + $0x1a60] sm:$0xff]  ;;  %v7788_v40 = vpack.c.bf16 %v1591_v50, %v1584_v30 }
 0x35f   :  { %8207 = vmatpush3.bf16.msra.mxu0 %v8206_v38  ;;  %7761 = vmatprep.subr.bf16.mxu1 %v7760_v25  ;;  %v8220_v38 = vpack.c.bf16 %v4328_v27, %v4325_v26  ;;  %v4327_v25 = vld [vmem:[%s10959_s5 + $0x48] sm:$0xff]  ;;  %v7782_v21 = vpack.c.bf16 %v1562_v13, %v1555_v6  ;;  %v1576_v26 = vld [vmem:[#allocation2 + $0x1a98] sm:$0xff]  ;;  %v4342_v27 = vld [vmem:[%s10959_s5 + $0xc0] sm:$0xff] }
 0x360   :  { %8209 = vmatprep.subr.bf16.mxu0 %v8208_v18  ;;  %v4312_v14 = vmax.f32 %v9338_v24, 0.0  ;;  %v4331_v18 = vld [vmem:[%s10959_s5 + $0x68] sm:$0xff]  ;;  %v8222_v48 = vpack.c.bf16 %v4327_v25, %v4324_v62  ;;  %v4349_v62 = vld [vmem:[%s10959_s5 + $0xf8] sm:$0xff]  ;;  %v1583_v42 = vld [vmem:[#allocation2 + $0x1ad0] sm:$0xff] }
 0x361   :  { %v1619_v6 = vld [vmem:[#allocation2 + $0x1bf0] sm:$0xff]  ;;  %v4370_v30 = vld [vmem:[%s10959_s5 + $0x1a0] sm:$0xff] }
 0x362   :  { %7763 = vmatpush1.bf16.msra.mxu1 %v7762_v57  ;;  %v4330_v57 = vld [vmem:[%s10959_s5 + $0x60] sm:$0xff] }
 0x363   :  { %8211 = vmatpush3.bf16.msra.mxu0 %v8210_v58  ;;  %7765 = vmatprep.subr.bf16.mxu1 %v7764_v55  ;;  %v8224_v58 = vpack.c.bf16 %v4334_v46, %v4331_v18  ;;  %v4333_v55 = vld [vmem:[%s10959_s5 + $0x78] sm:$0xff]  ;;  %v1590_v18 = vld [vmem:[#allocation2 + $0x1b08] sm:$0xff]  ;;  %v4348_v46 = vld [vmem:[%s10959_s5 + $0xf0] sm:$0xff] }
 0x364   :  { %8213 = vmatprep.subr.bf16.mxu0 %v8212_v63  ;;  %v4340_v63 = vld [vmem:[%s10959_s5 + $0xb0] sm:$0xff]  ;;  %v8226_v3 = vpack.c.bf16 %v4333_v55, %v4330_v57  ;;  %v4358_v57 = vld [vmem:[%s10959_s5 + $0x140] sm:$0xff] }
 0x366   :  { %7767 = vmatpush1.bf16.msra.mxu1 %v7766_v9  ;;  %v8228_v9 = vpack.c.bf16 %v4340_v63, %v4337_v36  ;;  %v1604_v36 = vld [vmem:[#allocation2 + $0x1b78] sm:$0xff]  ;;  %v4354_v63 = vld [vmem:[%s10959_s5 + $0x120] sm:$0xff] }
 0x367   :  { %8215 = vmatpush3.bf16.msra.mxu0 %v8214_v61  ;;  %7769 = vmatprep.subr.bf16.mxu1 %v7768_v12  ;;  %v4339_v61 = vld [vmem:[%s10959_s5 + $0xa8] sm:$0xff] }
 0x368   :  { %8217 = vmatprep.subr.bf16.mxu0 %v8216_v20  ;;  %v1570_v12 = vld [vmem:[#allocation2 + $0x1a68] sm:$0xff]  ;;  %v4346_v20 = vld [vmem:[%s10959_s5 + $0xe0] sm:$0xff]  ;;  %v8230_v7 = vpack.c.bf16 %v4339_v61, %v4336_v2  ;;  %v4361_v2 = vld [vmem:[%s10959_s5 + $0x158] sm:$0xff] }
 0x369   :  { %v7784_v22 = vpack.c.bf16 %v1577_v15, %v1570_v12  ;;  %v7794_v12 = vpack.c.bf16 %v1604_v36, %v1597_v44  ;;  %v4375_v36 = vld [vmem:[%s10959_s5 + $0x1c8] sm:$0xff] }
 0x36a   :  { %4306 = vmatmul.mubr.f32.vlgmr.msra.gmra.mrb[22].mxu0 %v9289_v4  ;;  %7771 = vmatpush1.bf16.msra.mxu1 %v7770_v28  ;;  %v8232_v28 = vpack.c.bf16 %v4346_v20, %v4343_v16 }
 0x36b   :  { %8219 = vmatpush1.bf16.msra.mxu0 %v8218_v53  ;;  %4735 = vmatprep.mubr.f32.mxu0 %v4312_v14  ;;  %v4345_v53 = vld [vmem:[%s10959_s5 + $0xd8] sm:$0xff] }
 0x36c   :  { %7773 = vmatprep.subr.bf16.mxu1 %v7772_v33  ;;  %8221 = vmatprep.subr.bf16.mxu0 %v8220_v38  ;;  %v4352_v33 = vld [vmem:[%s10959_s5 + $0x110] sm:$0xff]  ;;  %v7786_v38 = vpack.c.bf16 %v1576_v26, %v1569_v10  ;;  %v8234_v25 = vpack.c.bf16 %v4345_v53, %v4342_v27  ;;  %v4363_v26 = vld [vmem:[%s10959_s5 + $0x168] sm:$0xff] }
 0x36d   :  { %v1626_v27 = vld [vmem:[#allocation2 + $0x1c28] sm:$0xff] }
 0x36e   :  { %7775 = vmatpush1.bf16.msra.mxu1 %v7774_v47  ;;  %v8236_v47 = vpack.c.bf16 %v4352_v33, %v4349_v62  ;;  %v4367_v53 = vld [vmem:[%s10959_s5 + $0x188] sm:$0xff] }
 0x36f   :  { %8223 = vmatpush1.bf16.msra.mxu0 %v8222_v48  ;;  %7777 = vmatprep.subr.bf16.mxu1 %v7776_v51  ;;  %v4351_v48 = vld [vmem:[%s10959_s5 + $0x108] sm:$0xff] }
 0x370   :  { %8225 = vmatprep.subr.bf16.mxu0 %v8224_v58  ;;  %v1598_v51 = vld [vmem:[#allocation2 + $0x1b48] sm:$0xff]  ;;  %v7790_v58 = vpack.c.bf16 %v1590_v18, %v1583_v42  ;;  %v8238_v55 = vpack.c.bf16 %v4351_v48, %v4348_v46  ;;  %v8248_v42 = vpack.c.bf16 %v4370_v30, %v4367_v53  ;;  %v4369_v18 = vld [vmem:[%s10959_s5 + $0x198] sm:$0xff]  ;;  %v4384_v53 = vld [vmem:[%s10959_s5 + $0x210] sm:$0xff] }
 0x371   :  { %v7792_v59 = vpack.c.bf16 %v1605_v31, %v1598_v51  ;;  %v1640_v46 = vld [vmem:[#allocation2 + $0x1c98] sm:$0xff]  ;;  %v4376_v51 = vld [vmem:[%s10959_s5 + $0x1d0] sm:$0xff] }
 0x372   :  { %7779 = vmatpush1.bf16.msra.mxu1 %v7778_v1  ;;  %v8240_v1 = vpack.c.bf16 %v4358_v57, %v4355_v52  ;;  %v4373_v48 = vld [vmem:[%s10959_s5 + $0x1b8] sm:$0xff] }
 0x373   :  { %8227 = vmatpush1.bf16.msra.mxu0 %v8226_v3  ;;  %7781 = vmatprep.subr.bf16.mxu1 %v7780_v5  ;;  %v4357_v3 = vld [vmem:[%s10959_s5 + $0x138] sm:$0xff]  ;;  %v8252_v44 = vpack.c.bf16 %v4376_v51, %v4373_v48  ;;  %v4390_v48 = vld [vmem:[%s10959_s5 + $0x240] sm:$0xff] }
 0x374   :  { %8229 = vmatprep.subr.bf16.mxu0 %v8228_v9  ;;  %v1612_v5 = vld [vmem:[#allocation2 + $0x1bb8] sm:$0xff]  ;;  %v4364_v9 = vld [vmem:[%s10959_s5 + $0x170] sm:$0xff]  ;;  %v8242_v16 = vpack.c.bf16 %v4357_v3, %v4354_v63  ;;  %v1654_v63 = vld [vmem:[#allocation2 + $0x1d08] sm:$0xff] }
 0x375   :  { %v7796_v20 = vpack.c.bf16 %v1619_v6, %v1612_v5  ;;  %v8244_v10 = vpack.c.bf16 %v4364_v9, %v4361_v2  ;;  %v4379_v3 = vld [vmem:[%s10959_s5 + $0x1e8] sm:$0xff]  ;;  %v4382_v5 = vld [vmem:[%s10959_s5 + $0x200] sm:$0xff] }
 0x376   :  { %7783 = vmatpush1.bf16.msra.mxu1 %v7782_v21  ;;  %v1611_v21 = vld [vmem:[#allocation2 + $0x1bb0] sm:$0xff]  ;;  %v1653_v9 = vld [vmem:[#allocation2 + $0x1d00] sm:$0xff] }
 0x377   :  { %8231 = vmatpush1.bf16.msra.mxu0 %v8230_v7  ;;  %7785 = vmatprep.subr.bf16.mxu1 %v7784_v22  ;;  %v1618_v7 = vld [vmem:[#allocation2 + $0x1be8] sm:$0xff]  ;;  %v4360_v22 = vld [vmem:[%s10959_s5 + $0x150] sm:$0xff] }
 0x378   :  { %8233 = vmatprep.subr.bf16.mxu0 %v8232_v28  ;;  %v1633_v28 = vld [vmem:[#allocation2 + $0x1c60] sm:$0xff]  ;;  %v7798_v50 = vpack.c.bf16 %v1618_v7, %v1611_v21  ;;  %v8246_v62 = vpack.c.bf16 %v4363_v26, %v4360_v22  ;;  %v1675_v21 = vld [vmem:[#allocation2 + $0x1db0] sm:$0xff] }
 0x379   :  { %v7800_v33 = vpack.c.bf16 %v1633_v28, %v1626_v27  ;;  %v4388_v7 = vld [vmem:[%s10959_s5 + $0x230] sm:$0xff]  ;;  %v1674_v28 = vld [vmem:[#allocation2 + $0x1da8] sm:$0xff] }
 0x37a   :  { %7787 = vmatpush1.bf16.msra.mxu1 %v7786_v38  ;;  %v1625_v38 = vld [vmem:[#allocation2 + $0x1c20] sm:$0xff]  ;;  %v1667_v27 = vld [vmem:[#allocation2 + $0x1d70] sm:$0xff] }
 0x37b   :  { %8235 = vmatpush1.bf16.msra.mxu0 %v8234_v25  ;;  %7789 = vmatprep.subr.bf16.mxu1 %v7788_v40  ;;  %v1632_v25 = vld [vmem:[#allocation2 + $0x1c58] sm:$0xff]  ;;  %v4366_v40 = vld [vmem:[%s10959_s5 + $0x180] sm:$0xff] }
 0x37c   :  { %8237 = vmatprep.subr.bf16.mxu0 %v8236_v47  ;;  %v1647_v47 = vld [vmem:[#allocation2 + $0x1cd0] sm:$0xff]  ;;  %v7802_v31 = vpack.c.bf16 %v1632_v25, %v1625_v38  ;;  %v8250_v52 = vpack.c.bf16 %v4369_v18, %v4366_v40  ;;  %v4391_v38 = vld [vmem:[%s10959_s5 + $0x248] sm:$0xff]  ;;  %v4394_v25 = vld [vmem:[%s10959_s5 + $0x260] sm:$0xff]  ;;  %v7814_v40 = vpack.c.bf16 %v1674_v28, %v1667_v27 }
 0x37d   :  { %v6081_v13 = vpop.f32.mrb[10].mxu0  ;;  %v7804_v57 = vpack.c.bf16 %v1647_v47, %v1640_v46  ;;  %v1681_v46 = vld [vmem:[#allocation2 + $0x1de0] sm:$0xff]  ;;  %v1688_v47 = vld [vmem:[#allocation2 + $0x1e18] sm:$0xff]  ;;  %v8264_v51 = vpack.c.bf16 %v4394_v25, %v4391_v38  ;;  %v1731_v27 = vld [vmem:[#allocation2 + $0x1f70] sm:$0xff] }
 0x37e   :  { %v6082_v61 = vpop.f32.mrb[11].mxu0  ;;  %7791 = vmatpush1.bf16.msra.mxu1 %v7790_v58  ;;  %v1639_v58 = vld [vmem:[#allocation2 + $0x1c90] sm:$0xff] }
 0x37f   :  { %v9422_v15 = vadd.f32 %v6082_v61, %v6081_v13  ;;  %8239 = vmatpush1.bf16.msra.mxu0 %v8238_v55  ;;  %7793 = vmatprep.subr.bf16.mxu1 %v7792_v59  ;;  %v1646_v55 = vld [vmem:[#allocation2 + $0x1cc8] sm:$0xff]  ;;  %v4372_v59 = vld [vmem:[%s10959_s5 + $0x1b0] sm:$0xff]  ;;  %v1660_v61 = vld [vmem:[#allocation2 + $0x1d38] sm:$0xff] }
 0x380   :  { %8241 = vmatprep.subr.bf16.mxu0 %v8240_v1  ;;  %v1661_v1 = vld [vmem:[#allocation2 + $0x1d40] sm:$0xff]  ;;  %v7806_v6 = vpack.c.bf16 %v1646_v55, %v1639_v58  ;;  %v8254_v13 = vpack.c.bf16 %v4375_v36, %v4372_v59  ;;  %v7810_v22 = vpack.c.bf16 %v1660_v61, %v1653_v9  ;;  %v4397_v58 = vld [vmem:[%s10959_s5 + $0x278] sm:$0xff]  ;;  %v4400_v55 = vld [vmem:[%s10959_s5 + $0x290] sm:$0xff]  ;;  %v7818_v59 = vpack.c.bf16 %v1688_v47, %v1681_v46 }
 0x381   :  { %v7808_v2 = vpack.c.bf16 %v1661_v1, %v1654_v63  ;;  %v1695_v63 = vld [vmem:[#allocation2 + $0x1e50] sm:$0xff]  ;;  %v1702_v1 = vld [vmem:[#allocation2 + $0x1e88] sm:$0xff]  ;;  %v4406_v61 = vld [vmem:[%s10959_s5 + $0x2c0] sm:$0xff] }
 0x382   :  { %7795 = vmatpush1.bf16.msra.mxu1 %v7794_v12  ;;  %v8256_v12 = vpack.c.bf16 %v4382_v5, %v4379_v3  ;;  %v4396_v3 = vld [vmem:[%s10959_s5 + $0x270] sm:$0xff]  ;;  %v8268_v5 = vpack.c.bf16 %v4400_v55, %v4397_v58  ;;  %v4403_v9 = vld [vmem:[%s10959_s5 + $0x2a8] sm:$0xff] }
 0x383   :  { %8243 = vmatpush1.bf16.msra.mxu0 %v8242_v16  ;;  %7797 = vmatprep.subr.bf16.mxu1 %v7796_v20  ;;  %v4381_v16 = vld [vmem:[%s10959_s5 + $0x1f8] sm:$0xff]  ;;  %v4412_v28 = vld [vmem:[%s10959_s5 + $0x2f0] sm:$0xff]  ;;  %v4411_v47 = vld [vmem:[%s10959_s5 + $0x2e8] sm:$0xff] }
 0x384   :  { %8245 = vmatprep.subr.bf16.mxu0 %v8244_v10  ;;  %v1668_v20 = vld [vmem:[#allocation2 + $0x1d78] sm:$0xff]  ;;  %v1723_v25 = vld [vmem:[#allocation2 + $0x1f30] sm:$0xff] }
 0x385   :  { %v7812_v26 = vpack.c.bf16 %v1675_v21, %v1668_v20 }
 0x386   :  { %7799 = vmatpush1.bf16.msra.mxu1 %v7798_v50  ;;  %v4387_v50 = vld [vmem:[%s10959_s5 + $0x228] sm:$0xff] }
 0x387   :  { %8247 = vmatpush1.bf16.msra.mxu0 %v8246_v62  ;;  %7801 = vmatprep.subr.bf16.mxu1 %v7800_v33  ;;  %v1682_v62 = vld [vmem:[#allocation2 + $0x1de8] sm:$0xff]  ;;  %v1689_v33 = vld [vmem:[#allocation2 + $0x1e20] sm:$0xff] }
 0x388   :  { %8249 = vmatprep.subr.bf16.mxu0 %v8248_v42  ;;  %v8262_v42 = vpack.c.bf16 %v4387_v50, %v4384_v53  ;;  %v7816_v18 = vpack.c.bf16 %v1689_v33, %v1682_v62 }
 0x389   :  { %3602 = vmatmul.mubr.f32.vlgmr.msra.gmra.mrb[8].mxu1 %v9241_v60  ;;  %v4378_v60 = vld [vmem:[%s10959_s5 + $0x1e0] sm:$0xff] }
 0x38a   :  { %7803 = vmatpush1.bf16.msra.mxu1 %v7802_v31  ;;  %3672 = vmatprep.mubr.f32.mxu1 %v9243_v8  ;;  %v4385_v8 = vld [vmem:[%s10959_s5 + $0x218] sm:$0xff]  ;;  %v8258_v10 = vpack.c.bf16 %v4381_v16, %v4378_v60  ;;  %v7822_v60 = vpack.c.bf16 %v1702_v1, %v1695_v63  ;;  %v2322_v16 = vrot.slane %v9320_v56, %v166_v54  ;;  %v4414_v63 = vld [vmem:[%s10959_s5 + $0x300] sm:$0xff] }
 0x38b   :  { %8251 = vmatpush1.bf16.msra.mxu0 %v8250_v52  ;;  %7805 = vmatprep.subr.bf16.mxu1 %v7804_v57  ;;  %v8260_v30 = vpack.c.bf16 %v4388_v7, %v4385_v8  ;;  %v4393_v31 = vld [vmem:[%s10959_s5 + $0x258] sm:$0xff]  ;;  %v1703_v57 = vld [vmem:[#allocation2 + $0x1e90] sm:$0xff]  ;;  %v4402_v7 = vld [vmem:[%s10959_s5 + $0x2a0] sm:$0xff] }
 0x38c   :  { %8253 = vmatprep.subr.bf16.mxu0 %v8252_v44  ;;  %v1696_v52 = vld [vmem:[#allocation2 + $0x1e58] sm:$0xff]  ;;  %v8266_v44 = vpack.c.bf16 %v4393_v31, %v4390_v48  ;;  %v3888_v62 = vadd.f32 %v9422_v15, %v2322_v16  ;;  %v1738_v15 = vld [vmem:[#allocation2 + $0x1fa8] sm:$0xff]  ;;  %v1745_v48 = vld [vmem:[#allocation2 + $0x1fe0] sm:$0xff] }
 0x38d   :  { %v7820_v36 = vpack.c.bf16 %v1703_v57, %v1696_v52  ;;  %v1716_v8 = vld [vmem:[#allocation2 + $0x1ef8] sm:$0xff]  ;;  %v4415_v52 = vld [vmem:[%s10959_s5 + $0x308] sm:$0xff]  ;;  %v4418_v57 = vld [vmem:[%s10959_s5 + $0x320] sm:$0xff] }
 0x38e   :  { %7807 = vmatpush1.bf16.msra.mxu1 %v7806_v6  ;;  %v4399_v6 = vld [vmem:[%s10959_s5 + $0x288] sm:$0xff]  ;;  %v4409_v54 = vld [vmem:[%s10959_s5 + $0x2d8] sm:$0xff] }
 0x38f   :  { %8255 = vmatpush1.bf16.msra.mxu0 %v8254_v13  ;;  %7809 = vmatprep.subr.bf16.mxu1 %v7808_v2  ;;  %v1710_v13 = vld [vmem:[#allocation2 + $0x1ec8] sm:$0xff]  ;;  %v1717_v2 = vld [vmem:[#allocation2 + $0x1f00] sm:$0xff]  ;;  %v8270_v20 = vpack.c.bf16 %v4399_v6, %v4396_v3  ;;  %v8276_v46 = vpack.c.bf16 %v4412_v28, %v4409_v54  ;;  %v4417_v1 = vld [vmem:[%s10959_s5 + $0x318] sm:$0xff] }
 0x390   :  { %8257 = vmatprep.subr.bf16.mxu0 %v8256_v12  ;;  %v1709_v12 = vld [vmem:[#allocation2 + $0x1ec0] sm:$0xff]  ;;  %v7824_v21 = vpack.c.bf16 %v1717_v2, %v1710_v13  ;;  %v1752_v3 = vld [vmem:[#allocation2 + $0x2018] sm:$0xff]  ;;  %v1759_v6 = vld [vmem:[#allocation2 + $0x2050] sm:$0xff] }
 0x391   :  { %v4424_v13 = vld [vmem:[%s10959_s5 + $0x350] sm:$0xff]  ;;  %v7836_v16 = vpack.c.bf16 %v1759_v6, %v1752_v3  ;;  %v1765_v28 = vld [vmem:[#allocation2 + $0x2080] sm:$0xff] }
 0x392   :  { %7811 = vmatpush1.bf16.msra.mxu1 %v7810_v22  ;;  %v4405_v22 = vld [vmem:[%s10959_s5 + $0x2b8] sm:$0xff]  ;;  %v4438_v3 = vld [vmem:[%s10959_s5 + $0x3c0] sm:$0xff] }
 0x393   :  { %8259 = vmatpush1.bf16.msra.mxu0 %v8258_v10  ;;  %7813 = vmatprep.subr.bf16.mxu1 %v7812_v26  ;;  %v8272_v10 = vpack.c.bf16 %v4406_v61, %v4403_v9  ;;  %v1724_v26 = vld [vmem:[#allocation2 + $0x1f38] sm:$0xff]  ;;  %v8274_v50 = vpack.c.bf16 %v4405_v22, %v4402_v7  ;;  %v8282_v9 = vpack.c.bf16 %v4417_v1, %v4414_v63  ;;  %v1751_v61 = vld [vmem:[#allocation2 + $0x2010] sm:$0xff]  ;;  %v1773_v7 = vld [vmem:[#allocation2 + $0x20c0] sm:$0xff] }
 0x394   :  { %8261 = vmatprep.subr.bf16.mxu0 %v8260_v30  ;;  %v7826_v30 = vpack.c.bf16 %v1716_v8, %v1709_v12  ;;  %v7828_v38 = vpack.c.bf16 %v1731_v27, %v1724_v26  ;;  %v1766_v8 = vld [vmem:[#allocation2 + $0x2088] sm:$0xff]  ;;  %v4430_v26 = vld [vmem:[%s10959_s5 + $0x380] sm:$0xff]  ;;  %v1800_v1 = vld [vmem:[#allocation2 + $0x2198] sm:$0xff] }
 0x395   :  { %v7840_v54 = vpack.c.bf16 %v1773_v7, %v1766_v8  ;;  %v1793_v63 = vld [vmem:[#allocation2 + $0x2160] sm:$0xff]  ;;  %v4444_v8 = vld [vmem:[%s10959_s5 + $0x3f0] sm:$0xff] }
 0x396   :  { %7815 = vmatpush1.bf16.msra.mxu1 %v7814_v40  ;;  %v1730_v40 = vld [vmem:[#allocation2 + $0x1f68] sm:$0xff] }
 0x397   :  { %8263 = vmatpush1.bf16.msra.mxu0 %v8262_v42  ;;  %7817 = vmatprep.subr.bf16.mxu1 %v7816_v18  ;;  %v4408_v42 = vld [vmem:[%s10959_s5 + $0x2d0] sm:$0xff]  ;;  %v2298_v18 = vrot.slane %v9320_v56, %v9137_v35  ;;  %v7830_v58 = vpack.c.bf16 %v1730_v40, %v1723_v25  ;;  %v4433_v25 = vld [vmem:[%s10959_s5 + $0x398] sm:$0xff] }
 0x398   :  { %8265 = vmatprep.subr.bf16.mxu0 %v8264_v51  ;;  %v2310_v51 = vrot.slane %v9320_v56, %v9150_v39  ;;  %v8278_v55 = vpack.c.bf16 %v4411_v47, %v4408_v42  ;;  %v8280_v56 = vpack.c.bf16 %v4418_v57, %v4415_v52  ;;  %v4436_v40 = vld [vmem:[%s10959_s5 + $0x3b0] sm:$0xff]  ;;  %v4435_v52 = vld [vmem:[%s10959_s5 + $0x3a8] sm:$0xff] }
 0x399   :  { %v9545_v39 = vadd.f32 %v9313_v45, %v2298_v18  ;;  %v4421_v45 = vld [vmem:[%s10959_s5 + $0x338] sm:$0xff]  ;;  %v1779_v47 = vld [vmem:[#allocation2 + $0x20f0] sm:$0xff]  ;;  %v1794_v57 = vld [vmem:[#allocation2 + $0x2168] sm:$0xff] }
 0x39a   :  { %7819 = vmatpush1.bf16.msra.mxu1 %v7818_v59  ;;  %v7832_v59 = vpack.c.bf16 %v1745_v48, %v1738_v15  ;;  %v1786_v15 = vld [vmem:[#allocation2 + $0x2128] sm:$0xff]  ;;  %v4432_v48 = vld [vmem:[%s10959_s5 + $0x390] sm:$0xff] }
 0x39b   :  { %8267 = vmatpush1.bf16.msra.mxu0 %v8266_v44  ;;  %7821 = vmatprep.subr.bf16.mxu1 %v7820_v36  ;;  %v1737_v44 = vld [vmem:[#allocation2 + $0x1fa0] sm:$0xff]  ;;  %v1744_v36 = vld [vmem:[#allocation2 + $0x1fd8] sm:$0xff]  ;;  %v4311_v12 = vmax.f32 %v9545_v39, 0.0 }
 0x39c   :  { %8269 = vmatprep.subr.bf16.mxu0 %v8268_v5  ;;  %v9554_v5 = vadd.f32 %v9322_v17, %v2310_v51  ;;  %v7834_v2 = vpack.c.bf16 %v1744_v36, %v1737_v44  ;;  %v4420_v17 = vld [vmem:[%s10959_s5 + $0x330] sm:$0xff]  ;;  %v8292_v51 = vpack.c.bf16 %v4436_v40, %v4433_v25  ;;  %v7846_v44 = vpack.c.bf16 %v1786_v15, %v1779_v47  ;;  %v4453_v25 = vld [vmem:[%s10959_s5 + $0x438] sm:$0xff] }
 0x39d   :  { %v6116_v34 = vpop.f32.mrb[12].mxu0  ;;  %v8294_v36 = vpack.c.bf16 %v4435_v52, %v4432_v48  ;;  %v1836_v40 = vld [vmem:[#allocation2 + $0x22b8] sm:$0xff]  ;;  %v4460_v47 = vld [vmem:[%s10959_s5 + $0x470] sm:$0xff] }
 0x39e   :  { %v6117_v53 = vpop.f32.mrb[13].mxu0  ;;  %7823 = vmatpush1.bf16.msra.mxu1 %v7822_v60  ;;  %v1758_v60 = vld [vmem:[#allocation2 + $0x2048] sm:$0xff]  ;;  %v4314_v22 = vmax.f32 %v9554_v5, 0.0  ;;  %v4581_v39 = vld [vmem:[%s10959_s5 + $0x838] sm:$0xff] }
 0x39f   :  { %v6118_v33 = vadd.f32 %v6117_v53, %v6116_v34  ;;  %8271 = vmatpush1.bf16.msra.mxu0 %v8270_v20  ;;  %7825 = vmatprep.subr.bf16.mxu1 %v7824_v21  ;;  %v8284_v20 = vpack.c.bf16 %v4424_v13, %v4421_v45  ;;  %v4423_v21 = vld [vmem:[%s10959_s5 + $0x348] sm:$0xff]  ;;  %v7838_v27 = vpack.c.bf16 %v1758_v60, %v1751_v61  ;;  %v1772_v53 = vld [vmem:[#allocation2 + $0x20b8] sm:$0xff]  ;;  %v4448_v61 = vld [vmem:[%s10959_s5 + $0x410] sm:$0xff] }
 0x3a0   :  { %8273 = vmatprep.subr.bf16.mxu0 %v8272_v10  ;;  %v4427_v10 = vld [vmem:[%s10959_s5 + $0x368] sm:$0xff]  ;;  %v8286_v34 = vpack.c.bf16 %v4423_v21, %v4420_v17  ;;  %v7842_v42 = vpack.c.bf16 %v1772_v53, %v1765_v28  ;;  %v4441_v45 = vld [vmem:[%s10959_s5 + $0x3d8] sm:$0xff]  ;;  %v7850_v60 = vpack.c.bf16 %v1800_v1, %v1793_v63  ;;  %v1857_v63 = vld [vmem:[#allocation2 + $0x2360] sm:$0xff] }
 0x3a1   :  { %v9536_v31 = vadd.f32 %v6118_v33, %v3888_v62  ;;  %v4429_v62 = vld [vmem:[%s10959_s5 + $0x378] sm:$0xff]  ;;  %v8298_v17 = vpack.c.bf16 %v4441_v45, %v4438_v3  ;;  %v1814_v21 = vld [vmem:[#allocation2 + $0x2208] sm:$0xff] }
 0x3a2   :  { %7827 = vmatpush1.bf16.msra.mxu1 %v7826_v30  ;;  %v4426_v30 = vld [vmem:[%s10959_s5 + $0x360] sm:$0xff]  ;;  %v1780_v33 = vld [vmem:[#allocation2 + $0x20f8] sm:$0xff]  ;;  %v4463_v3 = vld [vmem:[%s10959_s5 + $0x488] sm:$0xff] }
 0x3a3   :  { %8275 = vmatpush1.bf16.msra.mxu0 %v8274_v50  ;;  %7829 = vmatprep.subr.bf16.mxu1 %v7828_v38  ;;  %v8288_v50 = vpack.c.bf16 %v4430_v26, %v4427_v10  ;;  %v1787_v38 = vld [vmem:[#allocation2 + $0x2130] sm:$0xff]  ;;  %v8290_v18 = vpack.c.bf16 %v4429_v62, %v4426_v30  ;;  %v1808_v13 = vld [vmem:[#allocation2 + $0x21d8] sm:$0xff]  ;;  %v4447_v10 = vld [vmem:[%s10959_s5 + $0x408] sm:$0xff] }
 0x3a4   :  { %8277 = vmatprep.subr.bf16.mxu0 %v8276_v46  ;;  %v7844_v46 = vpack.c.bf16 %v1787_v38, %v1780_v33  ;;  %v1822_v26 = vld [vmem:[#allocation2 + $0x2248] sm:$0xff]  ;;  %v8302_v53 = vpack.c.bf16 %v4447_v10, %v4444_v8  ;;  %v1828_v62 = vld [vmem:[#allocation2 + $0x2278] sm:$0xff]  ;;  %v4450_v33 = vld [vmem:[%s10959_s5 + $0x420] sm:$0xff] }
 0x3a5   :  { %v8306_v52 = vpack.c.bf16 %v4453_v25, %v4450_v33  ;;  %v4472_v8 = vld [vmem:[%s10959_s5 + $0x4d0] sm:$0xff]  ;;  %v4478_v33 = vld [vmem:[%s10959_s5 + $0x500] sm:$0xff]  ;;  %v4485_v5 = vld [vmem:[%s10959_s5 + $0x538] sm:$0xff] }
 0x3a6   :  { %7831 = vmatpush1.bf16.msra.mxu1 %v7830_v58  ;;  %v1801_v58 = vld [vmem:[#allocation2 + $0x21a0] sm:$0xff] }
 0x3a7   :  { %8279 = vmatpush1.bf16.msra.mxu0 %v8278_v55  ;;  %7833 = vmatprep.subr.bf16.mxu1 %v7832_v59  ;;  %v4439_v55 = vld [vmem:[%s10959_s5 + $0x3c8] sm:$0xff]  ;;  %v4442_v59 = vld [vmem:[%s10959_s5 + $0x3e0] sm:$0xff] }
 0x3a8   :  { %8281 = vmatprep.subr.bf16.mxu0 %v8280_v56  ;;  %v7848_v56 = vpack.c.bf16 %v1801_v58, %v1794_v57  ;;  %v8296_v6 = vpack.c.bf16 %v4442_v59, %v4439_v55  ;;  %v1835_v58 = vld [vmem:[#allocation2 + $0x22b0] sm:$0xff]  ;;  %v1842_v55 = vld [vmem:[#allocation2 + $0x22e8] sm:$0xff] }
 0x3a9   :  { %v4456_v59 = vld [vmem:[%s10959_s5 + $0x450] sm:$0xff]  ;;  %v7862_v45 = vpack.c.bf16 %v1842_v55, %v1835_v58 }
 0x3aa   :  { %4736 = vmatmul.mubr.f32.vlgmr.msra.gmra.mrb[24].mxu0 %v4311_v12  ;;  %7835 = vmatpush1.bf16.msra.mxu1 %v7834_v2  ;;  %v1815_v2 = vld [vmem:[#allocation2 + $0x2210] sm:$0xff] }
 0x3ab   :  { %8283 = vmatpush1.bf16.msra.mxu0 %v8282_v9  ;;  %4806 = vmatprep.mubr.f32.mxu0 %v4314_v22  ;;  %v4445_v9 = vld [vmem:[%s10959_s5 + $0x3f8] sm:$0xff]  ;;  %v1891_v55 = vld [vmem:[#allocation2 + $0x2470] sm:$0xff] }
 0x3ac   :  { %7837 = vmatprep.subr.bf16.mxu1 %v7836_v16  ;;  %8285 = vmatprep.subr.bf16.mxu0 %v8284_v20  ;;  %v7852_v16 = vpack.c.bf16 %v1815_v2, %v1808_v13  ;;  %v1807_v20 = vld [vmem:[#allocation2 + $0x21d0] sm:$0xff]  ;;  %v8300_v7 = vpack.c.bf16 %v4448_v61, %v4445_v9  ;;  %v1849_v9 = vld [vmem:[#allocation2 + $0x2320] sm:$0xff]  ;;  %v1856_v61 = vld [vmem:[#allocation2 + $0x2358] sm:$0xff] }
 0x3ad   :  { %v7854_v28 = vpack.c.bf16 %v1814_v21, %v1807_v20  ;;  %v1871_v20 = vld [vmem:[#allocation2 + $0x23d0] sm:$0xff]  ;;  %v4469_v21 = vld [vmem:[%s10959_s5 + $0x4b8] sm:$0xff] }
 0x3ae   :  { %7839 = vmatpush1.bf16.msra.mxu1 %v7838_v27  ;;  %v1829_v27 = vld [vmem:[#allocation2 + $0x2280] sm:$0xff] }
 0x3af   :  { %8287 = vmatpush1.bf16.msra.mxu0 %v8286_v34  ;;  %7841 = vmatprep.subr.bf16.mxu1 %v7840_v54  ;;  %v4451_v34 = vld [vmem:[%s10959_s5 + $0x428] sm:$0xff]  ;;  %v4454_v54 = vld [vmem:[%s10959_s5 + $0x440] sm:$0xff]  ;;  %v7856_v30 = vpack.c.bf16 %v1829_v27, %v1822_v26  ;;  %v1863_v27 = vld [vmem:[#allocation2 + $0x2390] sm:$0xff] }
 0x3b0   :  { %8289 = vmatprep.subr.bf16.mxu0 %v8288_v50  ;;  %v1821_v50 = vld [vmem:[#allocation2 + $0x2240] sm:$0xff]  ;;  %v8304_v38 = vpack.c.bf16 %v4454_v54, %v4451_v34  ;;  %v1870_v34 = vld [vmem:[#allocation2 + $0x23c8] sm:$0xff]  ;;  %v4468_v54 = vld [vmem:[%s10959_s5 + $0x4b0] sm:$0xff] }
 0x3b1   :  { %v7858_v48 = vpack.c.bf16 %v1828_v62, %v1821_v50  ;;  %v1885_v50 = vld [vmem:[#allocation2 + $0x2440] sm:$0xff]  ;;  %v4475_v62 = vld [vmem:[%s10959_s5 + $0x4e8] sm:$0xff] }
 0x3b2   :  { %7843 = vmatpush1.bf16.msra.mxu1 %v7842_v42  ;;  %v1843_v42 = vld [vmem:[#allocation2 + $0x22f0] sm:$0xff] }
 0x3b3   :  { %8291 = vmatpush1.bf16.msra.mxu0 %v8290_v18  ;;  %7845 = vmatprep.subr.bf16.mxu1 %v7844_v46  ;;  %v4457_v46 = vld [vmem:[%s10959_s5 + $0x458] sm:$0xff]  ;;  %v7860_v57 = vpack.c.bf16 %v1843_v42, %v1836_v40  ;;  %v1877_v42 = vld [vmem:[#allocation2 + $0x2400] sm:$0xff] }
 0x3b4   :  { %8293 = vmatprep.subr.bf16.mxu0 %v8292_v51 }
 0x3b6   :  { %7847 = vmatpush1.bf16.msra.mxu1 %v7846_v44  ;;  %v8308_v44 = vpack.c.bf16 %v4460_v47, %v4457_v46  ;;  %v8320_v46 = vpack.c.bf16 %v4478_v33, %v4475_v62  ;;  %v4477_v47 = vld [vmem:[%s10959_s5 + $0x4f8] sm:$0xff]  ;;  %v1941_v62 = vld [vmem:[#allocation2 + $0x2600] sm:$0xff]  ;;  %v4499_v33 = vld [vmem:[%s10959_s5 + $0x5a8] sm:$0xff] }
 0x3b7   :  { %8295 = vmatpush1.bf16.msra.mxu0 %v8294_v36  ;;  %7849 = vmatprep.subr.bf16.mxu1 %v7848_v56  ;;  %v4459_v36 = vld [vmem:[%s10959_s5 + $0x468] sm:$0xff] }
 0x3b8   :  { %8297 = vmatprep.subr.bf16.mxu0 %v8296_v6  ;;  %v1850_v56 = vld [vmem:[#allocation2 + $0x2328] sm:$0xff]  ;;  %v4466_v6 = vld [vmem:[%s10959_s5 + $0x4a0] sm:$0xff]  ;;  %v8310_v13 = vpack.c.bf16 %v4459_v36, %v4456_v59 }
 0x3b9   :  { %v7864_v2 = vpack.c.bf16 %v1857_v63, %v1850_v56  ;;  %v1898_v59 = vld [vmem:[#allocation2 + $0x24a8] sm:$0xff] }
 0x3ba   :  { %7851 = vmatpush1.bf16.msra.mxu1 %v7850_v60  ;;  %v8312_v60 = vpack.c.bf16 %v4466_v6, %v4463_v3  ;;  %v4483_v56 = vld [vmem:[%s10959_s5 + $0x528] sm:$0xff]  ;;  %v1913_v3 = vld [vmem:[#allocation2 + $0x2520] sm:$0xff] }
 0x3bb   :  { %8299 = vmatpush1.bf16.msra.mxu0 %v8298_v17  ;;  %7853 = vmatprep.subr.bf16.mxu1 %v7852_v16  ;;  %v4465_v17 = vld [vmem:[%s10959_s5 + $0x498] sm:$0xff]  ;;  %v1906_v63 = vld [vmem:[#allocation2 + $0x24e8] sm:$0xff] }
 0x3bc   :  { %8301 = vmatprep.subr.bf16.mxu0 %v8300_v7  ;;  %v1864_v16 = vld [vmem:[#allocation2 + $0x2398] sm:$0xff]  ;;  %v7866_v7 = vpack.c.bf16 %v1856_v61, %v1849_v9  ;;  %v4487_v6 = vld [vmem:[%s10959_s5 + $0x548] sm:$0xff]  ;;  %v7880_v9 = vpack.c.bf16 %v1913_v3, %v1906_v63  ;;  %v1905_v61 = vld [vmem:[#allocation2 + $0x24e0] sm:$0xff] }
 0x3bd   :  { %v6151_v18 = vpop.f32.mrb[14].mxu0  ;;  %v7868_v26 = vpack.c.bf16 %v1871_v20, %v1864_v16  ;;  %v4489_v16 = vld [vmem:[%s10959_s5 + $0x558] sm:$0xff]  ;;  %v1954_v63 = vld [vmem:[#allocation2 + $0x2668] sm:$0xff]  ;;  %v4504_v3 = vld [vmem:[%s10959_s5 + $0x5d0] sm:$0xff] }
 0x3be   :  { %v6152_v15 = vpop.f32.mrb[15].mxu0  ;;  %7855 = vmatpush1.bf16.msra.mxu1 %v7854_v28  ;;  %v8316_v28 = vpack.c.bf16 %v4472_v8, %v4469_v21  ;;  %v1920_v20 = vld [vmem:[#allocation2 + $0x2558] sm:$0xff]  ;;  %v1927_v21 = vld [vmem:[#allocation2 + $0x2590] sm:$0xff] }
 0x3bf   :  { %v6153_v51 = vadd.f32 %v6152_v15, %v6151_v18  ;;  %8303 = vmatpush1.bf16.msra.mxu0 %v8302_v53  ;;  %7857 = vmatprep.subr.bf16.mxu1 %v7856_v30  ;;  %v4471_v53 = vld [vmem:[%s10959_s5 + $0x4c8] sm:$0xff]  ;;  %v1884_v18 = vld [vmem:[#allocation2 + $0x2438] sm:$0xff] }
 0x3c0   :  { %8305 = vmatprep.subr.bf16.mxu0 %v8304_v38  ;;  %v1878_v30 = vld [vmem:[#allocation2 + $0x2408] sm:$0xff]  ;;  %v7870_v38 = vpack.c.bf16 %v1870_v34, %v1863_v27  ;;  %v8318_v25 = vpack.c.bf16 %v4471_v53, %v4468_v54  ;;  %v1892_v15 = vld [vmem:[#allocation2 + $0x2478] sm:$0xff]  ;;  %v7884_v27 = vpack.c.bf16 %v1927_v21, %v1920_v20  ;;  %v1919_v34 = vld [vmem:[#allocation2 + $0x2550] sm:$0xff] }
 0x3c1   :  { %v9647_v1 = vadd.f32 %v6153_v51, %v9536_v31  ;;  %v4462_v31 = vld [vmem:[%s10959_s5 + $0x480] sm:$0xff]  ;;  %v7872_v40 = vpack.c.bf16 %v1885_v50, %v1878_v30  ;;  %v4484_v51 = vld [vmem:[%s10959_s5 + $0x530] sm:$0xff]  ;;  %v4493_v8 = vld [vmem:[%s10959_s5 + $0x578] sm:$0xff] }
 0x3c2   :  { %7859 = vmatpush1.bf16.msra.mxu1 %v7858_v48  ;;  %v8314_v10 = vpack.c.bf16 %v4465_v17, %v4462_v31  ;;  %v1899_v48 = vld [vmem:[#allocation2 + $0x24b0] sm:$0xff]  ;;  %v1912_v31 = vld [vmem:[#allocation2 + $0x2518] sm:$0xff]  ;;  %v1926_v54 = vld [vmem:[#allocation2 + $0x2588] sm:$0xff] }
 0x3c3   :  { %8307 = vmatpush1.bf16.msra.mxu0 %v8306_v52  ;;  %7861 = vmatprep.subr.bf16.mxu1 %v7860_v57  ;;  %v7874_v52 = vpack.c.bf16 %v1884_v18, %v1877_v42  ;;  %v7876_v58 = vpack.c.bf16 %v1899_v48, %v1892_v15  ;;  %v4495_v30 = vld [vmem:[%s10959_s5 + $0x588] sm:$0xff]  ;;  %v1933_v18 = vld [vmem:[#allocation2 + $0x25c0] sm:$0xff]  ;;  %v4501_v15 = vld [vmem:[%s10959_s5 + $0x5b8] sm:$0xff] }
 0x3c4   :  { %8309 = vmatprep.subr.bf16.mxu0 %v8308_v44  ;;  %v4480_v44 = vld [vmem:[%s10959_s5 + $0x510] sm:$0xff]  ;;  %v1934_v50 = vld [vmem:[#allocation2 + $0x25c8] sm:$0xff]  ;;  %v1948_v48 = vld [vmem:[#allocation2 + $0x2638] sm:$0xff] }
 0x3c5   :  { %v7888_v42 = vpack.c.bf16 %v1941_v62, %v1934_v50  ;;  %v1961_v20 = vld [vmem:[#allocation2 + $0x26a0] sm:$0xff]  ;;  %v1968_v21 = vld [vmem:[#allocation2 + $0x26d8] sm:$0xff] }
 0x3c6   :  { %7863 = vmatpush1.bf16.msra.mxu1 %v7862_v45  ;;  %v4490_v45 = vld [vmem:[%s10959_s5 + $0x560] sm:$0xff]  ;;  %v1996_v50 = vld [vmem:[#allocation2 + $0x27b8] sm:$0xff] }
 0x3c7   :  { %8311 = vmatpush1.bf16.msra.mxu0 %v8310_v13  ;;  %7865 = vmatprep.subr.bf16.mxu1 %v7864_v2  ;;  %v7878_v13 = vpack.c.bf16 %v1898_v59, %v1891_v55  ;;  %v8326_v2 = vpack.c.bf16 %v4483_v56, %v4480_v44  ;;  %v8328_v17 = vpack.c.bf16 %v4490_v45, %v4487_v6  ;;  %v1947_v56 = vld [vmem:[#allocation2 + $0x2630] sm:$0xff]  ;;  %v9747_v6 = vld [vmem:[%s10990_s28] sm:$0xff] }
 0x3c8   :  { %8313 = vmatprep.subr.bf16.mxu0 %v8312_v60  ;;  %v4486_v60 = vld [vmem:[%s10959_s5 + $0x540] sm:$0xff]  ;;  %v2306_v45 = vrot.slane %v9747_v6, %v9183_v32 }
 0x3c9   :  { %3673 = vmatmul.mubr.f32.vlgmr.msra.gmra.mrb[8].mxu1 %v9259_v29  ;;  %v4474_v29 = vld [vmem:[%s10959_s5 + $0x4e0] sm:$0xff] }
 0x3ca   :  { %7867 = vmatpush1.bf16.msra.mxu1 %v7866_v7  ;;  %3743 = vmatprep.mubr.f32.mxu1 %v9261_v43  ;;  %v4481_v43 = vld [vmem:[%s10959_s5 + $0x518] sm:$0xff]  ;;  %v8322_v57 = vpack.c.bf16 %v4477_v47, %v4474_v29  ;;  %v4496_v7 = vld [vmem:[%s10959_s5 + $0x590] sm:$0xff]  ;;  %v4514_v62 = vld [vmem:[%s10959_s5 + $0x620] sm:$0xff] }
 0x3cb   :  { %8315 = vmatpush1.bf16.msra.mxu0 %v8314_v10  ;;  %7869 = vmatprep.subr.bf16.mxu1 %v7868_v26  ;;  %v8324_v36 = vpack.c.bf16 %v4484_v51, %v4481_v43  ;;  %v7882_v10 = vpack.c.bf16 %v1912_v31, %v1905_v61  ;;  %v8330_v26 = vpack.c.bf16 %v4489_v16, %v4486_v60  ;;  %v1940_v29 = vld [vmem:[#allocation2 + $0x25f8] sm:$0xff]  ;;  %v1955_v43 = vld [vmem:[#allocation2 + $0x2670] sm:$0xff]  ;;  %v1969_v61 = vld [vmem:[#allocation2 + $0x26e0] sm:$0xff] }
 0x3cc   :  { %8317 = vmatprep.subr.bf16.mxu0 %v8316_v28  ;;  %v4492_v28 = vld [vmem:[%s10959_s5 + $0x570] sm:$0xff]  ;;  %v8332_v53 = vpack.c.bf16 %v4496_v7, %v4493_v8  ;;  %v7890_v55 = vpack.c.bf16 %v1940_v29, %v1933_v18  ;;  %v7894_v60 = vpack.c.bf16 %v1954_v63, %v1947_v56  ;;  %v9758_v8 = vadd.f32 %v9315_v49, %v2306_v45  ;;  %v1976_v7 = vld [vmem:[#allocation2 + $0x2718] sm:$0xff]  ;;  %v4511_v49 = vld [vmem:[%s10959_s5 + $0x608] sm:$0xff] }
 0x3cd   :  { %v4520_v18 = vld [vmem:[%s10959_s5 + $0x650] sm:$0xff]  ;;  %v4525_v56 = vld [vmem:[%s10959_s5 + $0x678] sm:$0xff] }
 0x3ce   :  { %7871 = vmatpush1.bf16.msra.mxu1 %v7870_v38  ;;  %v4502_v38 = vld [vmem:[%s10959_s5 + $0x5c0] sm:$0xff]  ;;  %v4529_v45 = vld [vmem:[%s10959_s5 + $0x698] sm:$0xff] }
 0x3cf   :  { %8319 = vmatpush1.bf16.msra.mxu0 %v8318_v25  ;;  %7873 = vmatprep.subr.bf16.mxu1 %v7872_v40  ;;  %v7886_v25 = vpack.c.bf16 %v1926_v54, %v1919_v34  ;;  %v8334_v40 = vpack.c.bf16 %v4495_v30, %v4492_v28  ;;  %v8336_v47 = vpack.c.bf16 %v4502_v38, %v4499_v33  ;;  %v1982_v34 = vld [vmem:[#allocation2 + $0x2748] sm:$0xff]  ;;  %v4313_v54 = vmax.f32 %v9758_v8, 0.0  ;;  %v1989_v30 = vld [vmem:[#allocation2 + $0x2780] sm:$0xff] }
 0x3d0   :  { %8321 = vmatprep.subr.bf16.mxu0 %v8320_v46  ;;  %v4498_v46 = vld [vmem:[%s10959_s5 + $0x5a0] sm:$0xff]  ;;  %v1990_v28 = vld [vmem:[#allocation2 + $0x2788] sm:$0xff] }
 0x3d1   :  { %v8338_v44 = vpack.c.bf16 %v4501_v15, %v4498_v46  ;;  %v4510_v33 = vld [vmem:[%s10959_s5 + $0x600] sm:$0xff]  ;;  %v4516_v15 = vld [vmem:[%s10959_s5 + $0x630] sm:$0xff] }
 0x3d2   :  { %7875 = vmatpush1.bf16.msra.mxu1 %v7874_v52  ;;  %v4505_v52 = vld [vmem:[%s10959_s5 + $0x5d8] sm:$0xff]  ;;  %v4626_v8 = vld [vmem:[%s10959_s5 + $0x9a0] sm:$0xff] }
 0x3d3   :  { %8323 = vmatpush1.bf16.msra.mxu0 %v8322_v57  ;;  %7877 = vmatprep.subr.bf16.mxu1 %v7876_v58  ;;  %v4508_v57 = vld [vmem:[%s10959_s5 + $0x5f0] sm:$0xff] }
 0x3d4   :  { %8325 = vmatprep.subr.bf16.mxu0 %v8324_v36  ;;  %v7892_v36 = vpack.c.bf16 %v1955_v43, %v1948_v48  ;;  %v4519_v48 = vld [vmem:[%s10959_s5 + $0x648] sm:$0xff] }
 0x3d5   :  { %v4523_v43 = vld [vmem:[%s10959_s5 + $0x668] sm:$0xff] }
 0x3d6   :  { %7879 = vmatpush1.bf16.msra.mxu1 %v7878_v13  ;;  %v8340_v13 = vpack.c.bf16 %v4508_v57, %v4505_v52  ;;  %v2011_v52 = vld [vmem:[#allocation2 + $0x2830] sm:$0xff]  ;;  %v4526_v57 = vld [vmem:[%s10959_s5 + $0x680] sm:$0xff] }
 0x3d7   :  { %8327 = vmatpush1.bf16.msra.mxu0 %v8326_v2  ;;  %7881 = vmatprep.subr.bf16.mxu1 %v7880_v9  ;;  %v4507_v2 = vld [vmem:[%s10959_s5 + $0x5e8] sm:$0xff] }
 0x3d8   :  { %8329 = vmatprep.subr.bf16.mxu0 %v8328_v17  ;;  %v1962_v9 = vld [vmem:[#allocation2 + $0x26a8] sm:$0xff]  ;;  %v8342_v17 = vpack.c.bf16 %v4507_v2, %v4504_v3 }
 0x3d9   :  { %v7896_v16 = vpack.c.bf16 %v1969_v61, %v1962_v9  ;;  %v2010_v3 = vld [vmem:[#allocation2 + $0x2828] sm:$0xff]  ;;  %v2025_v9 = vld [vmem:[#allocation2 + $0x28a0] sm:$0xff] }
 0x3da   :  { %7883 = vmatpush1.bf16.msra.mxu1 %v7882_v10  ;;  %v1983_v10 = vld [vmem:[#allocation2 + $0x2750] sm:$0xff]  ;;  %v2018_v2 = vld [vmem:[#allocation2 + $0x2868] sm:$0xff] }
 0x3db   :  { %8331 = vmatpush1.bf16.msra.mxu0 %v8330_v26  ;;  %7885 = vmatprep.subr.bf16.mxu1 %v7884_v27  ;;  %v7898_v26 = vpack.c.bf16 %v1968_v21, %v1961_v20  ;;  %v1975_v27 = vld [vmem:[#allocation2 + $0x2710] sm:$0xff]  ;;  %v4531_v21 = vld [vmem:[%s10959_s5 + $0x6a8] sm:$0xff] }
 0x3dc   :  { %8333 = vmatprep.subr.bf16.mxu0 %v8332_v53  ;;  %v1997_v53 = vld [vmem:[#allocation2 + $0x27c0] sm:$0xff]  ;;  %v7902_v38 = vpack.c.bf16 %v1982_v34, %v1975_v27  ;;  %v4528_v20 = vld [vmem:[%s10959_s5 + $0x690] sm:$0xff]  ;;  %v2032_v27 = vld [vmem:[#allocation2 + $0x28d8] sm:$0xff] }
 0x3dd   :  { %v6186_v51 = vpop.f32.mrb[16].mxu0  ;;  %v7904_v29 = vpack.c.bf16 %v1997_v53, %v1990_v28  ;;  %v2039_v34 = vld [vmem:[#allocation2 + $0x2910] sm:$0xff]  ;;  %v8358_v28 = vpack.c.bf16 %v4531_v21, %v4528_v20  ;;  %v2074_v20 = vld [vmem:[#allocation2 + $0x2a28] sm:$0xff]  ;;  %v2081_v21 = vld [vmem:[#allocation2 + $0x2a60] sm:$0xff] }
 0x3de   :  { %v6187_v58 = vpop.f32.mrb[17].mxu0  ;;  %7887 = vmatpush1.bf16.msra.mxu1 %v7886_v25  ;;  %v8344_v25 = vpack.c.bf16 %v4514_v62, %v4511_v49  ;;  %v4534_v49 = vld [vmem:[%s10959_s5 + $0x6c0] sm:$0xff]  ;;  %v4537_v62 = vld [vmem:[%s10959_s5 + $0x6d8] sm:$0xff] }
 0x3df   :  { %v6188_v59 = vadd.f32 %v6187_v58, %v6186_v51  ;;  %8335 = vmatpush1.bf16.msra.mxu0 %v8334_v40  ;;  %7889 = vmatprep.subr.bf16.mxu1 %v7888_v42  ;;  %v4513_v40 = vld [vmem:[%s10959_s5 + $0x618] sm:$0xff]  ;;  %v8350_v58 = vpack.c.bf16 %v4519_v48, %v4516_v15  ;;  %v4540_v48 = vld [vmem:[%s10959_s5 + $0x6f0] sm:$0xff] }
 0x3e0   :  { %8337 = vmatprep.subr.bf16.mxu0 %v8336_v47  ;;  %v4517_v42 = vld [vmem:[%s10959_s5 + $0x638] sm:$0xff]  ;;  %v8346_v46 = vpack.c.bf16 %v4513_v40, %v4510_v33  ;;  %v7916_v33 = vpack.c.bf16 %v2039_v34, %v2032_v27  ;;  %v4544_v40 = vld [vmem:[%s10959_s5 + $0x710] sm:$0xff]  ;;  %v4555_v34 = vld [vmem:[%s10959_s5 + $0x768] sm:$0xff] }
 0x3e1   :  { %v9755_v31 = vadd.f32 %v6188_v59, %v9647_v1  ;;  %v7900_v1 = vpack.c.bf16 %v1983_v10, %v1976_v7  ;;  %v8348_v47 = vpack.c.bf16 %v4520_v18, %v4517_v42  ;;  %v2004_v51 = vld [vmem:[#allocation2 + $0x27f8] sm:$0xff]  ;;  %v2003_v59 = vld [vmem:[#allocation2 + $0x27f0] sm:$0xff]  ;;  %v7912_v7 = vpack.c.bf16 %v2025_v9, %v2018_v2  ;;  %v2046_v42 = vld [vmem:[#allocation2 + $0x2948] sm:$0xff] }
 0x3e2   :  { %7891 = vmatpush1.bf16.msra.mxu1 %v7890_v55  ;;  %v7906_v55 = vpack.c.bf16 %v1996_v50, %v1989_v30  ;;  %v7908_v63 = vpack.c.bf16 %v2011_v52, %v2004_v51  ;;  %v2024_v10 = vld [vmem:[#allocation2 + $0x2898] sm:$0xff]  ;;  %v2031_v30 = vld [vmem:[#allocation2 + $0x28d0] sm:$0xff]  ;;  %v2053_v18 = vld [vmem:[#allocation2 + $0x2980] sm:$0xff] }
 0x3e3   :  { %8339 = vmatpush1.bf16.msra.mxu0 %v8338_v44  ;;  %7893 = vmatprep.subr.bf16.mxu1 %v7892_v36  ;;  %v8352_v44 = vpack.c.bf16 %v4526_v57, %v4523_v43  ;;  %v4522_v36 = vld [vmem:[%s10959_s5 + $0x660] sm:$0xff]  ;;  %v4543_v43 = vld [vmem:[%s10959_s5 + $0x708] sm:$0xff]  ;;  %v7920_v51 = vpack.c.bf16 %v2053_v18, %v2046_v42  ;;  %v2052_v52 = vld [vmem:[#allocation2 + $0x2978] sm:$0xff] }
 0x3e4   :  { %8341 = vmatprep.subr.bf16.mxu0 %v8340_v13  ;;  %v4532_v13 = vld [vmem:[%s10959_s5 + $0x6b0] sm:$0xff]  ;;  %v8354_v61 = vpack.c.bf16 %v4525_v56, %v4522_v36  ;;  %v4547_v57 = vld [vmem:[%s10959_s5 + $0x728] sm:$0xff]  ;;  %v8366_v36 = vpack.c.bf16 %v4543_v43, %v4540_v48  ;;  %v4549_v2 = vld [vmem:[%s10959_s5 + $0x738] sm:$0xff] }
 0x3e5   :  { %v4552_v27 = vld [vmem:[%s10959_s5 + $0x750] sm:$0xff]  ;;  %v4561_v42 = vld [vmem:[%s10959_s5 + $0x798] sm:$0xff]  ;;  %v2102_v48 = vld [vmem:[#allocation2 + $0x2b08] sm:$0xff] }
 0x3e6   :  { %7895 = vmatpush1.bf16.msra.mxu1 %v7894_v60  ;;  %v7910_v60 = vpack.c.bf16 %v2010_v3, %v2003_v59  ;;  %v2067_v59 = vld [vmem:[#allocation2 + $0x29f0] sm:$0xff]  ;;  %v2109_v43 = vld [vmem:[#allocation2 + $0x2b40] sm:$0xff] }
 0x3e7   :  { %8343 = vmatpush1.bf16.msra.mxu0 %v8342_v17  ;;  %7897 = vmatprep.subr.bf16.mxu1 %v7896_v16  ;;  %v2017_v17 = vld [vmem:[#allocation2 + $0x2860] sm:$0xff]  ;;  %v8356_v16 = vpack.c.bf16 %v4532_v13, %v4529_v45  ;;  %v2059_v3 = vld [vmem:[#allocation2 + $0x29b0] sm:$0xff] }
 0x3e8   :  { %8345 = vmatprep.subr.bf16.mxu0 %v8344_v25  ;;  %v7914_v53 = vpack.c.bf16 %v2024_v10, %v2017_v17  ;;  %v4541_v25 = vld [vmem:[%s10959_s5 + $0x6f8] sm:$0xff]  ;;  %v4546_v13 = vld [vmem:[%s10959_s5 + $0x720] sm:$0xff] }
 0x3e9   :  { %v8364_v15 = vpack.c.bf16 %v4544_v40, %v4541_v25  ;;  %v4553_v17 = vld [vmem:[%s10959_s5 + $0x758] sm:$0xff]  ;;  %v8370_v10 = vpack.c.bf16 %v4549_v2, %v4546_v13  ;;  %v2087_v25 = vld [vmem:[#allocation2 + $0x2a90] sm:$0xff]  ;;  %v4558_v40 = vld [vmem:[%s10959_s5 + $0x780] sm:$0xff] }
 0x3ea   :  { %4807 = vmatmul.mubr.f32.vlgmr.msra.gmra.mrb[24].mxu0 %v4313_v54  ;;  %7899 = vmatpush1.bf16.msra.mxu1 %v7898_v26  ;;  %v4535_v26 = vld [vmem:[%s10959_s5 + $0x6c8] sm:$0xff]  ;;  %v2115_v13 = vld [vmem:[#allocation2 + $0x2b70] sm:$0xff] }
 0x3eb   :  { %7901 = vmatprep.subr.bf16.mxu1 %v7900_v1  ;;  %8347 = vmatpush1.bf16.msra.mxu0 %v8346_v46  ;;  %v4538_v1 = vld [vmem:[%s10959_s5 + $0x6e0] sm:$0xff] }
 0x3ec   :  { %8349 = vmatprep.subr.bf16.mxu0 %v8348_v47  ;;  %v8360_v50 = vpack.c.bf16 %v4538_v1, %v4535_v26  ;;  %v2045_v47 = vld [vmem:[#allocation2 + $0x2940] sm:$0xff] }
 0x3ee   :  { %7903 = vmatpush1.bf16.msra.mxu1 %v7902_v38  ;;  %v2038_v38 = vld [vmem:[#allocation2 + $0x2908] sm:$0xff] }
 0x3ef   :  { %7905 = vmatprep.subr.bf16.mxu1 %v7904_v29  ;;  %8351 = vmatpush1.bf16.msra.mxu0 %v8350_v58  ;;  %v8362_v29 = vpack.c.bf16 %v4537_v62, %v4534_v49  ;;  %v7918_v46 = vpack.c.bf16 %v2038_v38, %v2031_v30  ;;  %v4550_v58 = vld [vmem:[%s10959_s5 + $0x740] sm:$0xff]  ;;  %v2080_v30 = vld [vmem:[#allocation2 + $0x2a58] sm:$0xff]  ;;  %v4559_v49 = vld [vmem:[%s10959_s5 + $0x788] sm:$0xff] }
 0x3f0   :  { %8353 = vmatprep.subr.bf16.mxu0 %v8352_v44  ;;  %v8368_v45 = vpack.c.bf16 %v4550_v58, %v4547_v57  ;;  %v4562_v62 = vld [vmem:[%s10959_s5 + $0x7a0] sm:$0xff] }
 0x3f1   :  { %v2101_v57 = vld [vmem:[#allocation2 + $0x2b00] sm:$0xff] }
 0x3f2   :  { %7907 = vmatpush1.bf16.msra.mxu1 %v7906_v55  ;;  %v2060_v55 = vld [vmem:[#allocation2 + $0x29b8] sm:$0xff] }
 0x3f3   :  { %7909 = vmatprep.subr.bf16.mxu1 %v7908_v63  ;;  %8355 = vmatpush1.bf16.msra.mxu0 %v8354_v61  ;;  %v7922_v63 = vpack.c.bf16 %v2052_v52, %v2045_v47  ;;  %v7924_v61 = vpack.c.bf16 %v2067_v59, %v2060_v55  ;;  %v4565_v47 = vld [vmem:[%s10959_s5 + $0x7b8] sm:$0xff]  ;;  %v4564_v55 = vld [vmem:[%s10959_s5 + $0x7b0] sm:$0xff]  ;;  %v4567_v59 = vld [vmem:[%s10959_s5 + $0x7c8] sm:$0xff] }
 0x3f4   :  { %8357 = vmatprep.subr.bf16.mxu0 %v8356_v16  ;;  %v4556_v16 = vld [vmem:[%s10959_s5 + $0x770] sm:$0xff] }
 0x3f5   :  { %v8372_v1 = vpack.c.bf16 %v4556_v16, %v4553_v17  ;;  %v2122_v17 = vld [vmem:[#allocation2 + $0x2ba8] sm:$0xff]  ;;  %v4577_v16 = vld [vmem:[%s10959_s5 + $0x818] sm:$0xff] }
 0x3f6   :  { %7911 = vmatpush1.bf16.msra.mxu1 %v7910_v60  ;;  %v2066_v60 = vld [vmem:[#allocation2 + $0x29e8] sm:$0xff] }
 0x3f7   :  { %7913 = vmatprep.subr.bf16.mxu1 %v7912_v7  ;;  %8359 = vmatpush1.bf16.msra.mxu0 %v8358_v28  ;;  %v7926_v26 = vpack.c.bf16 %v2066_v60, %v2059_v3  ;;  %v7928_v28 = vpack.c.bf16 %v2081_v21, %v2074_v20  ;;  %v8382_v3 = vpack.c.bf16 %v4567_v59, %v4564_v55  ;;  %v4580_v20 = vld [vmem:[%s10959_s5 + $0x830] sm:$0xff]  ;;  %v2130_v21 = vld [vmem:[#allocation2 + $0x2be8] sm:$0xff] }
 0x3f8   :  { %8361 = vmatprep.subr.bf16.mxu0 %v8360_v50  ;;  %v2095_v50 = vld [vmem:[#allocation2 + $0x2ad0] sm:$0xff] }
 0x3f9   :  { %v4588_v59 = vld [vmem:[%s10959_s5 + $0x870] sm:$0xff] }
 0x3fa   :  { %7915 = vmatpush1.bf16.msra.mxu1 %v7914_v53  ;;  %v2073_v53 = vld [vmem:[#allocation2 + $0x2a20] sm:$0xff] }
 0x3fb   :  { %7917 = vmatprep.subr.bf16.mxu1 %v7916_v33  ;;  %8363 = vmatpush1.bf16.msra.mxu0 %v8362_v29  ;;  %v8374_v33 = vpack.c.bf16 %v4555_v34, %v4552_v27  ;;  %v7930_v38 = vpack.c.bf16 %v2080_v30, %v2073_v53  ;;  %v2094_v29 = vld [vmem:[#allocation2 + $0x2ac8] sm:$0xff]  ;;  %v2129_v27 = vld [vmem:[#allocation2 + $0x2be0] sm:$0xff]  ;;  %v8388_v34 = vpack.c.bf16 %v4580_v20, %v4577_v16 }
 0x3fc   :  { %8365 = vmatprep.subr.bf16.mxu0 %v8364_v15  ;;  %v4568_v15 = vld [vmem:[%s10959_s5 + $0x7d0] sm:$0xff]  ;;  %v7934_v52 = vpack.c.bf16 %v2094_v29, %v2087_v25  ;;  %v4579_v53 = vld [vmem:[%s10959_s5 + $0x828] sm:$0xff]  ;;  %v4585_v29 = vld [vmem:[%s10959_s5 + $0x858] sm:$0xff] }
 0x3fd   :  { %v6221_v44 = vpop.f32.mrb[18].mxu0  ;;  %v8380_v58 = vpack.c.bf16 %v4568_v15, %v4565_v47  ;;  %v2150_v47 = vld [vmem:[#allocation2 + $0x2c88] sm:$0xff]  ;;  %v4589_v15 = vld [vmem:[%s10959_s5 + $0x878] sm:$0xff] }
 0x3fe   :  { %v6222_v56 = vpop.f32.mrb[19].mxu0  ;;  %7919 = vmatpush1.bf16.msra.mxu1 %v7918_v46  ;;  %v8376_v46 = vpack.c.bf16 %v4562_v62, %v4559_v49  ;;  %v4586_v49 = vld [vmem:[%s10959_s5 + $0x860] sm:$0xff]  ;;  %v2144_v62 = vld [vmem:[#allocation2 + $0x2c58] sm:$0xff] }
 0x3ff   :  { %v6223_v9 = vadd.f32 %v6222_v56, %v6221_v44  ;;  %7921 = vmatprep.subr.bf16.mxu1 %v7920_v51  ;;  %8367 = vmatpush1.bf16.msra.mxu0 %v8366_v36  ;;  %v8378_v51 = vpack.c.bf16 %v4561_v42, %v4558_v40  ;;  %v7936_v44 = vpack.c.bf16 %v2109_v43, %v2102_v48  ;;  %v2108_v36 = vld [vmem:[#allocation2 + $0x2b38] sm:$0xff]  ;;  %v2143_v40 = vld [vmem:[#allocation2 + $0x2c50] sm:$0xff]  ;;  %v2158_v43 = vld [vmem:[#allocation2 + $0x2cc8] sm:$0xff] }
 0x400   :  { %8369 = vmatprep.subr.bf16.mxu0 %v8368_v45  ;;  %v2116_v56 = vld [vmem:[#allocation2 + $0x2b78] sm:$0xff]  ;;  %v7938_v45 = vpack.c.bf16 %v2108_v36, %v2101_v57  ;;  %v4592_v48 = vld [vmem:[%s10959_s5 + $0x890] sm:$0xff]  ;;  %v7950_v57 = vpack.c.bf16 %v2150_v47, %v2143_v40  ;;  %v2221_v40 = vld [vmem:[#allocation2 + $0x2ec0] sm:$0xff] }
 0x401   :  { %v9854_v7 = vadd.f32 %v6223_v9, %v9755_v31  ;;  %v2088_v31 = vld [vmem:[#allocation2 + $0x2a98] sm:$0xff]  ;;  %v4570_v9 = vld [vmem:[%s10959_s5 + $0x7e0] sm:$0xff]  ;;  %v8396_v55 = vpack.c.bf16 %v4592_v48, %v4589_v15  ;;  %v2235_v15 = vld [vmem:[#allocation2 + $0x2f30] sm:$0xff] }
 0x402   :  { %7923 = vmatpush1.bf16.msra.mxu1 %v7922_v63  ;;  %v7932_v18 = vpack.c.bf16 %v2095_v50, %v2088_v31  ;;  %v2123_v63 = vld [vmem:[#allocation2 + $0x2bb0] sm:$0xff]  ;;  %v2136_v31 = vld [vmem:[#allocation2 + $0x2c18] sm:$0xff]  ;;  %v4583_v50 = vld [vmem:[%s10959_s5 + $0x848] sm:$0xff] }
 0x403   :  { %7925 = vmatprep.subr.bf16.mxu1 %v7924_v61  ;;  %8371 = vmatpush1.bf16.msra.mxu0 %v8370_v10  ;;  %v4573_v61 = vld [vmem:[%s10959_s5 + $0x7f8] sm:$0xff]  ;;  %v7940_v60 = vpack.c.bf16 %v2123_v63, %v2116_v56  ;;  %v2137_v10 = vld [vmem:[#allocation2 + $0x2c20] sm:$0xff]  ;;  %v7946_v25 = vpack.c.bf16 %v2136_v31, %v2129_v27  ;;  %v8392_v42 = vpack.c.bf16 %v4586_v49, %v4583_v50  ;;  %v2207_v49 = vld [vmem:[#allocation2 + $0x2e50] sm:$0xff] }
 0x404   :  { %8373 = vmatprep.subr.bf16.mxu0 %v8372_v1  ;;  %v7942_v1 = vpack.c.bf16 %v2122_v17, %v2115_v13  ;;  %v7944_v30 = vpack.c.bf16 %v2137_v10, %v2130_v21  ;;  %v4598_v56 = vld [vmem:[%s10959_s5 + $0x8c0] sm:$0xff]  ;;  %v2172_v63 = vld [vmem:[#allocation2 + $0x2d38] sm:$0xff]  ;;  %v2171_v21 = vld [vmem:[#allocation2 + $0x2d30] sm:$0xff] }
 0x405   :  { %v4597_v17 = vld [vmem:[%s10959_s5 + $0x8b8] sm:$0xff]  ;;  %v2178_v10 = vld [vmem:[#allocation2 + $0x2d68] sm:$0xff] }
 0x406   :  { %7927 = vmatpush1.bf16.msra.mxu1 %v7926_v26  ;;  %v8386_v26 = vpack.c.bf16 %v4573_v61, %v4570_v9  ;;  %v2192_v31 = vld [vmem:[#allocation2 + $0x2dd8] sm:$0xff] }
 0x407   :  { %7929 = vmatprep.subr.bf16.mxu1 %v7928_v28  ;;  %8375 = vmatpush1.bf16.msra.mxu0 %v8374_v33  ;;  %v4576_v28 = vld [vmem:[%s10959_s5 + $0x810] sm:$0xff]  ;;  %v2200_v50 = vld [vmem:[#allocation2 + $0x2e18] sm:$0xff] }
 0x408   :  { %8377 = vmatprep.subr.bf16.mxu0 %v8376_v46  ;;  %v2151_v33 = vld [vmem:[#allocation2 + $0x2c90] sm:$0xff]  ;;  %v2228_v47 = vld [vmem:[#allocation2 + $0x2ef8] sm:$0xff] }
 0x409   :  { %3744 = vmatmul.mubr.f32.vlgmr.msra.gmra.mrb[8].mxu1 %v9278_v11  ;;  %v4571_v11 = vld [vmem:[%s10959_s5 + $0x7e8] sm:$0xff]  ;;  %v7948_v46 = vpack.c.bf16 %v2151_v33, %v2144_v62  ;;  %v7964_v33 = vpack.c.bf16 %v2207_v49, %v2200_v50 }
 0x40a   :  { %7931 = vmatpush1.bf16.msra.mxu1 %v7930_v38  ;;  %3814 = vmatprep.mubr.f32.mxu1 %v9280_v41  ;;  %v4574_v41 = vld [vmem:[%s10959_s5 + $0x800] sm:$0xff]  ;;  %v8390_v38 = vpack.c.bf16 %v4579_v53, %v4576_v28  ;;  %v7958_v28 = vpack.c.bf16 %v2178_v10, %v2171_v21 }
 0x40b   :  { %7933 = vmatprep.subr.bf16.mxu1 %v7932_v18  ;;  %8379 = vmatpush1.bf16.msra.mxu0 %v8378_v51  ;;  %v8384_v2 = vpack.c.bf16 %v4574_v41, %v4571_v11  ;;  %v4582_v18 = vld [vmem:[%s10959_s5 + $0x840] sm:$0xff]  ;;  %v2164_v11 = vld [vmem:[#allocation2 + $0x2cf8] sm:$0xff]  ;;  %v4595_v41 = vld [vmem:[%s10959_s5 + $0x8a8] sm:$0xff] }
 0x40c   :  { %8381 = vmatprep.subr.bf16.mxu0 %v8380_v58  ;;  %v2165_v51 = vld [vmem:[#allocation2 + $0x2d00] sm:$0xff]  ;;  %v8400_v61 = vpack.c.bf16 %v4598_v56, %v4595_v41  ;;  %v2263_v41 = vld [vmem:[#allocation2 + $0x3010] sm:$0xff] }
 0x40d   :  { %v2157_v58 = vld [vmem:[#allocation2 + $0x2cc0] sm:$0xff]  ;;  %v7952_v36 = vpack.c.bf16 %v2165_v51, %v2158_v43  ;;  %v7972_v43 = vpack.c.bf16 %v2235_v15, %v2228_v47  ;;  %v2227_v51 = vld [vmem:[#allocation2 + $0x2ef0] sm:$0xff] }
 0x40e   :  { %7935 = vmatpush1.bf16.msra.mxu1 %v7934_v52  ;;  %v8394_v52 = vpack.c.bf16 %v4585_v29, %v4582_v18  ;;  %v7954_v9 = vpack.c.bf16 %v2164_v11, %v2157_v58  ;;  %v2213_v29 = vld [vmem:[#allocation2 + $0x2e80] sm:$0xff]  ;;  %v2256_v11 = vld [vmem:[#allocation2 + $0x2fd8] sm:$0xff] }
 0x40f   :  { %7937 = vmatprep.subr.bf16.mxu1 %v7936_v44  ;;  %8383 = vmatpush1.bf16.msra.mxu0 %v8382_v3  ;;  %v4591_v44 = vld [vmem:[%s10959_s5 + $0x888] sm:$0xff]  ;;  %v2179_v3 = vld [vmem:[#allocation2 + $0x2d70] sm:$0xff]  ;;  %v2249_v58 = vld [vmem:[#allocation2 + $0x2fa0] sm:$0xff] }
 0x410   :  { %8385 = vmatprep.subr.bf16.mxu0 %v8384_v2  ;;  %v8398_v13 = vpack.c.bf16 %v4591_v44, %v4588_v59  ;;  %v7956_v20 = vpack.c.bf16 %v2179_v3, %v2172_v63  ;;  %v2241_v44 = vld [vmem:[#allocation2 + $0x2f60] sm:$0xff]  ;;  %v7980_v63 = vpack.c.bf16 %v2263_v41, %v2256_v11  ;;  %v2255_v3 = vld [vmem:[#allocation2 + $0x2fd0] sm:$0xff]  ;;  %v4347_v11 = vld [vmem:[%s10959_s5 + $0xe8] sm:$0xff] }
 0x411   :  { %v4398_v41 = vld [vmem:[%s10959_s5 + $0x280] sm:$0xff] }
 0x412   :  { %7939 = vmatpush1.bf16.msra.mxu1 %v7938_v45 }
 0x413   :  { %7941 = vmatprep.subr.bf16.mxu1 %v7940_v60  ;;  %8387 = vmatpush1.bf16.msra.mxu0 %v8386_v26  ;;  %v4594_v60 = vld [vmem:[%s10959_s5 + $0x8a0] sm:$0xff]  ;;  %v2186_v26 = vld [vmem:[#allocation2 + $0x2da8] sm:$0xff] }
 0x414   :  { %8389 = vmatprep.subr.bf16.mxu0 %v8388_v34  ;;  %v8402_v34 = vpack.c.bf16 %v4597_v17, %v4594_v60  ;;  %v2269_v60 = vld [vmem:[#allocation2 + $0x3040] sm:$0xff]  ;;  %v2276_v17 = vld [vmem:[#allocation2 + $0x3078] sm:$0xff] }
 0x416   :  { %7943 = vmatpush1.bf16.msra.mxu1 %v7942_v1  ;;  %v2193_v1 = vld [vmem:[#allocation2 + $0x2de0] sm:$0xff] }
 0x417   :  { %7945 = vmatprep.subr.bf16.mxu1 %v7944_v30  ;;  %8391 = vmatpush1.bf16.msra.mxu0 %v8390_v38  ;;  %v7960_v53 = vpack.c.bf16 %v2193_v1, %v2186_v26  ;;  %v2185_v30 = vld [vmem:[#allocation2 + $0x2da0] sm:$0xff]  ;;  %v2199_v38 = vld [vmem:[#allocation2 + $0x2e10] sm:$0xff]  ;;  %v7986_v26 = vpack.c.bf16 %v2276_v17, %v2269_v60 }
 0x418   :  { %8393 = vmatprep.subr.bf16.mxu0 %v8392_v42  ;;  %v7962_v62 = vpack.c.bf16 %v2192_v31, %v2185_v30  ;;  %v4368_v30 = vld [vmem:[%s10959_s5 + $0x190] sm:$0xff]  ;;  %v4371_v31 = vld [vmem:[%s10959_s5 + $0x1a8] sm:$0xff] }
 0x419   :  { %v4356_v17 = vld [vmem:[%s10959_s5 + $0x130] sm:$0xff] }
 0x41a   :  { %7947 = vmatpush1.bf16.msra.mxu1 %v7946_v25  ;;  %v2206_v25 = vld [vmem:[#allocation2 + $0x2e48] sm:$0xff] }
 0x41b   :  { %7949 = vmatprep.subr.bf16.mxu1 %v7948_v46  ;;  %8395 = vmatpush1.bf16.msra.mxu0 %v8394_v52  ;;  %v7966_v42 = vpack.c.bf16 %v2206_v25, %v2199_v38  ;;  %v2220_v46 = vld [vmem:[#allocation2 + $0x2eb8] sm:$0xff]  ;;  %v2234_v52 = vld [vmem:[#allocation2 + $0x2f28] sm:$0xff]  ;;  %v4374_v25 = vld [vmem:[%s10959_s5 + $0x1c0] sm:$0xff] }
 0x41c   :  { %8397 = vmatprep.subr.bf16.mxu0 %v8396_v55  ;;  %v7970_v48 = vpack.c.bf16 %v2220_v46, %v2213_v29  ;;  %v7974_v55 = vpack.c.bf16 %v2234_v52, %v2227_v51  ;;  %v4323_v38 = vld [vmem:[%s10959_s5 + $0x28] sm:$0xff]  ;;  %v4380_v29 = vld [vmem:[%s10959_s5 + $0x1f0] sm:$0xff]  ;;  %v4386_v51 = vld [vmem:[%s10959_s5 + $0x220] sm:$0xff] }
 0x41d   :  { %v6256_v45 = vpop.f32.mrb[20].mxu0  ;;  %v4383_v46 = vld [vmem:[%s10959_s5 + $0x208] sm:$0xff]  ;;  %v4338_v52 = vld [vmem:[%s10959_s5 + $0xa0] sm:$0xff] }
 0x41e   :  { %v6257_v2 = vpop.f32.mrb[21].mxu0  ;;  %7951 = vmatpush1.bf16.msra.mxu1 %v7950_v57  ;;  %v2242_v57 = vld [vmem:[#allocation2 + $0x2f68] sm:$0xff]  ;;  %v8448_v15 = vpack.c.bf16 %v4383_v46, %v4380_v29 }
 0x41f   :  { %v6258_v16 = vadd.f32 %v6257_v2, %v6256_v45  ;;  %7953 = vmatprep.subr.bf16.mxu1 %v7952_v36  ;;  %8399 = vmatpush1.bf16.msra.mxu0 %v8398_v13  ;;  %v7976_v59 = vpack.c.bf16 %v2249_v58, %v2242_v57  ;;  %v2248_v36 = vld [vmem:[#allocation2 + $0x2f98] sm:$0xff]  ;;  %v2262_v45 = vld [vmem:[#allocation2 + $0x3008] sm:$0xff]  ;;  %v2277_v2 = vld [vmem:[#allocation2 + $0x3080] sm:$0xff] }
 0x420   :  { %8401 = vmatprep.subr.bf16.mxu0 %v8400_v61  ;;  %v7978_v56 = vpack.c.bf16 %v2248_v36, %v2241_v44  ;;  %v2270_v13 = vld [vmem:[#allocation2 + $0x3048] sm:$0xff]  ;;  %v4341_v57 = vld [vmem:[%s10959_s5 + $0xb8] sm:$0xff]  ;;  %v4392_v58 = vld [vmem:[%s10959_s5 + $0x250] sm:$0xff] }
 0x421   :  { %v9949_v27 = vadd.f32 %v6258_v16, %v9854_v7  ;;  %v2214_v7 = vld [vmem:[#allocation2 + $0x2e88] sm:$0xff]  ;;  %v7984_v61 = vpack.c.bf16 %v2277_v2, %v2270_v13  ;;  %v2284_v16 = vld [vmem:[#allocation2 + $0x30b8] sm:$0xff]  ;;  %v4344_v36 = vld [vmem:[%s10959_s5 + $0xd0] sm:$0xff] }
 0x422   :  { %7955 = vmatpush1.bf16.msra.mxu1 %v7954_v9  ;;  %v7968_v18 = vpack.c.bf16 %v2221_v40, %v2214_v7  ;;  %v7982_v9 = vpack.c.bf16 %v2262_v45, %v2255_v3  ;;  %v4350_v45 = vld [vmem:[%s10959_s5 + $0x100] sm:$0xff]  ;;  %v4353_v13 = vld [vmem:[%s10959_s5 + $0x118] sm:$0xff]  ;;  %v4404_v2 = vld [vmem:[%s10959_s5 + $0x2b0] sm:$0xff] }
 0x423   :  { %7957 = vmatprep.subr.bf16.mxu1 %v7956_v20  ;;  %8403 = vmatpush1.bf16.msra.mxu0 %v8402_v34  ;;  %v2291_v20 = vld [vmem:[#allocation2 + $0x30f0] sm:$0xff] }
 0x424   :  { %v7988_v34 = vpack.c.bf16 %v2291_v20, %v2284_v16  ;;  %v4359_v16 = vld [vmem:[%s10959_s5 + $0x148] sm:$0xff]  ;;  %v4410_v20 = vld [vmem:[%s10959_s5 + $0x2e0] sm:$0xff] }
 0x426   :  { %7959 = vmatpush1.bf16.msra.mxu1 %v7958_v28  ;;  %v2283_v28 = vld [vmem:[#allocation2 + $0x30b0] sm:$0xff] }
 0x427   :  { %7961 = vmatprep.subr.bf16.mxu1 %v7960_v53  ;;  %v2290_v53 = vld [vmem:[#allocation2 + $0x30e8] sm:$0xff] }
 0x428   :  { %v7990_v49 = vpack.c.bf16 %v2290_v53, %v2283_v28  ;;  %v4560_v28 = vld [vmem:[%s10959_s5 + $0x790] sm:$0xff]  ;;  %v4563_v53 = vld [vmem:[%s10959_s5 + $0x7a8] sm:$0xff] }
 0x42a   :  { %7963 = vmatpush1.bf16.msra.mxu1 %v7962_v62  ;;  %v8440_v62 = vpack.c.bf16 %v4371_v31, %v4368_v30  ;;  %v8504_v31 = vpack.c.bf16 %v4563_v53, %v4560_v28  ;;  %v4557_v28 = vld [vmem:[%s10959_s5 + $0x778] sm:$0xff] }
 0x42b   :  { %7965 = vmatprep.subr.bf16.mxu1 %v7964_v33  ;;  %v4320_v33 = vld [vmem:[%s10959_s5 + $0x10] sm:$0xff] }
 0x42c   :  { %v8442_v7 = vpack.c.bf16 %v4323_v38, %v4320_v33  ;;  %v4566_v33 = vld [vmem:[%s10959_s5 + $0x7c0] sm:$0xff]  ;;  %v4569_v38 = vld [vmem:[%s10959_s5 + $0x7d8] sm:$0xff] }
 0x42e   :  { %7967 = vmatpush1.bf16.msra.mxu1 %v7966_v42  ;;  %v4326_v42 = vld [vmem:[%s10959_s5 + $0x40] sm:$0xff] }
 0x42f   :  { %7969 = vmatprep.subr.bf16.mxu1 %v7968_v18  ;;  %v4329_v18 = vld [vmem:[%s10959_s5 + $0x58] sm:$0xff] }
 0x430   :  { %v8446_v47 = vpack.c.bf16 %v4329_v18, %v4326_v42  ;;  %v4572_v42 = vld [vmem:[%s10959_s5 + $0x7f0] sm:$0xff]  ;;  %v4575_v18 = vld [vmem:[%s10959_s5 + $0x808] sm:$0xff] }
 0x431   :  { %v8512_v46 = vpack.c.bf16 %v4575_v18, %v4572_v42 }
 0x432   :  { %7971 = vmatpush1.bf16.msra.mxu1 %v7970_v48  ;;  %v4332_v48 = vld [vmem:[%s10959_s5 + $0x70] sm:$0xff] }
 0x433   :  { %7973 = vmatprep.subr.bf16.mxu1 %v7972_v43  ;;  %v4335_v43 = vld [vmem:[%s10959_s5 + $0x88] sm:$0xff] }
 0x434   :  { %v8450_v24 = vpack.c.bf16 %v4335_v43, %v4332_v48  ;;  %v4578_v48 = vld [vmem:[%s10959_s5 + $0x820] sm:$0xff] }
 0x435   :  { %v8516_v43 = vpack.c.bf16 %v4581_v39, %v4578_v48  ;;  %v5251_v48 = vld [vmem:[%s10962_s8 + $0x28] sm:$0xff]  ;;  %v5253_v39 = vld [vmem:[%s10962_s8 + $0x38] sm:$0xff] }
 0x436   :  { %7975 = vmatpush1.bf16.msra.mxu1 %v7974_v55  ;;  %v4395_v55 = vld [vmem:[%s10959_s5 + $0x268] sm:$0xff] }
 0x437   :  { %7977 = vmatprep.subr.bf16.mxu1 %v7976_v59  ;;  %v8454_v59 = vpack.c.bf16 %v4341_v57, %v4338_v52  ;;  %v8456_v44 = vpack.c.bf16 %v4395_v55, %v4392_v58  ;;  %v4536_v58 = vld [vmem:[%s10959_s5 + $0x6d0] sm:$0xff]  ;;  %v4539_v55 = vld [vmem:[%s10959_s5 + $0x6e8] sm:$0xff] }
 0x43a   :  { %7979 = vmatpush1.bf16.msra.mxu1 %v7978_v56  ;;  %v4401_v56 = vld [vmem:[%s10959_s5 + $0x298] sm:$0xff] }
 0x43b   :  { %7981 = vmatprep.subr.bf16.mxu1 %v7980_v63  ;;  %v8458_v63 = vpack.c.bf16 %v4347_v11, %v4344_v36  ;;  %v8460_v3 = vpack.c.bf16 %v4401_v56, %v4398_v41  ;;  %v8522_v36 = vpack.c.bf16 %v4539_v55, %v4536_v58  ;;  %v4542_v41 = vld [vmem:[%s10959_s5 + $0x700] sm:$0xff]  ;;  %v4545_v56 = vld [vmem:[%s10959_s5 + $0x718] sm:$0xff]  ;;  %v8564_v55 = vpack.c.bf16 %v5253_v39, %v5251_v48  ;;  %v4639_v48 = vld [vmem:[%s10959_s5 + $0xa08] sm:$0xff] }
 0x43c   :  { %v4622_v58 = vld [vmem:[%s10959_s5 + $0x980] sm:$0xff]  ;;  %v4643_v39 = vld [vmem:[%s10959_s5 + $0xa28] sm:$0xff] }
 0x43d   :  { %v6291_v21 = vpop.f32.mrb[22].mxu0 }
 0x43e   :  { %v6292_v10 = vpop.f32.mrb[23].mxu0  ;;  %7983 = vmatpush1.bf16.msra.mxu1 %v7982_v9  ;;  %v4407_v9 = vld [vmem:[%s10959_s5 + $0x2c8] sm:$0xff] }
 0x43f   :  { %v6293_v1 = vadd.f32 %v6292_v10, %v6291_v21  ;;  %7985 = vmatprep.subr.bf16.mxu1 %v7984_v61  ;;  %v8462_v61 = vpack.c.bf16 %v4353_v13, %v4350_v45  ;;  %v8464_v60 = vpack.c.bf16 %v4407_v9, %v4404_v2  ;;  %v4413_v21 = vld [vmem:[%s10959_s5 + $0x2f8] sm:$0xff]  ;;  %v8466_v10 = vpack.c.bf16 %v4359_v16, %v4356_v17  ;;  %v4548_v2 = vld [vmem:[%s10959_s5 + $0x730] sm:$0xff]  ;;  %v4551_v9 = vld [vmem:[%s10959_s5 + $0x748] sm:$0xff] }
 0x440   :  { %v8526_v45 = vpack.c.bf16 %v4545_v56, %v4542_v41  ;;  %v4604_v17 = vld [vmem:[%s10959_s5 + $0x8f0] sm:$0xff] }
 0x441   :  { %v9958_v50 = vadd.f32 %v6293_v1, %v9949_v27  ;;  %v4377_v27 = vld [vmem:[%s10959_s5 + $0x1d8] sm:$0xff]  ;;  %v4362_v1 = vld [vmem:[%s10959_s5 + $0x160] sm:$0xff] }
 0x442   :  { %7987 = vmatpush1.bf16.msra.mxu1 %v7986_v26  ;;  %v8444_v40 = vpack.c.bf16 %v4377_v27, %v4374_v25  ;;  %v8468_v26 = vpack.c.bf16 %v4413_v21, %v4410_v20  ;;  %v8508_v27 = vpack.c.bf16 %v4569_v38, %v4566_v33  ;;  %v4600_v20 = vld [vmem:[%s10959_s5 + $0x8d0] sm:$0xff]  ;;  %v4603_v21 = vld [vmem:[%s10959_s5 + $0x8e8] sm:$0xff]  ;;  %v5249_v38 = vld [vmem:[%s10962_s8 + $0x18] sm:$0xff] }
 0x443   :  { %7989 = vmatprep.subr.bf16.mxu1 %v7988_v34  ;;  %v4365_v34 = vld [vmem:[%s10959_s5 + $0x178] sm:$0xff]  ;;  %v5247_v33 = vld [vmem:[%s10962_s8 + $0x8] sm:$0xff] }
 0x444   :  { %v8470_v30 = vpack.c.bf16 %v4365_v34, %v4362_v1  ;;  %v4605_v1 = vld [vmem:[%s10959_s5 + $0x8f8] sm:$0xff]  ;;  %v4554_v34 = vld [vmem:[%s10959_s5 + $0x760] sm:$0xff] }
 0x446   :  { %7991 = vmatpush1.bf16.msra.mxu1 %v7990_v49  ;;  %v4512_v49 = vld [vmem:[%s10959_s5 + $0x610] sm:$0xff] }
 0x447   :  { %8441 = vmatprep.subr.bf16.mxu1 %v8440_v62  ;;  %v4515_v62 = vld [vmem:[%s10959_s5 + $0x628] sm:$0xff] }
 0x448   :  { %v8506_v25 = vpack.c.bf16 %v4515_v62, %v4512_v49  ;;  %v4610_v49 = vld [vmem:[%s10959_s5 + $0x920] sm:$0xff] }
 0x449   :  { %3815 = vmatmul.mubr.f32.vlgmr.msra.gmra.mrb[8].mxu1 %v9289_v4  ;;  %v4389_v4 = vld [vmem:[%s10959_s5 + $0x238] sm:$0xff] }
 0x44a   :  { %8443 = vmatpush3.bf16.msra.mxu1 %v8442_v7  ;;  %5019 = vmatprep.mubr.f32.mxu1 %v4312_v14  ;;  %v8452_v14 = vpack.c.bf16 %v4389_v4, %v4386_v51  ;;  %v4518_v7 = vld [vmem:[%s10959_s5 + $0x640] sm:$0xff]  ;;  %v4533_v4 = vld [vmem:[%s10959_s5 + $0x6b8] sm:$0xff] }
 0x44b   :  { %8445 = vmatprep.subr.bf16.mxu1 %v8444_v40  ;;  %v4521_v40 = vld [vmem:[%s10959_s5 + $0x658] sm:$0xff]  ;;  %v4530_v51 = vld [vmem:[%s10959_s5 + $0x6a0] sm:$0xff] }
 0x44c   :  { %v8510_v29 = vpack.c.bf16 %v4521_v40, %v4518_v7  ;;  %v8518_v52 = vpack.c.bf16 %v4533_v4, %v4530_v51  ;;  %v2318_v7 = vrot.slane %v9747_v6, %v9186_v23  ;;  %v4616_v23 = vld [vmem:[%s10959_s5 + $0x950] sm:$0xff] }
 0x44e   :  { %8447 = vmatpush3.bf16.msra.mxu1 %v8446_v47  ;;  %v4524_v47 = vld [vmem:[%s10959_s5 + $0x670] sm:$0xff] }
 0x44f   :  { %8449 = vmatprep.subr.bf16.mxu1 %v8448_v15  ;;  %v4527_v15 = vld [vmem:[%s10959_s5 + $0x688] sm:$0xff] }
 0x452   :  { %8451 = vmatpush3.bf16.msra.mxu1 %v8450_v24  ;;  %v4584_v24 = vld [vmem:[%s10959_s5 + $0x850] sm:$0xff] }
 0x453   :  { %8453 = vmatprep.subr.bf16.mxu1 %v8452_v14  ;;  %v4587_v14 = vld [vmem:[%s10959_s5 + $0x868] sm:$0xff] }
 0x454   :  { %v8520_v57 = vpack.c.bf16 %v4587_v14, %v4584_v24  ;;  %v4612_v24 = vld [vmem:[%s10959_s5 + $0x930] sm:$0xff]  ;;  %v4615_v14 = vld [vmem:[%s10959_s5 + $0x948] sm:$0xff] }
 0x455   :  { %v8414_v41 = vpack.c.bf16 %v4615_v14, %v4612_v24  ;;  %v5268_v24 = vld [vmem:[%s10962_s8 + $0xb0] sm:$0xff]  ;;  %v5271_v14 = vld [vmem:[%s10962_s8 + $0xc8] sm:$0xff] }
 0x456   :  { %8455 = vmatpush3.bf16.msra.mxu1 %v8454_v59  ;;  %v4590_v59 = vld [vmem:[%s10959_s5 + $0x880] sm:$0xff] }
 0x457   :  { %8457 = vmatprep.subr.bf16.mxu1 %v8456_v44  ;;  %v4593_v44 = vld [vmem:[%s10959_s5 + $0x898] sm:$0xff] }
 0x458   :  { %v8524_v11 = vpack.c.bf16 %v4593_v44, %v4590_v59  ;;  %v5250_v59 = vld [vmem:[%s10962_s8 + $0x20] sm:$0xff]  ;;  %v5252_v44 = vld [vmem:[%s10962_s8 + $0x30] sm:$0xff] }
 0x45a   :  { %8459 = vmatpush3.bf16.msra.mxu1 %v8458_v63  ;;  %v4596_v63 = vld [vmem:[%s10959_s5 + $0x8b0] sm:$0xff] }
 0x45b   :  { %8461 = vmatprep.subr.bf16.mxu1 %v8460_v3  ;;  %v4599_v3 = vld [vmem:[%s10959_s5 + $0x8c8] sm:$0xff] }
 0x45c   :  { %v8528_v13 = vpack.c.bf16 %v4599_v3, %v4596_v63  ;;  %v4618_v63 = vld [vmem:[%s10959_s5 + $0x960] sm:$0xff]  ;;  %v4621_v3 = vld [vmem:[%s10959_s5 + $0x978] sm:$0xff] }
 0x45e   :  { %8463 = vmatpush3.bf16.msra.mxu1 %v8462_v61  ;;  %v8530_v61 = vpack.c.bf16 %v4551_v9, %v4548_v2  ;;  %v4628_v2 = vld [vmem:[%s10959_s5 + $0x9b0] sm:$0xff] }
 0x45f   :  { %8465 = vmatprep.subr.bf16.mxu1 %v8464_v60  ;;  %v4601_v60 = vld [vmem:[%s10959_s5 + $0x8d8] sm:$0xff] }
 0x460   :  { %v8404_v16 = vpack.c.bf16 %v4604_v17, %v4601_v60  ;;  %v5256_v60 = vld [vmem:[%s10962_s8 + $0x50] sm:$0xff]  ;;  %v5259_v17 = vld [vmem:[%s10962_s8 + $0x68] sm:$0xff] }
 0x462   :  { %8467 = vmatpush3.bf16.msra.mxu1 %v8466_v10  ;;  %v4602_v10 = vld [vmem:[%s10959_s5 + $0x8e0] sm:$0xff]  ;;  %8405 = vmatprep.subr.bf16.mxu0 %v8404_v16  ;;  %v5261_v16 = vld [vmem:[%s10962_s8 + $0x78] sm:$0xff] }
 0x463   :  { %8469 = vmatprep.subr.bf16.mxu1 %v8468_v26  ;;  %v8406_v26 = vpack.c.bf16 %v4603_v21, %v4600_v20  ;;  %v8532_v53 = vpack.c.bf16 %v4605_v1, %v4602_v10  ;;  %v8418_v20 = vpack.c.bf16 %v4621_v3, %v4618_v63  ;;  %v4624_v10 = vld [vmem:[%s10959_s5 + $0x990] sm:$0xff]  ;;  %v4631_v1 = vld [vmem:[%s10959_s5 + $0x9c8] sm:$0xff] }
 0x464   :  { %v5272_v63 = vld [vmem:[%s10962_s8 + $0xd0] sm:$0xff] }
 0x465   :  { %8407 = vmatpush1.bf16.msra.mxu0 %v8406_v26  ;;  %v4627_v26 = vld [vmem:[%s10959_s5 + $0x9a8] sm:$0xff] }
 0x466   :  { %8471 = vmatpush3.bf16.msra.mxu1 %v8470_v30  ;;  %v8534_v30 = vpack.c.bf16 %v4557_v28, %v4554_v34  ;;  %v4634_v28 = vld [vmem:[%s10959_s5 + $0x9e0] sm:$0xff] }
 0x467   :  { %8505 = vmatprep.subr.bf16.mxu1 %v8504_v31  ;;  %v4607_v31 = vld [vmem:[%s10959_s5 + $0x908] sm:$0xff] }
 0x468   :  { %v8408_v62 = vpack.c.bf16 %v4610_v49, %v4607_v31  ;;  %v5260_v31 = vld [vmem:[%s10962_s8 + $0x70] sm:$0xff]  ;;  %v5263_v49 = vld [vmem:[%s10962_s8 + $0x88] sm:$0xff] }
 0x469   :  { %5020 = vmatmul.mubr.f32.vlgmr.msra.gmra.mrb[10].mxu1 %v4311_v12  ;;  %v8514_v12 = vpack.c.bf16 %v4527_v15, %v4524_v47  ;;  %v4613_v47 = vld [vmem:[%s10959_s5 + $0x938] sm:$0xff] }
 0x46a   :  { %8507 = vmatpush3.bf16.msra.mxu1 %v8506_v25  ;;  %8409 = vmatprep.subr.bf16.mxu0 %v8408_v62  ;;  %v8560_v25 = vpack.c.bf16 %v5249_v38, %v5247_v33  ;;  %v8412_v4 = vpack.c.bf16 %v4616_v23, %v4613_v47  ;;  %v5265_v62 = vld [vmem:[%s10962_s8 + $0x98] sm:$0xff]  ;;  %v8422_v33 = vpack.c.bf16 %v4627_v26, %v4624_v10  ;;  %v5267_v47 = vld [vmem:[%s10962_s8 + $0xa8] sm:$0xff]  ;;  %v4416_v10 = vld [vmem:[%s10959_s5 + $0x310] sm:$0xff] }
 0x46b   :  { %8509 = vmatprep.subr.bf16.mxu1 %v8508_v27  ;;  %v2314_v27 = vrot.slane %v9747_v6, %v9203_v19  ;;  %v5246_v19 = vld [vmem:[%s10962_s8] sm:$0xff]  ;;  %v5248_v6 = vld [vmem:[%s10962_s8 + $0x10] sm:$0xff]  ;;  %v8424_v38 = vpack.c.bf16 %v4634_v28, %v4631_v1  ;;  %v4419_v26 = vld [vmem:[%s10959_s5 + $0x328] sm:$0xff] }
 0x46c   :  { %v4473_v28 = vld [vmem:[%s10959_s5 + $0x4d8] sm:$0xff] }
 0x46e   :  { %8511 = vmatpush3.bf16.msra.mxu1 %v8510_v29  ;;  %v4606_v29 = vld [vmem:[%s10959_s5 + $0x900] sm:$0xff] }
 0x46f   :  { %8513 = vmatprep.subr.bf16.mxu1 %v8512_v46  ;;  %v4609_v46 = vld [vmem:[%s10959_s5 + $0x918] sm:$0xff] }
 0x472   :  { %8515 = vmatpush3.bf16.msra.mxu1 %v8514_v12 }
 0x473   :  { %8517 = vmatprep.subr.bf16.mxu1 %v8516_v43  ;;  %v8410_v43 = vpack.c.bf16 %v4609_v46, %v4606_v29  ;;  %v5262_v29 = vld [vmem:[%s10962_s8 + $0x80] sm:$0xff]  ;;  %v5264_v46 = vld [vmem:[%s10962_s8 + $0x90] sm:$0xff] }
 0x476   :  { %8519 = vmatpush3.bf16.msra.mxu1 %v8518_v52  ;;  %v4619_v52 = vld [vmem:[%s10959_s5 + $0x968] sm:$0xff] }
 0x477   :  { %8521 = vmatprep.subr.bf16.mxu1 %v8520_v57  ;;  %v8562_v57 = vpack.c.bf16 %v5248_v6, %v5246_v19  ;;  %v8416_v56 = vpack.c.bf16 %v4622_v58, %v4619_v52  ;;  %v4636_v6 = vld [vmem:[%s10959_s5 + $0x9f0] sm:$0xff]  ;;  %v5273_v52 = vld [vmem:[%s10962_s8 + $0xd8] sm:$0xff] }
 0x47a   :  { %8523 = vmatpush3.bf16.msra.mxu1 %v8522_v36  ;;  %v5255_v36 = vld [vmem:[%s10962_s8 + $0x48] sm:$0xff] }
 0x47b   :  { %8525 = vmatprep.subr.bf16.mxu1 %v8524_v11  ;;  %v5257_v11 = vld [vmem:[%s10962_s8 + $0x58] sm:$0xff] }
 0x47c   :  { %v8568_v9 = vpack.c.bf16 %v5257_v11, %v5255_v36  ;;  %v4652_v11 = vld [vmem:[%s10959_s5 + $0xa70] sm:$0xff] }
 0x47e   :  { %8527 = vmatpush3.bf16.msra.mxu1 %v8526_v45  ;;  %v4625_v45 = vld [vmem:[%s10959_s5 + $0x998] sm:$0xff] }
 0x47f   :  { %8529 = vmatprep.subr.bf16.mxu1 %v8528_v13  ;;  %v8566_v13 = vpack.c.bf16 %v5252_v44, %v5250_v59  ;;  %v8420_v21 = vpack.c.bf16 %v4628_v2, %v4625_v45  ;;  %v4645_v59 = vld [vmem:[%s10959_s5 + $0xa38] sm:$0xff]  ;;  %v4651_v2 = vld [vmem:[%s10959_s5 + $0xa68] sm:$0xff] }
 0x480   :  { %v4649_v44 = vld [vmem:[%s10959_s5 + $0xa58] sm:$0xff] }
 0x481   :  { %v8436_v45 = vpack.c.bf16 %v4652_v11, %v4649_v44  ;;  %v4506_v44 = vld [vmem:[%s10959_s5 + $0x5e0] sm:$0xff] }
 0x482   :  { %8531 = vmatpush3.bf16.msra.mxu1 %v8530_v61  ;;  %v5254_v61 = vld [vmem:[%s10962_s8 + $0x40] sm:$0xff] }
 0x483   :  { %8533 = vmatprep.subr.bf16.mxu1 %v8532_v53  ;;  %v8570_v34 = vpack.c.bf16 %v5256_v60, %v5254_v61  ;;  %v8572_v53 = vpack.c.bf16 %v5261_v16, %v5259_v17  ;;  %v4464_v61 = vld [vmem:[%s10959_s5 + $0x490] sm:$0xff]  ;;  %v4467_v60 = vld [vmem:[%s10959_s5 + $0x4a8] sm:$0xff] }
 0x486   :  { %8535 = vmatpush3.bf16.msra.mxu1 %v8534_v30  ;;  %v5258_v30 = vld [vmem:[%s10962_s8 + $0x60] sm:$0xff] }
 0x487   :  { %8561 = vmatprep.subr.bf16.mxu1 %v8560_v25  ;;  %v4630_v25 = vld [vmem:[%s10959_s5 + $0x9c0] sm:$0xff] }
 0x51c   :  { %v3816_v40 = vpop.f32.mrb[8].mxu1 }
 0x51d   :  { %v8733_v42 = vadd.f32 %v3816_v40, %v2314_v27  ;;  %v3818_v18 = vpop.f32.mrb[9].mxu1  ;;  %v4633_v27 = vld [vmem:[%s10959_s5 + $0x9d8] sm:$0xff]  ;;  %v8574_v40 = vpack.c.bf16 %v5260_v31, %v5258_v30  ;;  %v4317_v30 = vmax.f32 %v9958_v50, 0.0 }
 0x51e   :  { %v8734_v15 = vadd.f32 %v3818_v18, %v2318_v7  ;;  %v4637_v7 = vld [vmem:[%s10959_s5 + $0x9f8] sm:$0xff]  ;;  %v8576_v18 = vpack.c.bf16 %v5265_v62, %v5263_v49  ;;  %v8426_v23 = vpack.c.bf16 %v4633_v27, %v4630_v25  ;;  %v4422_v49 = vld [vmem:[%s10959_s5 + $0x340] sm:$0xff] }
 0x51f   :  { %v4315_v51 = vmax.f32 %v8733_v42, 0.0  ;;  %v4640_v42 = vld [vmem:[%s10959_s5 + $0xa10] sm:$0xff]  ;;  %v4425_v62 = vld [vmem:[%s10959_s5 + $0x358] sm:$0xff] }
 0x520   :  { %v4316_v12 = vmax.f32 %v8734_v15, 0.0  ;;  %v5269_v15 = vld [vmem:[%s10962_s8 + $0xb8] sm:$0xff]  ;;  %v8428_v19 = vpack.c.bf16 %v4640_v42, %v4637_v7  ;;  %v8478_v25 = vpack.c.bf16 %v4425_v62, %v4422_v49  ;;  %v4428_v7 = vld [vmem:[%s10959_s5 + $0x370] sm:$0xff]  ;;  %v4482_v42 = vld [vmem:[%s10959_s5 + $0x520] sm:$0xff] }
 0x521   :  { %v4644_v62 = vld [vmem:[%s10959_s5 + $0xa30] sm:$0xff]  ;;  %v5297_v50 = vld [vmem:[%s10962_s8 + $0x198] sm:$0xff] }
 0x522   :  { %4877 = vmatprep.mubr.f32.mxu0 %v4316_v12  ;;  %5159 = vmatprep.mubr.f32.mxu1 %v4316_v12  ;;  %v8578_v12 = vpack.c.bf16 %v5264_v46, %v5262_v29  ;;  %v4434_v29 = vld [vmem:[%s10959_s5 + $0x3a0] sm:$0xff]  ;;  %v4437_v46 = vld [vmem:[%s10959_s5 + $0x3b8] sm:$0xff] }
 0x523   :  { %4878 = vmatmul.mubr.f32.vlgmr.msra.gmra.mrb[24].mxu0 %v4315_v51  ;;  %5160 = vmatmul.mubr.f32.vlgmr.msra.gmra.mrb[12].mxu1 %v4315_v51  ;;  %v8580_v51 = vpack.c.bf16 %v5269_v15, %v5267_v47  ;;  %v4488_v47 = vld [vmem:[%s10959_s5 + $0x550] sm:$0xff]  ;;  %v4491_v15 = vld [vmem:[%s10959_s5 + $0x568] sm:$0xff] }
 0x524   :  { %8411 = vmatpush1.bf16.msra.mxu0 %v8410_v43  ;;  %4948 = vmatprep.mubr.f32.mxu0 %v8820_v0  ;;  %v4646_v43 = vld [vmem:[%s10959_s5 + $0xa40] sm:$0xff] }
 0x525   :  { %8413 = vmatprep.subr.bf16.mxu0 %v8412_v4  ;;  %8563 = vmatpush1.bf16.msra.mxu1 %v8562_v57  ;;  %v5266_v4 = vld [vmem:[%s10962_s8 + $0xa0] sm:$0xff]  ;;  %v8430_v57 = vpack.c.bf16 %v4639_v48, %v4636_v6  ;;  %v8432_v58 = vpack.c.bf16 %v4646_v43, %v4643_v39  ;;  %v4440_v6 = vld [vmem:[%s10959_s5 + $0x3d0] sm:$0xff]  ;;  %v4443_v48 = vld [vmem:[%s10959_s5 + $0x3e8] sm:$0xff] }
 0x526   :  { %8565 = vmatprep.subr.bf16.mxu1 %v8564_v55  ;;  %v4642_v55 = vld [vmem:[%s10959_s5 + $0xa20] sm:$0xff]  ;;  %v8582_v36 = vpack.c.bf16 %v5268_v24, %v5266_v4  ;;  %v8490_v43 = vpack.c.bf16 %v4443_v48, %v4440_v6  ;;  %v4449_v24 = vld [vmem:[%s10959_s5 + $0x418] sm:$0xff] }
 0x527   :  { %v8434_v3 = vpack.c.bf16 %v4645_v59, %v4642_v55  ;;  %v4494_v39 = vld [vmem:[%s10959_s5 + $0x580] sm:$0xff]  ;;  %v4452_v55 = vld [vmem:[%s10959_s5 + $0x430] sm:$0xff]  ;;  %v4455_v59 = vld [vmem:[%s10959_s5 + $0x448] sm:$0xff] }
 0x528   :  { %8415 = vmatpush1.bf16.msra.mxu0 %v8414_v41  ;;  %v8584_v41 = vpack.c.bf16 %v5273_v52, %v5271_v14  ;;  %v4446_v4 = vld [vmem:[%s10959_s5 + $0x400] sm:$0xff]  ;;  %v4500_v14 = vld [vmem:[%s10959_s5 + $0x5b0] sm:$0xff]  ;;  %v4503_v52 = vld [vmem:[%s10959_s5 + $0x5c8] sm:$0xff]  ;;  %v8498_v11 = vpack.c.bf16 %v4455_v59, %v4452_v55 }
 0x529   :  { %8417 = vmatprep.subr.bf16.mxu0 %v8416_v56  ;;  %8567 = vmatpush1.bf16.msra.mxu1 %v8566_v13  ;;  %v5270_v56 = vld [vmem:[%s10962_s8 + $0xc0] sm:$0xff]  ;;  %v4648_v13 = vld [vmem:[%s10959_s5 + $0xa50] sm:$0xff]  ;;  %v5285_v6 = vld [vmem:[%s10962_s8 + $0x138] sm:$0xff] }
 0x52a   :  { %8569 = vmatprep.subr.bf16.mxu1 %v8568_v9  ;;  %v8586_v9 = vpack.c.bf16 %v5272_v63, %v5270_v56  ;;  %v8438_v16 = vpack.c.bf16 %v4651_v2, %v4648_v13  ;;  %v4458_v56 = vld [vmem:[%s10959_s5 + $0x460] sm:$0xff]  ;;  %v4461_v63 = vld [vmem:[%s10959_s5 + $0x478] sm:$0xff]  ;;  %v4611_v13 = vld [vmem:[%s10959_s5 + $0x928] sm:$0xff] }
 0x52b   :  { %v5291_v55 = vld [vmem:[%s10962_s8 + $0x168] sm:$0xff]  ;;  %v5293_v59 = vld [vmem:[%s10962_s8 + $0x178] sm:$0xff] }
 0x52c   :  { %8419 = vmatpush1.bf16.msra.mxu0 %v8418_v20 }
 0x52d   :  { %8421 = vmatprep.subr.bf16.mxu0 %v8420_v21  ;;  %8571 = vmatpush1.bf16.msra.mxu1 %v8570_v34  ;;  %v8472_v21 = vpack.c.bf16 %v4467_v60, %v4464_v61  ;;  %v4470_v34 = vld [vmem:[%s10959_s5 + $0x4c0] sm:$0xff]  ;;  %v4617_v60 = vld [vmem:[%s10959_s5 + $0x958] sm:$0xff] }
 0x52e   :  { %8573 = vmatprep.subr.bf16.mxu1 %v8572_v53  ;;  %v8474_v53 = vpack.c.bf16 %v4419_v26, %v4416_v10  ;;  %v8476_v31 = vpack.c.bf16 %v4473_v28, %v4470_v34  ;;  %v4614_v61 = vld [vmem:[%s10959_s5 + $0x940] sm:$0xff]  ;;  %v4632_v26 = vld [vmem:[%s10959_s5 + $0x9d0] sm:$0xff]  ;;  %v4635_v34 = vld [vmem:[%s10959_s5 + $0x9e8] sm:$0xff] }
 0x52f   :  { %v8549_v28 = vpack.c.bf16 %v4635_v34, %v4632_v26  ;;  %v5304_v26 = vld [vmem:[%s10962_s8 + $0x1d0] sm:$0xff] }
 0x530   :  { %8423 = vmatpush1.bf16.msra.mxu0 %v8422_v33  ;;  %v4476_v33 = vld [vmem:[%s10959_s5 + $0x4f0] sm:$0xff] }
 0x531   :  { %8425 = vmatprep.subr.bf16.mxu0 %v8424_v38  ;;  %8575 = vmatpush1.bf16.msra.mxu1 %v8574_v40  ;;  %v4479_v38 = vld [vmem:[%s10959_s5 + $0x508] sm:$0xff] }
 0x532   :  { %8577 = vmatprep.subr.bf16.mxu1 %v8576_v18  ;;  %v8480_v27 = vpack.c.bf16 %v4479_v38, %v4476_v33  ;;  %v4431_v40 = vld [vmem:[%s10959_s5 + $0x388] sm:$0xff]  ;;  %v8484_v18 = vpack.c.bf16 %v4485_v5, %v4482_v42  ;;  %v4650_v38 = vld [vmem:[%s10959_s5 + $0xa60] sm:$0xff] }
 0x533   :  { %v4647_v33 = vld [vmem:[%s10959_s5 + $0xa48] sm:$0xff]  ;;  %v5274_v5 = vld [vmem:[%s10962_s8 + $0xe0] sm:$0xff] }
 0x534   :  { %8427 = vmatpush1.bf16.msra.mxu0 %v8426_v23  ;;  %v8486_v23 = vpack.c.bf16 %v4437_v46, %v4434_v29  ;;  %v5281_v46 = vld [vmem:[%s10962_s8 + $0x118] sm:$0xff] }
 0x535   :  { %8429 = vmatprep.subr.bf16.mxu0 %v8428_v19  ;;  %8579 = vmatpush1.bf16.msra.mxu1 %v8578_v12  ;;  %v8488_v19 = vpack.c.bf16 %v4491_v15, %v4488_v47  ;;  %v4497_v12 = vld [vmem:[%s10959_s5 + $0x598] sm:$0xff]  ;;  %v5278_v47 = vld [vmem:[%s10962_s8 + $0x100] sm:$0xff]  ;;  %v5280_v15 = vld [vmem:[%s10962_s8 + $0x110] sm:$0xff] }
 0x536   :  { %8581 = vmatprep.subr.bf16.mxu1 %v8580_v51  ;;  %v8492_v51 = vpack.c.bf16 %v4497_v12, %v4494_v39  ;;  %v8594_v48 = vpack.c.bf16 %v5280_v15, %v5278_v47  ;;  %v5565_v15 = vld [vmem:[%s10964_s10 + $0x10] sm:$0xff] }
 0x538   :  { %8431 = vmatpush1.bf16.msra.mxu0 %v8430_v57  ;;  %v8494_v57 = vpack.c.bf16 %v4449_v24, %v4446_v4  ;;  %v5287_v4 = vld [vmem:[%s10962_s8 + $0x148] sm:$0xff]  ;;  %v5289_v24 = vld [vmem:[%s10962_s8 + $0x158] sm:$0xff] }
 0x539   :  { %8433 = vmatprep.subr.bf16.mxu0 %v8432_v58  ;;  %8583 = vmatpush1.bf16.msra.mxu1 %v8582_v36  ;;  %v8496_v58 = vpack.c.bf16 %v4503_v52, %v4500_v14  ;;  %v4509_v36 = vld [vmem:[%s10959_s5 + $0x5f8] sm:$0xff]  ;;  %v8600_v52 = vpack.c.bf16 %v5289_v24, %v5287_v4 }
 0x53a   :  { %8585 = vmatprep.subr.bf16.mxu1 %v8584_v41  ;;  %v8500_v41 = vpack.c.bf16 %v4509_v36, %v4506_v44  ;;  %v8604_v36 = vpack.c.bf16 %v5293_v59, %v5291_v55  ;;  %v5586_v4 = vld [vmem:[%s10964_s10 + $0xb8] sm:$0xff]  ;;  %v5588_v55 = vld [vmem:[%s10964_s10 + $0xc8] sm:$0xff] }
 0x53c   :  { %8435 = vmatpush1.bf16.msra.mxu0 %v8434_v3  ;;  %v6326_v17 = vpop.f32.mrb[10].mxu1  ;;  %v8502_v3 = vpack.c.bf16 %v4461_v63, %v4458_v56  ;;  %v5295_v56 = vld [vmem:[%s10962_s8 + $0x188] sm:$0xff] }
 0x53d   :  { %v6327_v20 = vpop.f32.mrb[11].mxu1  ;;  %8437 = vmatprep.subr.bf16.mxu0 %v8436_v45  ;;  %8587 = vmatpush1.bf16.msra.mxu1 %v8586_v9  ;;  %v4608_v45 = vld [vmem:[%s10959_s5 + $0x910] sm:$0xff]  ;;  %v8821_v9 = vmov 0.0|0.0   ;;  %v8608_v63 = vpack.c.bf16 %v5297_v50, %v5295_v56  ;;  %v5590_v56 = vld [vmem:[%s10964_s10 + $0xd8] sm:$0xff] }
 0x53e   :  { %v10360_v1 = vadd.f32 %v6327_v20, %v6326_v17  ;;  %v8537_v2 = vpack.c.bf16 %v4611_v13, %v4608_v45  ;;  %v8540_v17 = vpack.c.bf16 %v4617_v60, %v4614_v61  ;;  %v4623_v20 = vld [vmem:[%s10959_s5 + $0x988] sm:$0xff]  ;;  %v5296_v45 = vld [vmem:[%s10962_s8 + $0x190] sm:$0xff] }
 0x53f   :  { %v5299_v13 = vld [vmem:[%s10962_s8 + $0x1a8] sm:$0xff] }
 0x540   :  { %8439 = vmatpush1.bf16.msra.mxu0 %v8438_v16  ;;  %v4620_v16 = vld [vmem:[%s10959_s5 + $0x970] sm:$0xff] }
 0x541   :  { %8473 = vmatprep.subr.bf16.mxu0 %v8472_v21  ;;  %v8543_v21 = vpack.c.bf16 %v4623_v20, %v4620_v16  ;;  %v5300_v16 = vld [vmem:[%s10962_s8 + $0x1b0] sm:$0xff]  ;;  %v5303_v20 = vld [vmem:[%s10962_s8 + $0x1c8] sm:$0xff] }
 0x543   :  { %4949 = vmatmul.mubr.f32.vlgmr.msra.gmra.mrb[24].mxu0 %v4317_v30 }
 0x544   :  { %8475 = vmatpush3.bf16.msra.mxu0 %v8474_v53  ;;  %5089 = vmatprep.mubr.f32.mxu0 %v4314_v22  ;;  %v8482_v22 = vpack.c.bf16 %v4431_v40, %v4428_v7  ;;  %v4638_v53 = vld [vmem:[%s10959_s5 + $0xa00] sm:$0xff]  ;;  %v5277_v7 = vld [vmem:[%s10962_s8 + $0xf8] sm:$0xff]  ;;  %v8555_v40 = vpack.c.bf16 %v4647_v33, %v4644_v62  ;;  %v5308_v62 = vld [vmem:[%s10962_s8 + $0x1f0] sm:$0xff] }
 0x545   :  { %8477 = vmatprep.subr.bf16.mxu0 %v8476_v31  ;;  %v4641_v31 = vld [vmem:[%s10959_s5 + $0xa18] sm:$0xff] }
 0x546   :  { %v8552_v49 = vpack.c.bf16 %v4641_v31, %v4638_v53  ;;  %v5309_v53 = vld [vmem:[%s10962_s8 + $0x1f8] sm:$0xff] }
 0x548   :  { %8479 = vmatpush3.bf16.msra.mxu0 %v8478_v25  ;;  %v4653_v25 = vld [vmem:[%s10959_s5 + $0xa78] sm:$0xff] }
 0x549   :  { %8481 = vmatprep.subr.bf16.mxu0 %v8480_v27  ;;  %v5275_v27 = vld [vmem:[%s10962_s8 + $0xe8] sm:$0xff]  ;;  %v8558_v39 = vpack.c.bf16 %v4653_v25, %v4650_v38  ;;  %v5313_v25 = vld [vmem:[%s10962_s8 + $0x218] sm:$0xff] }
 0x54a   :  { %v8588_v42 = vpack.c.bf16 %v5277_v7, %v5275_v27  ;;  %v5311_v38 = vld [vmem:[%s10962_s8 + $0x208] sm:$0xff]  ;;  %v5579_v7 = vld [vmem:[%s10964_s10 + $0x80] sm:$0xff] }
 0x54b   :  { %v8624_v27 = vpack.c.bf16 %v5313_v25, %v5311_v38 }
 0x54c   :  { %8483 = vmatpush3.bf16.msra.mxu0 %v8482_v22  ;;  %v5276_v22 = vld [vmem:[%s10962_s8 + $0xf0] sm:$0xff]  ;;  %8589 = vmatprep.subr.bf16.mxu1 %v8588_v42  ;;  %v5563_v42 = vld [vmem:[%s10964_s10] sm:$0xff] }
 0x54d   :  { %8485 = vmatprep.subr.bf16.mxu0 %v8484_v18  ;;  %v5279_v18 = vld [vmem:[%s10962_s8 + $0x108] sm:$0xff]  ;;  %v8590_v29 = vpack.c.bf16 %v5276_v22, %v5274_v5 }
 0x54e   :  { %v5564_v22 = vld [vmem:[%s10964_s10 + $0x8] sm:$0xff] }
 0x54f   :  { %8591 = vmatpush1.bf16.msra.mxu1 %v8590_v29  ;;  %v5582_v29 = vld [vmem:[%s10964_s10 + $0x98] sm:$0xff] }
 0x550   :  { %8487 = vmatpush3.bf16.msra.mxu0 %v8486_v23  ;;  %v8592_v23 = vpack.c.bf16 %v5281_v46, %v5279_v18  ;;  %v5581_v18 = vld [vmem:[%s10964_s10 + $0x90] sm:$0xff]  ;;  %v8654_v46 = vpack.c.bf16 %v5564_v22, %v5563_v42  ;;  %v5321_v42 = vld [vmem:[%s10962_s8 + $0x258] sm:$0xff] }
 0x551   :  { %8489 = vmatprep.subr.bf16.mxu0 %v8488_v19  ;;  %v5283_v19 = vld [vmem:[%s10962_s8 + $0x128] sm:$0xff]  ;;  %v8656_v47 = vpack.c.bf16 %v5582_v29, %v5581_v18  ;;  %v5318_v18 = vld [vmem:[%s10962_s8 + $0x240] sm:$0xff]  ;;  %v5320_v29 = vld [vmem:[%s10962_s8 + $0x250] sm:$0xff] }
 0x552   :  { %8593 = vmatprep.subr.bf16.mxu1 %v8592_v23  ;;  %v8596_v12 = vpack.c.bf16 %v5285_v6, %v5283_v19  ;;  %v5566_v23 = vld [vmem:[%s10964_s10 + $0x18] sm:$0xff]  ;;  %v5583_v19 = vld [vmem:[%s10964_s10 + $0xa0] sm:$0xff]  ;;  %v5584_v6 = vld [vmem:[%s10964_s10 + $0xa8] sm:$0xff] }
 0x553   :  { %8595 = vmatpush1.bf16.msra.mxu1 %v8594_v48  ;;  %v8658_v48 = vpack.c.bf16 %v5566_v23, %v5565_v15  ;;  %v8634_v15 = vpack.c.bf16 %v5320_v29, %v5318_v18  ;;  %v5677_v29 = vld [vmem:[%s10966_s12 + $0x20] sm:$0xff] }
 0x554   :  { %8491 = vmatpush3.bf16.msra.mxu0 %v8490_v43  ;;  %v5282_v43 = vld [vmem:[%s10962_s8 + $0x120] sm:$0xff]  ;;  %8597 = vmatprep.subr.bf16.mxu1 %v8596_v12 }
 0x555   :  { %8493 = vmatprep.subr.bf16.mxu0 %v8492_v51  ;;  %v5284_v51 = vld [vmem:[%s10962_s8 + $0x130] sm:$0xff]  ;;  %v5567_v12 = vld [vmem:[%s10964_s10 + $0x20] sm:$0xff] }
 0x556   :  { %v8598_v14 = vpack.c.bf16 %v5284_v51, %v5282_v43  ;;  %v5568_v43 = vld [vmem:[%s10964_s10 + $0x28] sm:$0xff]  ;;  %v5585_v51 = vld [vmem:[%s10964_s10 + $0xb0] sm:$0xff] }
 0x557   :  { %v8662_v24 = vpack.c.bf16 %v5568_v43, %v5567_v12 }
 0x558   :  { %8495 = vmatpush3.bf16.msra.mxu0 %v8494_v57  ;;  %v5286_v57 = vld [vmem:[%s10962_s8 + $0x140] sm:$0xff]  ;;  %8599 = vmatpush1.bf16.msra.mxu1 %v8598_v14  ;;  %v8664_v14 = vpack.c.bf16 %v5586_v4, %v5585_v51  ;;  %v5328_v4 = vld [vmem:[%s10962_s8 + $0x290] sm:$0xff] }
 0x559   :  { %8497 = vmatprep.subr.bf16.mxu0 %v8496_v58  ;;  %v5288_v58 = vld [vmem:[%s10962_s8 + $0x150] sm:$0xff]  ;;  %8601 = vmatprep.subr.bf16.mxu1 %v8600_v52  ;;  %v5326_v51 = vld [vmem:[%s10962_s8 + $0x280] sm:$0xff] }
 0x55a   :  { %v8602_v44 = vpack.c.bf16 %v5288_v58, %v5286_v57  ;;  %v5569_v52 = vld [vmem:[%s10964_s10 + $0x30] sm:$0xff]  ;;  %v5570_v57 = vld [vmem:[%s10964_s10 + $0x38] sm:$0xff]  ;;  %v5587_v58 = vld [vmem:[%s10964_s10 + $0xc0] sm:$0xff] }
 0x55b   :  { %v8666_v59 = vpack.c.bf16 %v5570_v57, %v5569_v52  ;;  %v8642_v52 = vpack.c.bf16 %v5328_v4, %v5326_v51  ;;  %v5685_v4 = vld [vmem:[%s10966_s12 + $0x60] sm:$0xff] }
 0x55c   :  { %8499 = vmatpush3.bf16.msra.mxu0 %v8498_v11  ;;  %v5290_v11 = vld [vmem:[%s10962_s8 + $0x160] sm:$0xff]  ;;  %8603 = vmatpush1.bf16.msra.mxu1 %v8602_v44  ;;  %v8668_v44 = vpack.c.bf16 %v5588_v55, %v5587_v58 }
 0x55d   :  { %8501 = vmatprep.subr.bf16.mxu0 %v8500_v41  ;;  %v5292_v41 = vld [vmem:[%s10962_s8 + $0x170] sm:$0xff]  ;;  %8605 = vmatprep.subr.bf16.mxu1 %v8604_v36  ;;  %v5571_v36 = vld [vmem:[%s10964_s10 + $0x40] sm:$0xff] }
 0x560   :  { %8503 = vmatpush3.bf16.msra.mxu0 %v8502_v3  ;;  %v5294_v3 = vld [vmem:[%s10962_s8 + $0x180] sm:$0xff] }
 0x561   :  { %8536 = vmatprep.subr.bf16.mxu0 %v8821_v9  ;;  %v8610_v61 = vpack.c.bf16 %v5296_v45, %v5294_v3  ;;  %v5574_v3 = vld [vmem:[%s10964_s10 + $0x58] sm:$0xff]  ;;  %v5591_v45 = vld [vmem:[%s10964_s10 + $0xe0] sm:$0xff] }
 0x563   :  { %5090 = vmatmul.mubr.f32.vlgmr.msra.gmra.mrb[26].mxu0 %v4313_v54  ;;  %v4629_v54 = vld [vmem:[%s10959_s5 + $0x9b8] sm:$0xff] }
 0x564   :  { %8538 = vmatpush3.bf16.msra.mxu0 %v8537_v2  ;;  %6517 = vmatprep.mubr.msk.f32.mxu0 %vm8822_vm1, %v8820_v0  ;;  %v8546_v10 = vpack.c.bf16 %v4629_v54, %v4626_v8  ;;  %v5301_v2 = vld [vmem:[%s10962_s8 + $0x1b8] sm:$0xff] }
 0x565   :  { %8539 = vmatprep.subr.bf16.mxu0 %v8821_v9  ;;  %v8612_v60 = vpack.c.bf16 %v5301_v2, %v5299_v13  ;;  %v5592_v13 = vld [vmem:[%s10964_s10 + $0xe8] sm:$0xff] }
 0x568   :  { %8541 = vmatpush3.bf16.msra.mxu0 %v8540_v17  ;;  %v5298_v17 = vld [vmem:[%s10962_s8 + $0x1a0] sm:$0xff] }
 0x569   :  { %8542 = vmatprep.subr.bf16.mxu0 %v8821_v9  ;;  %v8614_v8 = vpack.c.bf16 %v5300_v16, %v5298_v17  ;;  %v8676_v16 = vpack.c.bf16 %v5592_v13, %v5591_v45 }
 0x56c   :  { %8544 = vmatpush3.bf16.msra.mxu0 %v8543_v21  ;;  %v5305_v21 = vld [vmem:[%s10962_s8 + $0x1d8] sm:$0xff] }
 0x56d   :  { %8545 = vmatprep.subr.bf16.mxu0 %v8821_v9  ;;  %v8616_v54 = vpack.c.bf16 %v5305_v21, %v5303_v20  ;;  %v4654_v20 = vld [vmem:[%s10960_s6] sm:$0x7] }
 0x56e   :  { %v4659_v21 = vrot.slane %v4654_v20, %v9137_v35  ;;  %v4667_v58 = vrot.slane %v4654_v20, %v9183_v32  ;;  %v5243_v32 = vld [vmem:[%s10961_s7 + $0x28] sm:$0xff] }
 0x570   :  { %8547 = vmatpush3.bf16.msra.mxu0 %v8546_v10  ;;  %v5302_v10 = vld [vmem:[%s10962_s8 + $0x1c0] sm:$0xff] }
 0x571   :  { %8548 = vmatprep.subr.bf16.mxu0 %v8821_v9  ;;  %v8618_v34 = vpack.c.bf16 %v5304_v26, %v5302_v10 }
 0x574   :  { %8550 = vmatpush3.bf16.msra.mxu0 %v8549_v28  ;;  %v5307_v28 = vld [vmem:[%s10962_s8 + $0x1e8] sm:$0xff] }
 0x575   :  { %8551 = vmatprep.subr.bf16.mxu0 %v8821_v9  ;;  %v8620_v31 = vpack.c.bf16 %v5309_v53, %v5307_v28  ;;  %v5312_v28 = vld [vmem:[%s10962_s8 + $0x210] sm:$0xff] }
 0x578   :  { %8553 = vmatpush3.bf16.msra.mxu0 %v8552_v49  ;;  %v5306_v49 = vld [vmem:[%s10962_s8 + $0x1e0] sm:$0xff] }
 0x579   :  { %8554 = vmatprep.subr.bf16.mxu0 %v8821_v9  ;;  %v8622_v33 = vpack.c.bf16 %v5308_v62, %v5306_v49  ;;  %v5317_v49 = vld [vmem:[%s10962_s8 + $0x238] sm:$0xff] }
 0x57c   :  { %8556 = vmatpush3.bf16.msra.mxu0 %v8555_v40  ;;  %v5580_v40 = vld [vmem:[%s10964_s10 + $0x88] sm:$0xff] }
 0x57d   :  { %8557 = vmatprep.subr.bf16.mxu0 %v8821_v9  ;;  %v8652_v5 = vpack.c.bf16 %v5580_v40, %v5579_v7  ;;  %v5316_v7 = vld [vmem:[%s10962_s8 + $0x230] sm:$0xff]  ;;  %v5319_v40 = vld [vmem:[%s10962_s8 + $0x248] sm:$0xff] }
 0x57e   :  { %v8632_v22 = vpack.c.bf16 %v5321_v42, %v5319_v40 }
 0x580   :  { %8559 = vmatpush3.bf16.msra.mxu0 %v8558_v39  ;;  %v8660_v39 = vpack.c.bf16 %v5584_v6, %v5583_v19  ;;  %v5322_v19 = vld [vmem:[%s10962_s8 + $0x260] sm:$0xff]  ;;  %v5324_v6 = vld [vmem:[%s10962_s8 + $0x270] sm:$0xff] }
 0x581   :  { %8653 = vmatprep.subr.bf16.mxu0 %v8652_v5  ;;  %v8638_v12 = vpack.c.bf16 %v5324_v6, %v5322_v19  ;;  %v5681_v6 = vld [vmem:[%s10966_s12 + $0x40] sm:$0xff] }
 0x583   :  { %6518 = vmatmul.mubr.f32.vlgmr.msra.gmra.mrb[28].mxu0 %v4317_v30  ;;  %v8606_v30 = vpack.c.bf16 %v5292_v41, %v5290_v11  ;;  %v5572_v11 = vld [vmem:[%s10964_s10 + $0x48] sm:$0xff]  ;;  %v5589_v41 = vld [vmem:[%s10964_s10 + $0xd0] sm:$0xff] }
 0x584   :  { %8655 = vmatpush3.bf16.msra.mxu0 %v8654_v46  ;;  %v8670_v50 = vpack.c.bf16 %v5572_v11, %v5571_v36  ;;  %v5323_v46 = vld [vmem:[%s10962_s8 + $0x268] sm:$0xff] }
 0x585   :  { %8607 = vmatpush1.bf16.msra.mxu1 %v8606_v30  ;;  %8657 = vmatprep.subr.bf16.mxu0 %v8656_v47  ;;  %v8672_v30 = vpack.c.bf16 %v5590_v56, %v5589_v41  ;;  %v5325_v47 = vld [vmem:[%s10962_s8 + $0x278] sm:$0xff]  ;;  %v5238_v56 = vld [vmem:[%s10961_s7] sm:$0xff] }
 0x586   :  { %8609 = vmatprep.subr.bf16.mxu1 %v8608_v63  ;;  %v5573_v63 = vld [vmem:[%s10964_s10 + $0x50] sm:$0xff]  ;;  %v8636_v23 = vpack.c.bf16 %v5325_v47, %v5323_v46  ;;  %v5678_v46 = vld [vmem:[%s10966_s12 + $0x28] sm:$0xff] }
 0x587   :  { %v8691_v47 = vpack.c.bf16 %v5678_v46, %v5677_v29 }
 0x588   :  { %8659 = vmatpush3.bf16.msra.mxu0 %v8658_v48  ;;  %v5327_v48 = vld [vmem:[%s10962_s8 + $0x288] sm:$0xff] }
 0x589   :  { %8611 = vmatpush1.bf16.msra.mxu1 %v8610_v61  ;;  %8661 = vmatprep.subr.bf16.mxu0 %v8660_v39  ;;  %v5329_v39 = vld [vmem:[%s10962_s8 + $0x298] sm:$0xff] }
 0x58a   :  { %8613 = vmatprep.subr.bf16.mxu1 %v8612_v60  ;;  %v8674_v60 = vpack.c.bf16 %v5574_v3, %v5573_v63  ;;  %v8640_v43 = vpack.c.bf16 %v5329_v39, %v5327_v48  ;;  %v5682_v48 = vld [vmem:[%s10966_s12 + $0x48] sm:$0xff] }
 0x58b   :  { %v8697_v39 = vpack.c.bf16 %v5682_v48, %v5681_v6 }
 0x58c   :  { %8663 = vmatpush3.bf16.msra.mxu0 %v8662_v24  ;;  %v5239_v24 = vld [vmem:[%s10961_s7 + $0x8] sm:$0xff] }
 0x58d   :  { %8615 = vmatpush1.bf16.msra.mxu1 %v8614_v8  ;;  %8665 = vmatprep.subr.bf16.mxu0 %v8664_v14  ;;  %v4663_v8 = vrot.slane %v4654_v20, %v9145_v37  ;;  %v5241_v14 = vld [vmem:[%s10961_s7 + $0x18] sm:$0xff]  ;;  %v5575_v20 = vld [vmem:[%s10964_s10 + $0x60] sm:$0xff] }
 0x58e   :  { %8617 = vmatprep.subr.bf16.mxu1 %v8616_v54  ;;  %v8644_v57 = vpack.c.bf16 %v5241_v14, %v5239_v24  ;;  %v5686_v24 = vld [vmem:[%s10966_s12 + $0x68] sm:$0xff] }
 0x58f   :  { %v8703_v14 = vpack.c.bf16 %v5686_v24, %v5685_v4 }
 0x590   :  { %8667 = vmatpush3.bf16.msra.mxu0 %v8666_v59 }
 0x591   :  { %8619 = vmatpush1.bf16.msra.mxu1 %v8618_v34  ;;  %8669 = vmatprep.subr.bf16.mxu0 %v8668_v44  ;;  %v5310_v34 = vld [vmem:[%s10962_s8 + $0x200] sm:$0xff]  ;;  %v5022_v44 = vadd.f32 %v10360_v1, %v4667_v58  ;;  %v5245_v1 = vld [vmem:[%s10961_s7 + $0x38] sm:$0xff] }
 0x592   :  { %8621 = vmatprep.subr.bf16.mxu1 %v8620_v31  ;;  %v5315_v31 = vld [vmem:[%s10962_s8 + $0x228] sm:$0xff] }
 0x593   :  { %v8628_v25 = vpack.c.bf16 %v5317_v49, %v5315_v31  ;;  %v5547_v31 = vld [vmem:[%s10963_s9] sm:$0x3] }
 0x594   :  { %8671 = vmatpush3.bf16.msra.mxu0 %v8670_v50  ;;  %v5240_v50 = vld [vmem:[%s10961_s7 + $0x10] sm:$0xff]  ;;  %v5552_v49 = vrot.slane %v5547_v31, %v9137_v35 }
 0x595   :  { %8623 = vmatpush1.bf16.msra.mxu1 %v8622_v33  ;;  %8673 = vmatprep.subr.bf16.mxu0 %v8672_v30  ;;  %v8626_v33 = vpack.c.bf16 %v5312_v28, %v5310_v34  ;;  %v8646_v45 = vpack.c.bf16 %v5240_v50, %v5238_v56  ;;  %v5577_v34 = vld [vmem:[%s10964_s10 + $0x70] sm:$0xff]  ;;  %v5578_v28 = vld [vmem:[%s10964_s10 + $0x78] sm:$0xff] }
 0x596   :  { %8625 = vmatprep.subr.bf16.mxu1 %v8624_v27  ;;  %v5314_v27 = vld [vmem:[%s10962_s8 + $0x220] sm:$0xff]  ;;  %v5675_v35 = vld [vmem:[%s10966_s12 + $0x10] sm:$0xff] }
 0x597   :  { %v8630_v5 = vpack.c.bf16 %v5316_v7, %v5314_v27  ;;  %v5673_v27 = vld [vmem:[%s10966_s12] sm:$0xff]  ;;  %v5674_v7 = vld [vmem:[%s10966_s12 + $0x8] sm:$0xff] }
 0x598   :  { %8675 = vmatpush3.bf16.msra.mxu0 %v8674_v60  ;;  %v5244_v60 = vld [vmem:[%s10961_s7 + $0x30] sm:$0xff] }
 0x599   :  { %8677 = vmatprep.subr.bf16.mxu0 %v8676_v16  ;;  %v8792_v16 = vld [vmem:[%s10988_s21] sm:$0xff]  ;;  %s10991_s21 = sld [smem:[#allocation10_spill]] }
 0x5f6   :  { %v6396_v2 = vpop.f32.mrb[12].mxu1 }
 0x5f7   :  { %v6397_v61 = vpop.f32.mrb[13].mxu1 }
 0x5f8   :  { %v10705_v17 = vadd.f32 %v6397_v61, %v6396_v2  ;;  %v8648_v2 = vpack.c.bf16 %v5245_v1, %v5243_v32  ;;  %v5242_v61 = vld [vmem:[%s10961_s7 + $0x20] sm:$0xff]  ;;  %v5769_v32 = vld [vmem:[%s10968_s14 + $0x10] sm:$0xff]  ;;  %v5770_v1 = vld [vmem:[%s10968_s14 + $0x18] sm:$0xff] }
 0x616   :  { %v4950_v54 = vpop.f32.mrb[24].mxu0 }
 0x617   :  { %v8735_v10 = vadd.f32 %v4950_v54, %v4659_v21  ;;  %v4952_v26 = vpop.f32.mrb[25].mxu0  ;;  %v5576_v21 = vld [vmem:[%s10964_s10 + $0x68] sm:$0xff]  ;;  %v5593_v54 = vld [vmem:[%s10964_s10 + $0xf0] sm:$0xff] }
 0x618   :  { %v8736_v53 = vadd.f32 %v4952_v26, %v4663_v8  ;;  %v8678_v8 = vpack.c.bf16 %v5576_v21, %v5575_v20  ;;  %v5858_v20 = vld [vmem:[%s10970_s16 + $0x8] sm:$0xff] }
 0x619   :  { %v5235_v38 = vmax.f32 %v8735_v10, 0.0  ;;  %v5594_v10 = vld [vmem:[%s10964_s10 + $0xf8] sm:$0xff] }
 0x61a   :  { %v5236_v62 = vmax.f32 %v8736_v53, 0.0  ;;  %8679 = vmatpush3.bf16.msra.mxu0 %v8678_v8  ;;  %v8680_v26 = vpack.c.bf16 %v5594_v10, %v5593_v54  ;;  %v8682_v53 = vpack.c.bf16 %v5578_v28, %v5577_v34  ;;  %v5859_v34 = vld [vmem:[%s10970_s16 + $0x10] sm:$0xff]  ;;  %v5860_v28 = vld [vmem:[%s10970_s16 + $0x18] sm:$0xff] }
 0x61c   :  { %5398 = vmatprep.mubr.f32.mxu1 %v5236_v62  ;;  %8681 = vmatprep.subr.bf16.mxu0 %v8680_v26  ;;  %v5556_v62 = vrot.slane %v5547_v31, %v9145_v37  ;;  %v5676_v37 = vld [vmem:[%s10966_s12 + $0x18] sm:$0xff]  ;;  %v6043_v31 = vld [vmem:[%s10991_s21] ss:$0 sm:$0xff] }
 0x61d   :  { %5399 = vmatmul.mubr.f32.vlgmr.msra.gmra.mrb[14].mxu1 %v5235_v38  ;;  %v8688_v18 = vpack.c.bf16 %v5676_v37, %v5675_v35 }
 0x61e   :  { %8627 = vmatpush1.bf16.msra.mxu1 %v8626_v33  ;;  %5469 = vmatprep.mubr.f32.mxu1 %v8820_v0 }
 0x61f   :  { %8629 = vmatprep.subr.bf16.mxu1 %v8628_v25  ;;  %8683 = vmatpush3.bf16.msra.mxu0 %v8682_v53  ;;  %v8724_v53 = vpack.c.bf16 %v5860_v28, %v5859_v34 }
 0x620   :  { %8684 = vmatprep.subr.bf16.mxu0 %v8821_v9 }
 0x622   :  { %8631 = vmatpush1.bf16.msra.mxu1 %v8630_v5  ;;  %v8685_v5 = vpack.c.bf16 %v5674_v7, %v5673_v27  ;;  %v6045_v27 = vld [vmem:[%s10971_s17] ss:$0 sm:$0xff] }
 0x623   :  { %8633 = vmatprep.subr.bf16.mxu1 %v8632_v22 }
 0x626   :  { %8635 = vmatpush1.bf16.msra.mxu1 %v8634_v15  ;;  %v5679_v15 = vld [vmem:[%s10966_s12 + $0x30] sm:$0xff] }
 0x627   :  { %8637 = vmatprep.subr.bf16.mxu1 %v8636_v23  ;;  %v5680_v23 = vld [vmem:[%s10966_s12 + $0x38] sm:$0xff] }
 0x628   :  { %v8694_v19 = vpack.c.bf16 %v5680_v23, %v5679_v15 }
 0x62a   :  { %8639 = vmatpush1.bf16.msra.mxu1 %v8638_v12  ;;  %v5683_v12 = vld [vmem:[%s10966_s12 + $0x50] sm:$0xff] }
 0x62b   :  { %8641 = vmatprep.subr.bf16.mxu1 %v8640_v43  ;;  %v5684_v43 = vld [vmem:[%s10966_s12 + $0x58] sm:$0xff] }
 0x62c   :  { %v8700_v51 = vpack.c.bf16 %v5684_v43, %v5683_v12 }
 0x62e   :  { %8643 = vmatpush1.bf16.msra.mxu1 %v8642_v52  ;;  %v5687_v52 = vld [vmem:[%s10966_s12 + $0x70] sm:$0xff] }
 0x62f   :  { %8645 = vmatprep.subr.bf16.mxu1 %v8644_v57  ;;  %v5688_v57 = vld [vmem:[%s10966_s12 + $0x78] sm:$0xff] }
 0x630   :  { %v8706_v58 = vpack.c.bf16 %v5688_v57, %v5687_v52 }
 0x636   :  { %v6361_v55 = vpop.f32.mrb[26].mxu0 }
 0x637   :  { %v6362_v59 = vpop.f32.mrb[27].mxu0 }
 0x638   :  { %v6363_v36 = vadd.f32 %v6362_v59, %v6361_v55  ;;  %v6041_v59 = vld [vmem:[%s10965_s11] ss:$0 sm:$0xff] }
 0x63a   :  { %v5092_v11 = vadd.f32 %v6363_v36, %v5022_v44 }
 0x63c   :  { %v5162_v41 = vadd.f32 %v10705_v17, %v5092_v11  ;;  %v8650_v17 = vpack.c.bf16 %v5244_v60, %v5242_v61  ;;  %v5767_v11 = vld [vmem:[%s10968_s14] sm:$0xff]  ;;  %v5774_v61 = vld [vmem:[%s10968_s14 + $0x38] sm:$0xff] }
 0x656   :  { %v5231_v30 = vpop.f32.mrb[28].mxu0 }
 0x657   :  { %v5232_v63 = vadd.f32 %v5231_v30, %v5162_v41  ;;  %v6519_v3 = vpop.f32.mrb[29].mxu0  ;;  %v5768_v41 = vld [vmem:[%s10968_s14 + $0x8] sm:$0xff] }
 0x658   :  { %v8709_v50 = vpack.c.bf16 %v5768_v41, %v5767_v11  ;;  %v5771_v3 = vld [vmem:[%s10968_s14 + $0x20] sm:$0xff] }
 0x659   :  { %v5237_v13 = vmax.f32 %v5232_v63, 0.0  ;;  %v8712_v63 = vpack.c.bf16 %v5770_v1, %v5769_v32 }
 0x65b   :  { %6039 = vmatmul.mubr.msk.f32.vlgmr.msra.gmra.mrb[14].mxu1 %vm5330_vm2, %v5237_v13 }
 0x65c   :  { %8647 = vmatpush1.bf16.msra.mxu1 %v8646_v45  ;;  %5540 = vmatprep.mubr.f32.mxu1 %v8820_v0  ;;  %v5772_v45 = vld [vmem:[%s10968_s14 + $0x28] sm:$0xff] }
 0x65d   :  { %8649 = vmatprep.subr.bf16.mxu1 %v8648_v2  ;;  %v8715_v13 = vpack.c.bf16 %v5772_v45, %v5771_v3  ;;  %v5773_v2 = vld [vmem:[%s10968_s14 + $0x30] sm:$0xff] }
 0x65e   :  { %v8718_v60 = vpack.c.bf16 %v5774_v61, %v5773_v2 }
 0x660   :  { %8651 = vmatpush1.bf16.msra.mxu1 %v8650_v17  ;;  %v6042_v17 = vld [vmem:[%s10967_s13] ss:$0 sm:$0xff] }
 0x661   :  { %8726 = vmatprep.subr.bf16.mxu1 %v8821_v9 }
 0x663   :  { %6040 = vmatmul.mubr.msk.f32.vlgmr.msra.gmra.mrb[14].mxu1 %vm210_vm0, %v8792_v16  ;;  %v5857_v16 = vld [vmem:[%s10970_s16] sm:$0xff] }
 0x664   :  { %6589 = vmatprep.mubr.msk.f32.mxu1 %vm8822_vm1, %v8820_v0  ;;  %v8721_v10 = vpack.c.bf16 %v5858_v20, %v5857_v16 }
 0x736   :  { %v5542_v33 = vpop.f32.mrb[14].mxu1 }
 0x737   :  { %v5559_v38 = vadd.f32 %v5552_v49, %v5542_v33  ;;  %v5544_v25 = vpop.f32.mrb[15].mxu1 }
 0x738   :  { %v5560_v40 = vadd.f32 %v5556_v62, %v5544_v25 }
 0x739   :  { %v5561_v22 = vmax.f32 %v5559_v38, 0.0  ;;  %v5943_v38 = vld [vmem:[%s10972_s18 + $0x8] sm:$0xff] }
 0x73a   :  { %v5562_v42 = vmax.f32 %v5560_v40, 0.0 }
 0x73c   :  { %5666 = vmatprep.mubr.f32.mxu0 %v5562_v42 }
 0x73d   :  { %5667 = vmatmul.mubr.f32.vlgmr.msra.gmra.mrb[30].mxu0 %v5561_v22  ;;  %v6047_v22 = vld [vmem:[%s10973_s19] ss:$0 sm:$0xff] }
 0x73e   :  { %8686 = vmatpush3.bf16.msra.mxu0 %v8685_v5  ;;  %6552 = vmatprep.mubr.msk.f32.mxu0 %vm8822_vm1, %v8820_v0 }
 0x73f   :  { %8687 = vmatprep.subr.bf16.mxu0 %v8821_v9 }
 0x742   :  { %8689 = vmatpush3.bf16.msra.mxu0 %v8688_v18 }
 0x743   :  { %8690 = vmatprep.subr.bf16.mxu0 %v8821_v9 }
 0x746   :  { %8692 = vmatpush3.bf16.msra.mxu0 %v8691_v47 }
 0x747   :  { %8693 = vmatprep.subr.bf16.mxu0 %v8821_v9 }
 0x74a   :  { %8695 = vmatpush3.bf16.msra.mxu0 %v8694_v19 }
 0x74b   :  { %8696 = vmatprep.subr.bf16.mxu0 %v8821_v9 }
 0x74e   :  { %8698 = vmatpush3.bf16.msra.mxu0 %v8697_v39 }
 0x74f   :  { %8699 = vmatprep.subr.bf16.mxu0 %v8821_v9 }
 0x752   :  { %8701 = vmatpush3.bf16.msra.mxu0 %v8700_v51 }
 0x753   :  { %8702 = vmatprep.subr.bf16.mxu0 %v8821_v9 }
 0x756   :  { %8704 = vmatpush3.bf16.msra.mxu0 %v8703_v14 }
 0x757   :  { %8705 = vmatprep.subr.bf16.mxu0 %v8821_v9 }
 0x75a   :  { %8707 = vmatpush3.bf16.msra.mxu0 %v8706_v58 }
 0x75b   :  { %8708 = vmatprep.subr.bf16.mxu0 %v8821_v9 }
 0x810   :  { %v6448_v55 = vpop.f32.mrb[30].mxu0 }
 0x811   :  { %v6449_v44 = vpop.f32.mrb[31].mxu0 }
 0x812   :  { %v6450_v36 = vadd.f32 %v6449_v44, %v6448_v55 }
 0x814   :  { %v5669_v56 = vadd.f32 %v6450_v36, %v6041_v59 }
 0x816   :  { %v5672_v30 = vmax.f32 %v5669_v56, 0.0 }
 0x818   :  { %6553 = vmatmul.mubr.f32.vlgmr.msra.gmra.mrb[32].mxu0 %v5672_v30 }
 0x819   :  { %8710 = vmatpush3.bf16.msra.mxu0 %v8709_v50  ;;  %6571 = vmatprep.mubr.msk.f32.mxu0 %vm8822_vm1, %v8820_v0 }
 0x81a   :  { %8711 = vmatprep.subr.bf16.mxu0 %v8821_v9 }
 0x81d   :  { %8713 = vmatpush3.bf16.msra.mxu0 %v8712_v63 }
 0x81e   :  { %8714 = vmatprep.subr.bf16.mxu0 %v8821_v9 }
 0x821   :  { %8716 = vmatpush3.bf16.msra.mxu0 %v8715_v13 }
 0x822   :  { %8717 = vmatprep.subr.bf16.mxu0 %v8821_v9 }
 0x825   :  { %8719 = vmatpush3.bf16.msra.mxu0 %v8718_v60 }
 0x826   :  { %8720 = vmatprep.subr.bf16.mxu0 %v8821_v9 }
 0x8eb   :  { %v5762_v21 = vpop.f32.mrb[32].mxu0 }
 0x8ec   :  { %v5763_v8 = vadd.f32 %v6042_v17, %v5762_v21  ;;  %v6554_v54 = vpop.f32.mrb[33].mxu0 }
 0x8ee   :  { %v5766_v26 = vmax.f32 %v5763_v8, 0.0 }
 0x8f0   :  { %6572 = vmatmul.mubr.msk.f32.vlgmr.msra.gmra.mrb[34].mxu0 %vm5782_vm3, %v5766_v26 }
 0x8f1   :  { %8722 = vmatpush3.bf16.msra.mxu0 %v8721_v10  ;;  %6582 = vmatprep.mubr.msk.f32.mxu0 %vm8822_vm1, %v8820_v0 }
 0x8f2   :  { %8723 = vmatprep.subr.bf16.mxu0 %v8821_v9  ;;  %v5942_v9 = vld [vmem:[%s10972_s18] sm:$0xff] }
 0x8f3   :  { %v8727_v25 = vpack.c.bf16 %v5943_v38, %v5942_v9 }
 0x8f5   :  { %8725 = vmatpush3.bf16.msra.mxu0 %v8724_v53  ;;  %8728 = vmatpush3.bf16.msra.mxu1 %v8727_v25 }
 0x9c3   :  { %v5852_v49 = vpop.f32.mrb[34].mxu0 }
 0x9c4   :  { %v5853_v62 = vadd.f32 %v6043_v31, %v5852_v49  ;;  %v6573_v33 = vpop.f32.mrb[35].mxu0 }
 0x9c6   :  { %v5856_v0 = vmax.f32 %v5853_v62, 0.0 }
 0x9c8   :  { %6583 = vmatmul.mubr.msk.f32.vlgmr.msra.gmra.mrb[36].mxu0 %vm210_vm0, %v5856_v0 }
 0xa9b   :  { %v5937_v7 = vpop.f32.mrb[36].mxu0 }
 0xa9c   :  { %v5938_v40 = vadd.f32 %v6045_v27, %v5937_v7  ;;  %v6584_v42 = vpop.f32.mrb[37].mxu0 }
 0xa9e   :  { %v5941_v5 = vmax.f32 %v5938_v40, 0.0 }
 0xaa0   :  { %6590 = vmatmul.mubr.msk.f32.vlgmr.msra.gmra.mrb[16].mxu1 %vm5951_vm4, %v5941_v5 }
 0xb73   :  { %v6021_v35 = vpop.f32.mrb[16].mxu1 }
 0xb74   :  { %v6022_v37 = vadd.f32 %v6047_v22, %v6021_v35  ;;  %v6591_v18 = vpop.f32.mrb[17].mxu1 }
 0xb76   :  { %6026 = vst.msk [vmem:[%s10974_s20] sm:$0xff] %vm6025_vm5, %v6022_v37 }
 0xb77   :  { %6031 = vsyncpa [#allocation3], 1 }

</bundles_post_ra>
